<compile_context>
chip_gen: v6e
topology: v6e:2x2x1
jax: 0.10.0
libtpu: 0.0.40
codegen_flags: <defaults>
</compile_context>

<pallas_src>
import jax
import jax.numpy as jnp
from jax.experimental import pallas as pl
from jax.experimental.pallas import tpu as pltpu

_VMEM_LIMIT = 32 * 1024 * 1024     # safe on v5e(128M)/v6e(128M)/v7x(64M) physical
BN_EPS = 1e-5


# ------------------------------- helpers ------------------------------------

def _round_up(x, m):
    return (x + m - 1) // m * m


def _pick_row_tile(m, cap):
    """Pick a row-tile (multiple of 8) and the padded row count it divides."""
    mp = _round_up(max(m, 8), 8)
    if mp >= cap:
        mp = _round_up(mp, cap)
        return cap, mp
    return mp, mp


def _fold(C, M):
    """Fold spatial rows into lanes when C < 128 so stores are lane dense."""
    if C < 128 and 128 % C == 0 and M % (128 // C) == 0:
        return 128 // C
    return 1


# ----------------------------- Pallas kernels -------------------------------

def conv_matmul_kernel(a_ref, b_ref, y_ref, stat_ref):
    """bf16 MXU matmul over a full-K block + fused per-tile column stats.

    stat_ref block is (8, N): row 0 = column sum, row 1 = column sum-of-squares.
    """
    acc = jnp.dot(a_ref[...], b_ref[...], preferred_element_type=jnp.float32)
    y_ref[...] = acc.astype(y_ref.dtype)
    n = acc.shape[1]
    s = jnp.sum(acc, axis=0, keepdims=True)           # (1, N)
    ss = jnp.sum(acc * acc, axis=0, keepdims=True)    # (1, N)
    row = jax.lax.broadcasted_iota(jnp.int32, (8, n), 0)
    stat_ref[...] = jnp.where(row == 0, s, jnp.where(row == 1, ss, 0.0))


def _make_bn_kernel(do_relu, res_mode):
    """Fused BN affine apply.

    res_mode: 0 = no residual
              1 = pre-activated residual (plain add)
              2 = raw residual with its own BN scale/bias (downsample branch)
    """
    def kernel(*refs):
        if res_mode == 0:
            x_ref, s_ref, b_ref, o_ref = refs
        elif res_mode == 1:
            x_ref, s_ref, b_ref, r_ref, o_ref = refs
        else:
            x_ref, s_ref, b_ref, r_ref, rs_ref, rb_ref, o_ref = refs
        y = x_ref[...].astype(jnp.float32) * s_ref[...] + b_ref[...]
        if res_mode == 1:
            y = y + r_ref[...].astype(jnp.float32)
        elif res_mode == 2:
            y = y + (r_ref[...].astype(jnp.float32) * rs_ref[...] + rb_ref[...])
        if do_relu:
            y = jnp.maximum(y, 0.0)
        o_ref[...] = y.astype(o_ref.dtype)
    return kernel


def _make_maxpool_kernel(n_windows):
    def kernel(*refs):
        o_ref = refs[-1]
        acc = refs[0][...]
        for r in refs[1:n_windows]:
            acc = jnp.maximum(acc, r[...])
        o_ref[...] = acc
    return kernel


# ------------------------------ op wrappers ----------------------------------

def conv2d_bn_stats(x, w, stride, pad):
    """NHWC conv (bias-free) via im2col + full-K bf16 Pallas MXU matmul.

    Returns (y_bf16 NHWC, mean_f32 (Cout,), var_f32 (Cout,)).  mean/var are
    train-mode batch statistics accumulated from column sums produced in the
    matmul epilogue (no extra HBM pass over y).
    """
    B, H, W, Cin = x.shape
    Cout, _, Kh, Kw = w.shape
    Ho = (H + 2 * pad - Kh) // stride + 1
    Wo = (W + 2 * pad - Kw) // stride + 1

    # TODO(synk): the Kh*Kw im2col gather is still materialized once in HBM
    # (as one fused XLA producer feeding pallas_call); folding the gather into
    # the matmul pipeline with per-(kh,kw) DMA would remove that traffic too.
    xp = jnp.pad(x, ((0, 0), (pad, pad), (pad, pad), (0, 0)))
    cols = []
    for kh in range(Kh):
        for kw in range(Kw):
            cols.append(xp[:, kh:kh + stride * (Ho - 1) + 1:stride,
                           kw:kw + stride * (Wo - 1) + 1:stride, :])
    patches = jnp.concatenate(cols, axis=-1).reshape(B * Ho * Wo, Kh * Kw * Cin)
    patches = patches.astype(jnp.bfloat16)
    wmat = jnp.transpose(w, (2, 3, 1, 0)).reshape(Kh * Kw * Cin, Cout)
    wmat = wmat.astype(jnp.bfloat16)

    M, K = patches.shape
    N = Cout
    tm, Mp = _pick_row_tile(M, cap=512)
    if Mp != M:
        patches = jnp.pad(patches, ((0, Mp - M), (0, 0)))
    nmt = Mp // tm

    y, stats = pl.pallas_call(
        conv_matmul_kernel,
        out_shape=(jax.ShapeDtypeStruct((Mp, N), jnp.bfloat16),
                   jax.ShapeDtypeStruct((nmt * 8, N), jnp.float32)),
        grid_spec=pltpu.PrefetchScalarGridSpec(
            num_scalar_prefetch=0,
            grid=(nmt,),
            in_specs=[pl.BlockSpec((tm, K), lambda i: (i, 0)),
                      pl.BlockSpec((K, N), lambda i: (0, 0))],
            out_specs=[pl.BlockSpec((tm, N), lambda i: (i, 0)),
                       pl.BlockSpec((8, N), lambda i: (i, 0))]),
        compiler_params=pltpu.CompilerParams(
            dimension_semantics=("parallel",),
            vmem_limit_bytes=_VMEM_LIMIT),
    )(patches, wmat)

    if Mp != M:
        y = y[:M]
    st = stats.reshape(nmt, 8, N)
    inv_m = 1.0 / float(M)
    mean = jnp.sum(st[:, 0, :], axis=0) * inv_m
    ex2 = jnp.sum(st[:, 1, :], axis=0) * inv_m
    var = jnp.maximum(ex2 - mean * mean, 0.0)                 # biased (train mode)
    return y.reshape(B, Ho, Wo, Cout), mean, var


def bn_apply(y, mean, var, gamma, beta, relu=True, residual=None,
             residual_stats=None):
    """Gridded BN normalize (batch stats) + optional residual + ReLU, bf16 out.

    If residual_stats=(mean_d, var_d, gamma_d, beta_d) is given, `residual` is
    a raw conv output and its BN is fused into this kernel (downsample branch).
    """
    B, H, W, C = y.shape
    scale = gamma.astype(jnp.float32) * jax.lax.rsqrt(var + BN_EPS)
    bias = beta.astype(jnp.float32) - mean * scale

    M = B * H * W
    fold = _fold(C, M)
    Cf, Mf = C * fold, M // fold
    x2 = y.reshape(Mf, Cf)
    sc = jnp.tile(scale, fold).reshape(1, Cf)
    bs = jnp.tile(bias, fold).reshape(1, Cf)

    res_mode = 0
    r2 = rsc = rbs = None
    if residual is not None:
        r2 = residual.reshape(Mf, Cf)
        if residual_stats is None:
            res_mode = 1
        else:
            res_mode = 2
            md, vd, gd, bd = residual_stats
            rs = gd.astype(jnp.float32) * jax.lax.rsqrt(vd + BN_EPS)
            rb = bd.astype(jnp.float32) - md * rs
            rsc = jnp.tile(rs, fold).reshape(1, Cf)
            rbs = jnp.tile(rb, fold).reshape(1, Cf)

    tmf, Mp = _pick_row_tile(Mf, cap=1024)
    if Mp != Mf:
        x2 = jnp.pad(x2, ((0, Mp - Mf), (0, 0)))
        if r2 is not None:
            r2 = jnp.pad(r2, ((0, Mp - Mf), (0, 0)))
    nmt = Mp // tmf

    row_spec = pl.BlockSpec((tmf, Cf), lambda i: (i, 0))
    vec_spec = pl.BlockSpec((1, Cf), lambda i: (0, 0))
    in_specs = [row_spec, vec_spec, vec_spec]
    args = [x2, sc, bs]
    if res_mode >= 1:
        in_specs.append(row_spec)
        args.append(r2)
    if res_mode == 2:
        in_specs += [vec_spec, vec_spec]
        args += [rsc, rbs]

    out = pl.pallas_call(
        _make_bn_kernel(relu, res_mode),
        out_shape=jax.ShapeDtypeStruct((Mp, Cf), jnp.bfloat16),
        grid_spec=pltpu.PrefetchScalarGridSpec(
            num_scalar_prefetch=0,
            grid=(nmt,),
            in_specs=in_specs,
            out_specs=row_spec),
        compiler_params=pltpu.CompilerParams(
            dimension_semantics=("parallel",),
            vmem_limit_bytes=_VMEM_LIMIT),
    )(*args)
    if Mp != Mf:
        out = out[:Mf]
    return out.reshape(B, H, W, C)


def maxpool2d(x, k=3, stride=2, pad=1):
    B, H, W, C = x.shape
    Ho = (H + 2 * pad - k) // stride + 1
    Wo = (W + 2 * pad - k) // stride + 1
    xp = jnp.pad(x, ((0, 0), (pad, pad), (pad, pad), (0, 0)),
                 constant_values=-jnp.inf)
    M = B * Ho * Wo
    fold = _fold(C, M)
    Cf, Mf = C * fold, M // fold

    wins = []
    for kh in range(k):
        for kw in range(k):
            win = xp[:, kh:kh + stride * (Ho - 1) + 1:stride,
                     kw:kw + stride * (Wo - 1) + 1:stride, :]
            wins.append(win.reshape(Mf, Cf))

    tmf, Mp = _pick_row_tile(Mf, cap=1024)
    if Mp != Mf:
        wins = [jnp.pad(w_, ((0, Mp - Mf), (0, 0))) for w_ in wins]
    nmt = Mp // tmf
    row_spec = pl.BlockSpec((tmf, Cf), lambda i: (i, 0))

    out = pl.pallas_call(
        _make_maxpool_kernel(len(wins)),
        out_shape=jax.ShapeDtypeStruct((Mp, Cf), x.dtype),
        grid_spec=pltpu.PrefetchScalarGridSpec(
            num_scalar_prefetch=0,
            grid=(nmt,),
            in_specs=[row_spec] * len(wins),
            out_specs=row_spec),
        compiler_params=pltpu.CompilerParams(
            dimension_semantics=("parallel",),
            vmem_limit_bytes=_VMEM_LIMIT),
    )(*wins)
    if Mp != Mf:
        out = out[:Mf]
    return out.reshape(B, Ho, Wo, C)


# -------------------------------- model --------------------------------------

def basic_block(x, p, stride, downsample):
    y1, m1, v1 = conv2d_bn_stats(x, p["conv1_w"], stride, 1)
    out = bn_apply(y1, m1, v1, p["bn1_g"], p["bn1_b"], relu=True)
    y2, m2, v2 = conv2d_bn_stats(out, p["conv2_w"], 1, 1)
    if downsample:
        yd, md, vd = conv2d_bn_stats(x, p["down_w"], stride, 0)
        # bn2 + downsample-bn + residual add + relu fused in one Pallas kernel
        return bn_apply(y2, m2, v2, p["bn2_g"], p["bn2_b"], relu=True,
                        residual=yd,
                        residual_stats=(md, vd, p["down_g"], p["down_b"]))
    # bn2 + residual add + relu fused in one gridded Pallas kernel
    return bn_apply(y2, m2, v2, p["bn2_g"], p["bn2_b"], relu=True, residual=x)


def resnet_forward(x_nchw, params):
    x = jnp.transpose(x_nchw, (0, 2, 3, 1)).astype(jnp.bfloat16)  # NCHW -> NHWC
    y, m, v = conv2d_bn_stats(x, params["conv1_w"], 2, 3)         # 7x7 /2
    x = bn_apply(y, m, v, params["bn1_g"], params["bn1_b"], relu=True)
    x = maxpool2d(x, 3, 2, 1)                                     # 3x3 /2
    x = basic_block(x, params["layer1_0"], 1, False)
    x = basic_block(x, params["layer1_1"], 1, False)
    x = basic_block(x, params["layer2_0"], 2, True)
    x = basic_block(x, params["layer2_1"], 1, False)
    x = basic_block(x, params["layer3_0"], 2, True)
    x = basic_block(x, params["layer3_1"], 1, False)
    B, H, W, C = x.shape                                          # C == 256
    x = jnp.transpose(x, (0, 3, 1, 2)).astype(jnp.float32)        # back to NCHW
    return x.reshape(B, 256, H * W)                               # x.view(B,256,-1)


def init_params(key):
    cnt = [0]

    def nk():
        cnt[0] += 1
        return jax.random.fold_in(key, cnt[0])

    def conv_w(cout, cin, k):
        return jax.random.normal(nk(), (cout, cin, k, k), jnp.float32) * 0.05

    def block(cin, cout, downsample):
        p = {
            "conv1_w": conv_w(cout, cin, 3),
            "bn1_g": jnp.ones((cout,), jnp.float32),
            "bn1_b": jnp.zeros((cout,), jnp.float32),
            "conv2_w": conv_w(cout, cout, 3),
            "bn2_g": jnp.ones((cout,), jnp.float32),
            "bn2_b": jnp.zeros((cout,), jnp.float32),
        }
        if downsample:
            p["down_w"] = conv_w(cout, cin, 1)
            p["down_g"] = jnp.ones((cout,), jnp.float32)
            p["down_b"] = jnp.zeros((cout,), jnp.float32)
        return p

    return {
        "conv1_w": conv_w(64, 3, 7),
        "bn1_g": jnp.ones((64,), jnp.float32),
        "bn1_b": jnp.zeros((64,), jnp.float32),
        "layer1_0": block(64, 64, False),
        "layer1_1": block(64, 64, False),
        "layer2_0": block(64, 128, True),
        "layer2_1": block(128, 128, False),
        "layer3_0": block(128, 256, True),
        "layer3_1": block(256, 256, False),
    }


if __name__ == "__main__":
    key = jax.random.PRNGKey(0)
    params = init_params(jax.random.fold_in(key, 1))
    x = jax.random.normal(jax.random.fold_in(key, 2), (2, 3, 32, 32), jnp.float32)

    fwd = jax.jit(resnet_forward)
    out = fwd(x, params)
    out = jax.block_until_ready(out)

    assert out.shape == (2, 256, 4), out.shape
    assert bool(jnp.all(jnp.isfinite(out)))
    print("KERNEL_OK")
</pallas_src>

<mosaic_0001>
module attributes {stable_mosaic.version = 11 : i64} {
  func.func @conv_matmul_kernel(%arg0: i32, %arg1: memref<512x147xbf16, #tpu.memory_space<vmem>>, %arg2: memref<147x64xbf16, #tpu.memory_space<vmem>>, %arg3: memref<512x64xbf16, #tpu.memory_space<vmem>>, %arg4: memref<8x64xf32, #tpu.memory_space<vmem>>) attributes {dimension_semantics = [#tpu.dimension_semantics<parallel>], iteration_bounds = array<i64: 1>, scalar_prefetch = 0 : i64, scratch_operands = 0 : i64, tpu.core_type = #tpu.core_type<tc>, window_params = [{transform_indices = @transform_0, window_bounds = array<i64: 512, 147>}, {pipeline_mode = #tpu.pipeline_mode<synchronous>, transform_indices = @transform_1, window_bounds = array<i64: 147, 64>}, {transform_indices = @transform_2, window_bounds = array<i64: 512, 64>}, {transform_indices = @transform_3, window_bounds = array<i64: 8, 64>}]} {
    %c0 = arith.constant 0 : index
    %c0_0 = arith.constant 0 : index
    %0 = vector.load %arg1[%c0, %c0_0] : memref<512x147xbf16, #tpu.memory_space<vmem>>, vector<512x147xbf16>
    %c0_1 = arith.constant 0 : index
    %c0_2 = arith.constant 0 : index
    %1 = vector.load %arg2[%c0_1, %c0_2] : memref<147x64xbf16, #tpu.memory_space<vmem>>, vector<147x64xbf16>
    %cst = arith.constant dense<0.000000e+00> : vector<512x64xf32>
    %2 = tpu.matmul %0, %1, %cst {dimension_numbers = #tpu.dot_dimension_numbers<[1], [0], [0], [1], [0, 0, 1, 1], [], []>} : vector<512x147xbf16>, vector<147x64xbf16>, vector<512x64xf32> -> vector<512x64xf32>
    %3 = arith.truncf %2 : vector<512x64xf32> to vector<512x64xbf16>
    %c0_3 = arith.constant 0 : index
    %c0_4 = arith.constant 0 : index
    %4 = vector.load %arg3[%c0_3, %c0_4] : memref<512x64xbf16, #tpu.memory_space<vmem>>, vector<512x64xbf16>
    tpu.vector_store %arg3[%c0_3, %c0_4], %3 {strides = array<i32>} : memref<512x64xbf16, #tpu.memory_space<vmem>>, vector<512x64xbf16>,
    %cst_5 = arith.constant dense<0.000000e+00> : vector<64xf32>
    %5 = vector.multi_reduction <add>, %2, %cst_5 [0] : vector<512x64xf32> to vector<64xf32>
    %6 = vector.shape_cast %5 : vector<64xf32> to vector<1x64xf32>
    %7 = arith.mulf %2, %2 : vector<512x64xf32>
    %cst_6 = arith.constant dense<0.000000e+00> : vector<64xf32>
    %8 = vector.multi_reduction <add>, %7, %cst_6 [0] : vector<512x64xf32> to vector<64xf32>
    %9 = vector.shape_cast %8 : vector<64xf32> to vector<1x64xf32>
    %10 = tpu.iota {dimensions = array<i32: 0>} : vector<8x64xi32>
    %c0_i32 = arith.constant 0 : i32
    %11 = vector.broadcast %c0_i32 : i32 to vector<8x64xi32>
    %12 = arith.cmpi eq, %10, %11 : vector<8x64xi32>
    %c1_i32 = arith.constant 1 : i32
    %13 = vector.broadcast %c1_i32 : i32 to vector<8x64xi32>
    %14 = arith.cmpi eq, %10, %13 : vector<8x64xi32>
    %cst_7 = arith.constant 0.000000e+00 : f32
    %15 = vector.shape_cast %9 : vector<1x64xf32> to vector<1x64xf32>
    %16 = vector.broadcast %15 : vector<1x64xf32> to vector<8x64xf32>
    %17 = vector.broadcast %cst_7 : f32 to vector<8x64xf32>
    %18 = arith.select %14, %16, %17 : vector<8x64xi1>, vector<8x64xf32>
    %19 = vector.shape_cast %6 : vector<1x64xf32> to vector<1x64xf32>
    %20 = vector.broadcast %19 : vector<1x64xf32> to vector<8x64xf32>
    %21 = arith.select %12, %20, %18 : vector<8x64xi1>, vector<8x64xf32>
    %c0_8 = arith.constant 0 : index
    %c0_9 = arith.constant 0 : index
    %22 = vector.load %arg4[%c0_8, %c0_9] : memref<8x64xf32, #tpu.memory_space<vmem>>, vector<8x64xf32>
    tpu.vector_store %arg4[%c0_8, %c0_9], %21 {strides = array<i32>} : memref<8x64xf32, #tpu.memory_space<vmem>>, vector<8x64xf32>,
    return
  }
  func.func @transform_0(%arg0: i32) -> (i32, i32) {
    %c0_i32 = arith.constant 0 : i32
    %c0_i32_0 = arith.constant 0 : i32
    return %arg0, %c0_i32 : i32, i32
  }
  func.func @transform_1(%arg0: i32) -> (i32, i32) {
    %c0_i32 = arith.constant 0 : i32
    %c0_i32_0 = arith.constant 0 : i32
    %c0_i32_1 = arith.constant 0 : i32
    return %c0_i32, %c0_i32_0 : i32, i32
  }
  func.func @transform_2(%arg0: i32) -> (i32, i32) {
    %c0_i32 = arith.constant 0 : i32
    %c0_i32_0 = arith.constant 0 : i32
    return %arg0, %c0_i32 : i32, i32
  }
  func.func @transform_3(%arg0: i32) -> (i32, i32) {
    %c0_i32 = arith.constant 0 : i32
    %c0_i32_0 = arith.constant 0 : i32
    return %arg0, %c0_i32 : i32, i32
  }
}

module attributes {stable_mosaic.version = 11 : i64} {
  func.func @kernel(%arg0: i32, %arg1: memref<256x128xbf16, #tpu.memory_space<vmem>>, %arg2: memref<1x128xf32, #tpu.memory_space<vmem>>, %arg3: memref<1x128xf32, #tpu.memory_space<vmem>>, %arg4: memref<256x128xbf16, #tpu.memory_space<vmem>>) attributes {dimension_semantics = [#tpu.dimension_semantics<parallel>], iteration_bounds = array<i64: 1>, scalar_prefetch = 0 : i64, scratch_operands = 0 : i64, tpu.core_type = #tpu.core_type<tc>, window_params = [{transform_indices = @transform_0, window_bounds = array<i64: 256, 128>}, {pipeline_mode = #tpu.pipeline_mode<synchronous>, transform_indices = @transform_1, window_bounds = array<i64: 1, 128>}, {pipeline_mode = #tpu.pipeline_mode<synchronous>, transform_indices = @transform_2, window_bounds = array<i64: 1, 128>}, {transform_indices = @transform_3, window_bounds = array<i64: 256, 128>}]} {
    %c0 = arith.constant 0 : index
    %c0_0 = arith.constant 0 : index
    %0 = vector.load %arg1[%c0, %c0_0] : memref<256x128xbf16, #tpu.memory_space<vmem>>, vector<256x128xbf16>
    %1 = arith.extf %0 : vector<256x128xbf16> to vector<256x128xf32>
    %c0_1 = arith.constant 0 : index
    %c0_2 = arith.constant 0 : index
    %2 = vector.load %arg2[%c0_1, %c0_2] : memref<1x128xf32, #tpu.memory_space<vmem>>, vector<1x128xf32>
    %3 = vector.broadcast %2 : vector<1x128xf32> to vector<256x128xf32>
    %4 = arith.mulf %1, %3 : vector<256x128xf32>
    %c0_3 = arith.constant 0 : index
    %c0_4 = arith.constant 0 : index
    %5 = vector.load %arg3[%c0_3, %c0_4] : memref<1x128xf32, #tpu.memory_space<vmem>>, vector<1x128xf32>
    %6 = vector.broadcast %5 : vector<1x128xf32> to vector<256x128xf32>
    %7 = arith.addf %4, %6 : vector<256x128xf32>
    %cst = arith.constant 0.000000e+00 : f32
    %8 = vector.broadcast %cst : f32 to vector<256x128xf32>
    %9 = arith.maximumf %7, %8 : vector<256x128xf32>
    %10 = arith.truncf %9 : vector<256x128xf32> to vector<256x128xbf16>
    %c0_5 = arith.constant 0 : index
    %c0_6 = arith.constant 0 : index
    %11 = vector.load %arg4[%c0_5, %c0_6] : memref<256x128xbf16, #tpu.memory_space<vmem>>, vector<256x128xbf16>
    tpu.vector_store %arg4[%c0_5, %c0_6], %10 {strides = array<i32>} : memref<256x128xbf16, #tpu.memory_space<vmem>>, vector<256x128xbf16>,
    return
  }
  func.func @transform_0(%arg0: i32) -> (i32, i32) {
    %c0_i32 = arith.constant 0 : i32
    %c0_i32_0 = arith.constant 0 : i32
    return %arg0, %c0_i32 : i32, i32
  }
  func.func @transform_1(%arg0: i32) -> (i32, i32) {
    %c0_i32 = arith.constant 0 : i32
    %c0_i32_0 = arith.constant 0 : i32
    %c0_i32_1 = arith.constant 0 : i32
    return %c0_i32, %c0_i32_0 : i32, i32
  }
  func.func @transform_2(%arg0: i32) -> (i32, i32) {
    %c0_i32 = arith.constant 0 : i32
    %c0_i32_0 = arith.constant 0 : i32
    %c0_i32_1 = arith.constant 0 : i32
    return %c0_i32, %c0_i32_0 : i32, i32
  }
  func.func @transform_3(%arg0: i32) -> (i32, i32) {
    %c0_i32 = arith.constant 0 : i32
    %c0_i32_0 = arith.constant 0 : i32
    return %arg0, %c0_i32 : i32, i32
  }
}

module attributes {stable_mosaic.version = 11 : i64} {
  func.func @kernel(%arg0: i32, %arg1: memref<64x128xbf16, #tpu.memory_space<vmem>>, %arg2: memref<64x128xbf16, #tpu.memory_space<vmem>>, %arg3: memref<64x128xbf16, #tpu.memory_space<vmem>>, %arg4: memref<64x128xbf16, #tpu.memory_space<vmem>>, %arg5: memref<64x128xbf16, #tpu.memory_space<vmem>>, %arg6: memref<64x128xbf16, #tpu.memory_space<vmem>>, %arg7: memref<64x128xbf16, #tpu.memory_space<vmem>>, %arg8: memref<64x128xbf16, #tpu.memory_space<vmem>>, %arg9: memref<64x128xbf16, #tpu.memory_space<vmem>>, %arg10: memref<64x128xbf16, #tpu.memory_space<vmem>>) attributes {dimension_semantics = [#tpu.dimension_semantics<parallel>], iteration_bounds = array<i64: 1>, scalar_prefetch = 0 : i64, scratch_operands = 0 : i64, tpu.core_type = #tpu.core_type<tc>, window_params = [{transform_indices = @transform_0, window_bounds = array<i64: 64, 128>}, {transform_indices = @transform_1, window_bounds = array<i64: 64, 128>}, {transform_indices = @transform_2, window_bounds = array<i64: 64, 128>}, {transform_indices = @transform_3, window_bounds = array<i64: 64, 128>}, {transform_indices = @transform_4, window_bounds = array<i64: 64, 128>}, {transform_indices = @transform_5, window_bounds = array<i64: 64, 128>}, {transform_indices = @transform_6, window_bounds = array<i64: 64, 128>}, {transform_indices = @transform_7, window_bounds = array<i64: 64, 128>}, {transform_indices = @transform_8, window_bounds = array<i64: 64, 128>}, {transform_indices = @transform_9, window_bounds = array<i64: 64, 128>}]} {
    %c0 = arith.constant 0 : index
    %c0_0 = arith.constant 0 : index
    %0 = vector.load %arg1[%c0, %c0_0] : memref<64x128xbf16, #tpu.memory_space<vmem>>, vector<64x128xbf16>
    %c0_1 = arith.constant 0 : index
    %c0_2 = arith.constant 0 : index
    %1 = vector.load %arg2[%c0_1, %c0_2] : memref<64x128xbf16, #tpu.memory_space<vmem>>, vector<64x128xbf16>
    %2 = arith.maximumf %0, %1 : vector<64x128xbf16>
    %c0_3 = arith.constant 0 : index
    %c0_4 = arith.constant 0 : index
    %3 = vector.load %arg3[%c0_3, %c0_4] : memref<64x128xbf16, #tpu.memory_space<vmem>>, vector<64x128xbf16>
    %4 = arith.maximumf %2, %3 : vector<64x128xbf16>
    %c0_5 = arith.constant 0 : index
    %c0_6 = arith.constant 0 : index
    %5 = vector.load %arg4[%c0_5, %c0_6] : memref<64x128xbf16, #tpu.memory_space<vmem>>, vector<64x128xbf16>
    %6 = arith.maximumf %4, %5 : vector<64x128xbf16>
    %c0_7 = arith.constant 0 : index
    %c0_8 = arith.constant 0 : index
    %7 = vector.load %arg5[%c0_7, %c0_8] : memref<64x128xbf16, #tpu.memory_space<vmem>>, vector<64x128xbf16>
    %8 = arith.maximumf %6, %7 : vector<64x128xbf16>
    %c0_9 = arith.constant 0 : index
    %c0_10 = arith.constant 0 : index
    %9 = vector.load %arg6[%c0_9, %c0_10] : memref<64x128xbf16, #tpu.memory_space<vmem>>, vector<64x128xbf16>
    %10 = arith.maximumf %8, %9 : vector<64x128xbf16>
    %c0_11 = arith.constant 0 : index
    %c0_12 = arith.constant 0 : index
    %11 = vector.load %arg7[%c0_11, %c0_12] : memref<64x128xbf16, #tpu.memory_space<vmem>>, vector<64x128xbf16>
    %12 = arith.maximumf %10, %11 : vector<64x128xbf16>
    %c0_13 = arith.constant 0 : index
    %c0_14 = arith.constant 0 : index
    %13 = vector.load %arg8[%c0_13, %c0_14] : memref<64x128xbf16, #tpu.memory_space<vmem>>, vector<64x128xbf16>
    %14 = arith.maximumf %12, %13 : vector<64x128xbf16>
    %c0_15 = arith.constant 0 : index
    %c0_16 = arith.constant 0 : index
    %15 = vector.load %arg9[%c0_15, %c0_16] : memref<64x128xbf16, #tpu.memory_space<vmem>>, vector<64x128xbf16>
    %16 = arith.maximumf %14, %15 : vector<64x128xbf16>
    %c0_17 = arith.constant 0 : index
    %c0_18 = arith.constant 0 : index
    %17 = vector.load %arg10[%c0_17, %c0_18] : memref<64x128xbf16, #tpu.memory_space<vmem>>, vector<64x128xbf16>
    tpu.vector_store %arg10[%c0_17, %c0_18], %16 {strides = array<i32>} : memref<64x128xbf16, #tpu.memory_space<vmem>>, vector<64x128xbf16>,
    return
  }
  func.func @transform_0(%arg0: i32) -> (i32, i32) {
    %c0_i32 = arith.constant 0 : i32
    %c0_i32_0 = arith.constant 0 : i32
    return %arg0, %c0_i32 : i32, i32
  }
  func.func @transform_1(%arg0: i32) -> (i32, i32) {
    %c0_i32 = arith.constant 0 : i32
    %c0_i32_0 = arith.constant 0 : i32
    return %arg0, %c0_i32 : i32, i32
  }
  func.func @transform_2(%arg0: i32) -> (i32, i32) {
    %c0_i32 = arith.constant 0 : i32
    %c0_i32_0 = arith.constant 0 : i32
    return %arg0, %c0_i32 : i32, i32
  }
  func.func @transform_3(%arg0: i32) -> (i32, i32) {
    %c0_i32 = arith.constant 0 : i32
    %c0_i32_0 = arith.constant 0 : i32
    return %arg0, %c0_i32 : i32, i32
  }
  func.func @transform_4(%arg0: i32) -> (i32, i32) {
    %c0_i32 = arith.constant 0 : i32
    %c0_i32_0 = arith.constant 0 : i32
    return %arg0, %c0_i32 : i32, i32
  }
  func.func @transform_5(%arg0: i32) -> (i32, i32) {
    %c0_i32 = arith.constant 0 : i32
    %c0_i32_0 = arith.constant 0 : i32
    return %arg0, %c0_i32 : i32, i32
  }
  func.func @transform_6(%arg0: i32) -> (i32, i32) {
    %c0_i32 = arith.constant 0 : i32
    %c0_i32_0 = arith.constant 0 : i32
    return %arg0, %c0_i32 : i32, i32
  }
  func.func @transform_7(%arg0: i32) -> (i32, i32) {
    %c0_i32 = arith.constant 0 : i32
    %c0_i32_0 = arith.constant 0 : i32
    return %arg0, %c0_i32 : i32, i32
  }
  func.func @transform_8(%arg0: i32) -> (i32, i32) {
    %c0_i32 = arith.constant 0 : i32
    %c0_i32_0 = arith.constant 0 : i32
    return %arg0, %c0_i32 : i32, i32
  }
  func.func @transform_9(%arg0: i32) -> (i32, i32) {
    %c0_i32 = arith.constant 0 : i32
    %c0_i32_0 = arith.constant 0 : i32
    return %arg0, %c0_i32 : i32, i32
  }
}

module attributes {stable_mosaic.version = 11 : i64} {
  func.func @conv_matmul_kernel(%arg0: i32, %arg1: memref<128x576xbf16, #tpu.memory_space<vmem>>, %arg2: memref<576x64xbf16, #tpu.memory_space<vmem>>, %arg3: memref<128x64xbf16, #tpu.memory_space<vmem>>, %arg4: memref<8x64xf32, #tpu.memory_space<vmem>>) attributes {dimension_semantics = [#tpu.dimension_semantics<parallel>], iteration_bounds = array<i64: 1>, scalar_prefetch = 0 : i64, scratch_operands = 0 : i64, tpu.core_type = #tpu.core_type<tc>, window_params = [{transform_indices = @transform_0, window_bounds = array<i64: 128, 576>}, {pipeline_mode = #tpu.pipeline_mode<synchronous>, transform_indices = @transform_1, window_bounds = array<i64: 576, 64>}, {transform_indices = @transform_2, window_bounds = array<i64: 128, 64>}, {transform_indices = @transform_3, window_bounds = array<i64: 8, 64>}]} {
    %c0 = arith.constant 0 : index
    %c0_0 = arith.constant 0 : index
    %0 = vector.load %arg1[%c0, %c0_0] : memref<128x576xbf16, #tpu.memory_space<vmem>>, vector<128x576xbf16>
    %c0_1 = arith.constant 0 : index
    %c0_2 = arith.constant 0 : index
    %1 = vector.load %arg2[%c0_1, %c0_2] : memref<576x64xbf16, #tpu.memory_space<vmem>>, vector<576x64xbf16>
    %cst = arith.constant dense<0.000000e+00> : vector<128x64xf32>
    %2 = tpu.matmul %0, %1, %cst {dimension_numbers = #tpu.dot_dimension_numbers<[1], [0], [0], [1], [0, 0, 1, 1], [], []>} : vector<128x576xbf16>, vector<576x64xbf16>, vector<128x64xf32> -> vector<128x64xf32>
    %3 = arith.truncf %2 : vector<128x64xf32> to vector<128x64xbf16>
    %c0_3 = arith.constant 0 : index
    %c0_4 = arith.constant 0 : index
    %4 = vector.load %arg3[%c0_3, %c0_4] : memref<128x64xbf16, #tpu.memory_space<vmem>>, vector<128x64xbf16>
    tpu.vector_store %arg3[%c0_3, %c0_4], %3 {strides = array<i32>} : memref<128x64xbf16, #tpu.memory_space<vmem>>, vector<128x64xbf16>,
    %cst_5 = arith.constant dense<0.000000e+00> : vector<64xf32>
    %5 = vector.multi_reduction <add>, %2, %cst_5 [0] : vector<128x64xf32> to vector<64xf32>
    %6 = vector.shape_cast %5 : vector<64xf32> to vector<1x64xf32>
    %7 = arith.mulf %2, %2 : vector<128x64xf32>
    %cst_6 = arith.constant dense<0.000000e+00> : vector<64xf32>
    %8 = vector.multi_reduction <add>, %7, %cst_6 [0] : vector<128x64xf32> to vector<64xf32>
    %9 = vector.shape_cast %8 : vector<64xf32> to vector<1x64xf32>
    %10 = tpu.iota {dimensions = array<i32: 0>} : vector<8x64xi32>
    %c0_i32 = arith.constant 0 : i32
    %11 = vector.broadcast %c0_i32 : i32 to vector<8x64xi32>
    %12 = arith.cmpi eq, %10, %11 : vector<8x64xi32>
    %c1_i32 = arith.constant 1 : i32
    %13 = vector.broadcast %c1_i32 : i32 to vector<8x64xi32>
    %14 = arith.cmpi eq, %10, %13 : vector<8x64xi32>
    %cst_7 = arith.constant 0.000000e+00 : f32
    %15 = vector.shape_cast %9 : vector<1x64xf32> to vector<1x64xf32>
    %16 = vector.broadcast %15 : vector<1x64xf32> to vector<8x64xf32>
    %17 = vector.broadcast %cst_7 : f32 to vector<8x64xf32>
    %18 = arith.select %14, %16, %17 : vector<8x64xi1>, vector<8x64xf32>
    %19 = vector.shape_cast %6 : vector<1x64xf32> to vector<1x64xf32>
    %20 = vector.broadcast %19 : vector<1x64xf32> to vector<8x64xf32>
    %21 = arith.select %12, %20, %18 : vector<8x64xi1>, vector<8x64xf32>
    %c0_8 = arith.constant 0 : index
    %c0_9 = arith.constant 0 : index
    %22 = vector.load %arg4[%c0_8, %c0_9] : memref<8x64xf32, #tpu.memory_space<vmem>>, vector<8x64xf32>
    tpu.vector_store %arg4[%c0_8, %c0_9], %21 {strides = array<i32>} : memref<8x64xf32, #tpu.memory_space<vmem>>, vector<8x64xf32>,
    return
  }
  func.func @transform_0(%arg0: i32) -> (i32, i32) {
    %c0_i32 = arith.constant 0 : i32
    %c0_i32_0 = arith.constant 0 : i32
    return %arg0, %c0_i32 : i32, i32
  }
  func.func @transform_1(%arg0: i32) -> (i32, i32) {
    %c0_i32 = arith.constant 0 : i32
    %c0_i32_0 = arith.constant 0 : i32
    %c0_i32_1 = arith.constant 0 : i32
    return %c0_i32, %c0_i32_0 : i32, i32
  }
  func.func @transform_2(%arg0: i32) -> (i32, i32) {
    %c0_i32 = arith.constant 0 : i32
    %c0_i32_0 = arith.constant 0 : i32
    return %arg0, %c0_i32 : i32, i32
  }
  func.func @transform_3(%arg0: i32) -> (i32, i32) {
    %c0_i32 = arith.constant 0 : i32
    %c0_i32_0 = arith.constant 0 : i32
    return %arg0, %c0_i32 : i32, i32
  }
}

module attributes {stable_mosaic.version = 11 : i64} {
  func.func @kernel(%arg0: i32, %arg1: memref<64x128xbf16, #tpu.memory_space<vmem>>, %arg2: memref<1x128xf32, #tpu.memory_space<vmem>>, %arg3: memref<1x128xf32, #tpu.memory_space<vmem>>, %arg4: memref<64x128xbf16, #tpu.memory_space<vmem>>) attributes {dimension_semantics = [#tpu.dimension_semantics<parallel>], iteration_bounds = array<i64: 1>, scalar_prefetch = 0 : i64, scratch_operands = 0 : i64, tpu.core_type = #tpu.core_type<tc>, window_params = [{transform_indices = @transform_0, window_bounds = array<i64: 64, 128>}, {pipeline_mode = #tpu.pipeline_mode<synchronous>, transform_indices = @transform_1, window_bounds = array<i64: 1, 128>}, {pipeline_mode = #tpu.pipeline_mode<synchronous>, transform_indices = @transform_2, window_bounds = array<i64: 1, 128>}, {transform_indices = @transform_3, window_bounds = array<i64: 64, 128>}]} {
    %c0 = arith.constant 0 : index
    %c0_0 = arith.constant 0 : index
    %0 = vector.load %arg1[%c0, %c0_0] : memref<64x128xbf16, #tpu.memory_space<vmem>>, vector<64x128xbf16>
    %1 = arith.extf %0 : vector<64x128xbf16> to vector<64x128xf32>
    %c0_1 = arith.constant 0 : index
    %c0_2 = arith.constant 0 : index
    %2 = vector.load %arg2[%c0_1, %c0_2] : memref<1x128xf32, #tpu.memory_space<vmem>>, vector<1x128xf32>
    %3 = vector.broadcast %2 : vector<1x128xf32> to vector<64x128xf32>
    %4 = arith.mulf %1, %3 : vector<64x128xf32>
    %c0_3 = arith.constant 0 : index
    %c0_4 = arith.constant 0 : index
    %5 = vector.load %arg3[%c0_3, %c0_4] : memref<1x128xf32, #tpu.memory_space<vmem>>, vector<1x128xf32>
    %6 = vector.broadcast %5 : vector<1x128xf32> to vector<64x128xf32>
    %7 = arith.addf %4, %6 : vector<64x128xf32>
    %cst = arith.constant 0.000000e+00 : f32
    %8 = vector.broadcast %cst : f32 to vector<64x128xf32>
    %9 = arith.maximumf %7, %8 : vector<64x128xf32>
    %10 = arith.truncf %9 : vector<64x128xf32> to vector<64x128xbf16>
    %c0_5 = arith.constant 0 : index
    %c0_6 = arith.constant 0 : index
    %11 = vector.load %arg4[%c0_5, %c0_6] : memref<64x128xbf16, #tpu.memory_space<vmem>>, vector<64x128xbf16>
    tpu.vector_store %arg4[%c0_5, %c0_6], %10 {strides = array<i32>} : memref<64x128xbf16, #tpu.memory_space<vmem>>, vector<64x128xbf16>,
    return
  }
  func.func @transform_0(%arg0: i32) -> (i32, i32) {
    %c0_i32 = arith.constant 0 : i32
    %c0_i32_0 = arith.constant 0 : i32
    return %arg0, %c0_i32 : i32, i32
  }
  func.func @transform_1(%arg0: i32) -> (i32, i32) {
    %c0_i32 = arith.constant 0 : i32
    %c0_i32_0 = arith.constant 0 : i32
    %c0_i32_1 = arith.constant 0 : i32
    return %c0_i32, %c0_i32_0 : i32, i32
  }
  func.func @transform_2(%arg0: i32) -> (i32, i32) {
    %c0_i32 = arith.constant 0 : i32
    %c0_i32_0 = arith.constant 0 : i32
    %c0_i32_1 = arith.constant 0 : i32
    return %c0_i32, %c0_i32_0 : i32, i32
  }
  func.func @transform_3(%arg0: i32) -> (i32, i32) {
    %c0_i32 = arith.constant 0 : i32
    %c0_i32_0 = arith.constant 0 : i32
    return %arg0, %c0_i32 : i32, i32
  }
}

module attributes {stable_mosaic.version = 11 : i64} {
  func.func @kernel(%arg0: i32, %arg1: memref<64x128xbf16, #tpu.memory_space<vmem>>, %arg2: memref<1x128xf32, #tpu.memory_space<vmem>>, %arg3: memref<1x128xf32, #tpu.memory_space<vmem>>, %arg4: memref<64x128xbf16, #tpu.memory_space<vmem>>, %arg5: memref<64x128xbf16, #tpu.memory_space<vmem>>) attributes {dimension_semantics = [#tpu.dimension_semantics<parallel>], iteration_bounds = array<i64: 1>, scalar_prefetch = 0 : i64, scratch_operands = 0 : i64, tpu.core_type = #tpu.core_type<tc>, window_params = [{transform_indices = @transform_0, window_bounds = array<i64: 64, 128>}, {pipeline_mode = #tpu.pipeline_mode<synchronous>, transform_indices = @transform_1, window_bounds = array<i64: 1, 128>}, {pipeline_mode = #tpu.pipeline_mode<synchronous>, transform_indices = @transform_2, window_bounds = array<i64: 1, 128>}, {transform_indices = @transform_3, window_bounds = array<i64: 64, 128>}, {transform_indices = @transform_4, window_bounds = array<i64: 64, 128>}]} {
    %c0 = arith.constant 0 : index
    %c0_0 = arith.constant 0 : index
    %0 = vector.load %arg1[%c0, %c0_0] : memref<64x128xbf16, #tpu.memory_space<vmem>>, vector<64x128xbf16>
    %1 = arith.extf %0 : vector<64x128xbf16> to vector<64x128xf32>
    %c0_1 = arith.constant 0 : index
    %c0_2 = arith.constant 0 : index
    %2 = vector.load %arg2[%c0_1, %c0_2] : memref<1x128xf32, #tpu.memory_space<vmem>>, vector<1x128xf32>
    %3 = vector.broadcast %2 : vector<1x128xf32> to vector<64x128xf32>
    %4 = arith.mulf %1, %3 : vector<64x128xf32>
    %c0_3 = arith.constant 0 : index
    %c0_4 = arith.constant 0 : index
    %5 = vector.load %arg3[%c0_3, %c0_4] : memref<1x128xf32, #tpu.memory_space<vmem>>, vector<1x128xf32>
    %6 = vector.broadcast %5 : vector<1x128xf32> to vector<64x128xf32>
    %7 = arith.addf %4, %6 : vector<64x128xf32>
    %c0_5 = arith.constant 0 : index
    %c0_6 = arith.constant 0 : index
    %8 = vector.load %arg4[%c0_5, %c0_6] : memref<64x128xbf16, #tpu.memory_space<vmem>>, vector<64x128xbf16>
    %9 = arith.extf %8 : vector<64x128xbf16> to vector<64x128xf32>
    %10 = arith.addf %7, %9 : vector<64x128xf32>
    %cst = arith.constant 0.000000e+00 : f32
    %11 = vector.broadcast %cst : f32 to vector<64x128xf32>
    %12 = arith.maximumf %10, %11 : vector<64x128xf32>
    %13 = arith.truncf %12 : vector<64x128xf32> to vector<64x128xbf16>
    %c0_7 = arith.constant 0 : index
    %c0_8 = arith.constant 0 : index
    %14 = vector.load %arg5[%c0_7, %c0_8] : memref<64x128xbf16, #tpu.memory_space<vmem>>, vector<64x128xbf16>
    tpu.vector_store %arg5[%c0_7, %c0_8], %13 {strides = array<i32>} : memref<64x128xbf16, #tpu.memory_space<vmem>>, vector<64x128xbf16>,
    return
  }
  func.func @transform_0(%arg0: i32) -> (i32, i32) {
    %c0_i32 = arith.constant 0 : i32
    %c0_i32_0 = arith.constant 0 : i32
    return %arg0, %c0_i32 : i32, i32
  }
  func.func @transform_1(%arg0: i32) -> (i32, i32) {
    %c0_i32 = arith.constant 0 : i32
    %c0_i32_0 = arith.constant 0 : i32
    %c0_i32_1 = arith.constant 0 : i32
    return %c0_i32, %c0_i32_0 : i32, i32
  }
  func.func @transform_2(%arg0: i32) -> (i32, i32) {
    %c0_i32 = arith.constant 0 : i32
    %c0_i32_0 = arith.constant 0 : i32
    %c0_i32_1 = arith.constant 0 : i32
    return %c0_i32, %c0_i32_0 : i32, i32
  }
  func.func @transform_3(%arg0: i32) -> (i32, i32) {
    %c0_i32 = arith.constant 0 : i32
    %c0_i32_0 = arith.constant 0 : i32
    return %arg0, %c0_i32 : i32, i32
  }
  func.func @transform_4(%arg0: i32) -> (i32, i32) {
    %c0_i32 = arith.constant 0 : i32
    %c0_i32_0 = arith.constant 0 : i32
    return %arg0, %c0_i32 : i32, i32
  }
}

module attributes {stable_mosaic.version = 11 : i64} {
  func.func @conv_matmul_kernel(%arg0: i32, %arg1: memref<32x576xbf16, #tpu.memory_space<vmem>>, %arg2: memref<576x128xbf16, #tpu.memory_space<vmem>>, %arg3: memref<32x128xbf16, #tpu.memory_space<vmem>>, %arg4: memref<8x128xf32, #tpu.memory_space<vmem>>) attributes {dimension_semantics = [#tpu.dimension_semantics<parallel>], iteration_bounds = array<i64: 1>, scalar_prefetch = 0 : i64, scratch_operands = 0 : i64, tpu.core_type = #tpu.core_type<tc>, window_params = [{transform_indices = @transform_0, window_bounds = array<i64: 32, 576>}, {pipeline_mode = #tpu.pipeline_mode<synchronous>, transform_indices = @transform_1, window_bounds = array<i64: 576, 128>}, {transform_indices = @transform_2, window_bounds = array<i64: 32, 128>}, {transform_indices = @transform_3, window_bounds = array<i64: 8, 128>}]} {
    %c0 = arith.constant 0 : index
    %c0_0 = arith.constant 0 : index
    %0 = vector.load %arg1[%c0, %c0_0] : memref<32x576xbf16, #tpu.memory_space<vmem>>, vector<32x576xbf16>
    %c0_1 = arith.constant 0 : index
    %c0_2 = arith.constant 0 : index
    %1 = vector.load %arg2[%c0_1, %c0_2] : memref<576x128xbf16, #tpu.memory_space<vmem>>, vector<576x128xbf16>
    %cst = arith.constant dense<0.000000e+00> : vector<32x128xf32>
    %2 = tpu.matmul %0, %1, %cst {dimension_numbers = #tpu.dot_dimension_numbers<[1], [0], [0], [1], [0, 0, 1, 1], [], []>} : vector<32x576xbf16>, vector<576x128xbf16>, vector<32x128xf32> -> vector<32x128xf32>
    %3 = arith.truncf %2 : vector<32x128xf32> to vector<32x128xbf16>
    %c0_3 = arith.constant 0 : index
    %c0_4 = arith.constant 0 : index
    %4 = vector.load %arg3[%c0_3, %c0_4] : memref<32x128xbf16, #tpu.memory_space<vmem>>, vector<32x128xbf16>
    tpu.vector_store %arg3[%c0_3, %c0_4], %3 {strides = array<i32>} : memref<32x128xbf16, #tpu.memory_space<vmem>>, vector<32x128xbf16>,
    %cst_5 = arith.constant dense<0.000000e+00> : vector<128xf32>
    %5 = vector.multi_reduction <add>, %2, %cst_5 [0] : vector<32x128xf32> to vector<128xf32>
    %6 = vector.shape_cast %5 : vector<128xf32> to vector<1x128xf32>
    %7 = arith.mulf %2, %2 : vector<32x128xf32>
    %cst_6 = arith.constant dense<0.000000e+00> : vector<128xf32>
    %8 = vector.multi_reduction <add>, %7, %cst_6 [0] : vector<32x128xf32> to vector<128xf32>
    %9 = vector.shape_cast %8 : vector<128xf32> to vector<1x128xf32>
    %10 = tpu.iota {dimensions = array<i32: 0>} : vector<8x128xi32>
    %c0_i32 = arith.constant 0 : i32
    %11 = vector.broadcast %c0_i32 : i32 to vector<8x128xi32>
    %12 = arith.cmpi eq, %10, %11 : vector<8x128xi32>
    %c1_i32 = arith.constant 1 : i32
    %13 = vector.broadcast %c1_i32 : i32 to vector<8x128xi32>
    %14 = arith.cmpi eq, %10, %13 : vector<8x128xi32>
    %cst_7 = arith.constant 0.000000e+00 : f32
    %15 = vector.shape_cast %9 : vector<1x128xf32> to vector<1x128xf32>
    %16 = vector.broadcast %15 : vector<1x128xf32> to vector<8x128xf32>
    %17 = vector.broadcast %cst_7 : f32 to vector<8x128xf32>
    %18 = arith.select %14, %16, %17 : vector<8x128xi1>, vector<8x128xf32>
    %19 = vector.shape_cast %6 : vector<1x128xf32> to vector<1x128xf32>
    %20 = vector.broadcast %19 : vector<1x128xf32> to vector<8x128xf32>
    %21 = arith.select %12, %20, %18 : vector<8x128xi1>, vector<8x128xf32>
    %c0_8 = arith.constant 0 : index
    %c0_9 = arith.constant 0 : index
    %22 = vector.load %arg4[%c0_8, %c0_9] : memref<8x128xf32, #tpu.memory_space<vmem>>, vector<8x128xf32>
    tpu.vector_store %arg4[%c0_8, %c0_9], %21 {strides = array<i32>} : memref<8x128xf32, #tpu.memory_space<vmem>>, vector<8x128xf32>,
    return
  }
  func.func @transform_0(%arg0: i32) -> (i32, i32) {
    %c0_i32 = arith.constant 0 : i32
    %c0_i32_0 = arith.constant 0 : i32
    return %arg0, %c0_i32 : i32, i32
  }
  func.func @transform_1(%arg0: i32) -> (i32, i32) {
    %c0_i32 = arith.constant 0 : i32
    %c0_i32_0 = arith.constant 0 : i32
    %c0_i32_1 = arith.constant 0 : i32
    return %c0_i32, %c0_i32_0 : i32, i32
  }
  func.func @transform_2(%arg0: i32) -> (i32, i32) {
    %c0_i32 = arith.constant 0 : i32
    %c0_i32_0 = arith.constant 0 : i32
    return %arg0, %c0_i32 : i32, i32
  }
  func.func @transform_3(%arg0: i32) -> (i32, i32) {
    %c0_i32 = arith.constant 0 : i32
    %c0_i32_0 = arith.constant 0 : i32
    return %arg0, %c0_i32 : i32, i32
  }
}

module attributes {stable_mosaic.version = 11 : i64} {
  func.func @kernel(%arg0: i32, %arg1: memref<32x128xbf16, #tpu.memory_space<vmem>>, %arg2: memref<1x128xf32, #tpu.memory_space<vmem>>, %arg3: memref<1x128xf32, #tpu.memory_space<vmem>>, %arg4: memref<32x128xbf16, #tpu.memory_space<vmem>>) attributes {dimension_semantics = [#tpu.dimension_semantics<parallel>], iteration_bounds = array<i64: 1>, scalar_prefetch = 0 : i64, scratch_operands = 0 : i64, tpu.core_type = #tpu.core_type<tc>, window_params = [{transform_indices = @transform_0, window_bounds = array<i64: 32, 128>}, {pipeline_mode = #tpu.pipeline_mode<synchronous>, transform_indices = @transform_1, window_bounds = array<i64: 1, 128>}, {pipeline_mode = #tpu.pipeline_mode<synchronous>, transform_indices = @transform_2, window_bounds = array<i64: 1, 128>}, {transform_indices = @transform_3, window_bounds = array<i64: 32, 128>}]} {
    %c0 = arith.constant 0 : index
    %c0_0 = arith.constant 0 : index
    %0 = vector.load %arg1[%c0, %c0_0] : memref<32x128xbf16, #tpu.memory_space<vmem>>, vector<32x128xbf16>
    %1 = arith.extf %0 : vector<32x128xbf16> to vector<32x128xf32>
    %c0_1 = arith.constant 0 : index
    %c0_2 = arith.constant 0 : index
    %2 = vector.load %arg2[%c0_1, %c0_2] : memref<1x128xf32, #tpu.memory_space<vmem>>, vector<1x128xf32>
    %3 = vector.broadcast %2 : vector<1x128xf32> to vector<32x128xf32>
    %4 = arith.mulf %1, %3 : vector<32x128xf32>
    %c0_3 = arith.constant 0 : index
    %c0_4 = arith.constant 0 : index
    %5 = vector.load %arg3[%c0_3, %c0_4] : memref<1x128xf32, #tpu.memory_space<vmem>>, vector<1x128xf32>
    %6 = vector.broadcast %5 : vector<1x128xf32> to vector<32x128xf32>
    %7 = arith.addf %4, %6 : vector<32x128xf32>
    %cst = arith.constant 0.000000e+00 : f32
    %8 = vector.broadcast %cst : f32 to vector<32x128xf32>
    %9 = arith.maximumf %7, %8 : vector<32x128xf32>
    %10 = arith.truncf %9 : vector<32x128xf32> to vector<32x128xbf16>
    %c0_5 = arith.constant 0 : index
    %c0_6 = arith.constant 0 : index
    %11 = vector.load %arg4[%c0_5, %c0_6] : memref<32x128xbf16, #tpu.memory_space<vmem>>, vector<32x128xbf16>
    tpu.vector_store %arg4[%c0_5, %c0_6], %10 {strides = array<i32>} : memref<32x128xbf16, #tpu.memory_space<vmem>>, vector<32x128xbf16>,
    return
  }
  func.func @transform_0(%arg0: i32) -> (i32, i32) {
    %c0_i32 = arith.constant 0 : i32
    %c0_i32_0 = arith.constant 0 : i32
    return %arg0, %c0_i32 : i32, i32
  }
  func.func @transform_1(%arg0: i32) -> (i32, i32) {
    %c0_i32 = arith.constant 0 : i32
    %c0_i32_0 = arith.constant 0 : i32
    %c0_i32_1 = arith.constant 0 : i32
    return %c0_i32, %c0_i32_0 : i32, i32
  }
  func.func @transform_2(%arg0: i32) -> (i32, i32) {
    %c0_i32 = arith.constant 0 : i32
    %c0_i32_0 = arith.constant 0 : i32
    %c0_i32_1 = arith.constant 0 : i32
    return %c0_i32, %c0_i32_0 : i32, i32
  }
  func.func @transform_3(%arg0: i32) -> (i32, i32) {
    %c0_i32 = arith.constant 0 : i32
    %c0_i32_0 = arith.constant 0 : i32
    return %arg0, %c0_i32 : i32, i32
  }
}

module attributes {stable_mosaic.version = 11 : i64} {
  func.func @conv_matmul_kernel(%arg0: i32, %arg1: memref<32x1152xbf16, #tpu.memory_space<vmem>>, %arg2: memref<1152x128xbf16, #tpu.memory_space<vmem>>, %arg3: memref<32x128xbf16, #tpu.memory_space<vmem>>, %arg4: memref<8x128xf32, #tpu.memory_space<vmem>>) attributes {dimension_semantics = [#tpu.dimension_semantics<parallel>], iteration_bounds = array<i64: 1>, scalar_prefetch = 0 : i64, scratch_operands = 0 : i64, tpu.core_type = #tpu.core_type<tc>, window_params = [{transform_indices = @transform_0, window_bounds = array<i64: 32, 1152>}, {pipeline_mode = #tpu.pipeline_mode<synchronous>, transform_indices = @transform_1, window_bounds = array<i64: 1152, 128>}, {transform_indices = @transform_2, window_bounds = array<i64: 32, 128>}, {transform_indices = @transform_3, window_bounds = array<i64: 8, 128>}]} {
    %c0 = arith.constant 0 : index
    %c0_0 = arith.constant 0 : index
    %0 = vector.load %arg1[%c0, %c0_0] : memref<32x1152xbf16, #tpu.memory_space<vmem>>, vector<32x1152xbf16>
    %c0_1 = arith.constant 0 : index
    %c0_2 = arith.constant 0 : index
    %1 = vector.load %arg2[%c0_1, %c0_2] : memref<1152x128xbf16, #tpu.memory_space<vmem>>, vector<1152x128xbf16>
    %cst = arith.constant dense<0.000000e+00> : vector<32x128xf32>
    %2 = tpu.matmul %0, %1, %cst {dimension_numbers = #tpu.dot_dimension_numbers<[1], [0], [0], [1], [0, 0, 1, 1], [], []>} : vector<32x1152xbf16>, vector<1152x128xbf16>, vector<32x128xf32> -> vector<32x128xf32>
    %3 = arith.truncf %2 : vector<32x128xf32> to vector<32x128xbf16>
    %c0_3 = arith.constant 0 : index
    %c0_4 = arith.constant 0 : index
    %4 = vector.load %arg3[%c0_3, %c0_4] : memref<32x128xbf16, #tpu.memory_space<vmem>>, vector<32x128xbf16>
    tpu.vector_store %arg3[%c0_3, %c0_4], %3 {strides = array<i32>} : memref<32x128xbf16, #tpu.memory_space<vmem>>, vector<32x128xbf16>,
    %cst_5 = arith.constant dense<0.000000e+00> : vector<128xf32>
    %5 = vector.multi_reduction <add>, %2, %cst_5 [0] : vector<32x128xf32> to vector<128xf32>
    %6 = vector.shape_cast %5 : vector<128xf32> to vector<1x128xf32>
    %7 = arith.mulf %2, %2 : vector<32x128xf32>
    %cst_6 = arith.constant dense<0.000000e+00> : vector<128xf32>
    %8 = vector.multi_reduction <add>, %7, %cst_6 [0] : vector<32x128xf32> to vector<128xf32>
    %9 = vector.shape_cast %8 : vector<128xf32> to vector<1x128xf32>
    %10 = tpu.iota {dimensions = array<i32: 0>} : vector<8x128xi32>
    %c0_i32 = arith.constant 0 : i32
    %11 = vector.broadcast %c0_i32 : i32 to vector<8x128xi32>
    %12 = arith.cmpi eq, %10, %11 : vector<8x128xi32>
    %c1_i32 = arith.constant 1 : i32
    %13 = vector.broadcast %c1_i32 : i32 to vector<8x128xi32>
    %14 = arith.cmpi eq, %10, %13 : vector<8x128xi32>
    %cst_7 = arith.constant 0.000000e+00 : f32
    %15 = vector.shape_cast %9 : vector<1x128xf32> to vector<1x128xf32>
    %16 = vector.broadcast %15 : vector<1x128xf32> to vector<8x128xf32>
    %17 = vector.broadcast %cst_7 : f32 to vector<8x128xf32>
    %18 = arith.select %14, %16, %17 : vector<8x128xi1>, vector<8x128xf32>
    %19 = vector.shape_cast %6 : vector<1x128xf32> to vector<1x128xf32>
    %20 = vector.broadcast %19 : vector<1x128xf32> to vector<8x128xf32>
    %21 = arith.select %12, %20, %18 : vector<8x128xi1>, vector<8x128xf32>
    %c0_8 = arith.constant 0 : index
    %c0_9 = arith.constant 0 : index
    %22 = vector.load %arg4[%c0_8, %c0_9] : memref<8x128xf32, #tpu.memory_space<vmem>>, vector<8x128xf32>
    tpu.vector_store %arg4[%c0_8, %c0_9], %21 {strides = array<i32>} : memref<8x128xf32, #tpu.memory_space<vmem>>, vector<8x128xf32>,
    return
  }
  func.func @transform_0(%arg0: i32) -> (i32, i32) {
    %c0_i32 = arith.constant 0 : i32
    %c0_i32_0 = arith.constant 0 : i32
    return %arg0, %c0_i32 : i32, i32
  }
  func.func @transform_1(%arg0: i32) -> (i32, i32) {
    %c0_i32 = arith.constant 0 : i32
    %c0_i32_0 = arith.constant 0 : i32
    %c0_i32_1 = arith.constant 0 : i32
    return %c0_i32, %c0_i32_0 : i32, i32
  }
  func.func @transform_2(%arg0: i32) -> (i32, i32) {
    %c0_i32 = arith.constant 0 : i32
    %c0_i32_0 = arith.constant 0 : i32
    return %arg0, %c0_i32 : i32, i32
  }
  func.func @transform_3(%arg0: i32) -> (i32, i32) {
    %c0_i32 = arith.constant 0 : i32
    %c0_i32_0 = arith.constant 0 : i32
    return %arg0, %c0_i32 : i32, i32
  }
}

module attributes {stable_mosaic.version = 11 : i64} {
  func.func @conv_matmul_kernel(%arg0: i32, %arg1: memref<32x64xbf16, #tpu.memory_space<vmem>>, %arg2: memref<64x128xbf16, #tpu.memory_space<vmem>>, %arg3: memref<32x128xbf16, #tpu.memory_space<vmem>>, %arg4: memref<8x128xf32, #tpu.memory_space<vmem>>) attributes {dimension_semantics = [#tpu.dimension_semantics<parallel>], iteration_bounds = array<i64: 1>, scalar_prefetch = 0 : i64, scratch_operands = 0 : i64, tpu.core_type = #tpu.core_type<tc>, window_params = [{transform_indices = @transform_0, window_bounds = array<i64: 32, 64>}, {pipeline_mode = #tpu.pipeline_mode<synchronous>, transform_indices = @transform_1, window_bounds = array<i64: 64, 128>}, {transform_indices = @transform_2, window_bounds = array<i64: 32, 128>}, {transform_indices = @transform_3, window_bounds = array<i64: 8, 128>}]} {
    %c0 = arith.constant 0 : index
    %c0_0 = arith.constant 0 : index
    %0 = vector.load %arg1[%c0, %c0_0] : memref<32x64xbf16, #tpu.memory_space<vmem>>, vector<32x64xbf16>
    %c0_1 = arith.constant 0 : index
    %c0_2 = arith.constant 0 : index
    %1 = vector.load %arg2[%c0_1, %c0_2] : memref<64x128xbf16, #tpu.memory_space<vmem>>, vector<64x128xbf16>
    %cst = arith.constant dense<0.000000e+00> : vector<32x128xf32>
    %2 = tpu.matmul %0, %1, %cst {dimension_numbers = #tpu.dot_dimension_numbers<[1], [0], [0], [1], [0, 0, 1, 1], [], []>} : vector<32x64xbf16>, vector<64x128xbf16>, vector<32x128xf32> -> vector<32x128xf32>
    %3 = arith.truncf %2 : vector<32x128xf32> to vector<32x128xbf16>
    %c0_3 = arith.constant 0 : index
    %c0_4 = arith.constant 0 : index
    %4 = vector.load %arg3[%c0_3, %c0_4] : memref<32x128xbf16, #tpu.memory_space<vmem>>, vector<32x128xbf16>
    tpu.vector_store %arg3[%c0_3, %c0_4], %3 {strides = array<i32>} : memref<32x128xbf16, #tpu.memory_space<vmem>>, vector<32x128xbf16>,
    %cst_5 = arith.constant dense<0.000000e+00> : vector<128xf32>
    %5 = vector.multi_reduction <add>, %2, %cst_5 [0] : vector<32x128xf32> to vector<128xf32>
    %6 = vector.shape_cast %5 : vector<128xf32> to vector<1x128xf32>
    %7 = arith.mulf %2, %2 : vector<32x128xf32>
    %cst_6 = arith.constant dense<0.000000e+00> : vector<128xf32>
    %8 = vector.multi_reduction <add>, %7, %cst_6 [0] : vector<32x128xf32> to vector<128xf32>
    %9 = vector.shape_cast %8 : vector<128xf32> to vector<1x128xf32>
    %10 = tpu.iota {dimensions = array<i32: 0>} : vector<8x128xi32>
    %c0_i32 = arith.constant 0 : i32
    %11 = vector.broadcast %c0_i32 : i32 to vector<8x128xi32>
    %12 = arith.cmpi eq, %10, %11 : vector<8x128xi32>
    %c1_i32 = arith.constant 1 : i32
    %13 = vector.broadcast %c1_i32 : i32 to vector<8x128xi32>
    %14 = arith.cmpi eq, %10, %13 : vector<8x128xi32>
    %cst_7 = arith.constant 0.000000e+00 : f32
    %15 = vector.shape_cast %9 : vector<1x128xf32> to vector<1x128xf32>
    %16 = vector.broadcast %15 : vector<1x128xf32> to vector<8x128xf32>
    %17 = vector.broadcast %cst_7 : f32 to vector<8x128xf32>
    %18 = arith.select %14, %16, %17 : vector<8x128xi1>, vector<8x128xf32>
    %19 = vector.shape_cast %6 : vector<1x128xf32> to vector<1x128xf32>
    %20 = vector.broadcast %19 : vector<1x128xf32> to vector<8x128xf32>
    %21 = arith.select %12, %20, %18 : vector<8x128xi1>, vector<8x128xf32>
    %c0_8 = arith.constant 0 : index
    %c0_9 = arith.constant 0 : index
    %22 = vector.load %arg4[%c0_8, %c0_9] : memref<8x128xf32, #tpu.memory_space<vmem>>, vector<8x128xf32>
    tpu.vector_store %arg4[%c0_8, %c0_9], %21 {strides = array<i32>} : memref<8x128xf32, #tpu.memory_space<vmem>>, vector<8x128xf32>,
    return
  }
  func.func @transform_0(%arg0: i32) -> (i32, i32) {
    %c0_i32 = arith.constant 0 : i32
    %c0_i32_0 = arith.constant 0 : i32
    return %arg0, %c0_i32 : i32, i32
  }
  func.func @transform_1(%arg0: i32) -> (i32, i32) {
    %c0_i32 = arith.constant 0 : i32
    %c0_i32_0 = arith.constant 0 : i32
    %c0_i32_1 = arith.constant 0 : i32
    return %c0_i32, %c0_i32_0 : i32, i32
  }
  func.func @transform_2(%arg0: i32) -> (i32, i32) {
    %c0_i32 = arith.constant 0 : i32
    %c0_i32_0 = arith.constant 0 : i32
    return %arg0, %c0_i32 : i32, i32
  }
  func.func @transform_3(%arg0: i32) -> (i32, i32) {
    %c0_i32 = arith.constant 0 : i32
    %c0_i32_0 = arith.constant 0 : i32
    return %arg0, %c0_i32 : i32, i32
  }
}

module attributes {stable_mosaic.version = 11 : i64} {
  func.func @kernel(%arg0: i32, %arg1: memref<32x128xbf16, #tpu.memory_space<vmem>>, %arg2: memref<1x128xf32, #tpu.memory_space<vmem>>, %arg3: memref<1x128xf32, #tpu.memory_space<vmem>>, %arg4: memref<32x128xbf16, #tpu.memory_space<vmem>>, %arg5: memref<1x128xf32, #tpu.memory_space<vmem>>, %arg6: memref<1x128xf32, #tpu.memory_space<vmem>>, %arg7: memref<32x128xbf16, #tpu.memory_space<vmem>>) attributes {dimension_semantics = [#tpu.dimension_semantics<parallel>], iteration_bounds = array<i64: 1>, scalar_prefetch = 0 : i64, scratch_operands = 0 : i64, tpu.core_type = #tpu.core_type<tc>, window_params = [{transform_indices = @transform_0, window_bounds = array<i64: 32, 128>}, {pipeline_mode = #tpu.pipeline_mode<synchronous>, transform_indices = @transform_1, window_bounds = array<i64: 1, 128>}, {pipeline_mode = #tpu.pipeline_mode<synchronous>, transform_indices = @transform_2, window_bounds = array<i64: 1, 128>}, {transform_indices = @transform_3, window_bounds = array<i64: 32, 128>}, {pipeline_mode = #tpu.pipeline_mode<synchronous>, transform_indices = @transform_4, window_bounds = array<i64: 1, 128>}, {pipeline_mode = #tpu.pipeline_mode<synchronous>, transform_indices = @transform_5, window_bounds = array<i64: 1, 128>}, {transform_indices = @transform_6, window_bounds = array<i64: 32, 128>}]} {
    %c0 = arith.constant 0 : index
    %c0_0 = arith.constant 0 : index
    %0 = vector.load %arg1[%c0, %c0_0] : memref<32x128xbf16, #tpu.memory_space<vmem>>, vector<32x128xbf16>
    %1 = arith.extf %0 : vector<32x128xbf16> to vector<32x128xf32>
    %c0_1 = arith.constant 0 : index
    %c0_2 = arith.constant 0 : index
    %2 = vector.load %arg2[%c0_1, %c0_2] : memref<1x128xf32, #tpu.memory_space<vmem>>, vector<1x128xf32>
    %3 = vector.broadcast %2 : vector<1x128xf32> to vector<32x128xf32>
    %4 = arith.mulf %1, %3 : vector<32x128xf32>
    %c0_3 = arith.constant 0 : index
    %c0_4 = arith.constant 0 : index
    %5 = vector.load %arg3[%c0_3, %c0_4] : memref<1x128xf32, #tpu.memory_space<vmem>>, vector<1x128xf32>
    %6 = vector.broadcast %5 : vector<1x128xf32> to vector<32x128xf32>
    %7 = arith.addf %4, %6 : vector<32x128xf32>
    %c0_5 = arith.constant 0 : index
    %c0_6 = arith.constant 0 : index
    %8 = vector.load %arg4[%c0_5, %c0_6] : memref<32x128xbf16, #tpu.memory_space<vmem>>, vector<32x128xbf16>
    %9 = arith.extf %8 : vector<32x128xbf16> to vector<32x128xf32>
    %c0_7 = arith.constant 0 : index
    %c0_8 = arith.constant 0 : index
    %10 = vector.load %arg5[%c0_7, %c0_8] : memref<1x128xf32, #tpu.memory_space<vmem>>, vector<1x128xf32>
    %11 = vector.broadcast %10 : vector<1x128xf32> to vector<32x128xf32>
    %12 = arith.mulf %9, %11 : vector<32x128xf32>
    %c0_9 = arith.constant 0 : index
    %c0_10 = arith.constant 0 : index
    %13 = vector.load %arg6[%c0_9, %c0_10] : memref<1x128xf32, #tpu.memory_space<vmem>>, vector<1x128xf32>
    %14 = vector.broadcast %13 : vector<1x128xf32> to vector<32x128xf32>
    %15 = arith.addf %12, %14 : vector<32x128xf32>
    %16 = arith.addf %7, %15 : vector<32x128xf32>
    %cst = arith.constant 0.000000e+00 : f32
    %17 = vector.broadcast %cst : f32 to vector<32x128xf32>
    %18 = arith.maximumf %16, %17 : vector<32x128xf32>
    %19 = arith.truncf %18 : vector<32x128xf32> to vector<32x128xbf16>
    %c0_11 = arith.constant 0 : index
    %c0_12 = arith.constant 0 : index
    %20 = vector.load %arg7[%c0_11, %c0_12] : memref<32x128xbf16, #tpu.memory_space<vmem>>, vector<32x128xbf16>
    tpu.vector_store %arg7[%c0_11, %c0_12], %19 {strides = array<i32>} : memref<32x128xbf16, #tpu.memory_space<vmem>>, vector<32x128xbf16>,
    return
  }
  func.func @transform_0(%arg0: i32) -> (i32, i32) {
    %c0_i32 = arith.constant 0 : i32
    %c0_i32_0 = arith.constant 0 : i32
    return %arg0, %c0_i32 : i32, i32
  }
  func.func @transform_1(%arg0: i32) -> (i32, i32) {
    %c0_i32 = arith.constant 0 : i32
    %c0_i32_0 = arith.constant 0 : i32
    %c0_i32_1 = arith.constant 0 : i32
    return %c0_i32, %c0_i32_0 : i32, i32
  }
  func.func @transform_2(%arg0: i32) -> (i32, i32) {
    %c0_i32 = arith.constant 0 : i32
    %c0_i32_0 = arith.constant 0 : i32
    %c0_i32_1 = arith.constant 0 : i32
    return %c0_i32, %c0_i32_0 : i32, i32
  }
  func.func @transform_3(%arg0: i32) -> (i32, i32) {
    %c0_i32 = arith.constant 0 : i32
    %c0_i32_0 = arith.constant 0 : i32
    return %arg0, %c0_i32 : i32, i32
  }
  func.func @transform_4(%arg0: i32) -> (i32, i32) {
    %c0_i32 = arith.constant 0 : i32
    %c0_i32_0 = arith.constant 0 : i32
    %c0_i32_1 = arith.constant 0 : i32
    return %c0_i32, %c0_i32_0 : i32, i32
  }
  func.func @transform_5(%arg0: i32) -> (i32, i32) {
    %c0_i32 = arith.constant 0 : i32
    %c0_i32_0 = arith.constant 0 : i32
    %c0_i32_1 = arith.constant 0 : i32
    return %c0_i32, %c0_i32_0 : i32, i32
  }
  func.func @transform_6(%arg0: i32) -> (i32, i32) {
    %c0_i32 = arith.constant 0 : i32
    %c0_i32_0 = arith.constant 0 : i32
    return %arg0, %c0_i32 : i32, i32
  }
}

module attributes {stable_mosaic.version = 11 : i64} {
  func.func @kernel(%arg0: i32, %arg1: memref<32x128xbf16, #tpu.memory_space<vmem>>, %arg2: memref<1x128xf32, #tpu.memory_space<vmem>>, %arg3: memref<1x128xf32, #tpu.memory_space<vmem>>, %arg4: memref<32x128xbf16, #tpu.memory_space<vmem>>, %arg5: memref<32x128xbf16, #tpu.memory_space<vmem>>) attributes {dimension_semantics = [#tpu.dimension_semantics<parallel>], iteration_bounds = array<i64: 1>, scalar_prefetch = 0 : i64, scratch_operands = 0 : i64, tpu.core_type = #tpu.core_type<tc>, window_params = [{transform_indices = @transform_0, window_bounds = array<i64: 32, 128>}, {pipeline_mode = #tpu.pipeline_mode<synchronous>, transform_indices = @transform_1, window_bounds = array<i64: 1, 128>}, {pipeline_mode = #tpu.pipeline_mode<synchronous>, transform_indices = @transform_2, window_bounds = array<i64: 1, 128>}, {transform_indices = @transform_3, window_bounds = array<i64: 32, 128>}, {transform_indices = @transform_4, window_bounds = array<i64: 32, 128>}]} {
    %c0 = arith.constant 0 : index
    %c0_0 = arith.constant 0 : index
    %0 = vector.load %arg1[%c0, %c0_0] : memref<32x128xbf16, #tpu.memory_space<vmem>>, vector<32x128xbf16>
    %1 = arith.extf %0 : vector<32x128xbf16> to vector<32x128xf32>
    %c0_1 = arith.constant 0 : index
    %c0_2 = arith.constant 0 : index
    %2 = vector.load %arg2[%c0_1, %c0_2] : memref<1x128xf32, #tpu.memory_space<vmem>>, vector<1x128xf32>
    %3 = vector.broadcast %2 : vector<1x128xf32> to vector<32x128xf32>
    %4 = arith.mulf %1, %3 : vector<32x128xf32>
    %c0_3 = arith.constant 0 : index
    %c0_4 = arith.constant 0 : index
    %5 = vector.load %arg3[%c0_3, %c0_4] : memref<1x128xf32, #tpu.memory_space<vmem>>, vector<1x128xf32>
    %6 = vector.broadcast %5 : vector<1x128xf32> to vector<32x128xf32>
    %7 = arith.addf %4, %6 : vector<32x128xf32>
    %c0_5 = arith.constant 0 : index
    %c0_6 = arith.constant 0 : index
    %8 = vector.load %arg4[%c0_5, %c0_6] : memref<32x128xbf16, #tpu.memory_space<vmem>>, vector<32x128xbf16>
    %9 = arith.extf %8 : vector<32x128xbf16> to vector<32x128xf32>
    %10 = arith.addf %7, %9 : vector<32x128xf32>
    %cst = arith.constant 0.000000e+00 : f32
    %11 = vector.broadcast %cst : f32 to vector<32x128xf32>
    %12 = arith.maximumf %10, %11 : vector<32x128xf32>
    %13 = arith.truncf %12 : vector<32x128xf32> to vector<32x128xbf16>
    %c0_7 = arith.constant 0 : index
    %c0_8 = arith.constant 0 : index
    %14 = vector.load %arg5[%c0_7, %c0_8] : memref<32x128xbf16, #tpu.memory_space<vmem>>, vector<32x128xbf16>
    tpu.vector_store %arg5[%c0_7, %c0_8], %13 {strides = array<i32>} : memref<32x128xbf16, #tpu.memory_space<vmem>>, vector<32x128xbf16>,
    return
  }
  func.func @transform_0(%arg0: i32) -> (i32, i32) {
    %c0_i32 = arith.constant 0 : i32
    %c0_i32_0 = arith.constant 0 : i32
    return %arg0, %c0_i32 : i32, i32
  }
  func.func @transform_1(%arg0: i32) -> (i32, i32) {
    %c0_i32 = arith.constant 0 : i32
    %c0_i32_0 = arith.constant 0 : i32
    %c0_i32_1 = arith.constant 0 : i32
    return %c0_i32, %c0_i32_0 : i32, i32
  }
  func.func @transform_2(%arg0: i32) -> (i32, i32) {
    %c0_i32 = arith.constant 0 : i32
    %c0_i32_0 = arith.constant 0 : i32
    %c0_i32_1 = arith.constant 0 : i32
    return %c0_i32, %c0_i32_0 : i32, i32
  }
  func.func @transform_3(%arg0: i32) -> (i32, i32) {
    %c0_i32 = arith.constant 0 : i32
    %c0_i32_0 = arith.constant 0 : i32
    return %arg0, %c0_i32 : i32, i32
  }
  func.func @transform_4(%arg0: i32) -> (i32, i32) {
    %c0_i32 = arith.constant 0 : i32
    %c0_i32_0 = arith.constant 0 : i32
    return %arg0, %c0_i32 : i32, i32
  }
}

module attributes {stable_mosaic.version = 11 : i64} {
  func.func @conv_matmul_kernel(%arg0: i32, %arg1: memref<8x128xbf16, #tpu.memory_space<vmem>>, %arg2: memref<128x256xbf16, #tpu.memory_space<vmem>>, %arg3: memref<8x256xbf16, #tpu.memory_space<vmem>>, %arg4: memref<8x256xf32, #tpu.memory_space<vmem>>) attributes {dimension_semantics = [#tpu.dimension_semantics<parallel>], iteration_bounds = array<i64: 1>, scalar_prefetch = 0 : i64, scratch_operands = 0 : i64, tpu.core_type = #tpu.core_type<tc>, window_params = [{transform_indices = @transform_0, window_bounds = array<i64: 8, 128>}, {pipeline_mode = #tpu.pipeline_mode<synchronous>, transform_indices = @transform_1, window_bounds = array<i64: 128, 256>}, {transform_indices = @transform_2, window_bounds = array<i64: 8, 256>}, {transform_indices = @transform_3, window_bounds = array<i64: 8, 256>}]} {
    %c0 = arith.constant 0 : index
    %c0_0 = arith.constant 0 : index
    %0 = vector.load %arg1[%c0, %c0_0] : memref<8x128xbf16, #tpu.memory_space<vmem>>, vector<8x128xbf16>
    %c0_1 = arith.constant 0 : index
    %c0_2 = arith.constant 0 : index
    %1 = vector.load %arg2[%c0_1, %c0_2] : memref<128x256xbf16, #tpu.memory_space<vmem>>, vector<128x256xbf16>
    %cst = arith.constant dense<0.000000e+00> : vector<8x256xf32>
    %2 = tpu.matmul %0, %1, %cst {dimension_numbers = #tpu.dot_dimension_numbers<[1], [0], [0], [1], [0, 0, 1, 1], [], []>} : vector<8x128xbf16>, vector<128x256xbf16>, vector<8x256xf32> -> vector<8x256xf32>
    %3 = arith.truncf %2 : vector<8x256xf32> to vector<8x256xbf16>
    %c0_3 = arith.constant 0 : index
    %c0_4 = arith.constant 0 : index
    %4 = vector.load %arg3[%c0_3, %c0_4] : memref<8x256xbf16, #tpu.memory_space<vmem>>, vector<8x256xbf16>
    tpu.vector_store %arg3[%c0_3, %c0_4], %3 {strides = array<i32>} : memref<8x256xbf16, #tpu.memory_space<vmem>>, vector<8x256xbf16>,
    %cst_5 = arith.constant dense<0.000000e+00> : vector<256xf32>
    %5 = vector.multi_reduction <add>, %2, %cst_5 [0] : vector<8x256xf32> to vector<256xf32>
    %6 = vector.shape_cast %5 : vector<256xf32> to vector<1x256xf32>
    %7 = arith.mulf %2, %2 : vector<8x256xf32>
    %cst_6 = arith.constant dense<0.000000e+00> : vector<256xf32>
    %8 = vector.multi_reduction <add>, %7, %cst_6 [0] : vector<8x256xf32> to vector<256xf32>
    %9 = vector.shape_cast %8 : vector<256xf32> to vector<1x256xf32>
    %10 = tpu.iota {dimensions = array<i32: 0>} : vector<8x256xi32>
    %c0_i32 = arith.constant 0 : i32
    %11 = vector.broadcast %c0_i32 : i32 to vector<8x256xi32>
    %12 = arith.cmpi eq, %10, %11 : vector<8x256xi32>
    %c1_i32 = arith.constant 1 : i32
    %13 = vector.broadcast %c1_i32 : i32 to vector<8x256xi32>
    %14 = arith.cmpi eq, %10, %13 : vector<8x256xi32>
    %cst_7 = arith.constant 0.000000e+00 : f32
    %15 = vector.shape_cast %9 : vector<1x256xf32> to vector<1x256xf32>
    %16 = vector.broadcast %15 : vector<1x256xf32> to vector<8x256xf32>
    %17 = vector.broadcast %cst_7 : f32 to vector<8x256xf32>
    %18 = arith.select %14, %16, %17 : vector<8x256xi1>, vector<8x256xf32>
    %19 = vector.shape_cast %6 : vector<1x256xf32> to vector<1x256xf32>
    %20 = vector.broadcast %19 : vector<1x256xf32> to vector<8x256xf32>
    %21 = arith.select %12, %20, %18 : vector<8x256xi1>, vector<8x256xf32>
    %c0_8 = arith.constant 0 : index
    %c0_9 = arith.constant 0 : index
    %22 = vector.load %arg4[%c0_8, %c0_9] : memref<8x256xf32, #tpu.memory_space<vmem>>, vector<8x256xf32>
    tpu.vector_store %arg4[%c0_8, %c0_9], %21 {strides = array<i32>} : memref<8x256xf32, #tpu.memory_space<vmem>>, vector<8x256xf32>,
    return
  }
  func.func @transform_0(%arg0: i32) -> (i32, i32) {
    %c0_i32 = arith.constant 0 : i32
    %c0_i32_0 = arith.constant 0 : i32
    return %arg0, %c0_i32 : i32, i32
  }
  func.func @transform_1(%arg0: i32) -> (i32, i32) {
    %c0_i32 = arith.constant 0 : i32
    %c0_i32_0 = arith.constant 0 : i32
    %c0_i32_1 = arith.constant 0 : i32
    return %c0_i32, %c0_i32_0 : i32, i32
  }
  func.func @transform_2(%arg0: i32) -> (i32, i32) {
    %c0_i32 = arith.constant 0 : i32
    %c0_i32_0 = arith.constant 0 : i32
    return %arg0, %c0_i32 : i32, i32
  }
  func.func @transform_3(%arg0: i32) -> (i32, i32) {
    %c0_i32 = arith.constant 0 : i32
    %c0_i32_0 = arith.constant 0 : i32
    return %arg0, %c0_i32 : i32, i32
  }
}

module attributes {stable_mosaic.version = 11 : i64} {
  func.func @conv_matmul_kernel(%arg0: i32, %arg1: memref<8x1152xbf16, #tpu.memory_space<vmem>>, %arg2: memref<1152x256xbf16, #tpu.memory_space<vmem>>, %arg3: memref<8x256xbf16, #tpu.memory_space<vmem>>, %arg4: memref<8x256xf32, #tpu.memory_space<vmem>>) attributes {dimension_semantics = [#tpu.dimension_semantics<parallel>], iteration_bounds = array<i64: 1>, scalar_prefetch = 0 : i64, scratch_operands = 0 : i64, tpu.core_type = #tpu.core_type<tc>, window_params = [{transform_indices = @transform_0, window_bounds = array<i64: 8, 1152>}, {pipeline_mode = #tpu.pipeline_mode<synchronous>, transform_indices = @transform_1, window_bounds = array<i64: 1152, 256>}, {transform_indices = @transform_2, window_bounds = array<i64: 8, 256>}, {transform_indices = @transform_3, window_bounds = array<i64: 8, 256>}]} {
    %c0 = arith.constant 0 : index
    %c0_0 = arith.constant 0 : index
    %0 = vector.load %arg1[%c0, %c0_0] : memref<8x1152xbf16, #tpu.memory_space<vmem>>, vector<8x1152xbf16>
    %c0_1 = arith.constant 0 : index
    %c0_2 = arith.constant 0 : index
    %1 = vector.load %arg2[%c0_1, %c0_2] : memref<1152x256xbf16, #tpu.memory_space<vmem>>, vector<1152x256xbf16>
    %cst = arith.constant dense<0.000000e+00> : vector<8x256xf32>
    %2 = tpu.matmul %0, %1, %cst {dimension_numbers = #tpu.dot_dimension_numbers<[1], [0], [0], [1], [0, 0, 1, 1], [], []>} : vector<8x1152xbf16>, vector<1152x256xbf16>, vector<8x256xf32> -> vector<8x256xf32>
    %3 = arith.truncf %2 : vector<8x256xf32> to vector<8x256xbf16>
    %c0_3 = arith.constant 0 : index
    %c0_4 = arith.constant 0 : index
    %4 = vector.load %arg3[%c0_3, %c0_4] : memref<8x256xbf16, #tpu.memory_space<vmem>>, vector<8x256xbf16>
    tpu.vector_store %arg3[%c0_3, %c0_4], %3 {strides = array<i32>} : memref<8x256xbf16, #tpu.memory_space<vmem>>, vector<8x256xbf16>,
    %cst_5 = arith.constant dense<0.000000e+00> : vector<256xf32>
    %5 = vector.multi_reduction <add>, %2, %cst_5 [0] : vector<8x256xf32> to vector<256xf32>
    %6 = vector.shape_cast %5 : vector<256xf32> to vector<1x256xf32>
    %7 = arith.mulf %2, %2 : vector<8x256xf32>
    %cst_6 = arith.constant dense<0.000000e+00> : vector<256xf32>
    %8 = vector.multi_reduction <add>, %7, %cst_6 [0] : vector<8x256xf32> to vector<256xf32>
    %9 = vector.shape_cast %8 : vector<256xf32> to vector<1x256xf32>
    %10 = tpu.iota {dimensions = array<i32: 0>} : vector<8x256xi32>
    %c0_i32 = arith.constant 0 : i32
    %11 = vector.broadcast %c0_i32 : i32 to vector<8x256xi32>
    %12 = arith.cmpi eq, %10, %11 : vector<8x256xi32>
    %c1_i32 = arith.constant 1 : i32
    %13 = vector.broadcast %c1_i32 : i32 to vector<8x256xi32>
    %14 = arith.cmpi eq, %10, %13 : vector<8x256xi32>
    %cst_7 = arith.constant 0.000000e+00 : f32
    %15 = vector.shape_cast %9 : vector<1x256xf32> to vector<1x256xf32>
    %16 = vector.broadcast %15 : vector<1x256xf32> to vector<8x256xf32>
    %17 = vector.broadcast %cst_7 : f32 to vector<8x256xf32>
    %18 = arith.select %14, %16, %17 : vector<8x256xi1>, vector<8x256xf32>
    %19 = vector.shape_cast %6 : vector<1x256xf32> to vector<1x256xf32>
    %20 = vector.broadcast %19 : vector<1x256xf32> to vector<8x256xf32>
    %21 = arith.select %12, %20, %18 : vector<8x256xi1>, vector<8x256xf32>
    %c0_8 = arith.constant 0 : index
    %c0_9 = arith.constant 0 : index
    %22 = vector.load %arg4[%c0_8, %c0_9] : memref<8x256xf32, #tpu.memory_space<vmem>>, vector<8x256xf32>
    tpu.vector_store %arg4[%c0_8, %c0_9], %21 {strides = array<i32>} : memref<8x256xf32, #tpu.memory_space<vmem>>, vector<8x256xf32>,
    return
  }
  func.func @transform_0(%arg0: i32) -> (i32, i32) {
    %c0_i32 = arith.constant 0 : i32
    %c0_i32_0 = arith.constant 0 : i32
    return %arg0, %c0_i32 : i32, i32
  }
  func.func @transform_1(%arg0: i32) -> (i32, i32) {
    %c0_i32 = arith.constant 0 : i32
    %c0_i32_0 = arith.constant 0 : i32
    %c0_i32_1 = arith.constant 0 : i32
    return %c0_i32, %c0_i32_0 : i32, i32
  }
  func.func @transform_2(%arg0: i32) -> (i32, i32) {
    %c0_i32 = arith.constant 0 : i32
    %c0_i32_0 = arith.constant 0 : i32
    return %arg0, %c0_i32 : i32, i32
  }
  func.func @transform_3(%arg0: i32) -> (i32, i32) {
    %c0_i32 = arith.constant 0 : i32
    %c0_i32_0 = arith.constant 0 : i32
    return %arg0, %c0_i32 : i32, i32
  }
}

module attributes {stable_mosaic.version = 11 : i64} {
  func.func @kernel(%arg0: i32, %arg1: memref<8x256xbf16, #tpu.memory_space<vmem>>, %arg2: memref<1x256xf32, #tpu.memory_space<vmem>>, %arg3: memref<1x256xf32, #tpu.memory_space<vmem>>, %arg4: memref<8x256xbf16, #tpu.memory_space<vmem>>) attributes {dimension_semantics = [#tpu.dimension_semantics<parallel>], iteration_bounds = array<i64: 1>, scalar_prefetch = 0 : i64, scratch_operands = 0 : i64, tpu.core_type = #tpu.core_type<tc>, window_params = [{transform_indices = @transform_0, window_bounds = array<i64: 8, 256>}, {pipeline_mode = #tpu.pipeline_mode<synchronous>, transform_indices = @transform_1, window_bounds = array<i64: 1, 256>}, {pipeline_mode = #tpu.pipeline_mode<synchronous>, transform_indices = @transform_2, window_bounds = array<i64: 1, 256>}, {transform_indices = @transform_3, window_bounds = array<i64: 8, 256>}]} {
    %c0 = arith.constant 0 : index
    %c0_0 = arith.constant 0 : index
    %0 = vector.load %arg1[%c0, %c0_0] : memref<8x256xbf16, #tpu.memory_space<vmem>>, vector<8x256xbf16>
    %1 = arith.extf %0 : vector<8x256xbf16> to vector<8x256xf32>
    %c0_1 = arith.constant 0 : index
    %c0_2 = arith.constant 0 : index
    %2 = vector.load %arg2[%c0_1, %c0_2] : memref<1x256xf32, #tpu.memory_space<vmem>>, vector<1x256xf32>
    %3 = vector.broadcast %2 : vector<1x256xf32> to vector<8x256xf32>
    %4 = arith.mulf %1, %3 : vector<8x256xf32>
    %c0_3 = arith.constant 0 : index
    %c0_4 = arith.constant 0 : index
    %5 = vector.load %arg3[%c0_3, %c0_4] : memref<1x256xf32, #tpu.memory_space<vmem>>, vector<1x256xf32>
    %6 = vector.broadcast %5 : vector<1x256xf32> to vector<8x256xf32>
    %7 = arith.addf %4, %6 : vector<8x256xf32>
    %cst = arith.constant 0.000000e+00 : f32
    %8 = vector.broadcast %cst : f32 to vector<8x256xf32>
    %9 = arith.maximumf %7, %8 : vector<8x256xf32>
    %10 = arith.truncf %9 : vector<8x256xf32> to vector<8x256xbf16>
    %c0_5 = arith.constant 0 : index
    %c0_6 = arith.constant 0 : index
    %11 = vector.load %arg4[%c0_5, %c0_6] : memref<8x256xbf16, #tpu.memory_space<vmem>>, vector<8x256xbf16>
    tpu.vector_store %arg4[%c0_5, %c0_6], %10 {strides = array<i32>} : memref<8x256xbf16, #tpu.memory_space<vmem>>, vector<8x256xbf16>,
    return
  }
  func.func @transform_0(%arg0: i32) -> (i32, i32) {
    %c0_i32 = arith.constant 0 : i32
    %c0_i32_0 = arith.constant 0 : i32
    return %arg0, %c0_i32 : i32, i32
  }
  func.func @transform_1(%arg0: i32) -> (i32, i32) {
    %c0_i32 = arith.constant 0 : i32
    %c0_i32_0 = arith.constant 0 : i32
    %c0_i32_1 = arith.constant 0 : i32
    return %c0_i32, %c0_i32_0 : i32, i32
  }
  func.func @transform_2(%arg0: i32) -> (i32, i32) {
    %c0_i32 = arith.constant 0 : i32
    %c0_i32_0 = arith.constant 0 : i32
    %c0_i32_1 = arith.constant 0 : i32
    return %c0_i32, %c0_i32_0 : i32, i32
  }
  func.func @transform_3(%arg0: i32) -> (i32, i32) {
    %c0_i32 = arith.constant 0 : i32
    %c0_i32_0 = arith.constant 0 : i32
    return %arg0, %c0_i32 : i32, i32
  }
}

module attributes {stable_mosaic.version = 11 : i64} {
  func.func @conv_matmul_kernel(%arg0: i32, %arg1: memref<8x2304xbf16, #tpu.memory_space<vmem>>, %arg2: memref<2304x256xbf16, #tpu.memory_space<vmem>>, %arg3: memref<8x256xbf16, #tpu.memory_space<vmem>>, %arg4: memref<8x256xf32, #tpu.memory_space<vmem>>) attributes {dimension_semantics = [#tpu.dimension_semantics<parallel>], iteration_bounds = array<i64: 1>, scalar_prefetch = 0 : i64, scratch_operands = 0 : i64, tpu.core_type = #tpu.core_type<tc>, window_params = [{transform_indices = @transform_0, window_bounds = array<i64: 8, 2304>}, {pipeline_mode = #tpu.pipeline_mode<synchronous>, transform_indices = @transform_1, window_bounds = array<i64: 2304, 256>}, {transform_indices = @transform_2, window_bounds = array<i64: 8, 256>}, {transform_indices = @transform_3, window_bounds = array<i64: 8, 256>}]} {
    %c0 = arith.constant 0 : index
    %c0_0 = arith.constant 0 : index
    %0 = vector.load %arg1[%c0, %c0_0] : memref<8x2304xbf16, #tpu.memory_space<vmem>>, vector<8x2304xbf16>
    %c0_1 = arith.constant 0 : index
    %c0_2 = arith.constant 0 : index
    %1 = vector.load %arg2[%c0_1, %c0_2] : memref<2304x256xbf16, #tpu.memory_space<vmem>>, vector<2304x256xbf16>
    %cst = arith.constant dense<0.000000e+00> : vector<8x256xf32>
    %2 = tpu.matmul %0, %1, %cst {dimension_numbers = #tpu.dot_dimension_numbers<[1], [0], [0], [1], [0, 0, 1, 1], [], []>} : vector<8x2304xbf16>, vector<2304x256xbf16>, vector<8x256xf32> -> vector<8x256xf32>
    %3 = arith.truncf %2 : vector<8x256xf32> to vector<8x256xbf16>
    %c0_3 = arith.constant 0 : index
    %c0_4 = arith.constant 0 : index
    %4 = vector.load %arg3[%c0_3, %c0_4] : memref<8x256xbf16, #tpu.memory_space<vmem>>, vector<8x256xbf16>
    tpu.vector_store %arg3[%c0_3, %c0_4], %3 {strides = array<i32>} : memref<8x256xbf16, #tpu.memory_space<vmem>>, vector<8x256xbf16>,
    %cst_5 = arith.constant dense<0.000000e+00> : vector<256xf32>
    %5 = vector.multi_reduction <add>, %2, %cst_5 [0] : vector<8x256xf32> to vector<256xf32>
    %6 = vector.shape_cast %5 : vector<256xf32> to vector<1x256xf32>
    %7 = arith.mulf %2, %2 : vector<8x256xf32>
    %cst_6 = arith.constant dense<0.000000e+00> : vector<256xf32>
    %8 = vector.multi_reduction <add>, %7, %cst_6 [0] : vector<8x256xf32> to vector<256xf32>
    %9 = vector.shape_cast %8 : vector<256xf32> to vector<1x256xf32>
    %10 = tpu.iota {dimensions = array<i32: 0>} : vector<8x256xi32>
    %c0_i32 = arith.constant 0 : i32
    %11 = vector.broadcast %c0_i32 : i32 to vector<8x256xi32>
    %12 = arith.cmpi eq, %10, %11 : vector<8x256xi32>
    %c1_i32 = arith.constant 1 : i32
    %13 = vector.broadcast %c1_i32 : i32 to vector<8x256xi32>
    %14 = arith.cmpi eq, %10, %13 : vector<8x256xi32>
    %cst_7 = arith.constant 0.000000e+00 : f32
    %15 = vector.shape_cast %9 : vector<1x256xf32> to vector<1x256xf32>
    %16 = vector.broadcast %15 : vector<1x256xf32> to vector<8x256xf32>
    %17 = vector.broadcast %cst_7 : f32 to vector<8x256xf32>
    %18 = arith.select %14, %16, %17 : vector<8x256xi1>, vector<8x256xf32>
    %19 = vector.shape_cast %6 : vector<1x256xf32> to vector<1x256xf32>
    %20 = vector.broadcast %19 : vector<1x256xf32> to vector<8x256xf32>
    %21 = arith.select %12, %20, %18 : vector<8x256xi1>, vector<8x256xf32>
    %c0_8 = arith.constant 0 : index
    %c0_9 = arith.constant 0 : index
    %22 = vector.load %arg4[%c0_8, %c0_9] : memref<8x256xf32, #tpu.memory_space<vmem>>, vector<8x256xf32>
    tpu.vector_store %arg4[%c0_8, %c0_9], %21 {strides = array<i32>} : memref<8x256xf32, #tpu.memory_space<vmem>>, vector<8x256xf32>,
    return
  }
  func.func @transform_0(%arg0: i32) -> (i32, i32) {
    %c0_i32 = arith.constant 0 : i32
    %c0_i32_0 = arith.constant 0 : i32
    return %arg0, %c0_i32 : i32, i32
  }
  func.func @transform_1(%arg0: i32) -> (i32, i32) {
    %c0_i32 = arith.constant 0 : i32
    %c0_i32_0 = arith.constant 0 : i32
    %c0_i32_1 = arith.constant 0 : i32
    return %c0_i32, %c0_i32_0 : i32, i32
  }
  func.func @transform_2(%arg0: i32) -> (i32, i32) {
    %c0_i32 = arith.constant 0 : i32
    %c0_i32_0 = arith.constant 0 : i32
    return %arg0, %c0_i32 : i32, i32
  }
  func.func @transform_3(%arg0: i32) -> (i32, i32) {
    %c0_i32 = arith.constant 0 : i32
    %c0_i32_0 = arith.constant 0 : i32
    return %arg0, %c0_i32 : i32, i32
  }
}

module attributes {stable_mosaic.version = 11 : i64} {
  func.func @kernel(%arg0: i32, %arg1: memref<8x256xbf16, #tpu.memory_space<vmem>>, %arg2: memref<1x256xf32, #tpu.memory_space<vmem>>, %arg3: memref<1x256xf32, #tpu.memory_space<vmem>>, %arg4: memref<8x256xbf16, #tpu.memory_space<vmem>>, %arg5: memref<1x256xf32, #tpu.memory_space<vmem>>, %arg6: memref<1x256xf32, #tpu.memory_space<vmem>>, %arg7: memref<8x256xbf16, #tpu.memory_space<vmem>>) attributes {dimension_semantics = [#tpu.dimension_semantics<parallel>], iteration_bounds = array<i64: 1>, scalar_prefetch = 0 : i64, scratch_operands = 0 : i64, tpu.core_type = #tpu.core_type<tc>, window_params = [{transform_indices = @transform_0, window_bounds = array<i64: 8, 256>}, {pipeline_mode = #tpu.pipeline_mode<synchronous>, transform_indices = @transform_1, window_bounds = array<i64: 1, 256>}, {pipeline_mode = #tpu.pipeline_mode<synchronous>, transform_indices = @transform_2, window_bounds = array<i64: 1, 256>}, {transform_indices = @transform_3, window_bounds = array<i64: 8, 256>}, {pipeline_mode = #tpu.pipeline_mode<synchronous>, transform_indices = @transform_4, window_bounds = array<i64: 1, 256>}, {pipeline_mode = #tpu.pipeline_mode<synchronous>, transform_indices = @transform_5, window_bounds = array<i64: 1, 256>}, {transform_indices = @transform_6, window_bounds = array<i64: 8, 256>}]} {
    %c0 = arith.constant 0 : index
    %c0_0 = arith.constant 0 : index
    %0 = vector.load %arg1[%c0, %c0_0] : memref<8x256xbf16, #tpu.memory_space<vmem>>, vector<8x256xbf16>
    %1 = arith.extf %0 : vector<8x256xbf16> to vector<8x256xf32>
    %c0_1 = arith.constant 0 : index
    %c0_2 = arith.constant 0 : index
    %2 = vector.load %arg2[%c0_1, %c0_2] : memref<1x256xf32, #tpu.memory_space<vmem>>, vector<1x256xf32>
    %3 = vector.broadcast %2 : vector<1x256xf32> to vector<8x256xf32>
    %4 = arith.mulf %1, %3 : vector<8x256xf32>
    %c0_3 = arith.constant 0 : index
    %c0_4 = arith.constant 0 : index
    %5 = vector.load %arg3[%c0_3, %c0_4] : memref<1x256xf32, #tpu.memory_space<vmem>>, vector<1x256xf32>
    %6 = vector.broadcast %5 : vector<1x256xf32> to vector<8x256xf32>
    %7 = arith.addf %4, %6 : vector<8x256xf32>
    %c0_5 = arith.constant 0 : index
    %c0_6 = arith.constant 0 : index
    %8 = vector.load %arg4[%c0_5, %c0_6] : memref<8x256xbf16, #tpu.memory_space<vmem>>, vector<8x256xbf16>
    %9 = arith.extf %8 : vector<8x256xbf16> to vector<8x256xf32>
    %c0_7 = arith.constant 0 : index
    %c0_8 = arith.constant 0 : index
    %10 = vector.load %arg5[%c0_7, %c0_8] : memref<1x256xf32, #tpu.memory_space<vmem>>, vector<1x256xf32>
    %11 = vector.broadcast %10 : vector<1x256xf32> to vector<8x256xf32>
    %12 = arith.mulf %9, %11 : vector<8x256xf32>
    %c0_9 = arith.constant 0 : index
    %c0_10 = arith.constant 0 : index
    %13 = vector.load %arg6[%c0_9, %c0_10] : memref<1x256xf32, #tpu.memory_space<vmem>>, vector<1x256xf32>
    %14 = vector.broadcast %13 : vector<1x256xf32> to vector<8x256xf32>
    %15 = arith.addf %12, %14 : vector<8x256xf32>
    %16 = arith.addf %7, %15 : vector<8x256xf32>
    %cst = arith.constant 0.000000e+00 : f32
    %17 = vector.broadcast %cst : f32 to vector<8x256xf32>
    %18 = arith.maximumf %16, %17 : vector<8x256xf32>
    %19 = arith.truncf %18 : vector<8x256xf32> to vector<8x256xbf16>
    %c0_11 = arith.constant 0 : index
    %c0_12 = arith.constant 0 : index
    %20 = vector.load %arg7[%c0_11, %c0_12] : memref<8x256xbf16, #tpu.memory_space<vmem>>, vector<8x256xbf16>
    tpu.vector_store %arg7[%c0_11, %c0_12], %19 {strides = array<i32>} : memref<8x256xbf16, #tpu.memory_space<vmem>>, vector<8x256xbf16>,
    return
  }
  func.func @transform_0(%arg0: i32) -> (i32, i32) {
    %c0_i32 = arith.constant 0 : i32
    %c0_i32_0 = arith.constant 0 : i32
    return %arg0, %c0_i32 : i32, i32
  }
  func.func @transform_1(%arg0: i32) -> (i32, i32) {
    %c0_i32 = arith.constant 0 : i32
    %c0_i32_0 = arith.constant 0 : i32
    %c0_i32_1 = arith.constant 0 : i32
    return %c0_i32, %c0_i32_0 : i32, i32
  }
  func.func @transform_2(%arg0: i32) -> (i32, i32) {
    %c0_i32 = arith.constant 0 : i32
    %c0_i32_0 = arith.constant 0 : i32
    %c0_i32_1 = arith.constant 0 : i32
    return %c0_i32, %c0_i32_0 : i32, i32
  }
  func.func @transform_3(%arg0: i32) -> (i32, i32) {
    %c0_i32 = arith.constant 0 : i32
    %c0_i32_0 = arith.constant 0 : i32
    return %arg0, %c0_i32 : i32, i32
  }
  func.func @transform_4(%arg0: i32) -> (i32, i32) {
    %c0_i32 = arith.constant 0 : i32
    %c0_i32_0 = arith.constant 0 : i32
    %c0_i32_1 = arith.constant 0 : i32
    return %c0_i32, %c0_i32_0 : i32, i32
  }
  func.func @transform_5(%arg0: i32) -> (i32, i32) {
    %c0_i32 = arith.constant 0 : i32
    %c0_i32_0 = arith.constant 0 : i32
    %c0_i32_1 = arith.constant 0 : i32
    return %c0_i32, %c0_i32_0 : i32, i32
  }
  func.func @transform_6(%arg0: i32) -> (i32, i32) {
    %c0_i32 = arith.constant 0 : i32
    %c0_i32_0 = arith.constant 0 : i32
    return %arg0, %c0_i32 : i32, i32
  }
}

module attributes {stable_mosaic.version = 11 : i64} {
  func.func @kernel(%arg0: i32, %arg1: memref<8x256xbf16, #tpu.memory_space<vmem>>, %arg2: memref<1x256xf32, #tpu.memory_space<vmem>>, %arg3: memref<1x256xf32, #tpu.memory_space<vmem>>, %arg4: memref<8x256xbf16, #tpu.memory_space<vmem>>, %arg5: memref<8x256xbf16, #tpu.memory_space<vmem>>) attributes {dimension_semantics = [#tpu.dimension_semantics<parallel>], iteration_bounds = array<i64: 1>, scalar_prefetch = 0 : i64, scratch_operands = 0 : i64, tpu.core_type = #tpu.core_type<tc>, window_params = [{transform_indices = @transform_0, window_bounds = array<i64: 8, 256>}, {pipeline_mode = #tpu.pipeline_mode<synchronous>, transform_indices = @transform_1, window_bounds = array<i64: 1, 256>}, {pipeline_mode = #tpu.pipeline_mode<synchronous>, transform_indices = @transform_2, window_bounds = array<i64: 1, 256>}, {transform_indices = @transform_3, window_bounds = array<i64: 8, 256>}, {transform_indices = @transform_4, window_bounds = array<i64: 8, 256>}]} {
    %c0 = arith.constant 0 : index
    %c0_0 = arith.constant 0 : index
    %0 = vector.load %arg1[%c0, %c0_0] : memref<8x256xbf16, #tpu.memory_space<vmem>>, vector<8x256xbf16>
    %1 = arith.extf %0 : vector<8x256xbf16> to vector<8x256xf32>
    %c0_1 = arith.constant 0 : index
    %c0_2 = arith.constant 0 : index
    %2 = vector.load %arg2[%c0_1, %c0_2] : memref<1x256xf32, #tpu.memory_space<vmem>>, vector<1x256xf32>
    %3 = vector.broadcast %2 : vector<1x256xf32> to vector<8x256xf32>
    %4 = arith.mulf %1, %3 : vector<8x256xf32>
    %c0_3 = arith.constant 0 : index
    %c0_4 = arith.constant 0 : index
    %5 = vector.load %arg3[%c0_3, %c0_4] : memref<1x256xf32, #tpu.memory_space<vmem>>, vector<1x256xf32>
    %6 = vector.broadcast %5 : vector<1x256xf32> to vector<8x256xf32>
    %7 = arith.addf %4, %6 : vector<8x256xf32>
    %c0_5 = arith.constant 0 : index
    %c0_6 = arith.constant 0 : index
    %8 = vector.load %arg4[%c0_5, %c0_6] : memref<8x256xbf16, #tpu.memory_space<vmem>>, vector<8x256xbf16>
    %9 = arith.extf %8 : vector<8x256xbf16> to vector<8x256xf32>
    %10 = arith.addf %7, %9 : vector<8x256xf32>
    %cst = arith.constant 0.000000e+00 : f32
    %11 = vector.broadcast %cst : f32 to vector<8x256xf32>
    %12 = arith.maximumf %10, %11 : vector<8x256xf32>
    %13 = arith.truncf %12 : vector<8x256xf32> to vector<8x256xbf16>
    %c0_7 = arith.constant 0 : index
    %c0_8 = arith.constant 0 : index
    %14 = vector.load %arg5[%c0_7, %c0_8] : memref<8x256xbf16, #tpu.memory_space<vmem>>, vector<8x256xbf16>
    tpu.vector_store %arg5[%c0_7, %c0_8], %13 {strides = array<i32>} : memref<8x256xbf16, #tpu.memory_space<vmem>>, vector<8x256xbf16>,
    return
  }
  func.func @transform_0(%arg0: i32) -> (i32, i32) {
    %c0_i32 = arith.constant 0 : i32
    %c0_i32_0 = arith.constant 0 : i32
    return %arg0, %c0_i32 : i32, i32
  }
  func.func @transform_1(%arg0: i32) -> (i32, i32) {
    %c0_i32 = arith.constant 0 : i32
    %c0_i32_0 = arith.constant 0 : i32
    %c0_i32_1 = arith.constant 0 : i32
    return %c0_i32, %c0_i32_0 : i32, i32
  }
  func.func @transform_2(%arg0: i32) -> (i32, i32) {
    %c0_i32 = arith.constant 0 : i32
    %c0_i32_0 = arith.constant 0 : i32
    %c0_i32_1 = arith.constant 0 : i32
    return %c0_i32, %c0_i32_0 : i32, i32
  }
  func.func @transform_3(%arg0: i32) -> (i32, i32) {
    %c0_i32 = arith.constant 0 : i32
    %c0_i32_0 = arith.constant 0 : i32
    return %arg0, %c0_i32 : i32, i32
  }
  func.func @transform_4(%arg0: i32) -> (i32, i32) {
    %c0_i32 = arith.constant 0 : i32
    %c0_i32_0 = arith.constant 0 : i32
    return %arg0, %c0_i32 : i32, i32
  }
}

</mosaic_0001>

<bundles_post_ra>
// kernel: tile.73
= control target key start
LH: loop header
LB: loop body
LE: loop exit
PB: predicated region body
PF: predicated region fallthrough
CT: control target
= control target key end

     0   :  { %s22_s0 = inlined_call_operand.vmem [shape: f32[64], index: 0, kind: input, shape index: {}]   ;;  %s23_s1 = inlined_call_operand.vmem [shape: f32[2,64], index: 1, kind: output, shape index: {}]  }
   0x1   :  { %v4_v0 = vld [vmem:[%s22_s0] ss:$0 sm:$0xff] }
   0x2   :  { %5 = vst [vmem:[%s23_s1] sm:$0x3] %v4_v0 }

// kernel: tile.74
= control target key start
LH: loop header
LB: loop body
LE: loop exit
PB: predicated region body
PF: predicated region fallthrough
CT: control target
= control target key end

     0   :  { %vm8_vm0 = vcmask 523264   ;;  %vm14_vm1 = vcmask 1048064   ;;  %s42_s0 = inlined_call_operand.vmem [shape: f32[2,64], index: 0, kind: input, shape index: {}]   ;;  %s43_s1 = inlined_call_operand.vmem [shape: f32[1,128], index: 1, kind: output, shape index: {}]  }
   0x1   :  { %v5_v0 = vld [vmem:[%s42_s0] sm:$0x3]  ;;  %s25_s0 = smov 64  }
   0x2   :  { %6 = vst [vmem:[#allocation1] sm:$0x3] %v5_v0 }
   0x9   :  { %v11_v1 = vld [vmem:[#allocation1 + $0x1] sm:$0x1]   ;;  %v7_v2 = vld [vmem:[#allocation1] sm:$0x1]  }
   0xa   :  { %12 = vrot.lane.b32.xlu0 %v11_v1, %s25_s0  ;;  %9 = vst.msk [vmem:[#allocation0] sm:$0x1] %vm8_vm0, %v7_v2  }
  0x7c   :  { %v13_v3 = vpop.permute.xlu0 %12  }
  0x7d   :  { %15 = vst.msk [vmem:[#allocation0] sm:$0x1] %vm14_vm1, %v13_v3  }
  0x84   :  { %v20_v4 = vld [vmem:[#allocation0] sm:$0x1] }
  0x85   :  { %23 = vst [vmem:[%s43_s1] sm:$0x1] %v20_v4 }

// kernel: resnet_forward.30
= control target key start
LH: loop header
LB: loop body
LE: loop exit
PB: predicated region body
PF: predicated region fallthrough
CT: control target
= control target key end

     0   :  { %s782_s0 = inlined_call_operand.vmem [shape: bf16[256,128], index: 0, kind: input, shape index: {}]   ;;  %s783_s1 = inlined_call_operand.vmem [shape: f32[1,128], index: 1, kind: input, shape index: {}]   ;;  %s784_s2 = inlined_call_operand.vmem [shape: f32[1,128], index: 2, kind: input, shape index: {}]   ;;  %s785_s3 = inlined_call_operand.vmem [shape: bf16[256,128], index: 3, kind: output, shape index: {}]  }
   0x1   :  { %v419_v0 = vld [vmem:[%s782_s0] sm:$0xff]   ;;  %v562_v4 = vld [vmem:[%s782_s0 + $0x8] sm:$0xff]   ;;  %v563_v5 = vld [vmem:[%s782_s0 + $0x10] sm:$0xff]  }
   0x2   :  { %v618_v1 = vld [vmem:[%s783_s1] ss:$0 sm:$0xff]  ;;  %v420_v2 = vunpack.c.l.bf16 %v419_v0  ;;  %v421_v3 = vunpack.c.h.bf16 %v419_v0  ;;  %v564_v6 = vld [vmem:[%s782_s0 + $0x18] sm:$0xff]   ;;  %v424_v8 = vunpack.c.l.bf16 %v562_v4  ;;  %v425_v9 = vunpack.c.h.bf16 %v562_v4  ;;  %v566_v33 = vld [vmem:[%s782_s0 + $0x28] sm:$0xff]  }
   0x3   :  { %v632_v7 = vld [vmem:[%s784_s2] ss:$0 sm:$0xff]  ;;  %v428_v10 = vunpack.c.l.bf16 %v563_v5  ;;  %v429_v11 = vunpack.c.h.bf16 %v563_v5  ;;  %v432_v14 = vunpack.c.l.bf16 %v564_v6  ;;  %v433_v15 = vunpack.c.h.bf16 %v564_v6  ;;  %v567_v38 = vld [vmem:[%s782_s0 + $0x30] sm:$0xff]   ;;  %v568_v43 = vld [vmem:[%s782_s0 + $0x38] sm:$0xff]  }
   0x4   :  { %v85_v12 = vmul.f32 %v420_v2, %v618_v1  ;;  %v86_v13 = vmul.f32 %v421_v3, %v618_v1  ;;  %v87_v16 = vmul.f32 %v424_v8, %v618_v1  ;;  %v88_v17 = vmul.f32 %v425_v9, %v618_v1  ;;  %v565_v28 = vld [vmem:[%s782_s0 + $0x20] sm:$0xff]  }
   0x5   :  { %v89_v18 = vmul.f32 %v428_v10, %v618_v1  ;;  %v90_v19 = vmul.f32 %v429_v11, %v618_v1  ;;  %v91_v22 = vmul.f32 %v432_v14, %v618_v1  ;;  %v92_v23 = vmul.f32 %v433_v15, %v618_v1  ;;  %v569_v0 = vld [vmem:[%s782_s0 + $0x40] sm:$0xff]   ;;  %v570_v11 = vld [vmem:[%s782_s0 + $0x48] sm:$0xff]  }
   0x6   :  { %v124_v20 = vadd.f32 %v632_v7, %v85_v12  ;;  %v125_v21 = vadd.f32 %v632_v7, %v86_v13  ;;  %v126_v24 = vadd.f32 %v632_v7, %v87_v16  ;;  %v127_v25 = vadd.f32 %v632_v7, %v88_v17  ;;  %v571_v16 = vld [vmem:[%s782_s0 + $0x50] sm:$0xff]  }
   0x7   :  { %v128_v26 = vadd.f32 %v632_v7, %v89_v18  ;;  %v129_v27 = vadd.f32 %v632_v7, %v90_v19  ;;  %v130_v31 = vadd.f32 %v632_v7, %v91_v22  ;;  %v131_v32 = vadd.f32 %v632_v7, %v92_v23 }
   0x8   :  { %v156_v29 = vmax.f32 %v124_v20, 0.0  ;;  %v157_v30 = vmax.f32 %v125_v21, 0.0  ;;  %v158_v34 = vmax.f32 %v126_v24, 0.0  ;;  %v159_v35 = vmax.f32 %v127_v25, 0.0  ;;  %v572_v25 = vld [vmem:[%s782_s0 + $0x58] sm:$0xff]  }
   0x9   :  { %v160_v36 = vmax.f32 %v128_v26, 0.0  ;;  %v161_v37 = vmax.f32 %v129_v27, 0.0  ;;  %v162_v40 = vmax.f32 %v130_v31, 0.0  ;;  %v163_v41 = vmax.f32 %v131_v32, 0.0 }
   0xa   :  { %v485_v39 = vpack.c.bf16 %v157_v30, %v156_v29  ;;  %v436_v42 = vunpack.c.l.bf16 %v565_v28  ;;  %v490_v44 = vpack.c.bf16 %v159_v35, %v158_v34  ;;  %v437_v46 = vunpack.c.h.bf16 %v565_v28 }
   0xb   :  { %v495_v45 = vpack.c.bf16 %v161_v37, %v160_v36  ;;  %v440_v47 = vunpack.c.l.bf16 %v566_v33  ;;  %v500_v48 = vpack.c.bf16 %v163_v41, %v162_v40  ;;  %v441_v50 = vunpack.c.h.bf16 %v566_v33 }
   0xc   :  { %486 = vst [vmem:[%s785_s3] sm:$0xff] %v485_v39   ;;  %v93_v49 = vmul.f32 %v436_v42, %v618_v1  ;;  %v444_v51 = vunpack.c.l.bf16 %v567_v38  ;;  %577 = vst [vmem:[%s785_s3 + $0x8] sm:$0xff] %v490_v44   ;;  %v94_v52 = vmul.f32 %v437_v46, %v618_v1  ;;  %v445_v54 = vunpack.c.h.bf16 %v567_v38  ;;  %v573_v38 = vld [vmem:[%s782_s0 + $0x60] sm:$0xff]  }
   0xd   :  { %578 = vst [vmem:[%s785_s3 + $0x10] sm:$0xff] %v495_v45   ;;  %v95_v53 = vmul.f32 %v440_v47, %v618_v1  ;;  %v448_v55 = vunpack.c.l.bf16 %v568_v43  ;;  %579 = vst [vmem:[%s785_s3 + $0x18] sm:$0xff] %v500_v48   ;;  %v96_v57 = vmul.f32 %v441_v50, %v618_v1  ;;  %v449_v59 = vunpack.c.h.bf16 %v568_v43 }
   0xe   :  { %v132_v56 = vadd.f32 %v632_v7, %v93_v49  ;;  %v97_v58 = vmul.f32 %v444_v51, %v618_v1  ;;  %v133_v60 = vadd.f32 %v632_v7, %v94_v52  ;;  %v98_v62 = vmul.f32 %v445_v54, %v618_v1  ;;  %v574_v51 = vld [vmem:[%s782_s0 + $0x68] sm:$0xff]  }
   0xf   :  { %v134_v61 = vadd.f32 %v632_v7, %v95_v53  ;;  %v99_v63 = vmul.f32 %v448_v55, %v618_v1  ;;  %v135_v3 = vadd.f32 %v632_v7, %v96_v57  ;;  %v100_v5 = vmul.f32 %v449_v59, %v618_v1 }
  0x10   :  { %v164_v2 = vmax.f32 %v132_v56, 0.0  ;;  %v136_v4 = vadd.f32 %v632_v7, %v97_v58  ;;  %v165_v6 = vmax.f32 %v133_v60, 0.0  ;;  %v137_v9 = vadd.f32 %v632_v7, %v98_v62  ;;  %v575_v60 = vld [vmem:[%s782_s0 + $0x70] sm:$0xff]  }
  0x11   :  { %v166_v8 = vmax.f32 %v134_v61, 0.0  ;;  %v138_v10 = vadd.f32 %v632_v7, %v99_v63  ;;  %v167_v12 = vmax.f32 %v135_v3, 0.0  ;;  %v139_v14 = vadd.f32 %v632_v7, %v100_v5 }
  0x12   :  { %v168_v13 = vmax.f32 %v136_v4, 0.0  ;;  %v452_v15 = vunpack.c.l.bf16 %v569_v0  ;;  %v505_v17 = vpack.c.bf16 %v165_v6, %v164_v2  ;;  %v169_v18 = vmax.f32 %v137_v9, 0.0  ;;  %v576_v2 = vld [vmem:[%s782_s0 + $0x78] sm:$0xff]  }
  0x13   :  { %v170_v19 = vmax.f32 %v138_v10, 0.0  ;;  %v453_v20 = vunpack.c.h.bf16 %v569_v0  ;;  %v510_v21 = vpack.c.bf16 %v167_v12, %v166_v8  ;;  %v171_v22 = vmax.f32 %v139_v14, 0.0 }
  0x14   :  { %v101_v23 = vmul.f32 %v452_v15, %v618_v1  ;;  %v456_v24 = vunpack.c.l.bf16 %v570_v11  ;;  %580 = vst [vmem:[%s785_s3 + $0x20] sm:$0xff] %v505_v17   ;;  %v515_v26 = vpack.c.bf16 %v169_v18, %v168_v13  ;;  %v457_v28 = vunpack.c.h.bf16 %v570_v11 }
  0x15   :  { %v102_v27 = vmul.f32 %v453_v20, %v618_v1  ;;  %v460_v29 = vunpack.c.l.bf16 %v571_v16  ;;  %581 = vst [vmem:[%s785_s3 + $0x28] sm:$0xff] %v510_v21   ;;  %v520_v30 = vpack.c.bf16 %v171_v22, %v170_v19  ;;  %v461_v33 = vunpack.c.h.bf16 %v571_v16 }
  0x16   :  { %v140_v31 = vadd.f32 %v632_v7, %v101_v23  ;;  %v103_v32 = vmul.f32 %v456_v24, %v618_v1  ;;  %582 = vst [vmem:[%s785_s3 + $0x30] sm:$0xff] %v515_v26   ;;  %v104_v35 = vmul.f32 %v457_v28, %v618_v1  ;;  %v464_v37 = vunpack.c.l.bf16 %v572_v25 }
  0x17   :  { %v141_v34 = vadd.f32 %v632_v7, %v102_v27  ;;  %v105_v36 = vmul.f32 %v460_v29, %v618_v1  ;;  %583 = vst [vmem:[%s785_s3 + $0x38] sm:$0xff] %v520_v30   ;;  %v106_v41 = vmul.f32 %v461_v33, %v618_v1  ;;  %v465_v42 = vunpack.c.h.bf16 %v572_v25 }
  0x18   :  { %v172_v39 = vmax.f32 %v140_v31, 0.0  ;;  %v142_v40 = vadd.f32 %v632_v7, %v103_v32  ;;  %v143_v44 = vadd.f32 %v632_v7, %v104_v35  ;;  %v107_v46 = vmul.f32 %v464_v37, %v618_v1 }
  0x19   :  { %v173_v43 = vmax.f32 %v141_v34, 0.0  ;;  %v144_v45 = vadd.f32 %v632_v7, %v105_v36  ;;  %v145_v48 = vadd.f32 %v632_v7, %v106_v41  ;;  %v108_v49 = vmul.f32 %v465_v42, %v618_v1 }
  0x1a   :  { %v174_v47 = vmax.f32 %v142_v40, 0.0  ;;  %v468_v50 = vunpack.c.l.bf16 %v573_v38  ;;  %v175_v53 = vmax.f32 %v143_v44, 0.0  ;;  %v146_v55 = vadd.f32 %v632_v7, %v107_v46 }
  0x1b   :  { %v525_v52 = vpack.c.bf16 %v173_v43, %v172_v39  ;;  %v176_v54 = vmax.f32 %v144_v45, 0.0  ;;  %v177_v56 = vmax.f32 %v145_v48, 0.0  ;;  %v147_v57 = vadd.f32 %v632_v7, %v108_v49 }
  0x1c   :  { %v469_v58 = vunpack.c.h.bf16 %v573_v38  ;;  %v109_v59 = vmul.f32 %v468_v50, %v618_v1  ;;  %v530_v61 = vpack.c.bf16 %v175_v53, %v174_v47  ;;  %v178_v62 = vmax.f32 %v146_v55, 0.0 }
  0x1d   :  { %584 = vst [vmem:[%s785_s3 + $0x40] sm:$0xff] %v525_v52   ;;  %v472_v63 = vunpack.c.l.bf16 %v574_v51  ;;  %v473_v0 = vunpack.c.h.bf16 %v574_v51  ;;  %v535_v3 = vpack.c.bf16 %v177_v56, %v176_v54  ;;  %v179_v4 = vmax.f32 %v147_v57, 0.0 }
  0x1e   :  { %v110_v5 = vmul.f32 %v469_v58, %v618_v1  ;;  %v148_v6 = vadd.f32 %v632_v7, %v109_v59  ;;  %585 = vst [vmem:[%s785_s3 + $0x48] sm:$0xff] %v530_v61   ;;  %v476_v10 = vunpack.c.l.bf16 %v575_v60  ;;  %v477_v11 = vunpack.c.h.bf16 %v575_v60 }
  0x1f   :  { %v111_v8 = vmul.f32 %v472_v63, %v618_v1  ;;  %v112_v9 = vmul.f32 %v473_v0, %v618_v1  ;;  %586 = vst [vmem:[%s785_s3 + $0x50] sm:$0xff] %v535_v3   ;;  %v540_v12 = vpack.c.bf16 %v179_v4, %v178_v62  ;;  %v480_v15 = vunpack.c.l.bf16 %v576_v2 }
  0x20   :  { %v149_v13 = vadd.f32 %v632_v7, %v110_v5  ;;  %v180_v14 = vmax.f32 %v148_v6, 0.0  ;;  %v113_v18 = vmul.f32 %v476_v10, %v618_v1  ;;  %v114_v19 = vmul.f32 %v477_v11, %v618_v1 }
  0x21   :  { %v150_v16 = vadd.f32 %v632_v7, %v111_v8  ;;  %v151_v17 = vadd.f32 %v632_v7, %v112_v9  ;;  %587 = vst [vmem:[%s785_s3 + $0x58] sm:$0xff] %v540_v12   ;;  %v481_v21 = vunpack.c.h.bf16 %v576_v2  ;;  %v115_v22 = vmul.f32 %v480_v15, %v618_v1 }
  0x22   :  { %v181_v20 = vmax.f32 %v149_v13, 0.0  ;;  %v152_v25 = vadd.f32 %v632_v7, %v113_v18  ;;  %v153_v26 = vadd.f32 %v632_v7, %v114_v19 }
  0x23   :  { %v182_v23 = vmax.f32 %v150_v16, 0.0  ;;  %v183_v24 = vmax.f32 %v151_v17, 0.0  ;;  %v116_v28 = vmul.f32 %v481_v21, %v618_v1  ;;  %v154_v29 = vadd.f32 %v632_v7, %v115_v22 }
  0x24   :  { %v545_v27 = vpack.c.bf16 %v181_v20, %v180_v14  ;;  %v184_v31 = vmax.f32 %v152_v25, 0.0  ;;  %v185_v32 = vmax.f32 %v153_v26, 0.0 }
  0x25   :  { %v550_v30 = vpack.c.bf16 %v183_v24, %v182_v23  ;;  %v155_v33 = vadd.f32 %v632_v7, %v116_v28  ;;  %v186_v34 = vmax.f32 %v154_v29, 0.0 }
  0x26   :  { %588 = vst [vmem:[%s785_s3 + $0x60] sm:$0xff] %v545_v27   ;;  %v555_v35 = vpack.c.bf16 %v185_v32, %v184_v31 }
  0x27   :  { %589 = vst [vmem:[%s785_s3 + $0x68] sm:$0xff] %v550_v30   ;;  %v187_v36 = vmax.f32 %v155_v33, 0.0 }
  0x28   :  { %590 = vst [vmem:[%s785_s3 + $0x70] sm:$0xff] %v555_v35  }
  0x29   :  { %v560_v1 = vpack.c.bf16 %v187_v36, %v186_v34 }
  0x2b   :  { %591 = vst [vmem:[%s785_s3 + $0x78] sm:$0xff] %v560_v1  }

// kernel: resnet_forward.29
= control target key start
LH: loop header
LB: loop body
LE: loop exit
PB: predicated region body
PF: predicated region fallthrough
CT: control target
= control target key end

     0   :  { %v1864_v0 = vmov 0   ;;  %vm442_vm0 = vcmask 154624   ;;  %vm539_vm1 = vcmask 1040384   ;;  %vm540_vm2 = vcmask 1041408   ;;  %s2920_s1 = inlined_call_operand.vmem [shape: bf16[147,64], index: 1, kind: input, shape index: {}]   ;;  %s2921_s0 = inlined_call_operand.vmem [shape: bf16[512,147], index: 0, kind: input, shape index: {}]   ;;  %s2922_s2 = inlined_call_operand.vmem [shape: bf16[512,64], index: 2, kind: output, shape index: {0}]   ;;  %s2923_s3 = inlined_call_operand.vmem [shape: f32[8,64], index: 3, kind: output, shape index: {1}]  }
   0x1   :  { %546 = vmatprep.subr.bf16.mxu0 %v1864_v0  ;;  %v1758_v1 = vld [vmem:[%s2920_s1 + $0x38] sm:$0xff]   ;;  %1736 = vmatprep.subr.bf16.mxu1 %v1864_v0  ;;  %v1759_v2 = vld [vmem:[%s2920_s1 + $0x30] sm:$0xff]   ;;  %v1760_v3 = vld [vmem:[%s2920_s1 + $0x28] sm:$0xff]   ;;  %v1865_v10 = vmov 65535   ;;  %vm1091_vm3 = vcmask 519168   ;;  %vm1156_vm4 = vcmask 523264  }
   0x2   :  { %547 = vmatpush1.bf16.msra.mxu0 %v1758_v1  ;;  %1746 = vmatpush1.bf16.msra.mxu1 %v1758_v1  ;;  %v1761_v4 = vld [vmem:[%s2920_s1 + $0x20] sm:$0xff]   ;;  %v1762_v6 = vld [vmem:[%s2920_s1 + $0x18] sm:$0xff]   ;;  %v1763_v7 = vld [vmem:[%s2920_s1 + $0x10] sm:$0xff]   ;;  %v541_v11 = vsel %vm539_vm1, 4294967295, %v1865_v10 }
   0x3   :  { %548 = vmatprep.subr.bf16.mxu0 %v1864_v0  ;;  %1737 = vmatprep.subr.bf16.mxu1 %v1864_v0  ;;  %v1770_v5 = vld [vmem:[%s2921_s0 + $0x4] ss:$8 sps:$4 sm:$0xff]   ;;  %v1766_v13 = vld [vmem:[%s2920_s1 + $0x48] ss:$0 sps:$4 sm:$0x33]   ;;  %v542_v14 = vsel %vm540_vm2, %v541_v11, 0 }
   0x4   :  { %1576 = vmatprep.mubr.msk.bf16.mxu0 %vm442_vm0, %v1770_v5  ;;  %v1794_v8 = vld [vmem:[%s2921_s0 + $0x104] ss:$8 sps:$4 sm:$0xff]   ;;  %v544_v15 = vand.u32 %v1766_v13, %v542_v14  ;;  %v1768_v17 = vld [vmem:[%s2921_s0] ss:$8 sps:$4 sm:$0xff]   ;;  %v1771_v19 = vld [vmem:[%s2921_s0 + $0x14] ss:$8 sps:$4 sm:$0xff]  }
   0x5   :  { %v1764_v9 = vld [vmem:[%s2920_s1 + $0x8] sm:$0xff]   ;;  %1592 = vmatprep.mubr.msk.bf16.mxu1 %vm442_vm0, %v1794_v8  ;;  %v1765_v12 = vld [vmem:[%s2920_s1] sm:$0xff]   ;;  %v1798_v20 = vld [vmem:[%s2921_s0 + $0x114] ss:$8 sps:$4 sm:$0xff]  }
   0x6   :  { %549 = vmatpush1.bf16.msra.mxu0 %v1759_v2  ;;  %1747 = vmatpush1.bf16.msra.mxu1 %v1759_v2  ;;  %v1767_v16 = vld [vmem:[%s2920_s1 + $0x40] sm:$0xff]   ;;  %v1773_v21 = vld [vmem:[%s2921_s0 + $0x10] ss:$8 sps:$4 sm:$0xff]   ;;  %v1777_v27 = vld [vmem:[%s2921_s0 + $0x34] ss:$8 sps:$4 sm:$0xff]  }
   0x7   :  { %550 = vmatprep.subr.bf16.mxu0 %v1864_v0  ;;  %1738 = vmatprep.subr.bf16.mxu1 %v1864_v0  ;;  %v1792_v18 = vld [vmem:[%s2921_s0 + $0x100] ss:$8 sps:$4 sm:$0xff]   ;;  %v1800_v22 = vld [vmem:[%s2921_s0 + $0x110] ss:$8 sps:$4 sm:$0xff]   ;;  %v1774_v23 = vld [vmem:[%s2921_s0 + $0x24] ss:$8 sps:$4 sm:$0xff]  }
   0x8   :  { %v1804_v24 = vld [vmem:[%s2921_s0 + $0x124] ss:$8 sps:$4 sm:$0xff]   ;;  %v1776_v25 = vld [vmem:[%s2921_s0 + $0x20] ss:$8 sps:$4 sm:$0xff]   ;;  %v1810_v28 = vld [vmem:[%s2921_s0 + $0x134] ss:$8 sps:$4 sm:$0xff]  }
   0x9   :  { %v1806_v26 = vld [vmem:[%s2921_s0 + $0x120] ss:$8 sps:$4 sm:$0xff]   ;;  %v1779_v29 = vld [vmem:[%s2921_s0 + $0x30] ss:$8 sps:$4 sm:$0xff]   ;;  %v1780_v31 = vld [vmem:[%s2921_s0 + $0x44] ss:$8 sps:$4 sm:$0xff]  }
   0xa   :  { %551 = vmatpush1.bf16.msra.mxu0 %v1760_v3  ;;  %1748 = vmatpush1.bf16.msra.mxu1 %v1760_v3  ;;  %v1812_v30 = vld [vmem:[%s2921_s0 + $0x130] ss:$8 sps:$4 sm:$0xff]   ;;  %v1816_v32 = vld [vmem:[%s2921_s0 + $0x144] ss:$8 sps:$4 sm:$0xff]   ;;  %v1782_v33 = vld [vmem:[%s2921_s0 + $0x40] ss:$8 sps:$4 sm:$0xff]  }
   0xb   :  { %552 = vmatprep.subr.bf16.mxu0 %v1864_v0  ;;  %1739 = vmatprep.subr.bf16.mxu1 %v1864_v0  ;;  %v1818_v34 = vld [vmem:[%s2921_s0 + $0x140] ss:$8 sps:$4 sm:$0xff]   ;;  %v1783_v35 = vld [vmem:[%s2921_s0 + $0x54] ss:$8 sps:$4 sm:$0xff]   ;;  %v1785_v37 = vld [vmem:[%s2921_s0 + $0x50] ss:$8 sps:$4 sm:$0xff]  }
   0xc   :  { %v1822_v36 = vld [vmem:[%s2921_s0 + $0x154] ss:$8 sps:$4 sm:$0xff]   ;;  %v1824_v38 = vld [vmem:[%s2921_s0 + $0x150] ss:$8 sps:$4 sm:$0xff]   ;;  %v1786_v39 = vld [vmem:[%s2921_s0 + $0x64] ss:$8 sps:$4 sm:$0xff]  }
   0xd   :  { %v1828_v40 = vld [vmem:[%s2921_s0 + $0x164] ss:$8 sps:$4 sm:$0xff]   ;;  %v1788_v41 = vld [vmem:[%s2921_s0 + $0x60] ss:$8 sps:$4 sm:$0xff]   ;;  %v1789_v43 = vld [vmem:[%s2921_s0 + $0x74] ss:$8 sps:$4 sm:$0xff]  }
   0xe   :  { %553 = vmatpush1.bf16.msra.mxu0 %v1761_v4  ;;  %1749 = vmatpush1.bf16.msra.mxu1 %v1761_v4  ;;  %v1830_v42 = vld [vmem:[%s2921_s0 + $0x160] ss:$8 sps:$4 sm:$0xff]   ;;  %v1834_v44 = vld [vmem:[%s2921_s0 + $0x174] ss:$8 sps:$4 sm:$0xff]   ;;  %v1791_v45 = vld [vmem:[%s2921_s0 + $0x70] ss:$8 sps:$4 sm:$0xff]  }
   0xf   :  { %554 = vmatprep.subr.bf16.mxu0 %v1864_v0  ;;  %1740 = vmatprep.subr.bf16.mxu1 %v1864_v0  ;;  %v1836_v46 = vld [vmem:[%s2921_s0 + $0x170] ss:$8 sps:$4 sm:$0xff]   ;;  %v1795_v47 = vld [vmem:[%s2921_s0 + $0x84] ss:$8 sps:$4 sm:$0xff]   ;;  %v1797_v49 = vld [vmem:[%s2921_s0 + $0x80] ss:$8 sps:$4 sm:$0xff]  }
  0x10   :  { %v1840_v48 = vld [vmem:[%s2921_s0 + $0x184] ss:$8 sps:$4 sm:$0xff]   ;;  %v1842_v50 = vld [vmem:[%s2921_s0 + $0x180] ss:$8 sps:$4 sm:$0xff]   ;;  %v1801_v51 = vld [vmem:[%s2921_s0 + $0x94] ss:$8 sps:$4 sm:$0xff]  }
  0x11   :  { %v1843_v52 = vld [vmem:[%s2921_s0 + $0x194] ss:$8 sps:$4 sm:$0xff]   ;;  %v1803_v53 = vld [vmem:[%s2921_s0 + $0x90] ss:$8 sps:$4 sm:$0xff]   ;;  %v1807_v55 = vld [vmem:[%s2921_s0 + $0xa4] ss:$8 sps:$4 sm:$0xff]  }
  0x12   :  { %555 = vmatpush1.bf16.msra.mxu0 %v1762_v6  ;;  %1750 = vmatpush1.bf16.msra.mxu1 %v1762_v6  ;;  %v1845_v54 = vld [vmem:[%s2921_s0 + $0x190] ss:$8 sps:$4 sm:$0xff]   ;;  %v1846_v56 = vld [vmem:[%s2921_s0 + $0x1a4] ss:$8 sps:$4 sm:$0xff]   ;;  %v1809_v57 = vld [vmem:[%s2921_s0 + $0xa0] ss:$8 sps:$4 sm:$0xff]  }
  0x13   :  { %556 = vmatprep.subr.bf16.mxu0 %v1864_v0  ;;  %1741 = vmatprep.subr.bf16.mxu1 %v1864_v0  ;;  %v1848_v58 = vld [vmem:[%s2921_s0 + $0x1a0] ss:$8 sps:$4 sm:$0xff]   ;;  %v1813_v59 = vld [vmem:[%s2921_s0 + $0xb4] ss:$8 sps:$4 sm:$0xff]   ;;  %v1815_v61 = vld [vmem:[%s2921_s0 + $0xb0] ss:$8 sps:$4 sm:$0xff]  }
  0x14   :  { %v1849_v60 = vld [vmem:[%s2921_s0 + $0x1b4] ss:$8 sps:$4 sm:$0xff]   ;;  %v1851_v62 = vld [vmem:[%s2921_s0 + $0x1b0] ss:$8 sps:$4 sm:$0xff]   ;;  %v1819_v63 = vld [vmem:[%s2921_s0 + $0xc4] ss:$8 sps:$4 sm:$0xff]  }
  0x15   :  { %v1821_v1 = vld [vmem:[%s2921_s0 + $0xc0] ss:$8 sps:$4 sm:$0xff]   ;;  %v1825_v3 = vld [vmem:[%s2921_s0 + $0xd4] ss:$8 sps:$4 sm:$0xff]   ;;  %v1827_v5 = vld [vmem:[%s2921_s0 + $0xd0] ss:$8 sps:$4 sm:$0xff]  }
  0x16   :  { %557 = vmatpush1.bf16.msra.mxu0 %v1763_v7  ;;  %1751 = vmatpush1.bf16.msra.mxu1 %v1763_v7  ;;  %v1854_v2 = vld [vmem:[%s2921_s0 + $0x1c0] ss:$8 sps:$4 sm:$0xff]   ;;  %v1855_v4 = vld [vmem:[%s2921_s0 + $0x1d4] ss:$8 sps:$4 sm:$0xff]   ;;  %v1857_v6 = vld [vmem:[%s2921_s0 + $0x1d0] ss:$8 sps:$4 sm:$0xff]  }
  0x17   :  { %558 = vmatprep.subr.bf16.mxu0 %v1864_v0  ;;  %1742 = vmatprep.subr.bf16.mxu1 %v1864_v0  ;;  %v1831_v7 = vld [vmem:[%s2921_s0 + $0xe4] ss:$8 sps:$4 sm:$0xff]   ;;  %v1860_v10 = vld [vmem:[%s2921_s0 + $0x1e0] ss:$8 sps:$4 sm:$0xff]   ;;  %v1837_v11 = vld [vmem:[%s2921_s0 + $0xf4] ss:$8 sps:$4 sm:$0xff]  }
  0x18   :  { %v1858_v8 = vld [vmem:[%s2921_s0 + $0x1e4] ss:$8 sps:$4 sm:$0xff]   ;;  %v1839_v13 = vld [vmem:[%s2921_s0 + $0xf0] ss:$8 sps:$4 sm:$0xff]  }
  0x19   :  { %v1863_v14 = vld [vmem:[%s2921_s0 + $0x1f0] ss:$8 sps:$4 sm:$0xff]  }
  0x1a   :  { %559 = vmatpush1.bf16.msra.mxu0 %v1764_v9  ;;  %1752 = vmatpush1.bf16.msra.mxu1 %v1764_v9  ;;  %v1833_v9 = vld [vmem:[%s2921_s0 + $0xe0] ss:$8 sps:$4 sm:$0xff]  }
  0x1b   :  { %560 = vmatprep.subr.bf16.mxu0 %v1864_v0  ;;  %1743 = vmatprep.subr.bf16.mxu1 %v1864_v0 }
  0x1e   :  { %561 = vmatpush1.bf16.msra.mxu0 %v1765_v12  ;;  %1753 = vmatpush1.bf16.msra.mxu1 %v1765_v12  ;;  %v1861_v12 = vld [vmem:[%s2921_s0 + $0x1f4] ss:$8 sps:$4 sm:$0xff]  }
  0x1f   :  { %574 = vmatprep.subr.bf16.mxu0 %v1864_v0  ;;  %1744 = vmatprep.subr.bf16.mxu1 %v1864_v0 }
  0x22   :  { %575 = vmatpush2.bf16.msra.mxu0 %v544_v15  ;;  %1754 = vmatpush2.bf16.msra.mxu1 %v544_v15 }
  0x23   :  { %576 = vmatprep.subr.bf16.mxu0 %v1864_v0  ;;  %1745 = vmatprep.subr.bf16.mxu1 %v1864_v0  ;;  %v1852_v0 = vld [vmem:[%s2921_s0 + $0x1c4] ss:$8 sps:$4 sm:$0xff]  }
  0x26   :  { %577 = vmatpush2.bf16.msra.mxu0 %v1767_v16  ;;  %1755 = vmatpush2.bf16.msra.mxu1 %v1767_v16 }
  0x29   :  { %579 = vmatmul.mubr.bf16.vlgmr.msra.gmra.mxu0 %v1768_v17  ;;  %707 = vmatmul.mubr.bf16.vlgmr.msra.gmra.mxu1 %v1792_v18 }
  0x2a   :  { %1577 = vmatprep.mubr.msk.bf16.mxu0 %vm442_vm0, %v1771_v19  ;;  %1593 = vmatprep.mubr.msk.bf16.mxu1 %vm442_vm0, %v1798_v20 }
  0x31   :  { %587 = vmatmul.mubr.bf16.gmra.mxu0 %v1773_v21  ;;  %715 = vmatmul.mubr.bf16.gmra.mxu1 %v1800_v22 }
  0x32   :  { %1578 = vmatprep.mubr.msk.bf16.mxu0 %vm442_vm0, %v1774_v23  ;;  %1594 = vmatprep.mubr.msk.bf16.mxu1 %vm442_vm0, %v1804_v24 }
  0x39   :  { %595 = vmatmul.mubr.bf16.gmra.mxu0 %v1776_v25  ;;  %723 = vmatmul.mubr.bf16.gmra.mxu1 %v1806_v26 }
  0x3a   :  { %1579 = vmatprep.mubr.msk.bf16.mxu0 %vm442_vm0, %v1777_v27  ;;  %1595 = vmatprep.mubr.msk.bf16.mxu1 %vm442_vm0, %v1810_v28 }
  0x41   :  { %603 = vmatmul.mubr.bf16.gmra.mxu0 %v1779_v29  ;;  %731 = vmatmul.mubr.bf16.gmra.mxu1 %v1812_v30 }
  0x42   :  { %1580 = vmatprep.mubr.msk.bf16.mxu0 %vm442_vm0, %v1780_v31  ;;  %1596 = vmatprep.mubr.msk.bf16.mxu1 %vm442_vm0, %v1816_v32 }
  0x49   :  { %611 = vmatmul.mubr.bf16.gmra.mxu0 %v1782_v33  ;;  %739 = vmatmul.mubr.bf16.gmra.mxu1 %v1818_v34 }
  0x4a   :  { %1581 = vmatprep.mubr.msk.bf16.mxu0 %vm442_vm0, %v1783_v35  ;;  %1597 = vmatprep.mubr.msk.bf16.mxu1 %vm442_vm0, %v1822_v36 }
  0x51   :  { %619 = vmatmul.mubr.bf16.gmra.mxu0 %v1785_v37  ;;  %747 = vmatmul.mubr.bf16.gmra.mxu1 %v1824_v38 }
  0x52   :  { %1582 = vmatprep.mubr.msk.bf16.mxu0 %vm442_vm0, %v1786_v39  ;;  %1598 = vmatprep.mubr.msk.bf16.mxu1 %vm442_vm0, %v1828_v40 }
  0x59   :  { %627 = vmatmul.mubr.bf16.gmra.mxu0 %v1788_v41  ;;  %755 = vmatmul.mubr.bf16.gmra.mxu1 %v1830_v42 }
  0x5a   :  { %1583 = vmatprep.mubr.msk.bf16.mxu0 %vm442_vm0, %v1789_v43  ;;  %1599 = vmatprep.mubr.msk.bf16.mxu1 %vm442_vm0, %v1834_v44 }
  0x61   :  { %635 = vmatmul.mubr.bf16.gmra.mxu0 %v1791_v45  ;;  %763 = vmatmul.mubr.bf16.gmra.mxu1 %v1836_v46 }
  0x62   :  { %1584 = vmatprep.mubr.msk.bf16.mxu0 %vm442_vm0, %v1795_v47  ;;  %1600 = vmatprep.mubr.msk.bf16.mxu1 %vm442_vm0, %v1840_v48 }
  0x69   :  { %643 = vmatmul.mubr.bf16.gmra.mxu0 %v1797_v49  ;;  %771 = vmatmul.mubr.bf16.gmra.mxu1 %v1842_v50 }
  0x6a   :  { %1585 = vmatprep.mubr.msk.bf16.mxu0 %vm442_vm0, %v1801_v51  ;;  %1601 = vmatprep.mubr.msk.bf16.mxu1 %vm442_vm0, %v1843_v52 }
  0x71   :  { %651 = vmatmul.mubr.bf16.gmra.mxu0 %v1803_v53  ;;  %779 = vmatmul.mubr.bf16.gmra.mxu1 %v1845_v54 }
  0x72   :  { %1586 = vmatprep.mubr.msk.bf16.mxu0 %vm442_vm0, %v1807_v55  ;;  %1602 = vmatprep.mubr.msk.bf16.mxu1 %vm442_vm0, %v1846_v56 }
  0x79   :  { %659 = vmatmul.mubr.bf16.gmra.mxu0 %v1809_v57  ;;  %787 = vmatmul.mubr.bf16.gmra.mxu1 %v1848_v58 }
  0x7a   :  { %1587 = vmatprep.mubr.msk.bf16.mxu0 %vm442_vm0, %v1813_v59  ;;  %1603 = vmatprep.mubr.msk.bf16.mxu1 %vm442_vm0, %v1849_v60 }
  0x81   :  { %667 = vmatmul.mubr.bf16.gmra.mxu0 %v1815_v61  ;;  %795 = vmatmul.mubr.bf16.gmra.mxu1 %v1851_v62 }
  0x82   :  { %1588 = vmatprep.mubr.msk.bf16.mxu0 %vm442_vm0, %v1819_v63  ;;  %1604 = vmatprep.mubr.msk.bf16.mxu1 %vm442_vm0, %v1852_v0 }
  0x89   :  { %675 = vmatmul.mubr.bf16.gmra.mxu0 %v1821_v1  ;;  %803 = vmatmul.mubr.bf16.gmra.mxu1 %v1854_v2 }
  0x8a   :  { %1589 = vmatprep.mubr.msk.bf16.mxu0 %vm442_vm0, %v1825_v3  ;;  %1605 = vmatprep.mubr.msk.bf16.mxu1 %vm442_vm0, %v1855_v4 }
  0x91   :  { %683 = vmatmul.mubr.bf16.gmra.mxu0 %v1827_v5  ;;  %811 = vmatmul.mubr.bf16.gmra.mxu1 %v1857_v6 }
  0x92   :  { %1590 = vmatprep.mubr.msk.bf16.mxu0 %vm442_vm0, %v1831_v7  ;;  %1606 = vmatprep.mubr.msk.bf16.mxu1 %vm442_vm0, %v1858_v8 }
  0x99   :  { %691 = vmatmul.mubr.bf16.gmra.mxu0 %v1833_v9  ;;  %819 = vmatmul.mubr.bf16.gmra.mxu1 %v1860_v10 }
  0x9a   :  { %1591 = vmatprep.mubr.msk.bf16.mxu0 %vm442_vm0, %v1837_v11  ;;  %1607 = vmatprep.mubr.msk.bf16.mxu1 %vm442_vm0, %v1861_v12 }
  0xa1   :  { %699 = vmatmul.mubr.bf16.gmra.mxu0 %v1839_v13  ;;  %827 = vmatmul.mubr.bf16.gmra.mxu1 %v1863_v14 }
  0xe9   :  { %v2140_v15 = vpop.f32.mrf.mxu0  ;;  %v2142_v16 = vpop.f32.mrf.mxu1 }
  0xea   :  { %v1672_v17 = vpack.c.bf16 %v2140_v15, %v2140_v15  ;;  %v1704_v18 = vpack.c.bf16 %v2142_v16, %v2142_v16 }
  0xeb   :  { %v582_v19 = vpop.f32.mrf.mxu0  ;;  %v710_v20 = vpop.f32.mrf.mxu1 }
  0xec   :  { %1092 = vst.msk [vmem:[%s2922_s2] sm:$0xf] %vm1091_vm3, %v1672_v17  ;;  %1124 = vst.msk [vmem:[%s2922_s2 + $0x80] sm:$0xf] %vm1091_vm3, %v1704_v18 }
  0xed   :  { %v2156_v21 = vpop.f32.mrf.mxu0  ;;  %v2158_v22 = vpop.f32.mrf.mxu1 }
  0xee   :  { %v1673_v23 = vpack.c.bf16 %v2156_v21, %v2156_v21  ;;  %v1705_v24 = vpack.c.bf16 %v2158_v22, %v2158_v22 }
  0xef   :  { %v585_v25 = vpop.f32.mrf.mxu0  ;;  %v713_v26 = vpop.f32.mrf.mxu1 }
  0xf0   :  { %1093 = vst.msk [vmem:[%s2922_s2 + $0x4] sm:$0xf] %vm1091_vm3, %v1673_v23  ;;  %1125 = vst.msk [vmem:[%s2922_s2 + $0x84] sm:$0xf] %vm1091_vm3, %v1705_v24 }
  0xf1   :  { %v2172_v27 = vpop.f32.mrf.mxu0  ;;  %v2174_v28 = vpop.f32.mrf.mxu1 }
  0xf2   :  { %v1674_v29 = vpack.c.bf16 %v2172_v27, %v2172_v27  ;;  %v1706_v30 = vpack.c.bf16 %v2174_v28, %v2174_v28 }
  0xf3   :  { %v590_v31 = vpop.f32.mrf.mxu0  ;;  %v718_v32 = vpop.f32.mrf.mxu1 }
  0xf4   :  { %1094 = vst.msk [vmem:[%s2922_s2 + $0x8] sm:$0xf] %vm1091_vm3, %v1674_v29  ;;  %1126 = vst.msk [vmem:[%s2922_s2 + $0x88] sm:$0xf] %vm1091_vm3, %v1706_v30 }
  0xf5   :  { %v2188_v33 = vpop.f32.mrf.mxu0  ;;  %v2190_v34 = vpop.f32.mrf.mxu1 }
  0xf6   :  { %v1675_v35 = vpack.c.bf16 %v2188_v33, %v2188_v33  ;;  %v1707_v36 = vpack.c.bf16 %v2190_v34, %v2190_v34 }
  0xf7   :  { %v593_v37 = vpop.f32.mrf.mxu0  ;;  %v721_v38 = vpop.f32.mrf.mxu1 }
  0xf8   :  { %1095 = vst.msk [vmem:[%s2922_s2 + $0xc] sm:$0xf] %vm1091_vm3, %v1675_v35  ;;  %1127 = vst.msk [vmem:[%s2922_s2 + $0x8c] sm:$0xf] %vm1091_vm3, %v1707_v36 }
  0xf9   :  { %v2204_v39 = vpop.f32.mrf.mxu0  ;;  %v2206_v40 = vpop.f32.mrf.mxu1 }
  0xfa   :  { %v1676_v41 = vpack.c.bf16 %v2204_v39, %v2204_v39  ;;  %v1708_v42 = vpack.c.bf16 %v2206_v40, %v2206_v40 }
  0xfb   :  { %v598_v43 = vpop.f32.mrf.mxu0  ;;  %v726_v44 = vpop.f32.mrf.mxu1 }
  0xfc   :  { %1096 = vst.msk [vmem:[%s2922_s2 + $0x10] sm:$0xf] %vm1091_vm3, %v1676_v41  ;;  %1128 = vst.msk [vmem:[%s2922_s2 + $0x90] sm:$0xf] %vm1091_vm3, %v1708_v42 }
  0xfd   :  { %v2220_v45 = vpop.f32.mrf.mxu0  ;;  %v2222_v46 = vpop.f32.mrf.mxu1 }
  0xfe   :  { %v1677_v47 = vpack.c.bf16 %v2220_v45, %v2220_v45  ;;  %v1709_v48 = vpack.c.bf16 %v2222_v46, %v2222_v46 }
  0xff   :  { %v601_v49 = vpop.f32.mrf.mxu0  ;;  %v729_v50 = vpop.f32.mrf.mxu1 }
 0x100   :  { %1097 = vst.msk [vmem:[%s2922_s2 + $0x14] sm:$0xf] %vm1091_vm3, %v1677_v47  ;;  %1129 = vst.msk [vmem:[%s2922_s2 + $0x94] sm:$0xf] %vm1091_vm3, %v1709_v48 }
 0x101   :  { %v2236_v51 = vpop.f32.mrf.mxu0  ;;  %v2238_v52 = vpop.f32.mrf.mxu1 }
 0x102   :  { %v1678_v53 = vpack.c.bf16 %v2236_v51, %v2236_v51  ;;  %v1710_v54 = vpack.c.bf16 %v2238_v52, %v2238_v52 }
 0x103   :  { %v606_v55 = vpop.f32.mrf.mxu0  ;;  %v734_v56 = vpop.f32.mrf.mxu1 }
 0x104   :  { %1098 = vst.msk [vmem:[%s2922_s2 + $0x18] sm:$0xf] %vm1091_vm3, %v1678_v53  ;;  %1130 = vst.msk [vmem:[%s2922_s2 + $0x98] sm:$0xf] %vm1091_vm3, %v1710_v54 }
 0x105   :  { %v2252_v57 = vpop.f32.mrf.mxu0  ;;  %v2254_v58 = vpop.f32.mrf.mxu1 }
 0x106   :  { %v1679_v59 = vpack.c.bf16 %v2252_v57, %v2252_v57  ;;  %v1711_v60 = vpack.c.bf16 %v2254_v58, %v2254_v58 }
 0x107   :  { %v609_v61 = vpop.f32.mrf.mxu0  ;;  %v737_v62 = vpop.f32.mrf.mxu1 }
 0x108   :  { %1099 = vst.msk [vmem:[%s2922_s2 + $0x1c] sm:$0xf] %vm1091_vm3, %v1679_v59  ;;  %1131 = vst.msk [vmem:[%s2922_s2 + $0x9c] sm:$0xf] %vm1091_vm3, %v1711_v60  ;;  %v1291_v59 = vmul.f32 %v2156_v21, %v2156_v21 }
 0x109   :  { %v2268_v63 = vpop.f32.mrf.mxu0  ;;  %v2270_v0 = vpop.f32.mrf.mxu1 }
 0x10a   :  { %v1680_v1 = vpack.c.bf16 %v2268_v63, %v2268_v63  ;;  %v1712_v2 = vpack.c.bf16 %v2270_v0, %v2270_v0 }
 0x10b   :  { %v614_v3 = vpop.f32.mrf.mxu0  ;;  %v742_v4 = vpop.f32.mrf.mxu1 }
 0x10c   :  { %1100 = vst.msk [vmem:[%s2922_s2 + $0x20] sm:$0xf] %vm1091_vm3, %v1680_v1  ;;  %1132 = vst.msk [vmem:[%s2922_s2 + $0xa0] sm:$0xf] %vm1091_vm3, %v1712_v2  ;;  %v1290_v2 = vmul.f32 %v2140_v15, %v2140_v15  ;;  %v1158_v3 = vsel %vm1156_vm4, %v2156_v21, 0.0  ;;  %v1292_v4 = vmul.f32 %v2172_v27, %v2172_v27 }
 0x10d   :  { %v2284_v5 = vpop.f32.mrf.mxu0  ;;  %v2286_v6 = vpop.f32.mrf.mxu1 }
 0x10e   :  { %v1681_v7 = vpack.c.bf16 %v2284_v5, %v2284_v5  ;;  %v1713_v8 = vpack.c.bf16 %v2286_v6, %v2286_v6 }
 0x10f   :  { %v617_v9 = vpop.f32.mrf.mxu0  ;;  %v745_v10 = vpop.f32.mrf.mxu1 }
 0x110   :  { %1101 = vst.msk [vmem:[%s2922_s2 + $0x24] sm:$0xf] %vm1091_vm3, %v1681_v7  ;;  %1133 = vst.msk [vmem:[%s2922_s2 + $0xa4] sm:$0xf] %vm1091_vm3, %v1713_v8  ;;  %v1157_v7 = vsel %vm1156_vm4, %v2140_v15, 0.0  ;;  %v1293_v8 = vmul.f32 %v2188_v33, %v2188_v33  ;;  %v1355_v10 = vsel %vm1156_vm4, %v1291_v59, 0.0 }
 0x111   :  { %v2300_v11 = vpop.f32.mrf.mxu0  ;;  %v2302_v12 = vpop.f32.mrf.mxu1 }
 0x112   :  { %v1682_v13 = vpack.c.bf16 %v2300_v11, %v2300_v11  ;;  %v1714_v14 = vpack.c.bf16 %v2302_v12, %v2302_v12 }
 0x113   :  { %v622_v17 = vpop.f32.mrf.mxu0  ;;  %v750_v18 = vpop.f32.mrf.mxu1 }
 0x114   :  { %1102 = vst.msk [vmem:[%s2922_s2 + $0x28] sm:$0xf] %vm1091_vm3, %v1682_v13  ;;  %1134 = vst.msk [vmem:[%s2922_s2 + $0xa8] sm:$0xf] %vm1091_vm3, %v1714_v14  ;;  %v1160_v13 = vsel %vm1156_vm4, %v2172_v27, 0.0  ;;  %v1159_v18 = vadd.f32 %v1158_v3, %v1157_v7 }
 0x115   :  { %v2316_v19 = vpop.f32.mrf.mxu0  ;;  %v2318_v20 = vpop.f32.mrf.mxu1 }
 0x116   :  { %v1683_v23 = vpack.c.bf16 %v2316_v19, %v2316_v19  ;;  %v1715_v24 = vpack.c.bf16 %v2318_v20, %v2318_v20 }
 0x117   :  { %v625_v25 = vpop.f32.mrf.mxu0  ;;  %v753_v26 = vpop.f32.mrf.mxu1 }
 0x118   :  { %1103 = vst.msk [vmem:[%s2922_s2 + $0x2c] sm:$0xf] %vm1091_vm3, %v1683_v23  ;;  %1135 = vst.msk [vmem:[%s2922_s2 + $0xac] sm:$0xf] %vm1091_vm3, %v1715_v24  ;;  %v1354_v24 = vsel %vm1156_vm4, %v1290_v2, 0.0  ;;  %v1357_v25 = vsel %vm1156_vm4, %v1292_v4, 0.0 }
 0x119   :  { %v2332_v29 = vpop.f32.mrf.mxu0  ;;  %v2334_v30 = vpop.f32.mrf.mxu1  ;;  %v1162_v26 = vsel %vm1156_vm4, %v2188_v33, 0.0  ;;  %v1356_v27 = vadd.f32 %v1355_v10, %v1354_v24  ;;  %v1168_v4 = vsel %vm1156_vm4, %v2236_v51, 0.0 }
 0x11a   :  { %v1684_v31 = vpack.c.bf16 %v2332_v29, %v2332_v29  ;;  %v1716_v32 = vpack.c.bf16 %v2334_v30, %v2334_v30 }
 0x11b   :  { %v630_v35 = vpop.f32.mrf.mxu0  ;;  %v758_v36 = vpop.f32.mrf.mxu1 }
 0x11c   :  { %1104 = vst.msk [vmem:[%s2922_s2 + $0x30] sm:$0xf] %vm1091_vm3, %v1684_v31  ;;  %1136 = vst.msk [vmem:[%s2922_s2 + $0xb0] sm:$0xf] %vm1091_vm3, %v1716_v32  ;;  %v1294_v31 = vmul.f32 %v2204_v39, %v2204_v39  ;;  %v1161_v32 = vadd.f32 %v1160_v13, %v1159_v18  ;;  %v1359_v35 = vsel %vm1156_vm4, %v1293_v8, 0.0 }
 0x11d   :  { %v2348_v37 = vpop.f32.mrf.mxu0  ;;  %v2350_v38 = vpop.f32.mrf.mxu1 }
 0x11e   :  { %v1685_v41 = vpack.c.bf16 %v2348_v37, %v2348_v37  ;;  %v1717_v42 = vpack.c.bf16 %v2350_v38, %v2350_v38  ;;  %v1361_v59 = vsel %vm1156_vm4, %v1294_v31, 0.0  ;;  %v1172_v31 = vsel %vm1156_vm4, %v2268_v63, 0.0 }
 0x11f   :  { %v633_v43 = vpop.f32.mrf.mxu0  ;;  %v761_v44 = vpop.f32.mrf.mxu1 }
 0x120   :  { %1105 = vst.msk [vmem:[%s2922_s2 + $0x34] sm:$0xf] %vm1091_vm3, %v1685_v41  ;;  %1137 = vst.msk [vmem:[%s2922_s2 + $0xb4] sm:$0xf] %vm1091_vm3, %v1717_v42  ;;  %v1164_v41 = vsel %vm1156_vm4, %v2204_v39, 0.0  ;;  %v1295_v42 = vmul.f32 %v2220_v45, %v2220_v45  ;;  %v1296_v39 = vmul.f32 %v2236_v51, %v2236_v51 }
 0x121   :  { %v2364_v47 = vpop.f32.mrf.mxu0  ;;  %v2366_v48 = vpop.f32.mrf.mxu1 }
 0x122   :  { %v1686_v49 = vpack.c.bf16 %v2364_v47, %v2364_v47  ;;  %v1718_v50 = vpack.c.bf16 %v2366_v48, %v2366_v48  ;;  %v1363_v3 = vsel %vm1156_vm4, %v1295_v42, 0.0  ;;  %v1365_v18 = vsel %vm1156_vm4, %v1296_v39, 0.0 }
 0x123   :  { %v638_v53 = vpop.f32.mrf.mxu0  ;;  %v766_v54 = vpop.f32.mrf.mxu1 }
 0x124   :  { %1106 = vst.msk [vmem:[%s2922_s2 + $0x38] sm:$0xf] %vm1091_vm3, %v1686_v49  ;;  %1138 = vst.msk [vmem:[%s2922_s2 + $0xb8] sm:$0xf] %vm1091_vm3, %v1718_v50  ;;  %v1358_v49 = vadd.f32 %v1357_v25, %v1356_v27  ;;  %v1163_v50 = vadd.f32 %v1162_v26, %v1161_v32  ;;  %v1299_v27 = vmul.f32 %v2284_v5, %v2284_v5 }
 0x125   :  { %v2380_v55 = vpop.f32.mrf.mxu0  ;;  %v2382_v56 = vpop.f32.mrf.mxu1 }
 0x126   :  { %v1687_v60 = vpack.c.bf16 %v2380_v55, %v2380_v55  ;;  %v1719_v61 = vpack.c.bf16 %v2382_v56, %v2382_v56  ;;  %v1371_v39 = vsel %vm1156_vm4, %v1299_v27, 0.0 }
 0x127   :  { %v641_v62 = vpop.f32.mrf.mxu0  ;;  %v769_v1 = vpop.f32.mrf.mxu1 }
 0x128   :  { %1107 = vst.msk [vmem:[%s2922_s2 + $0x3c] sm:$0xf] %vm1091_vm3, %v1687_v60  ;;  %1139 = vst.msk [vmem:[%s2922_s2 + $0xbc] sm:$0xf] %vm1091_vm3, %v1719_v61  ;;  %v1166_v60 = vsel %vm1156_vm4, %v2220_v45, 0.0  ;;  %v1360_v61 = vadd.f32 %v1359_v35, %v1358_v49  ;;  %v1165_v62 = vadd.f32 %v1164_v41, %v1163_v50  ;;  %v1297_v1 = vmul.f32 %v2252_v57, %v2252_v57 }
 0x129   :  { %v2408_v21 = vpop.f32.mrf.mxu0  ;;  %v2410_v9 = vpop.f32.mrf.mxu1  ;;  %v1174_v50 = vsel %vm1156_vm4, %v2284_v5, 0.0 }
 0x12a   :  { %v1688_v14 = vpack.c.bf16 %v2408_v21, %v2408_v21  ;;  %v1720_v17 = vpack.c.bf16 %v2410_v9, %v2410_v9  ;;  %v1362_v10 = vadd.f32 %v1361_v59, %v1360_v61  ;;  %v1167_v13 = vadd.f32 %v1166_v60, %v1165_v62 }
 0x12b   :  { %v646_v15 = vpop.f32.mrf.mxu0  ;;  %v774_v23 = vpop.f32.mrf.mxu1  ;;  %v1367_v25 = vsel %vm1156_vm4, %v1297_v1, 0.0  ;;  %v1301_v59 = vmul.f32 %v2316_v19, %v2316_v19  ;;  %v1176_v61 = vsel %vm1156_vm4, %v2300_v11, 0.0 }
 0x12c   :  { %1108 = vst.msk [vmem:[%s2922_s2 + $0x40] sm:$0xf] %vm1091_vm3, %v1688_v14  ;;  %1140 = vst.msk [vmem:[%s2922_s2 + $0xc0] sm:$0xf] %vm1091_vm3, %v1720_v17  ;;  %v1170_v15 = vsel %vm1156_vm4, %v2252_v57, 0.0  ;;  %v1298_v23 = vmul.f32 %v2268_v63, %v2268_v63  ;;  %v1364_v51 = vadd.f32 %v1363_v3, %v1362_v10  ;;  %v1169_v24 = vadd.f32 %v1168_v4, %v1167_v13 }
 0x12d   :  { %v2434_v36 = vpop.f32.mrf.mxu0  ;;  %v2436_v33 = vpop.f32.mrf.mxu1  ;;  %v1300_v63 = vmul.f32 %v2300_v11, %v2300_v11  ;;  %v1178_v13 = vsel %vm1156_vm4, %v2316_v19, 0.0 }
 0x12e   :  { %v1689_v43 = vpack.c.bf16 %v2434_v36, %v2434_v36  ;;  %v1721_v44 = vpack.c.bf16 %v2436_v33, %v2436_v33  ;;  %v1366_v41 = vadd.f32 %v1365_v18, %v1364_v51  ;;  %v1171_v42 = vadd.f32 %v1170_v15, %v1169_v24 }
 0x12f   :  { %v649_v53 = vpop.f32.mrf.mxu0  ;;  %v777_v54 = vpop.f32.mrf.mxu1  ;;  %v1369_v49 = vsel %vm1156_vm4, %v1298_v23, 0.0  ;;  %v1373_v10 = vsel %vm1156_vm4, %v1300_v63, 0.0  ;;  %v1375_v18 = vsel %vm1156_vm4, %v1301_v59, 0.0  ;;  %v1180_v23 = vsel %vm1156_vm4, %v2332_v29, 0.0 }
 0x130   :  { %1109 = vst.msk [vmem:[%s2922_s2 + $0x44] sm:$0xf] %vm1091_vm3, %v1689_v43  ;;  %1141 = vst.msk [vmem:[%s2922_s2 + $0xc4] sm:$0xf] %vm1091_vm3, %v1721_v44  ;;  %v1368_v53 = vadd.f32 %v1367_v25, %v1366_v41  ;;  %v1173_v54 = vadd.f32 %v1172_v31, %v1171_v42  ;;  %v1303_v51 = vmul.f32 %v2348_v37, %v2348_v37  ;;  %v1182_v42 = vsel %vm1156_vm4, %v2348_v37, 0.0 }
 0x131   :  { %v2461_v2 = vpop.f32.mrf.mxu0  ;;  %v2463_v45 = vpop.f32.mrf.mxu1 }
 0x132   :  { %v1690_v7 = vpack.c.bf16 %v2461_v2, %v2461_v2  ;;  %v1722_v8 = vpack.c.bf16 %v2463_v45, %v2463_v45  ;;  %v1370_v3 = vadd.f32 %v1369_v49, %v1368_v53  ;;  %v1175_v4 = vadd.f32 %v1174_v50, %v1173_v54 }
 0x133   :  { %v654_v14 = vpop.f32.mrf.mxu0  ;;  %v782_v17 = vpop.f32.mrf.mxu1  ;;  %v1305_v49 = vmul.f32 %v2380_v55, %v2380_v55  ;;  %v1379_v63 = vsel %vm1156_vm4, %v1303_v51, 0.0  ;;  %v1184_v53 = vsel %vm1156_vm4, %v2364_v47, 0.0 }
 0x134   :  { %1110 = vst.msk [vmem:[%s2922_s2 + $0x48] sm:$0xf] %vm1091_vm3, %v1690_v7  ;;  %1142 = vst.msk [vmem:[%s2922_s2 + $0xc8] sm:$0xf] %vm1091_vm3, %v1722_v8  ;;  %v1302_v14 = vmul.f32 %v2332_v29, %v2332_v29  ;;  %v1372_v11 = vadd.f32 %v1371_v39, %v1370_v3  ;;  %v1177_v17 = vadd.f32 %v1176_v61, %v1175_v4  ;;  %v1186_v4 = vsel %vm1156_vm4, %v2380_v55, 0.0 }
 0x135   :  { %v2486_v26 = vpop.f32.mrf.mxu0  ;;  %v2488_v57 = vpop.f32.mrf.mxu1  ;;  %v1304_v29 = vmul.f32 %v2364_v47, %v2364_v47 }
 0x136   :  { %v1691_v32 = vpack.c.bf16 %v2486_v26, %v2486_v26  ;;  %v1723_v35 = vpack.c.bf16 %v2488_v57, %v2488_v57  ;;  %v1374_v31 = vadd.f32 %v1373_v10, %v1372_v11  ;;  %v1179_v27 = vadd.f32 %v1178_v13, %v1177_v17 }
 0x137   :  { %v657_v43 = vpop.f32.mrf.mxu0  ;;  %v785_v44 = vpop.f32.mrf.mxu1  ;;  %v1377_v41 = vsel %vm1156_vm4, %v1302_v14, 0.0  ;;  %v1381_v3 = vsel %vm1156_vm4, %v1304_v29, 0.0  ;;  %v1383_v10 = vsel %vm1156_vm4, %v1305_v49, 0.0  ;;  %v1188_v14 = vsel %vm1156_vm4, %v2408_v21, 0.0 }
 0x138   :  { %1111 = vst.msk [vmem:[%s2922_s2 + $0x4c] sm:$0xf] %vm1091_vm3, %v1691_v32  ;;  %1143 = vst.msk [vmem:[%s2922_s2 + $0xcc] sm:$0xf] %vm1091_vm3, %v1723_v35  ;;  %v1376_v43 = vadd.f32 %v1375_v18, %v1374_v31  ;;  %v1181_v44 = vadd.f32 %v1180_v23, %v1179_v27  ;;  %v1307_v11 = vmul.f32 %v2434_v36, %v2434_v36  ;;  %v1190_v27 = vsel %vm1156_vm4, %v2434_v36, 0.0 }
 0x139   :  { %v2513_v60 = vpop.f32.mrf.mxu0  ;;  %v2515_v5 = vpop.f32.mrf.mxu1 }
 0x13a   :  { %v1692_v62 = vpack.c.bf16 %v2513_v60, %v2513_v60  ;;  %v1724_v1 = vpack.c.bf16 %v2515_v5, %v2515_v5  ;;  %v1378_v39 = vadd.f32 %v1377_v41, %v1376_v43  ;;  %v1183_v61 = vadd.f32 %v1182_v42, %v1181_v44 }
 0x13b   :  { %v662_v7 = vpop.f32.mrf.mxu0  ;;  %v790_v8 = vpop.f32.mrf.mxu1  ;;  %v1309_v41 = vmul.f32 %v2486_v26, %v2486_v26  ;;  %v1387_v29 = vsel %vm1156_vm4, %v1307_v11, 0.0  ;;  %v1192_v43 = vsel %vm1156_vm4, %v2461_v2, 0.0 }
 0x13c   :  { %1112 = vst.msk [vmem:[%s2922_s2 + $0x50] sm:$0xf] %vm1091_vm3, %v1692_v62  ;;  %1144 = vst.msk [vmem:[%s2922_s2 + $0xd0] sm:$0xf] %vm1091_vm3, %v1724_v1  ;;  %v1306_v7 = vmul.f32 %v2408_v21, %v2408_v21  ;;  %v1380_v47 = vadd.f32 %v1379_v63, %v1378_v39  ;;  %v1185_v8 = vadd.f32 %v1184_v53, %v1183_v61  ;;  %v1194_v61 = vsel %vm1156_vm4, %v2486_v26, 0.0 }
 0x13d   :  { %v2538_v15 = vpop.f32.mrf.mxu0  ;;  %v2540_v19 = vpop.f32.mrf.mxu1  ;;  %v1308_v21 = vmul.f32 %v2461_v2, %v2461_v2  ;;  %v1196_v26 = vsel %vm1156_vm4, %v2513_v60, 0.0 }
 0x13e   :  { %v1693_v24 = vpack.c.bf16 %v2538_v15, %v2538_v15  ;;  %v1725_v25 = vpack.c.bf16 %v2540_v19, %v2540_v19  ;;  %v1382_v23 = vadd.f32 %v1381_v3, %v1380_v47  ;;  %v1187_v51 = vadd.f32 %v1186_v4, %v1185_v8 }
 0x13f   :  { %v665_v32 = vpop.f32.mrf.mxu0  ;;  %v793_v35 = vpop.f32.mrf.mxu1  ;;  %v1385_v31 = vsel %vm1156_vm4, %v1306_v7, 0.0  ;;  %v1389_v39 = vsel %vm1156_vm4, %v1308_v21, 0.0  ;;  %v1391_v3 = vsel %vm1156_vm4, %v1309_v41, 0.0  ;;  %v1311_v47 = vmul.f32 %v2538_v15, %v2538_v15 }
 0x140   :  { %1113 = vst.msk [vmem:[%s2922_s2 + $0x54] sm:$0xf] %vm1091_vm3, %v1693_v24  ;;  %1145 = vst.msk [vmem:[%s2922_s2 + $0xd4] sm:$0xf] %vm1091_vm3, %v1725_v25  ;;  %v1384_v32 = vadd.f32 %v1383_v10, %v1382_v23  ;;  %v1189_v35 = vadd.f32 %v1188_v14, %v1187_v51  ;;  %v1198_v51 = vsel %vm1156_vm4, %v2538_v15, 0.0 }
 0x141   :  { %v2565_v50 = vpop.f32.mrf.mxu0  ;;  %v2567_v37 = vpop.f32.mrf.mxu1  ;;  %v1395_v21 = vsel %vm1156_vm4, %v1311_v47, 0.0 }
 0x142   :  { %v1694_v54 = vpack.c.bf16 %v2565_v50, %v2565_v50  ;;  %v1726_v59 = vpack.c.bf16 %v2567_v37, %v2567_v37  ;;  %v1386_v63 = vadd.f32 %v1385_v31, %v1384_v32  ;;  %v1191_v53 = vadd.f32 %v1190_v27, %v1189_v35 }
 0x143   :  { %v670_v62 = vpop.f32.mrf.mxu0  ;;  %v798_v1 = vpop.f32.mrf.mxu1  ;;  %v1200_v32 = vsel %vm1156_vm4, %v2565_v50, 0.0 }
 0x144   :  { %1114 = vst.msk [vmem:[%s2922_s2 + $0x58] sm:$0xf] %vm1091_vm3, %v1694_v54  ;;  %1146 = vst.msk [vmem:[%s2922_s2 + $0xd8] sm:$0xf] %vm1091_vm3, %v1726_v59  ;;  %v1310_v62 = vmul.f32 %v2513_v60, %v2513_v60  ;;  %v1388_v2 = vadd.f32 %v1387_v29, %v1386_v63  ;;  %v1193_v1 = vadd.f32 %v1192_v43, %v1191_v53 }
 0x145   :  { %v2590_v13 = vpop.f32.mrf.mxu0  ;;  %v2592_v55 = vpop.f32.mrf.mxu1 }
 0x146   :  { %v1695_v17 = vpack.c.bf16 %v2590_v13, %v2590_v13  ;;  %v1727_v18 = vpack.c.bf16 %v2592_v55, %v2592_v55  ;;  %v1390_v14 = vadd.f32 %v1389_v39, %v1388_v2  ;;  %v1195_v11 = vadd.f32 %v1194_v61, %v1193_v1 }
 0x147   :  { %v673_v24 = vpop.f32.mrf.mxu0  ;;  %v801_v25 = vpop.f32.mrf.mxu1  ;;  %v1393_v23 = vsel %vm1156_vm4, %v1310_v62, 0.0  ;;  %v1313_v31 = vmul.f32 %v2590_v13, %v2590_v13  ;;  %v1202_v53 = vsel %vm1156_vm4, %v2590_v13, 0.0 }
 0x148   :  { %1115 = vst.msk [vmem:[%s2922_s2 + $0x5c] sm:$0xf] %vm1091_vm3, %v1695_v17  ;;  %1147 = vst.msk [vmem:[%s2922_s2 + $0xdc] sm:$0xf] %vm1091_vm3, %v1727_v18  ;;  %v1312_v24 = vmul.f32 %v2565_v50, %v2565_v50  ;;  %v1392_v60 = vadd.f32 %v1391_v3, %v1390_v14  ;;  %v1197_v25 = vadd.f32 %v1196_v26, %v1195_v11 }
 0x149   :  { %v676_v42 = vpop.f32.mrf.mxu0  ;;  %v2617_v36 = vpop.f32.mrf.mxu1  ;;  %v1399_v39 = vsel %vm1156_vm4, %v1313_v31, 0.0 }
 0x14a   :  { %v1696_v44 = vpack.c.bf16 %v676_v42, %v676_v42  ;;  %v1728_v49 = vpack.c.bf16 %v2617_v36, %v2617_v36  ;;  %v1394_v29 = vadd.f32 %v1393_v23, %v1392_v60  ;;  %v1199_v43 = vadd.f32 %v1198_v51, %v1197_v25 }
 0x14b   :  { %v678_v54 = vpop.f32.mrf.mxu0  ;;  %v806_v59 = vpop.f32.mrf.mxu1  ;;  %v1397_v63 = vsel %vm1156_vm4, %v1312_v24, 0.0  ;;  %v1204_v13 = vsel %vm1156_vm4, %v676_v42, 0.0 }
 0x14c   :  { %1116 = vst.msk [vmem:[%s2922_s2 + $0x60] sm:$0xf] %vm1091_vm3, %v1696_v44  ;;  %1148 = vst.msk [vmem:[%s2922_s2 + $0xe0] sm:$0xf] %vm1091_vm3, %v1728_v49  ;;  %v1314_v54 = vmul.f32 %v676_v42, %v676_v42  ;;  %v1396_v50 = vadd.f32 %v1395_v21, %v1394_v29  ;;  %v1201_v59 = vadd.f32 %v1200_v32, %v1199_v43 }
 0x14d   :  { %v679_v4 = vpop.f32.mrf.mxu0  ;;  %v2638_v7 = vpop.f32.mrf.mxu1 }
 0x14e   :  { %v1697_v8 = vpack.c.bf16 %v679_v4, %v679_v4  ;;  %v1729_v10 = vpack.c.bf16 %v2638_v7, %v2638_v7  ;;  %v1315_v2 = vmul.f32 %v679_v4, %v679_v4  ;;  %v1398_v26 = vadd.f32 %v1397_v63, %v1396_v50 }
 0x14f   :  { %v681_v17 = vpop.f32.mrf.mxu0  ;;  %v809_v18 = vpop.f32.mrf.mxu1  ;;  %v1203_v47 = vadd.f32 %v1202_v53, %v1201_v59  ;;  %v1401_v14 = vsel %vm1156_vm4, %v1314_v54, 0.0  ;;  %v1206_v11 = vsel %vm1156_vm4, %v679_v4, 0.0 }
 0x150   :  { %1117 = vst.msk [vmem:[%s2922_s2 + $0x64] sm:$0xf] %vm1091_vm3, %v1697_v8  ;;  %1149 = vst.msk [vmem:[%s2922_s2 + $0xe4] sm:$0xf] %vm1091_vm3, %v1729_v10  ;;  %v1400_v42 = vadd.f32 %v1399_v39, %v1398_v26  ;;  %v1403_v60 = vsel %vm1156_vm4, %v1315_v2, 0.0 }
 0x151   :  { %v684_v27 = vpop.f32.mrf.mxu0  ;;  %v2661_v15 = vpop.f32.mrf.mxu1  ;;  %v1205_v18 = vadd.f32 %v1204_v13, %v1203_v47 }
 0x152   :  { %v1698_v35 = vpack.c.bf16 %v684_v27, %v684_v27  ;;  %v1730_v41 = vpack.c.bf16 %v2661_v15, %v2661_v15  ;;  %v1316_v17 = vmul.f32 %v684_v27, %v684_v27  ;;  %v1208_v4 = vsel %vm1156_vm4, %v684_v27, 0.0 }
 0x153   :  { %v686_v44 = vpop.f32.mrf.mxu0  ;;  %v814_v49 = vpop.f32.mrf.mxu1  ;;  %v1402_v21 = vadd.f32 %v1401_v14, %v1400_v42  ;;  %v1207_v32 = vadd.f32 %v1206_v11, %v1205_v18 }
 0x154   :  { %1118 = vst.msk [vmem:[%s2922_s2 + $0x68] sm:$0xf] %vm1091_vm3, %v1698_v35  ;;  %1150 = vst.msk [vmem:[%s2922_s2 + $0xe8] sm:$0xf] %vm1091_vm3, %v1730_v41  ;;  %v1405_v29 = vsel %vm1156_vm4, %v1316_v17, 0.0 }
 0x155   :  { %v687_v61 = vpop.f32.mrf.mxu0  ;;  %v2680_v62 = vpop.f32.mrf.mxu1  ;;  %v1404_v27 = vadd.f32 %v1403_v60, %v1402_v21  ;;  %v1209_v49 = vadd.f32 %v1208_v4, %v1207_v32  ;;  %v1322_v32 = vmul.f32 %v2142_v16, %v2142_v16 }
 0x156   :  { %v1699_v1 = vpack.c.bf16 %v687_v61, %v687_v61  ;;  %v1731_v3 = vpack.c.bf16 %v2680_v62, %v2680_v62  ;;  %v1317_v23 = vmul.f32 %v687_v61, %v687_v61  ;;  %v1210_v43 = vsel %vm1156_vm4, %v687_v61, 0.0 }
 0x157   :  { %v689_v8 = vpop.f32.mrf.mxu0  ;;  %v817_v10 = vpop.f32.mrf.mxu1  ;;  %v1406_v13 = vadd.f32 %v1405_v29, %v1404_v27  ;;  %v1211_v2 = vadd.f32 %v1210_v43, %v1209_v49 }
 0x158   :  { %1119 = vst.msk [vmem:[%s2922_s2 + $0x6c] sm:$0xf] %vm1091_vm3, %v1699_v1  ;;  %1151 = vst.msk [vmem:[%s2922_s2 + $0xec] sm:$0xf] %vm1091_vm3, %v1731_v3  ;;  %v1407_v63 = vsel %vm1156_vm4, %v1317_v23, 0.0 }
 0x159   :  { %v692_v51 = vpop.f32.mrf.mxu0  ;;  %v2695_v24 = vpop.f32.mrf.mxu1  ;;  %v1408_v8 = vadd.f32 %v1407_v63, %v1406_v13  ;;  %v1323_v13 = vmul.f32 %v2158_v22, %v2158_v22 }
 0x15a   :  { %v1700_v25 = vpack.c.bf16 %v692_v51, %v692_v51  ;;  %v1732_v31 = vpack.c.bf16 %v2695_v24, %v2695_v24  ;;  %v1318_v44 = vmul.f32 %v692_v51, %v692_v51  ;;  %v1212_v50 = vsel %vm1156_vm4, %v692_v51, 0.0 }
 0x15b   :  { %v694_v35 = vpop.f32.mrf.mxu0  ;;  %v822_v41 = vpop.f32.mrf.mxu1  ;;  %v1213_v10 = vadd.f32 %v1212_v50, %v1211_v2 }
 0x15c   :  { %1120 = vst.msk [vmem:[%s2922_s2 + $0x70] sm:$0xf] %vm1091_vm3, %v1700_v25  ;;  %1152 = vst.msk [vmem:[%s2922_s2 + $0xf0] sm:$0xf] %vm1091_vm3, %v1732_v31  ;;  %v1409_v26 = vsel %vm1156_vm4, %v1318_v44, 0.0 }
 0x15d   :  { %v695_v53 = vpop.f32.mrf.mxu0  ;;  %v2712_v54 = vpop.f32.mrf.mxu1  ;;  %v1410_v60 = vadd.f32 %v1409_v26, %v1408_v8  ;;  %v1417_v26 = vsel %vm1156_vm4, %v1322_v32, 0.0 }
 0x15e   :  { %v1701_v59 = vpack.c.bf16 %v695_v53, %v695_v53  ;;  %v1319_v39 = vmul.f32 %v695_v53, %v695_v53  ;;  %v1733_v61 = vpack.c.bf16 %v2712_v54, %v2712_v54  ;;  %v1214_v47 = vsel %vm1156_vm4, %v695_v53, 0.0 }
 0x15f   :  { %v697_v1 = vpop.f32.mrf.mxu0  ;;  %v825_v3 = vpop.f32.mrf.mxu1  ;;  %v1215_v4 = vadd.f32 %v1214_v47, %v1213_v10  ;;  %v1324_v47 = vmul.f32 %v2174_v28, %v2174_v28 }
 0x160   :  { %1121 = vst.msk [vmem:[%s2922_s2 + $0x74] sm:$0xf] %vm1091_vm3, %v1701_v59  ;;  %1153 = vst.msk [vmem:[%s2922_s2 + $0xf4] sm:$0xf] %vm1091_vm3, %v1733_v61  ;;  %v1411_v14 = vsel %vm1156_vm4, %v1319_v39, 0.0  ;;  %v1220_v61 = vsel %vm1156_vm4, %v2142_v16, 0.0 }
 0x161   :  { %v700_v11 = vpop.f32.mrf.mxu0  ;;  %v2728_v17 = vpop.f32.mrf.mxu1  ;;  %v1412_v35 = vadd.f32 %v1411_v14, %v1410_v60  ;;  %v1222_v16 = vsel %vm1156_vm4, %v2158_v22, 0.0  ;;  %v1419_v14 = vsel %vm1156_vm4, %v1323_v13, 0.0  ;;  %v1226_v22 = vsel %vm1156_vm4, %v2190_v34, 0.0 }
 0x162   :  { %v1702_v42 = vpack.c.bf16 %v700_v11, %v700_v11  ;;  %v1216_v18 = vsel %vm1156_vm4, %v700_v11, 0.0  ;;  %v1320_v23 = vmul.f32 %v700_v11, %v700_v11  ;;  %v1734_v51 = vpack.c.bf16 %v2728_v17, %v2728_v17 }
 0x163   :  { %v702_v25 = vpop.f32.mrf.mxu0  ;;  %v830_v31 = vpop.f32.mrf.mxu1  ;;  %v1217_v41 = vadd.f32 %v1216_v18, %v1215_v4  ;;  %v1224_v11 = vsel %vm1156_vm4, %v2174_v28, 0.0  ;;  %v1326_v60 = vmul.f32 %v2206_v40, %v2206_v40  ;;  %v1228_v28 = vsel %vm1156_vm4, %v2206_v40, 0.0 }
 0x164   :  { %1122 = vst.msk [vmem:[%s2922_s2 + $0x78] sm:$0xf] %vm1091_vm3, %v1702_v42  ;;  %v1413_v21 = vsel %vm1156_vm4, %v1320_v23, 0.0  ;;  %1154 = vst.msk [vmem:[%s2922_s2 + $0xf8] sm:$0xf] %vm1091_vm3, %v1734_v51  ;;  %v1325_v42 = vmul.f32 %v2190_v34, %v2190_v34  ;;  %v1421_v51 = vsel %vm1156_vm4, %v1324_v47, 0.0  ;;  %v1332_v47 = vmul.f32 %v2302_v12, %v2302_v12 }
 0x165   :  { %v703_v29 = vpop.f32.mrf.mxu0  ;;  %v2744_v43 = vpop.f32.mrf.mxu1  ;;  %v1414_v53 = vadd.f32 %v1413_v21, %v1412_v35  ;;  %v1327_v21 = vmul.f32 %v2222_v46, %v2222_v46  ;;  %v1230_v34 = vsel %vm1156_vm4, %v2222_v46, 0.0  ;;  %v1232_v40 = vsel %vm1156_vm4, %v2238_v52, 0.0 }
 0x166   :  { %v1703_v44 = vpack.c.bf16 %v703_v29, %v703_v29  ;;  %v1218_v27 = vsel %vm1156_vm4, %v703_v29, 0.0  ;;  %v1321_v49 = vmul.f32 %v703_v29, %v703_v29  ;;  %v1735_v63 = vpack.c.bf16 %v2744_v43, %v2744_v43 }
 0x167   :  { %v1219_v50 = vadd.f32 %v1218_v27, %v1217_v41  ;;  %v705_v59 = vpop.f32.mrf.mxu0  ;;  %v833_v39 = vpop.f32.mrf.mxu1  ;;  %v1423_v31 = vsel %vm1156_vm4, %v1325_v42, 0.0  ;;  %v1425_v41 = vsel %vm1156_vm4, %v1326_v60, 0.0  ;;  %v1328_v29 = vmul.f32 %v2238_v52, %v2238_v52 }
 0x168   :  { %1123 = vst.msk [vmem:[%s2922_s2 + $0x7c] sm:$0xf] %vm1091_vm3, %v1703_v44  ;;  %v1415_v2 = vsel %vm1156_vm4, %v1321_v49, 0.0  ;;  %1155 = vst.msk [vmem:[%s2922_s2 + $0xfc] sm:$0xf] %vm1091_vm3, %v1735_v63  ;;  %v1427_v49 = vsel %vm1156_vm4, %v1327_v21, 0.0  ;;  %v1329_v63 = vmul.f32 %v2254_v58, %v2254_v58  ;;  %v1330_v39 = vmul.f32 %v2270_v0, %v2270_v0 }
 0x169   :  { %v1221_v1 = vadd.f32 %v1220_v61, %v1219_v50  ;;  %v1416_v3 = vadd.f32 %v1415_v2, %v1414_v53  ;;  %v1429_v59 = vsel %vm1156_vm4, %v1328_v29, 0.0  ;;  %v1234_v46 = vsel %vm1156_vm4, %v2254_v58, 0.0 }
 0x16a   :  { %v1431_v2 = vsel %vm1156_vm4, %v1329_v63, 0.0  ;;  %v1236_v52 = vsel %vm1156_vm4, %v2270_v0, 0.0  ;;  %v1238_v58 = vsel %vm1156_vm4, %v2286_v6, 0.0  ;;  %v1240_v0 = vsel %vm1156_vm4, %v2302_v12, 0.0 }
 0x16b   :  { %v1223_v8 = vadd.f32 %v1222_v16, %v1221_v1  ;;  %v1418_v10 = vadd.f32 %v1417_v26, %v1416_v3  ;;  %v1331_v1 = vmul.f32 %v2286_v6, %v2286_v6  ;;  %v1433_v16 = vsel %vm1156_vm4, %v1330_v39, 0.0 }
 0x16c   :  { %v1242_v6 = vsel %vm1156_vm4, %v2318_v20, 0.0  ;;  %v1244_v12 = vsel %vm1156_vm4, %v2334_v30, 0.0  ;;  %v1337_v29 = vmul.f32 %v2382_v56, %v2382_v56 }
 0x16d   :  { %v1225_v18 = vadd.f32 %v1224_v11, %v1223_v8  ;;  %v1420_v23 = vadd.f32 %v1419_v14, %v1418_v10  ;;  %v1435_v14 = vsel %vm1156_vm4, %v1331_v1, 0.0  ;;  %v1333_v11 = vmul.f32 %v2318_v20, %v2318_v20 }
 0x16e   :  { %v1246_v20 = vsel %vm1156_vm4, %v2350_v38, 0.0 }
 0x16f   :  { %v1227_v4 = vadd.f32 %v1226_v22, %v1225_v18  ;;  %v1422_v25 = vadd.f32 %v1421_v51, %v1420_v23  ;;  %v1437_v23 = vsel %vm1156_vm4, %v1332_v47, 0.0  ;;  %v1334_v51 = vmul.f32 %v2334_v30, %v2334_v30 }
 0x170   :  { %v1248_v30 = vsel %vm1156_vm4, %v2366_v48, 0.0  ;;  %v1342_v47 = vmul.f32 %v2515_v5, %v2515_v5 }
 0x171   :  { %v1229_v32 = vadd.f32 %v1228_v28, %v1227_v4  ;;  %v1424_v35 = vadd.f32 %v1423_v31, %v1422_v25  ;;  %v1439_v4 = vsel %vm1156_vm4, %v1333_v11, 0.0  ;;  %v1335_v25 = vmul.f32 %v2350_v38, %v2350_v38 }
 0x172   :  { %v1441_v21 = vsel %vm1156_vm4, %v1334_v51, 0.0  ;;  %v1250_v38 = vsel %vm1156_vm4, %v2382_v56, 0.0  ;;  %v1254_v56 = vsel %vm1156_vm4, %v2436_v33, 0.0 }
 0x173   :  { %v1231_v44 = vadd.f32 %v1230_v34, %v1229_v32  ;;  %v1426_v27 = vadd.f32 %v1425_v41, %v1424_v35  ;;  %v1336_v32 = vmul.f32 %v2366_v48, %v2366_v48  ;;  %v1443_v34 = vsel %vm1156_vm4, %v1335_v25, 0.0 }
 0x174   :  { %v1252_v48 = vsel %vm1156_vm4, %v2410_v9, 0.0 }
 0x175   :  { %v1233_v53 = vadd.f32 %v1232_v40, %v1231_v44  ;;  %v1428_v50 = vadd.f32 %v1427_v49, %v1426_v27  ;;  %v1445_v49 = vsel %vm1156_vm4, %v1336_v32, 0.0  ;;  %v1338_v40 = vmul.f32 %v2410_v9, %v2410_v9 }
 0x176   :  { %v1256_v9 = vsel %vm1156_vm4, %v2463_v45, 0.0  ;;  %v1347_v32 = vmul.f32 %v2638_v7, %v2638_v7 }
 0x177   :  { %v1235_v61 = vadd.f32 %v1234_v46, %v1233_v53  ;;  %v1430_v13 = vadd.f32 %v1429_v59, %v1428_v50  ;;  %v1447_v50 = vsel %vm1156_vm4, %v1337_v29, 0.0  ;;  %v1339_v59 = vmul.f32 %v2436_v33, %v2436_v33 }
 0x178   :  { %v1258_v33 = vsel %vm1156_vm4, %v2488_v57, 0.0 }
 0x179   :  { %v1432_v3 = vadd.f32 %v1431_v2, %v1430_v13  ;;  %v1237_v26 = vadd.f32 %v1236_v52, %v1235_v61  ;;  %v1449_v61 = vsel %vm1156_vm4, %v1338_v40, 0.0  ;;  %v1340_v13 = vmul.f32 %v2463_v45, %v2463_v45 }
 0x17a   :  { %v1451_v1 = vsel %vm1156_vm4, %v1339_v59, 0.0  ;;  %v1260_v45 = vsel %vm1156_vm4, %v2515_v5, 0.0  ;;  %v1264_v5 = vsel %vm1156_vm4, %v2567_v37, 0.0 }
 0x17b   :  { %v1239_v8 = vadd.f32 %v1238_v58, %v1237_v26  ;;  %v1434_v10 = vadd.f32 %v1433_v16, %v1432_v3  ;;  %v1341_v3 = vmul.f32 %v2488_v57, %v2488_v57  ;;  %v1453_v58 = vsel %vm1156_vm4, %v1340_v13, 0.0 }
 0x17c   :  { %v1262_v57 = vsel %vm1156_vm4, %v2540_v19, 0.0  ;;  %v1352_v13 = vmul.f32 %v2728_v17, %v2728_v17 }
 0x17d   :  { %v1241_v42 = vadd.f32 %v1240_v0, %v1239_v8  ;;  %v1436_v18 = vadd.f32 %v1435_v14, %v1434_v10  ;;  %v1455_v14 = vsel %vm1156_vm4, %v1341_v3, 0.0  ;;  %v1343_v0 = vmul.f32 %v2540_v19, %v2540_v19 }
 0x17e   :  { %v1266_v19 = vsel %vm1156_vm4, %v2592_v55, 0.0 }
 0x17f   :  { %v1243_v22 = vadd.f32 %v1242_v6, %v1241_v42  ;;  %v1438_v60 = vadd.f32 %v1437_v23, %v1436_v18  ;;  %v1457_v18 = vsel %vm1156_vm4, %v1342_v47, 0.0  ;;  %v1344_v23 = vmul.f32 %v2567_v37, %v2567_v37 }
 0x180   :  { %v1268_v37 = vsel %vm1156_vm4, %v2617_v36, 0.0 }
 0x181   :  { %v1245_v31 = vadd.f32 %v1244_v12, %v1243_v22  ;;  %v1440_v28 = vadd.f32 %v1439_v4, %v1438_v60  ;;  %v1459_v22 = vsel %vm1156_vm4, %v1343_v0, 0.0  ;;  %v1345_v60 = vmul.f32 %v2592_v55, %v2592_v55 }
 0x182   :  { %v1461_v25 = vsel %vm1156_vm4, %v1344_v23, 0.0  ;;  %v1270_v55 = vsel %vm1156_vm4, %v2638_v7, 0.0  ;;  %v1274_v7 = vsel %vm1156_vm4, %v2680_v62, 0.0  ;;  %v1487_v0 = vlaneseq }
 0x183   :  { %v1247_v35 = vadd.f32 %v1246_v20, %v1245_v31  ;;  %v1442_v41 = vadd.f32 %v1441_v21, %v1440_v28  ;;  %v1346_v31 = vmul.f32 %v2617_v36, %v2617_v36  ;;  %v1463_v20 = vsel %vm1156_vm4, %v1345_v60, 0.0 }
 0x184   :  { %v1272_v36 = vsel %vm1156_vm4, %v2661_v15, 0.0 }
 0x185   :  { %v1249_v44 = vadd.f32 %v1248_v30, %v1247_v35  ;;  %v1444_v27 = vadd.f32 %v1443_v34, %v1442_v41  ;;  %v1465_v34 = vsel %vm1156_vm4, %v1346_v31, 0.0  ;;  %v1348_v30 = vmul.f32 %v2661_v15, %v2661_v15 }
 0x186   :  { %v1276_v15 = vsel %vm1156_vm4, %v2695_v24, 0.0 }
 0x187   :  { %v1251_v63 = vadd.f32 %v1250_v38, %v1249_v44  ;;  %v1446_v53 = vadd.f32 %v1445_v49, %v1444_v27  ;;  %v1467_v27 = vsel %vm1156_vm4, %v1347_v32, 0.0  ;;  %v1349_v49 = vmul.f32 %v2680_v62, %v2680_v62 }
 0x188   :  { %v1278_v62 = vsel %vm1156_vm4, %v2712_v54, 0.0 }
 0x189   :  { %v1253_v46 = vadd.f32 %v1252_v48, %v1251_v63  ;;  %v1448_v39 = vadd.f32 %v1447_v50, %v1446_v53  ;;  %v1469_v63 = vsel %vm1156_vm4, %v1348_v30, 0.0  ;;  %v1350_v53 = vmul.f32 %v2695_v24, %v2695_v24 }
 0x18a   :  { %v1471_v59 = vsel %vm1156_vm4, %v1349_v49, 0.0  ;;  %v1280_v24 = vsel %vm1156_vm4, %v2728_v17, 0.0 }
 0x18b   :  { %v1255_v2 = vadd.f32 %v1254_v56, %v1253_v46  ;;  %v1450_v52 = vadd.f32 %v1449_v61, %v1448_v39  ;;  %v1351_v46 = vmul.f32 %v2712_v54, %v2712_v54  ;;  %v1473_v56 = vsel %vm1156_vm4, %v1350_v53, 0.0 }
 0x18c   :  { %v1282_v54 = vsel %vm1156_vm4, %v2744_v43, 0.0 }
 0x18d   :  { %v1452_v26 = vadd.f32 %v1451_v1, %v1450_v52  ;;  %v1257_v16 = vadd.f32 %v1256_v9, %v1255_v2  ;;  %v1475_v1 = vsel %vm1156_vm4, %v1351_v46, 0.0  ;;  %v1353_v9 = vmul.f32 %v2744_v43, %v2744_v43 }
 0x18f   :  { %v1454_v8 = vadd.f32 %v1453_v58, %v1452_v26  ;;  %v1259_v10 = vadd.f32 %v1258_v33, %v1257_v16  ;;  %v1477_v16 = vsel %vm1156_vm4, %v1352_v13, 0.0  ;;  %v1479_v47 = vsel %vm1156_vm4, %v1353_v9, 0.0 }
 0x191   :  { %v1456_v11 = vadd.f32 %v1455_v14, %v1454_v8  ;;  %v1261_v42 = vadd.f32 %v1260_v45, %v1259_v10 }
 0x193   :  { %v1458_v6 = vadd.f32 %v1457_v18, %v1456_v11  ;;  %v1263_v51 = vadd.f32 %v1262_v57, %v1261_v42  ;;  %v1488_v57 = vshrl.u32 %v1487_v0, 7 }
 0x195   :  { %v1460_v4 = vadd.f32 %v1459_v22, %v1458_v6  ;;  %v1265_v12 = vadd.f32 %v1264_v5, %v1263_v51  ;;  %vm1490_vm5 = vcmp.eq.s32.totalorder %v1488_v57, 1  ;;  %vm1489_vm6 = vcmp.eq.s32.totalorder %v1488_v57, 0 }
 0x197   :  { %v1462_v28 = vadd.f32 %v1461_v25, %v1460_v4  ;;  %v1267_v21 = vadd.f32 %v1266_v19, %v1265_v12 }
 0x199   :  { %v1464_v35 = vadd.f32 %v1463_v20, %v1462_v28  ;;  %v1269_v41 = vadd.f32 %v1268_v37, %v1267_v21 }
 0x19b   :  { %v1466_v29 = vadd.f32 %v1465_v34, %v1464_v35  ;;  %v1271_v44 = vadd.f32 %v1270_v55, %v1269_v41 }
 0x19d   :  { %v1468_v38 = vadd.f32 %v1467_v27, %v1466_v29  ;;  %v1273_v40 = vadd.f32 %v1272_v36, %v1271_v44 }
 0x19f   :  { %v1470_v50 = vadd.f32 %v1469_v63, %v1468_v38  ;;  %v1275_v48 = vadd.f32 %v1274_v7, %v1273_v40 }
 0x1a1   :  { %v1472_v39 = vadd.f32 %v1471_v59, %v1470_v50  ;;  %v1277_v61 = vadd.f32 %v1276_v15, %v1275_v48 }
 0x1a3   :  { %v1474_v2 = vadd.f32 %v1473_v56, %v1472_v39  ;;  %v1279_v52 = vadd.f32 %v1278_v62, %v1277_v61 }
 0x1a5   :  { %v1476_v3 = vadd.f32 %v1475_v1, %v1474_v2  ;;  %v1281_v26 = vadd.f32 %v1280_v24, %v1279_v52 }
 0x1a7   :  { %v1478_v58 = vadd.f32 %v1477_v16, %v1476_v3  ;;  %v1283_v33 = vadd.f32 %v1282_v54, %v1281_v26 }
 0x1a9   :  { %v1284_v8 = vrot.slane %v1283_v33, 4  ;;  %v1480_v10 = vadd.f32 %v1479_v47, %v1478_v58 }
 0x1ab   :  { %v1285_v14 = vadd.f32 %v1284_v8, %v1283_v33  ;;  %v1481_v45 = vrot.slane %v1480_v10, 4 }
 0x1ad   :  { %v1286_v17 = vrot.slane %v1285_v14, 2  ;;  %v1482_v11 = vadd.f32 %v1481_v45, %v1480_v10 }
 0x1af   :  { %v1287_v42 = vadd.f32 %v1286_v17, %v1285_v14  ;;  %v1483_v18 = vrot.slane %v1482_v11, 2 }
 0x1b1   :  { %v1484_v23 = vadd.f32 %v1483_v18, %v1482_v11  ;;  %v1288_v6 = vrot.slane %v1287_v42, 1 }
 0x1b3   :  { %v1485_v51 = vrot.slane %v1484_v23, 1  ;;  %v1289_v43 = vadd.f32 %v1288_v6, %v1287_v42 }
 0x1b5   :  { %v1486_v22 = vadd.f32 %v1485_v51, %v1484_v23 }
 0x1b7   :  { %v1491_v5 = vsel %vm1490_vm5, %v1486_v22, 0.0 }
 0x1b8   :  { %v1492_v60 = vsel %vm1489_vm6, %v1289_v43, %v1491_v5 }
 0x1b9   :  { %1493 = vst.msk [vmem:[%s2923_s3] sm:$0xff] %vm1156_vm4, %v1492_v60 }

// kernel: resnet_forward.31
= control target key start
LH: loop header
LB: loop body
LE: loop exit
PB: predicated region body
PF: predicated region fallthrough
CT: control target
= control target key end

     0   :  { %s485_s0 = inlined_call_operand.vmem [shape: bf16[64,128], index: 0, kind: input, shape index: {}]   ;;  %s486_s1 = inlined_call_operand.vmem [shape: bf16[64,128], index: 1, kind: input, shape index: {}]   ;;  %s487_s2 = inlined_call_operand.vmem [shape: bf16[64,128], index: 2, kind: input, shape index: {}]   ;;  %s488_s3 = inlined_call_operand.vmem [shape: bf16[64,128], index: 3, kind: input, shape index: {}]   ;;  %s489_s4 = inlined_call_operand.vmem [shape: bf16[64,128], index: 4, kind: input, shape index: {}]   ;;  %s490_s5 = inlined_call_operand.vmem [shape: bf16[64,128], index: 5, kind: input, shape index: {}]   ;;  %s491_s6 = inlined_call_operand.vmem [shape: bf16[64,128], index: 6, kind: input, shape index: {}]   ;;  %s492_s7 = inlined_call_operand.vmem [shape: bf16[64,128], index: 7, kind: input, shape index: {}]   ;;  %s493_s8 = inlined_call_operand.vmem [shape: bf16[64,128], index: 8, kind: input, shape index: {}]   ;;  %s494_s9 = inlined_call_operand.vmem [shape: bf16[64,128], index: 9, kind: output, shape index: {}]  }
   0x1   :  { %v32_v0 = vld [vmem:[%s485_s0] sm:$0xf]  ;;  %v33_v1 = vld [vmem:[%s485_s0 + $0x4] sm:$0xf]  ;;  %v34_v18 = vld [vmem:[%s485_s0 + $0x8] sm:$0xf] }
   0x2   :  { %v40_v2 = vld [vmem:[%s486_s1] sm:$0xf]  ;;  %v41_v3 = vld [vmem:[%s486_s1 + $0x4] sm:$0xf]  ;;  %v35_v19 = vld [vmem:[%s485_s0 + $0xc] sm:$0xf] }
   0x3   :  { %v48_v4 = vmax.bf16 %v40_v2, %v32_v0  ;;  %v56_v5 = vld [vmem:[%s487_s2] sm:$0xf]  ;;  %v57_v6 = vld [vmem:[%s487_s2 + $0x4] sm:$0xf]  ;;  %v49_v7 = vmax.bf16 %v41_v3, %v33_v1  ;;  %v42_v20 = vld [vmem:[%s486_s1 + $0x8] sm:$0xf] }
   0x4   :  { %v72_v8 = vld [vmem:[%s488_s3] sm:$0xf]  ;;  %v73_v10 = vld [vmem:[%s488_s3 + $0x4] sm:$0xf]  ;;  %v43_v22 = vld [vmem:[%s486_s1 + $0xc] sm:$0xf]  ;;  %v50_v23 = vmax.bf16 %v42_v20, %v34_v18 }
   0x5   :  { %v64_v9 = vmax.bf16 %v56_v5, %v48_v4  ;;  %v65_v11 = vmax.bf16 %v57_v6, %v49_v7  ;;  %v88_v12 = vld [vmem:[%s489_s4] sm:$0xf]  ;;  %v89_v14 = vld [vmem:[%s489_s4 + $0x4] sm:$0xf]  ;;  %v58_v24 = vld [vmem:[%s487_s2 + $0x8] sm:$0xf]  ;;  %v51_v28 = vmax.bf16 %v43_v22, %v35_v19 }
   0x6   :  { %v104_v15 = vld [vmem:[%s490_s5] sm:$0xf]  ;;  %v105_v16 = vld [vmem:[%s490_s5 + $0x4] sm:$0xf]  ;;  %v59_v25 = vld [vmem:[%s487_s2 + $0xc] sm:$0xf]  ;;  %v66_v33 = vmax.bf16 %v58_v24, %v50_v23 }
   0x7   :  { %v80_v13 = vmax.bf16 %v72_v8, %v64_v9  ;;  %v81_v17 = vmax.bf16 %v73_v10, %v65_v11  ;;  %v120_v27 = vld [vmem:[%s491_s6] sm:$0xf]  ;;  %v74_v29 = vld [vmem:[%s488_s3 + $0x8] sm:$0xf]  ;;  %v121_v31 = vld [vmem:[%s491_s6 + $0x4] sm:$0xf]  ;;  %v67_v38 = vmax.bf16 %v59_v25, %v51_v28 }
   0x8   :  { %v136_v32 = vld [vmem:[%s492_s7] sm:$0xf]  ;;  %v75_v34 = vld [vmem:[%s488_s3 + $0xc] sm:$0xf]  ;;  %v137_v36 = vld [vmem:[%s492_s7 + $0x4] sm:$0xf]  ;;  %v82_v42 = vmax.bf16 %v74_v29, %v66_v33 }
   0x9   :  { %v96_v21 = vmax.bf16 %v88_v12, %v80_v13  ;;  %v97_v26 = vmax.bf16 %v89_v14, %v81_v17  ;;  %v152_v37 = vld [vmem:[%s493_s8] sm:$0xf]  ;;  %v90_v39 = vld [vmem:[%s489_s4 + $0x8] sm:$0xf]  ;;  %v153_v41 = vld [vmem:[%s493_s8 + $0x4] sm:$0xf]  ;;  %v83_v47 = vmax.bf16 %v75_v34, %v67_v38 }
   0xa   :  { %v91_v43 = vld [vmem:[%s489_s4 + $0xc] sm:$0xf]  ;;  %v106_v44 = vld [vmem:[%s490_s5 + $0x8] sm:$0xf]  ;;  %v36_v48 = vld [vmem:[%s485_s0 + $0x10] sm:$0xf]  ;;  %v98_v52 = vmax.bf16 %v90_v39, %v82_v42 }
   0xb   :  { %v112_v30 = vmax.bf16 %v104_v15, %v96_v21  ;;  %v113_v35 = vmax.bf16 %v105_v16, %v97_v26  ;;  %v107_v45 = vld [vmem:[%s490_s5 + $0xc] sm:$0xf]  ;;  %v37_v49 = vld [vmem:[%s485_s0 + $0x14] sm:$0xf]  ;;  %v44_v50 = vld [vmem:[%s486_s1 + $0x10] sm:$0xf]  ;;  %v99_v58 = vmax.bf16 %v91_v43, %v83_v47 }
   0xc   :  { %v45_v53 = vld [vmem:[%s486_s1 + $0x14] sm:$0xf]  ;;  %v52_v54 = vmax.bf16 %v44_v50, %v36_v48  ;;  %v60_v55 = vld [vmem:[%s487_s2 + $0x10] sm:$0xf]  ;;  %v122_v59 = vld [vmem:[%s491_s6 + $0x8] sm:$0xf]  ;;  %v114_v63 = vmax.bf16 %v106_v44, %v98_v52 }
   0xd   :  { %v128_v40 = vmax.bf16 %v120_v27, %v112_v30  ;;  %v129_v46 = vmax.bf16 %v121_v31, %v113_v35  ;;  %v61_v56 = vld [vmem:[%s487_s2 + $0x14] sm:$0xf]  ;;  %v53_v60 = vmax.bf16 %v45_v53, %v37_v49  ;;  %v76_v61 = vld [vmem:[%s488_s3 + $0x10] sm:$0xf]  ;;  %v123_v0 = vld [vmem:[%s491_s6 + $0xc] sm:$0xf]  ;;  %v115_v5 = vmax.bf16 %v107_v45, %v99_v58 }
   0xe   :  { %v138_v1 = vld [vmem:[%s492_s7 + $0x8] sm:$0xf]  ;;  %v68_v2 = vmax.bf16 %v60_v55, %v52_v54  ;;  %v77_v3 = vld [vmem:[%s488_s3 + $0x14] sm:$0xf]  ;;  %v139_v6 = vld [vmem:[%s492_s7 + $0xc] sm:$0xf]  ;;  %v130_v10 = vmax.bf16 %v122_v59, %v114_v63 }
   0xf   :  { %v144_v51 = vmax.bf16 %v136_v32, %v128_v40  ;;  %v145_v57 = vmax.bf16 %v137_v36, %v129_v46  ;;  %v154_v7 = vld [vmem:[%s493_s8 + $0x8] sm:$0xf]  ;;  %v69_v8 = vmax.bf16 %v61_v56, %v53_v60  ;;  %v92_v9 = vld [vmem:[%s489_s4 + $0x10] sm:$0xf]  ;;  %v155_v11 = vld [vmem:[%s493_s8 + $0xc] sm:$0xf]  ;;  %v131_v17 = vmax.bf16 %v123_v0, %v115_v5 }
  0x10   :  { %v84_v12 = vmax.bf16 %v76_v61, %v68_v2  ;;  %v93_v13 = vld [vmem:[%s489_s4 + $0x14] sm:$0xf]  ;;  %v108_v14 = vld [vmem:[%s490_s5 + $0x10] sm:$0xf]  ;;  %v38_v19 = vld [vmem:[%s485_s0 + $0x18] sm:$0xf]  ;;  %v146_v22 = vmax.bf16 %v138_v1, %v130_v10 }
  0x11   :  { %v160_v62 = vmax.bf16 %v152_v37, %v144_v51  ;;  %v161_v4 = vmax.bf16 %v153_v41, %v145_v57  ;;  %v109_v15 = vld [vmem:[%s490_s5 + $0x14] sm:$0xf]  ;;  %v85_v18 = vmax.bf16 %v77_v3, %v69_v8  ;;  %v39_v20 = vld [vmem:[%s485_s0 + $0x1c] sm:$0xf]  ;;  %v46_v21 = vld [vmem:[%s486_s1 + $0x18] sm:$0xf]  ;;  %v147_v28 = vmax.bf16 %v139_v6, %v131_v17 }
  0x12   :  { %v100_v23 = vmax.bf16 %v92_v9, %v84_v12  ;;  %v47_v24 = vld [vmem:[%s486_s1 + $0x1c] sm:$0xf]  ;;  %v54_v25 = vmax.bf16 %v46_v21, %v38_v19  ;;  %v62_v26 = vld [vmem:[%s487_s2 + $0x18] sm:$0xf]  ;;  %v124_v30 = vld [vmem:[%s491_s6 + $0x10] sm:$0xf]  ;;  %v162_v33 = vmax.bf16 %v154_v7, %v146_v22 }
  0x13   :  { %v200_v16 = vcombine.low %v160_v62, %v161_v4  ;;  %v63_v27 = vld [vmem:[%s487_s2 + $0x1c] sm:$0xf]  ;;  %v101_v29 = vmax.bf16 %v93_v13, %v85_v18  ;;  %v55_v31 = vmax.bf16 %v47_v24, %v39_v20  ;;  %v78_v32 = vld [vmem:[%s488_s3 + $0x18] sm:$0xf]  ;;  %v125_v35 = vld [vmem:[%s491_s6 + $0x14] sm:$0xf]  ;;  %v163_v38 = vmax.bf16 %v155_v11, %v147_v28 }
  0x14   :  { %v116_v34 = vmax.bf16 %v108_v14, %v100_v23  ;;  %v70_v36 = vmax.bf16 %v62_v26, %v54_v25  ;;  %v79_v37 = vld [vmem:[%s488_s3 + $0x1c] sm:$0xf]  ;;  %v140_v40 = vld [vmem:[%s492_s7 + $0x10] sm:$0xf]  ;;  %v94_v42 = vld [vmem:[%s489_s4 + $0x18] sm:$0xf] }
  0x15   :  { %184 = vst [vmem:[%s494_s9] sm:$0xff] %v200_v16   ;;  %v117_v39 = vmax.bf16 %v109_v15, %v101_v29  ;;  %v71_v41 = vmax.bf16 %v63_v27, %v55_v31  ;;  %v141_v44 = vld [vmem:[%s492_s7 + $0x14] sm:$0xf]  ;;  %v95_v46 = vld [vmem:[%s489_s4 + $0x1c] sm:$0xf]  ;;  %v201_v47 = vcombine.low %v162_v33, %v163_v38  ;;  %v156_v49 = vld [vmem:[%s493_s8 + $0x10] sm:$0xf] }
  0x16   :  { %v132_v43 = vmax.bf16 %v124_v30, %v116_v34  ;;  %v86_v45 = vmax.bf16 %v78_v32, %v70_v36  ;;  %v110_v51 = vld [vmem:[%s490_s5 + $0x18] sm:$0xf]  ;;  %v157_v53 = vld [vmem:[%s493_s8 + $0x14] sm:$0xf]  ;;  %v111_v55 = vld [vmem:[%s490_s5 + $0x1c] sm:$0xf] }
  0x17   :  { %v133_v48 = vmax.bf16 %v125_v35, %v117_v39  ;;  %v87_v50 = vmax.bf16 %v79_v37, %v71_v41  ;;  %202 = vst [vmem:[%s494_s9 + $0x8] sm:$0xff] %v201_v47   ;;  %v126_v58 = vld [vmem:[%s491_s6 + $0x18] sm:$0xf]  ;;  %v127_v61 = vld [vmem:[%s491_s6 + $0x1c] sm:$0xf] }
  0x18   :  { %v148_v52 = vmax.bf16 %v140_v40, %v132_v43  ;;  %v102_v54 = vmax.bf16 %v94_v42, %v86_v45  ;;  %v142_v0 = vld [vmem:[%s492_s7 + $0x18] sm:$0xf]  ;;  %v143_v2 = vld [vmem:[%s492_s7 + $0x1c] sm:$0xf] }
  0x19   :  { %v149_v56 = vmax.bf16 %v141_v44, %v133_v48  ;;  %v103_v57 = vmax.bf16 %v95_v46, %v87_v50  ;;  %v158_v5 = vld [vmem:[%s493_s8 + $0x18] sm:$0xf]  ;;  %v159_v7 = vld [vmem:[%s493_s8 + $0x1c] sm:$0xf] }
  0x1a   :  { %v164_v59 = vmax.bf16 %v156_v49, %v148_v52  ;;  %v118_v60 = vmax.bf16 %v110_v51, %v102_v54 }
  0x1b   :  { %v165_v62 = vmax.bf16 %v157_v53, %v149_v56  ;;  %v119_v63 = vmax.bf16 %v111_v55, %v103_v57 }
  0x1c   :  { %v134_v1 = vmax.bf16 %v126_v58, %v118_v60 }
  0x1d   :  { %v203_v3 = vcombine.low %v164_v59, %v165_v62  ;;  %v135_v4 = vmax.bf16 %v127_v61, %v119_v63 }
  0x1e   :  { %v150_v6 = vmax.bf16 %v142_v0, %v134_v1 }
  0x1f   :  { %204 = vst [vmem:[%s494_s9 + $0x10] sm:$0xff] %v203_v3   ;;  %v151_v8 = vmax.bf16 %v143_v2, %v135_v4 }
  0x20   :  { %v166_v9 = vmax.bf16 %v158_v5, %v150_v6 }
  0x21   :  { %v167_v10 = vmax.bf16 %v159_v7, %v151_v8 }
  0x23   :  { %v205_v11 = vcombine.low %v166_v9, %v167_v10 }
  0x25   :  { %206 = vst [vmem:[%s494_s9 + $0x18] sm:$0xff] %v205_v11  }

// kernel: resnet_forward.33
= control target key start
LH: loop header
LB: loop body
LE: loop exit
PB: predicated region body
PF: predicated region fallthrough
CT: control target
= control target key end

     0   :  { %s222_s0 = inlined_call_operand.vmem [shape: bf16[64,128], index: 0, kind: input, shape index: {}]   ;;  %s223_s1 = inlined_call_operand.vmem [shape: f32[1,128], index: 1, kind: input, shape index: {}]   ;;  %s224_s2 = inlined_call_operand.vmem [shape: f32[1,128], index: 2, kind: input, shape index: {}]   ;;  %s225_s3 = inlined_call_operand.vmem [shape: bf16[64,128], index: 3, kind: output, shape index: {}]  }
   0x1   :  { %v131_v0 = vld [vmem:[%s222_s0] sm:$0xff]   ;;  %v166_v4 = vld [vmem:[%s222_s0 + $0x8] sm:$0xff]   ;;  %v167_v5 = vld [vmem:[%s222_s0 + $0x10] sm:$0xff]  }
   0x2   :  { %v112_v1 = vld [vmem:[%s223_s1] ss:$0 sm:$0xff]  ;;  %v132_v2 = vunpack.c.l.bf16 %v131_v0  ;;  %v133_v3 = vunpack.c.h.bf16 %v131_v0  ;;  %v168_v6 = vld [vmem:[%s222_s0 + $0x18] sm:$0xff]   ;;  %v136_v8 = vunpack.c.l.bf16 %v166_v4  ;;  %v137_v9 = vunpack.c.h.bf16 %v166_v4 }
   0x3   :  { %v113_v7 = vld [vmem:[%s224_s2] ss:$0 sm:$0xff]  ;;  %v140_v10 = vunpack.c.l.bf16 %v167_v5  ;;  %v141_v11 = vunpack.c.h.bf16 %v167_v5  ;;  %v144_v14 = vunpack.c.l.bf16 %v168_v6  ;;  %v145_v15 = vunpack.c.h.bf16 %v168_v6 }
   0x4   :  { %v37_v12 = vmul.f32 %v132_v2, %v112_v1  ;;  %v38_v13 = vmul.f32 %v133_v3, %v112_v1  ;;  %v39_v16 = vmul.f32 %v136_v8, %v112_v1  ;;  %v40_v17 = vmul.f32 %v137_v9, %v112_v1 }
   0x5   :  { %v41_v18 = vmul.f32 %v140_v10, %v112_v1  ;;  %v42_v19 = vmul.f32 %v141_v11, %v112_v1  ;;  %v43_v22 = vmul.f32 %v144_v14, %v112_v1  ;;  %v44_v23 = vmul.f32 %v145_v15, %v112_v1 }
   0x6   :  { %v52_v20 = vadd.f32 %v113_v7, %v37_v12  ;;  %v53_v21 = vadd.f32 %v113_v7, %v38_v13  ;;  %v54_v24 = vadd.f32 %v113_v7, %v39_v16  ;;  %v55_v25 = vadd.f32 %v113_v7, %v40_v17 }
   0x7   :  { %v56_v26 = vadd.f32 %v113_v7, %v41_v18  ;;  %v57_v27 = vadd.f32 %v113_v7, %v42_v19  ;;  %v58_v30 = vadd.f32 %v113_v7, %v43_v22  ;;  %v59_v31 = vadd.f32 %v113_v7, %v44_v23 }
   0x8   :  { %v60_v28 = vmax.f32 %v52_v20, 0.0  ;;  %v61_v29 = vmax.f32 %v53_v21, 0.0  ;;  %v62_v32 = vmax.f32 %v54_v24, 0.0  ;;  %v63_v33 = vmax.f32 %v55_v25, 0.0 }
   0x9   :  { %v64_v34 = vmax.f32 %v56_v26, 0.0  ;;  %v65_v35 = vmax.f32 %v57_v27, 0.0  ;;  %v66_v37 = vmax.f32 %v58_v30, 0.0  ;;  %v67_v38 = vmax.f32 %v59_v31, 0.0 }
   0xa   :  { %v149_v36 = vpack.c.bf16 %v61_v29, %v60_v28  ;;  %v154_v39 = vpack.c.bf16 %v63_v33, %v62_v32 }
   0xb   :  { %v159_v40 = vpack.c.bf16 %v65_v35, %v64_v34  ;;  %v164_v41 = vpack.c.bf16 %v67_v38, %v66_v37 }
   0xc   :  { %150 = vst [vmem:[%s225_s3] sm:$0xff] %v149_v36   ;;  %169 = vst [vmem:[%s225_s3 + $0x8] sm:$0xff] %v154_v39  }
   0xd   :  { %170 = vst [vmem:[%s225_s3 + $0x10] sm:$0xff] %v159_v40   ;;  %171 = vst [vmem:[%s225_s3 + $0x18] sm:$0xff] %v164_v41  }

// kernel: resnet_forward.32
= control target key start
LH: loop header
LB: loop body
LE: loop exit
PB: predicated region body
PF: predicated region fallthrough
CT: control target
= control target key end

     0   :  { %vm550_vm0 = vcmask 523264   ;;  %vm930_vm1 = vcmask 519168   ;;  %s1908_s1 = inlined_call_operand.vmem [shape: bf16[576,64], index: 1, kind: input, shape index: {}]   ;;  %s1909_s0 = inlined_call_operand.vmem [shape: bf16[128,576], index: 0, kind: input, shape index: {}]   ;;  %s1910_s2 = inlined_call_operand.vmem [shape: bf16[128,64], index: 2, kind: output, shape index: {0}]   ;;  %s1911_s3 = inlined_call_operand.vmem [shape: f32[8,64], index: 3, kind: output, shape index: {1}]  }
   0x1   :  { %v1340_v0 = vld [vmem:[%s1908_s1 + $0x78] sm:$0xff]   ;;  %v1344_v4 = vld [vmem:[%s1908_s1 + $0x70] sm:$0xff]   ;;  %v1348_v8 = vld [vmem:[%s1908_s1 + $0x68] sm:$0xff]  }
   0x2   :  { %v1341_v1 = vld [vmem:[%s1908_s1 + $0xf8] sm:$0xff]   ;;  %1168 = vmatprep.subr.bf16.mxu0 %v1340_v0  ;;  %v1345_v5 = vld [vmem:[%s1908_s1 + $0xf0] sm:$0xff]   ;;  %v1349_v9 = vld [vmem:[%s1908_s1 + $0xe8] sm:$0xff]  }
   0x3   :  { %v1342_v2 = vld [vmem:[%s1908_s1 + $0x38] sm:$0xff]   ;;  %1232 = vmatprep.subr.bf16.mxu1 %v1341_v1  ;;  %v1346_v6 = vld [vmem:[%s1908_s1 + $0x30] sm:$0xff]   ;;  %v1350_v10 = vld [vmem:[%s1908_s1 + $0x28] sm:$0xff]  }
   0x4   :  { %v1343_v3 = vld [vmem:[%s1908_s1 + $0xb8] sm:$0xff]   ;;  %1169 = vmatpush3.bf16.msra.mxu0 %v1342_v2  ;;  %v1347_v7 = vld [vmem:[%s1908_s1 + $0xb0] sm:$0xff]   ;;  %v1351_v11 = vld [vmem:[%s1908_s1 + $0xa8] sm:$0xff]  }
   0x5   :  { %1233 = vmatpush3.bf16.msra.mxu1 %v1343_v3  ;;  %1170 = vmatprep.subr.bf16.mxu0 %v1344_v4  ;;  %v1352_v12 = vld [vmem:[%s1908_s1 + $0x60] sm:$0xff]   ;;  %v1356_v16 = vld [vmem:[%s1908_s1 + $0x58] sm:$0xff]   ;;  %v1360_v20 = vld [vmem:[%s1908_s1 + $0x50] sm:$0xff]  }
   0x6   :  { %1234 = vmatprep.subr.bf16.mxu1 %v1345_v5  ;;  %v1353_v13 = vld [vmem:[%s1908_s1 + $0xe0] sm:$0xff]   ;;  %v1357_v17 = vld [vmem:[%s1908_s1 + $0xd8] sm:$0xff]   ;;  %v1361_v21 = vld [vmem:[%s1908_s1 + $0xd0] sm:$0xff]  }
   0x7   :  { %v1354_v14 = vld [vmem:[%s1908_s1 + $0x20] sm:$0xff]   ;;  %v1358_v18 = vld [vmem:[%s1908_s1 + $0x18] sm:$0xff]   ;;  %v1362_v22 = vld [vmem:[%s1908_s1 + $0x10] sm:$0xff]  }
   0x8   :  { %1171 = vmatpush3.bf16.msra.mxu0 %v1346_v6  ;;  %v1355_v15 = vld [vmem:[%s1908_s1 + $0xa0] sm:$0xff]   ;;  %v1359_v19 = vld [vmem:[%s1908_s1 + $0x98] sm:$0xff]   ;;  %v1363_v23 = vld [vmem:[%s1908_s1 + $0x90] sm:$0xff]  }
   0x9   :  { %1235 = vmatpush3.bf16.msra.mxu1 %v1347_v7  ;;  %1172 = vmatprep.subr.bf16.mxu0 %v1348_v8  ;;  %v1364_v24 = vld [vmem:[%s1908_s1 + $0x48] sm:$0xff]   ;;  %v1368_v28 = vld [vmem:[%s1908_s1 + $0x40] sm:$0xff]   ;;  %v1378_v36 = vld [vmem:[%s1908_s1 + $0x118] sm:$0xff]  }
   0xa   :  { %1236 = vmatprep.subr.bf16.mxu1 %v1349_v9  ;;  %v1365_v25 = vld [vmem:[%s1908_s1 + $0xc8] sm:$0xff]   ;;  %v1369_v29 = vld [vmem:[%s1908_s1 + $0xc0] sm:$0xff]   ;;  %v1391_v42 = vld [vmem:[%s1908_s1 + $0x110] sm:$0xff]  }
   0xb   :  { %v1366_v26 = vld [vmem:[%s1908_s1 + $0x8] sm:$0xff]   ;;  %v1370_v30 = vld [vmem:[%s1908_s1] sm:$0xff]   ;;  %v1387_v43 = vld [vmem:[%s1909_s0 + $0x5c] ss:$20 sps:$4 sm:$0xff]  }
   0xc   :  { %1173 = vmatpush3.bf16.msra.mxu0 %v1350_v10  ;;  %v1367_v27 = vld [vmem:[%s1908_s1 + $0x88] sm:$0xff]   ;;  %v1371_v31 = vld [vmem:[%s1908_s1 + $0x80] sm:$0xff]   ;;  %v1392_v47 = vld [vmem:[%s1909_s0 + $0x7c] ss:$20 sps:$4 sm:$0xff]  }
   0xd   :  { %1237 = vmatpush3.bf16.msra.mxu1 %v1351_v11  ;;  %1174 = vmatprep.subr.bf16.mxu0 %v1352_v12  ;;  %v1372_v32 = vld [vmem:[%s1909_s0] ss:$20 sps:$4 sm:$0xff]   ;;  %v1374_v33 = vld [vmem:[%s1909_s0 + $0x4] ss:$20 sps:$4 sm:$0xff]   ;;  %v1375_v34 = vld [vmem:[%s1909_s0 + $0x8] ss:$20 sps:$4 sm:$0xff]  }
   0xe   :  { %1238 = vmatprep.subr.bf16.mxu1 %v1353_v13  ;;  %v1377_v35 = vld [vmem:[%s1909_s0 + $0xc] ss:$20 sps:$4 sm:$0xff]   ;;  %607 = vmatprep.mubr.bf16.mxu0 %v1374_v33  ;;  %v1381_v38 = vld [vmem:[%s1909_s0 + $0x34] ss:$20 sps:$4 sm:$0xff]   ;;  %v1384_v40 = vld [vmem:[%s1909_s0 + $0x30] ss:$20 sps:$4 sm:$0xff]  }
   0xf   :  { %704 = vmatprep.mubr.bf16.mxu1 %v1377_v35  ;;  %v1379_v37 = vld [vmem:[%s1909_s0 + $0x2c] ss:$20 sps:$4 sm:$0xff]   ;;  %v1383_v39 = vld [vmem:[%s1909_s0 + $0x28] ss:$20 sps:$4 sm:$0xff]   ;;  %v1389_v44 = vld [vmem:[%s1909_s0 + $0x50] ss:$20 sps:$4 sm:$0xff]  }
  0x10   :  { %1175 = vmatpush3.bf16.msra.mxu0 %v1354_v14  ;;  %v1385_v41 = vld [vmem:[%s1909_s0 + $0x54] ss:$20 sps:$4 sm:$0xff]   ;;  %v1390_v45 = vld [vmem:[%s1909_s0 + $0x58] ss:$20 sps:$4 sm:$0xff]   ;;  %v1417_v49 = vld [vmem:[%s1908_s1 + $0x100] sm:$0xff]  }
  0x11   :  { %1239 = vmatpush3.bf16.msra.mxu1 %v1355_v15  ;;  %1176 = vmatprep.subr.bf16.mxu0 %v1356_v16  ;;  %v1404_v46 = vld [vmem:[%s1908_s1 + $0x108] sm:$0xff]   ;;  %v1394_v48 = vld [vmem:[%s1909_s0 + $0x84] ss:$20 sps:$4 sm:$0xff]   ;;  %v1397_v51 = vld [vmem:[%s1909_s0 + $0x80] ss:$20 sps:$4 sm:$0xff]  }
  0x12   :  { %1240 = vmatprep.subr.bf16.mxu1 %v1357_v17  ;;  %v1396_v50 = vld [vmem:[%s1909_s0 + $0x78] ss:$20 sps:$4 sm:$0xff]   ;;  %v1402_v54 = vld [vmem:[%s1909_s0 + $0xa0] ss:$20 sps:$4 sm:$0xff]   ;;  %v1403_v55 = vld [vmem:[%s1909_s0 + $0xa8] ss:$20 sps:$4 sm:$0xff]  }
  0x13   :  { %v1398_v52 = vld [vmem:[%s1909_s0 + $0xa4] ss:$20 sps:$4 sm:$0xff]   ;;  %v1400_v53 = vld [vmem:[%s1909_s0 + $0xac] ss:$20 sps:$4 sm:$0xff]   ;;  %v1407_v57 = vld [vmem:[%s1909_s0 + $0xd4] ss:$20 sps:$4 sm:$0xff]  }
  0x14   :  { %1177 = vmatpush3.bf16.msra.mxu0 %v1358_v18  ;;  %v1405_v56 = vld [vmem:[%s1909_s0 + $0xcc] ss:$20 sps:$4 sm:$0xff]   ;;  %v1409_v58 = vld [vmem:[%s1909_s0 + $0xc8] ss:$20 sps:$4 sm:$0xff]   ;;  %v1410_v59 = vld [vmem:[%s1909_s0 + $0xd0] ss:$20 sps:$4 sm:$0xff]  }
  0x15   :  { %1241 = vmatpush3.bf16.msra.mxu1 %v1359_v19  ;;  %1178 = vmatprep.subr.bf16.mxu0 %v1360_v20  ;;  %v1411_v60 = vld [vmem:[%s1909_s0 + $0xf4] ss:$20 sps:$4 sm:$0xff]   ;;  %v1413_v61 = vld [vmem:[%s1909_s0 + $0xfc] ss:$20 sps:$4 sm:$0xff]   ;;  %v1416_v63 = vld [vmem:[%s1909_s0 + $0xf8] ss:$20 sps:$4 sm:$0xff]  }
  0x16   :  { %1242 = vmatprep.subr.bf16.mxu1 %v1361_v21  ;;  %v1415_v62 = vld [vmem:[%s1909_s0 + $0xf0] ss:$20 sps:$4 sm:$0xff]   ;;  %v1422_v2 = vld [vmem:[%s1909_s0 + $0x118] ss:$20 sps:$4 sm:$0xff]   ;;  %v1423_v3 = vld [vmem:[%s1909_s0 + $0x120] ss:$20 sps:$4 sm:$0xff]  }
  0x17   :  { %v1418_v0 = vld [vmem:[%s1909_s0 + $0x11c] ss:$20 sps:$4 sm:$0xff]   ;;  %v1420_v1 = vld [vmem:[%s1909_s0 + $0x124] ss:$20 sps:$4 sm:$0xff]   ;;  %v1428_v8 = vld [vmem:[%s1909_s0 + $0x60] ss:$20 sps:$4 sm:$0xff]  }
  0x18   :  { %1179 = vmatpush3.bf16.msra.mxu0 %v1362_v22  ;;  %v1424_v4 = vld [vmem:[%s1909_s0 + $0x10] ss:$20 sps:$4 sm:$0xff]   ;;  %v1426_v6 = vld [vmem:[%s1909_s0 + $0x38] ss:$20 sps:$4 sm:$0xff]   ;;  %v1429_v9 = vld [vmem:[%s1909_s0 + $0x100] ss:$20 sps:$4 sm:$0xff]  }
  0x19   :  { %1243 = vmatpush3.bf16.msra.mxu1 %v1363_v23  ;;  %1180 = vmatprep.subr.bf16.mxu0 %v1364_v24  ;;  %v1425_v5 = vld [vmem:[%s1909_s0 + $0xb0] ss:$20 sps:$4 sm:$0xff]   ;;  %v1427_v7 = vld [vmem:[%s1909_s0 + $0xd8] ss:$20 sps:$4 sm:$0xff]   ;;  %v1430_v10 = vld [vmem:[%s1909_s0 + $0x88] ss:$20 sps:$4 sm:$0xff]  }
  0x1a   :  { %1244 = vmatprep.subr.bf16.mxu1 %v1365_v25  ;;  %v1431_v11 = vld [vmem:[%s1909_s0 + $0x128] ss:$20 sps:$4 sm:$0xff]  }
  0x1c   :  { %1181 = vmatpush3.bf16.msra.mxu0 %v1366_v26 }
  0x1d   :  { %1245 = vmatpush3.bf16.msra.mxu1 %v1367_v27  ;;  %1182 = vmatprep.subr.bf16.mxu0 %v1368_v28 }
  0x1e   :  { %1246 = vmatprep.subr.bf16.mxu1 %v1369_v29 }
  0x20   :  { %1183 = vmatpush3.bf16.msra.mxu0 %v1370_v30 }
  0x21   :  { %1247 = vmatpush3.bf16.msra.mxu1 %v1371_v31  ;;  %1308 = vmatprep.subr.bf16.mxu0 %v1378_v36 }
  0x22   :  { %1332 = vmatprep.subr.bf16.mxu1 %v1378_v36 }
  0x23   :  { %608 = vmatmul.mubr.bf16.vlgmr.msra.gmra.mxu0 %v1372_v32 }
  0x24   :  { %705 = vmatmul.mubr.bf16.vlgmr.msra.gmra.mxu1 %v1375_v34  ;;  %1309 = vmatpush3.bf16.msra.mxu0 %v1378_v36 }
  0x25   :  { %615 = vmatprep.mubr.bf16.mxu0 %v1379_v37  ;;  %712 = vmatprep.mubr.bf16.mxu1 %v1381_v38 }
  0x26   :  { %1336 = vmatpush3.bf16.msra.mxu1 %v1378_v36  ;;  %1310 = vmatprep.subr.bf16.mxu0 %v1391_v42 }
  0x27   :  { %1333 = vmatprep.subr.bf16.mxu1 %v1391_v42 }
  0x28   :  { %1311 = vmatpush3.bf16.msra.mxu0 %v1391_v42 }
  0x29   :  { %1312 = vmatprep.subr.bf16.mxu0 %v1404_v46 }
  0x2a   :  { %1337 = vmatpush3.bf16.msra.mxu1 %v1391_v42 }
  0x2b   :  { %616 = vmatmul.mubr.bf16.gmra.mxu0 %v1383_v39  ;;  %1334 = vmatprep.subr.bf16.mxu1 %v1404_v46 }
  0x2c   :  { %713 = vmatmul.mubr.bf16.gmra.mxu1 %v1384_v40  ;;  %623 = vmatprep.mubr.bf16.mxu0 %v1385_v41 }
  0x2d   :  { %720 = vmatprep.mubr.bf16.mxu1 %v1387_v43  ;;  %1313 = vmatpush3.bf16.msra.mxu0 %v1404_v46 }
  0x2e   :  { %1338 = vmatpush3.bf16.msra.mxu1 %v1404_v46  ;;  %1314 = vmatprep.subr.bf16.mxu0 %v1417_v49 }
  0x2f   :  { %1335 = vmatprep.subr.bf16.mxu1 %v1417_v49 }
  0x31   :  { %1315 = vmatpush3.bf16.msra.mxu0 %v1417_v49 }
  0x32   :  { %1339 = vmatpush3.bf16.msra.mxu1 %v1417_v49 }
  0x33   :  { %624 = vmatmul.mubr.bf16.gmra.mxu0 %v1389_v44 }
  0x34   :  { %721 = vmatmul.mubr.bf16.gmra.mxu1 %v1390_v45  ;;  %631 = vmatprep.mubr.bf16.mxu0 %v1392_v47 }
  0x35   :  { %728 = vmatprep.mubr.bf16.mxu1 %v1394_v48 }
  0x3b   :  { %632 = vmatmul.mubr.bf16.gmra.mxu0 %v1396_v50 }
  0x3c   :  { %729 = vmatmul.mubr.bf16.gmra.mxu1 %v1397_v51  ;;  %639 = vmatprep.mubr.bf16.mxu0 %v1398_v52 }
  0x3d   :  { %736 = vmatprep.mubr.bf16.mxu1 %v1400_v53 }
  0x43   :  { %640 = vmatmul.mubr.bf16.gmra.mxu0 %v1402_v54 }
  0x44   :  { %737 = vmatmul.mubr.bf16.gmra.mxu1 %v1403_v55  ;;  %647 = vmatprep.mubr.bf16.mxu0 %v1405_v56 }
  0x45   :  { %744 = vmatprep.mubr.bf16.mxu1 %v1407_v57 }
  0x4b   :  { %648 = vmatmul.mubr.bf16.gmra.mxu0 %v1409_v58 }
  0x4c   :  { %745 = vmatmul.mubr.bf16.gmra.mxu1 %v1410_v59  ;;  %655 = vmatprep.mubr.bf16.mxu0 %v1411_v60 }
  0x4d   :  { %752 = vmatprep.mubr.bf16.mxu1 %v1413_v61 }
  0x53   :  { %656 = vmatmul.mubr.bf16.gmra.mxu0 %v1415_v62 }
  0x54   :  { %753 = vmatmul.mubr.bf16.gmra.mxu1 %v1416_v63  ;;  %663 = vmatprep.mubr.bf16.mxu0 %v1418_v0 }
  0x55   :  { %760 = vmatprep.mubr.bf16.mxu1 %v1420_v1 }
  0x5b   :  { %664 = vmatmul.mubr.bf16.gmra.mxu0 %v1422_v2 }
  0x5c   :  { %761 = vmatmul.mubr.bf16.gmra.mxu1 %v1423_v3  ;;  %1316 = vmatprep.mubr.msk.bf16.mxu0 %vm550_vm0, %v1424_v4 }
  0x5d   :  { %1324 = vmatprep.mubr.msk.bf16.mxu1 %vm550_vm0, %v1425_v5 }
  0x63   :  { %1317 = vmatmul.mubr.msk.bf16.vlgmr.msra.gmra.mxu0 %vm550_vm0, %v1426_v6 }
  0x64   :  { %1325 = vmatmul.mubr.msk.bf16.vlgmr.msra.gmra.mxu1 %vm550_vm0, %v1427_v7  ;;  %1320 = vmatprep.mubr.msk.bf16.mxu0 %vm550_vm0, %v1428_v8 }
  0x65   :  { %1328 = vmatprep.mubr.msk.bf16.mxu1 %vm550_vm0, %v1429_v9 }
  0x6b   :  { %1321 = vmatmul.mubr.msk.bf16.gmra.mxu0 %vm550_vm0, %v1430_v10 }
  0x6c   :  { %1329 = vmatmul.mubr.msk.bf16.gmra.mxu1 %vm550_vm0, %v1431_v11 }
  0xe3   :  { %v1184_v12 = vpop.f32.mrf.mxu0 }
  0xe4   :  { %v1248_v13 = vpop.f32.mrf.mxu1 }
  0xe5   :  { %v1185_v14 = vpop.f32.mrf.mxu0 }
  0xe6   :  { %v1249_v15 = vpop.f32.mrf.mxu1  ;;  %v1186_v6 = vadd.f32 %v1185_v14, %v1184_v12 }
  0xe7   :  { %v1187_v16 = vpop.f32.mrf.mxu0  ;;  %v1250_v7 = vadd.f32 %v1249_v15, %v1248_v13 }
  0xe8   :  { %v1251_v17 = vpop.f32.mrf.mxu1 }
  0xe9   :  { %v1188_v18 = vpop.f32.mrf.mxu0 }
  0xea   :  { %v1252_v19 = vpop.f32.mrf.mxu1  ;;  %v1189_v9 = vadd.f32 %v1188_v18, %v1187_v16 }
  0xeb   :  { %v1190_v20 = vpop.f32.mrf.mxu0  ;;  %v1253_v10 = vadd.f32 %v1252_v19, %v1251_v17  ;;  %v707_v17 = vadd.f32 %v1250_v7, %v1186_v6 }
  0xec   :  { %v1254_v21 = vpop.f32.mrf.mxu1 }
  0xed   :  { %v1191_v22 = vpop.f32.mrf.mxu0  ;;  %v710_v19 = vadd.f32 %v1253_v10, %v1189_v9 }
  0xee   :  { %v1255_v23 = vpop.f32.mrf.mxu1  ;;  %v1192_v11 = vadd.f32 %v1191_v22, %v1190_v20 }
  0xef   :  { %v1193_v24 = vpop.f32.mrf.mxu0 }
  0xf0   :  { %v1257_v25 = vpop.f32.mrf.mxu1 }
  0xf1   :  { %v1194_v26 = vpop.f32.mrf.mxu0 }
  0xf2   :  { %v1258_v27 = vpop.f32.mrf.mxu1 }
  0xf3   :  { %v1196_v28 = vpop.f32.mrf.mxu0 }
  0xf4   :  { %v1260_v29 = vpop.f32.mrf.mxu1 }
  0xf5   :  { %v1197_v30 = vpop.f32.mrf.mxu0 }
  0xf6   :  { %v1261_v31 = vpop.f32.mrf.mxu1 }
  0xf7   :  { %v1688_v32 = vpop.f32.mrf.mxu0 }
  0xf8   :  { %1912 = vst [vmem:[#allocation2_spill] sm:$0xff] %v1688_v32  ;;  %v1690_v33 = vpop.f32.mrf.mxu1 }
  0xf9   :  { %1913 = vst [vmem:[#allocation3_spill] sm:$0xff] %v1690_v33  ;;  %v1692_v34 = vpop.f32.mrf.mxu0 }
  0xfa   :  { %1914 = vst [vmem:[#allocation4_spill] sm:$0xff] %v1692_v34  ;;  %v1694_v35 = vpop.f32.mrf.mxu1 }
  0xfb   :  { %1915 = vst [vmem:[#allocation5_spill] sm:$0xff] %v1694_v35  ;;  %v1696_v36 = vpop.f32.mrf.mxu0 }
  0xfc   :  { %v1698_v37 = vpop.f32.mrf.mxu1 }
  0xfd   :  { %v1700_v38 = vpop.f32.mrf.mxu0 }
  0xfe   :  { %v1702_v39 = vpop.f32.mrf.mxu1 }
  0xff   :  { %v1704_v40 = vpop.f32.mrf.mxu0 }
 0x100   :  { %v1706_v41 = vpop.f32.mrf.mxu1 }
 0x101   :  { %v1708_v42 = vpop.f32.mrf.mxu0 }
 0x102   :  { %v1710_v43 = vpop.f32.mrf.mxu1 }
 0x103   :  { %v1208_v44 = vpop.f32.mrf.mxu0 }
 0x104   :  { %v1272_v45 = vpop.f32.mrf.mxu1 }
 0x105   :  { %v1209_v46 = vpop.f32.mrf.mxu0 }
 0x106   :  { %v1273_v47 = vpop.f32.mrf.mxu1 }
 0x107   :  { %v1211_v48 = vpop.f32.mrf.mxu0  ;;  %v1274_v32 = vadd.f32 %v1273_v47, %v1272_v45  ;;  %v1271_v47 = vadd.f32 %v1710_v43, %v1706_v41  ;;  %v1926_v41 = vld [vmem:[#allocation3_spill] sm:$0xff]  ;;  %v1927_v43 = vld [vmem:[#allocation5_spill] sm:$0xff] }
 0x108   :  { %v1275_v49 = vpop.f32.mrf.mxu1 }
 0x109   :  { %v1212_v50 = vpop.f32.mrf.mxu0 }
 0x10a   :  { %v1276_v51 = vpop.f32.mrf.mxu1 }
 0x10b   :  { %v1214_v52 = vpop.f32.mrf.mxu0 }
 0x10c   :  { %v1278_v53 = vpop.f32.mrf.mxu1 }
 0x10d   :  { %v1215_v54 = vpop.f32.mrf.mxu0 }
 0x10e   :  { %v1279_v55 = vpop.f32.mrf.mxu1  ;;  %v1216_v35 = vadd.f32 %v1215_v54, %v1214_v52  ;;  %v1760_v52 = vadd.f32 %v1927_v43, %v1926_v41 }
 0x10f   :  { %v1217_v56 = vpop.f32.mrf.mxu0 }
 0x110   :  { %v1281_v57 = vpop.f32.mrf.mxu1 }
 0x111   :  { %v1218_v58 = vpop.f32.mrf.mxu0 }
 0x112   :  { %v1282_v59 = vpop.f32.mrf.mxu1  ;;  %v1219_v20 = vadd.f32 %v1218_v58, %v1217_v56 }
 0x113   :  { %v1712_v60 = vpop.f32.mrf.mxu0 }
 0x114   :  { %1916 = vst [vmem:[#allocation6_spill] sm:$0xff] %v1712_v60  ;;  %v1714_v61 = vpop.f32.mrf.mxu1  ;;  %v1195_v60 = vadd.f32 %v1194_v26, %v1193_v24  ;;  %v1277_v26 = vadd.f32 %v1276_v51, %v1275_v49 }
 0x115   :  { %1917 = vst [vmem:[#allocation7_spill] sm:$0xff] %v1714_v61  ;;  %v1716_v62 = vpop.f32.mrf.mxu0  ;;  %v1256_v61 = vadd.f32 %v1255_v23, %v1254_v21  ;;  %v1283_v21 = vadd.f32 %v1282_v59, %v1281_v57 }
 0x116   :  { %1918 = vst [vmem:[#allocation8_spill] sm:$0xff] %v1716_v62  ;;  %v1718_v63 = vpop.f32.mrf.mxu1 }
 0x117   :  { %1919 = vst [vmem:[#allocation9_spill] sm:$0xff] %v1718_v63  ;;  %v1720_v0 = vpop.f32.mrf.mxu0  ;;  %v1259_v63 = vadd.f32 %v1258_v27, %v1257_v25  ;;  %v715_v14 = vadd.f32 %v1256_v61, %v1192_v11  ;;  %v1213_v25 = vadd.f32 %v1212_v50, %v1211_v48 }
 0x118   :  { %1920 = vst [vmem:[#allocation10_spill] sm:$0xff] %v1720_v0  ;;  %v1722_v1 = vpop.f32.mrf.mxu1  ;;  %v1280_v0 = vadd.f32 %v1279_v55, %v1278_v53 }
 0x119   :  { %1921 = vst [vmem:[#allocation11_spill] sm:$0xff] %v1722_v1  ;;  %v1724_v2 = vpop.f32.mrf.mxu0  ;;  %v1198_v1 = vadd.f32 %v1197_v30, %v1196_v28  ;;  %v718_v18 = vadd.f32 %v1259_v63, %v1195_v60  ;;  %v1204_v30 = vadd.f32 %v1700_v38, %v1696_v36  ;;  %v750_v38 = vadd.f32 %v1283_v21, %v1219_v20 }
 0x11a   :  { %1922 = vst [vmem:[#allocation12_spill] sm:$0xff] %v1724_v2  ;;  %v1726_v3 = vpop.f32.mrf.mxu1  ;;  %v1262_v2 = vadd.f32 %v1261_v31, %v1260_v29  ;;  %v747_v16 = vadd.f32 %v1280_v0, %v1216_v35  ;;  %v1268_v31 = vadd.f32 %v1702_v39, %v1698_v37  ;;  %v742_v55 = vadd.f32 %v1277_v26, %v1213_v25 }
 0x11b   :  { %1923 = vst [vmem:[#allocation13_spill] sm:$0xff] %v1726_v3  ;;  %v1226_v4 = vpop.f32.mrf.mxu0  ;;  %v1210_v3 = vadd.f32 %v1209_v46, %v1208_v44  ;;  %v1207_v46 = vadd.f32 %v1708_v42, %v1704_v40  ;;  %v1924_v40 = vld [vmem:[#allocation2_spill] sm:$0xff]  ;;  %v1925_v42 = vld [vmem:[#allocation4_spill] sm:$0xff] }
 0x11c   :  { %v1290_v5 = vpop.f32.mrf.mxu1  ;;  %v1734_v24 = vadd.f32 %v1262_v2, %v1198_v1  ;;  %v1756_v51 = vadd.f32 %v1925_v42, %v1924_v40  ;;  %v731_v60 = vadd.f32 %v1268_v31, %v1204_v30  ;;  %v1928_v61 = vld [vmem:[#allocation6_spill] sm:$0xff] }
 0x11d   :  { %v1227_v8 = vpop.f32.mrf.mxu0  ;;  %v739_v29 = vadd.f32 %v1274_v32, %v1210_v3  ;;  %v734_v3 = vadd.f32 %v1271_v47, %v1207_v46 }
 0x11e   :  { %v1291_v62 = vpop.f32.mrf.mxu1  ;;  %v1228_v50 = vadd.f32 %v1227_v8, %v1226_v4  ;;  %v1930_v4 = vld [vmem:[#allocation7_spill] sm:$0xff] }
 0x11f   :  { %v1728_v33 = vpop.f32.mrf.mxu0  ;;  %v1292_v36 = vadd.f32 %v1291_v62, %v1290_v5  ;;  %v1929_v62 = vld [vmem:[#allocation8_spill] sm:$0xff]  ;;  %v1931_v5 = vld [vmem:[#allocation9_spill] sm:$0xff] }
 0x120   :  { %v1730_v34 = vpop.f32.mrf.mxu1  ;;  %v1222_v63 = vadd.f32 %v1929_v62, %v1928_v61  ;;  %v1286_v6 = vadd.f32 %v1931_v5, %v1930_v4  ;;  %v1934_v47 = vld [vmem:[#allocation11_spill] sm:$0xff] }
 0x121   :  { %v1230_v12 = vpop.f32.mrf.mxu0  ;;  %v763_v9 = vadd.f32 %v1292_v36, %v1228_v50 }
 0x122   :  { %v1732_v13 = vpop.f32.mrf.mxu1  ;;  %v1231_v11 = vadd.f32 %v1230_v12, %v1728_v33 }
 0x123   :  { %v1318_v15 = vpop.f32.mrf.mxu0  ;;  %v1295_v21 = vadd.f32 %v1732_v13, %v1730_v34 }
 0x124   :  { %v812_v22 = vadd.f32 %v1318_v15, %v715_v14  ;;  %v1326_v23 = vpop.f32.mrf.mxu1 }
 0x125   :  { %v1736_v27 = vadd.f32 %v1326_v23, %v747_v16  ;;  %v803_v28 = vpop.f32.mrf.mxu0  ;;  %v766_v42 = vadd.f32 %v1295_v21, %v1231_v11 }
 0x126   :  { %v1154_v35 = vpack.c.bf16 %v812_v22, %v812_v22  ;;  %v804_v44 = vadd.f32 %v803_v28, %v707_v17  ;;  %v835_v45 = vpop.f32.mrf.mxu1  ;;  %v950_v23 = vsel %vm550_vm0, %v812_v22, 0.0 }
 0x127   :  { %v1162_v48 = vpack.c.bf16 %v1736_v27, %v1736_v27  ;;  %v1748_v49 = vadd.f32 %v835_v45, %v739_v29  ;;  %v1319_v32 = vpop.f32.mrf.mxu0  ;;  %v1933_v45 = vld [vmem:[#allocation12_spill] sm:$0xff] }
 0x128   :  { %933 = vst.msk [vmem:[%s1910_s2 + $0x8] sm:$0xf] %vm930_vm1, %v1154_v35  ;;  %v1152_v37 = vpack.c.bf16 %v804_v44, %v804_v44  ;;  %v1327_v39 = vpop.f32.mrf.mxu1  ;;  %v815_v56 = vadd.f32 %v1319_v32, %v718_v18  ;;  %v984_v0 = vmul.f32 %v804_v44, %v804_v44  ;;  %v947_v14 = vsel %vm550_vm0, %v804_v44, 0.0  ;;  %v1932_v44 = vld [vmem:[#allocation10_spill] sm:$0xff] }
 0x129   :  { %941 = vst.msk [vmem:[%s1910_s2 + $0x28] sm:$0xf] %vm930_vm1, %v1162_v48  ;;  %v1160_v53 = vpack.c.bf16 %v1748_v49, %v1748_v49  ;;  %v806_v54 = vpop.f32.mrf.mxu0  ;;  %v1772_v57 = vadd.f32 %v1327_v39, %v750_v38  ;;  %v986_v18 = vmul.f32 %v812_v22, %v812_v22  ;;  %v755_v35 = vadd.f32 %v1286_v6, %v1222_v63  ;;  %v1935_v48 = vld [vmem:[#allocation13_spill] sm:$0xff] }
 0x12a   :  { %931 = vst.msk [vmem:[%s1910_s2] sm:$0xf] %vm930_vm1, %v1152_v37  ;;  %v807_v58 = vadd.f32 %v806_v54, %v710_v19  ;;  %v838_v59 = vpop.f32.mrf.mxu1  ;;  %v1155_v7 = vpack.c.bf16 %v815_v56, %v815_v56  ;;  %v1000_v25 = vsel %vm550_vm0, %v984_v0, 0.0  ;;  %v987_v13 = vmul.f32 %v815_v56, %v815_v56 }
 0x12b   :  { %939 = vst.msk [vmem:[%s1910_s2 + $0x20] sm:$0xf] %vm930_vm1, %v1160_v53  ;;  %v1780_v1 = vadd.f32 %v838_v59, %v742_v55  ;;  %v1322_v2 = vpop.f32.mrf.mxu0  ;;  %v1163_v8 = vpack.c.bf16 %v1772_v57, %v1772_v57  ;;  %v1225_v46 = vadd.f32 %v1933_v45, %v1932_v44  ;;  %v1289_v32 = vadd.f32 %v1935_v48, %v1934_v47 }
 0x12c   :  { %v1330_v10 = vpop.f32.mrf.mxu1  ;;  %v1153_v15 = vpack.c.bf16 %v807_v58, %v807_v58  ;;  %v948_v16 = vsel %vm550_vm0, %v807_v58, 0.0  ;;  %934 = vst.msk [vmem:[%s1910_s2 + $0xc] sm:$0xf] %vm930_vm1, %v1155_v7  ;;  %v985_v20 = vmul.f32 %v807_v58, %v807_v58  ;;  %v828_v26 = vadd.f32 %v1322_v2, %v731_v60 }
 0x12d   :  { %v819_v17 = vpop.f32.mrf.mxu0  ;;  %942 = vst.msk [vmem:[%s1910_s2 + $0x2c] sm:$0xf] %vm930_vm1, %v1163_v8  ;;  %v949_v19 = vadd.f32 %v948_v16, %v947_v14  ;;  %v1161_v33 = vpack.c.bf16 %v1780_v1, %v1780_v1  ;;  %v1812_v30 = vadd.f32 %v1330_v10, %v763_v9  ;;  %v1003_v50 = vsel %vm550_vm0, %v986_v18, 0.0 }
 0x12e   :  { %v851_v12 = vpop.f32.mrf.mxu1  ;;  %932 = vst.msk [vmem:[%s1910_s2 + $0x4] sm:$0xf] %vm930_vm1, %v1153_v15  ;;  %v1001_v29 = vsel %vm550_vm0, %v985_v20, 0.0  ;;  %v820_v34 = vadd.f32 %v819_v17, %v1734_v24  ;;  %v1158_v31 = vpack.c.bf16 %v828_v26, %v828_v26  ;;  %v952_v39 = vsel %vm550_vm0, %v815_v56, 0.0 }
 0x12f   :  { %v951_v28 = vadd.f32 %v950_v23, %v949_v19  ;;  %940 = vst.msk [vmem:[%s1910_s2 + $0x24] sm:$0xf] %vm930_vm1, %v1161_v33  ;;  %v1002_v22 = vadd.f32 %v1001_v29, %v1000_v25  ;;  %v1166_v36 = vpack.c.bf16 %v1812_v30, %v1812_v30  ;;  %v1323_v37 = vpop.f32.mrf.mxu0  ;;  %v852_v43 = vadd.f32 %v851_v12, %v755_v35 }
 0x130   :  { %v1331_v38 = vpop.f32.mrf.mxu1  ;;  %937 = vst.msk [vmem:[%s1910_s2 + $0x18] sm:$0xf] %vm930_vm1, %v1158_v31  ;;  %v1156_v40 = vpack.c.bf16 %v820_v34, %v820_v34  ;;  %v1005_v53 = vsel %vm550_vm0, %v987_v13, 0.0  ;;  %v988_v54 = vmul.f32 %v820_v34, %v820_v34  ;;  %v831_v55 = vadd.f32 %v1323_v37, %v734_v3 }
 0x131   :  { %v1004_v24 = vadd.f32 %v1003_v50, %v1002_v22  ;;  %945 = vst.msk [vmem:[%s1910_s2 + $0x38] sm:$0xf] %vm930_vm1, %v1166_v36  ;;  %v953_v41 = vadd.f32 %v952_v39, %v951_v28  ;;  %v1836_v56 = vadd.f32 %v1331_v38, %v766_v42  ;;  %v1164_v59 = vpack.c.bf16 %v852_v43, %v852_v43  ;;  %v822_v60 = vpop.f32.mrf.mxu0 }
 0x132   :  { %935 = vst.msk [vmem:[%s1910_s2 + $0x10] sm:$0xf] %vm930_vm1, %v1156_v40  ;;  %v854_v61 = vpop.f32.mrf.mxu1  ;;  %v954_v62 = vsel %vm550_vm0, %v820_v34, 0.0  ;;  %v1159_v63 = vpack.c.bf16 %v831_v55, %v831_v55  ;;  %v726_v0 = vadd.f32 %v1760_v52, %v1756_v51  ;;  %v758_v2 = vadd.f32 %v1289_v32, %v1225_v46 }
 0x133   :  { %v1006_v58 = vadd.f32 %v1005_v53, %v1004_v24  ;;  %v955_v4 = vadd.f32 %v954_v62, %v953_v41  ;;  %943 = vst.msk [vmem:[%s1910_s2 + $0x30] sm:$0xf] %vm930_vm1, %v1164_v59  ;;  %v1167_v3 = vpack.c.bf16 %v1836_v56, %v1836_v56  ;;  %v1007_v5 = vsel %vm550_vm0, %v988_v54, 0.0 }
 0x134   :  { %938 = vst.msk [vmem:[%s1910_s2 + $0x1c] sm:$0xf] %vm930_vm1, %v1159_v63  ;;  %v823_v6 = vadd.f32 %v822_v60, %v726_v0  ;;  %v855_v7 = vadd.f32 %v854_v61, %v758_v2  ;;  %v990_v51 = vmul.f32 %v828_v26, %v828_v26  ;;  %v958_v15 = vsel %vm550_vm0, %v828_v26, 0.0 }
 0x135   :  { %v1008_v52 = vadd.f32 %v1007_v5, %v1006_v58  ;;  %946 = vst.msk [vmem:[%s1910_s2 + $0x3c] sm:$0xf] %vm930_vm1, %v1167_v3  ;;  %v991_v16 = vmul.f32 %v831_v55, %v831_v55  ;;  %v992_v20 = vmul.f32 %v1748_v49, %v1748_v49  ;;  %v960_v12 = vsel %vm550_vm0, %v831_v55, 0.0 }
 0x136   :  { %v1157_v8 = vpack.c.bf16 %v823_v6, %v823_v6  ;;  %v956_v9 = vsel %vm550_vm0, %v823_v6, 0.0  ;;  %v989_v10 = vmul.f32 %v823_v6, %v823_v6  ;;  %v1165_v11 = vpack.c.bf16 %v855_v7, %v855_v7 }
 0x137   :  { %v957_v14 = vadd.f32 %v956_v9, %v955_v4  ;;  %v1011_v33 = vsel %vm550_vm0, %v990_v51, 0.0  ;;  %v962_v25 = vsel %vm550_vm0, %v1748_v49, 0.0  ;;  %v993_v26 = vmul.f32 %v1780_v1, %v1780_v1 }
 0x138   :  { %936 = vst.msk [vmem:[%s1910_s2 + $0x14] sm:$0xf] %vm930_vm1, %v1157_v8  ;;  %v1009_v17 = vsel %vm550_vm0, %v989_v10, 0.0  ;;  %944 = vst.msk [vmem:[%s1910_s2 + $0x34] sm:$0xf] %vm930_vm1, %v1165_v11  ;;  %v1013_v28 = vsel %vm550_vm0, %v991_v16, 0.0  ;;  %v994_v13 = vmul.f32 %v1736_v27, %v1736_v27  ;;  %v995_v45 = vmul.f32 %v1772_v57, %v1772_v57 }
 0x139   :  { %v959_v18 = vadd.f32 %v958_v15, %v957_v14  ;;  %v1010_v19 = vadd.f32 %v1009_v17, %v1008_v52  ;;  %v1015_v22 = vsel %vm550_vm0, %v992_v20, 0.0  ;;  %v964_v31 = vsel %vm550_vm0, %v1780_v1, 0.0 }
 0x13a   :  { %v966_v49 = vsel %vm550_vm0, %v1736_v27, 0.0  ;;  %v1017_v46 = vsel %vm550_vm0, %v993_v26, 0.0  ;;  %v1019_v32 = vsel %vm550_vm0, %v994_v13, 0.0  ;;  %v968_v50 = vsel %vm550_vm0, %v1772_v57, 0.0 }
 0x13b   :  { %v961_v21 = vadd.f32 %v960_v12, %v959_v18  ;;  %v1012_v23 = vadd.f32 %v1011_v33, %v1010_v19  ;;  %v996_v36 = vmul.f32 %v852_v43, %v852_v43  ;;  %v1021_v38 = vsel %vm550_vm0, %v995_v45, 0.0 }
 0x13c   :  { %v970_v39 = vsel %vm550_vm0, %v852_v43, 0.0  ;;  %v997_v27 = vmul.f32 %v855_v7, %v855_v7  ;;  %v998_v42 = vmul.f32 %v1812_v30, %v1812_v30  ;;  %v972_v53 = vsel %vm550_vm0, %v855_v7, 0.0 }
 0x13d   :  { %v963_v29 = vadd.f32 %v962_v25, %v961_v21  ;;  %v1014_v34 = vadd.f32 %v1013_v28, %v1012_v23  ;;  %v1023_v41 = vsel %vm550_vm0, %v996_v36, 0.0  ;;  %v974_v57 = vsel %vm550_vm0, %v1812_v30, 0.0 }
 0x13e   :  { %v999_v58 = vmul.f32 %v1836_v56, %v1836_v56  ;;  %v1025_v43 = vsel %vm550_vm0, %v997_v27, 0.0  ;;  %v1027_v61 = vsel %vm550_vm0, %v998_v42, 0.0  ;;  %v976_v62 = vsel %vm550_vm0, %v1836_v56, 0.0 }
 0x13f   :  { %v1016_v35 = vadd.f32 %v1015_v22, %v1014_v34  ;;  %v965_v44 = vadd.f32 %v964_v31, %v963_v29  ;;  %v1037_v6 = vlaneseq }
 0x140   :  { %v1029_v2 = vsel %vm550_vm0, %v999_v58, 0.0 }
 0x141   :  { %v967_v47 = vadd.f32 %v966_v49, %v965_v44  ;;  %v1018_v48 = vadd.f32 %v1017_v46, %v1016_v35  ;;  %v1038_v9 = vshrl.u32 %v1037_v6, 7 }
 0x143   :  { %v969_v37 = vadd.f32 %v968_v50, %v967_v47  ;;  %v1020_v1 = vadd.f32 %v1019_v32, %v1018_v48  ;;  %vm1040_vm2 = vcmp.eq.s32.totalorder %v1038_v9, 1  ;;  %vm1039_vm3 = vcmp.eq.s32.totalorder %v1038_v9, 0 }
 0x145   :  { %v971_v24 = vadd.f32 %v970_v39, %v969_v37  ;;  %v1022_v40 = vadd.f32 %v1021_v38, %v1020_v1 }
 0x147   :  { %v973_v54 = vadd.f32 %v972_v53, %v971_v24  ;;  %v1024_v55 = vadd.f32 %v1023_v41, %v1022_v40 }
 0x149   :  { %v975_v59 = vadd.f32 %v974_v57, %v973_v54  ;;  %v1026_v60 = vadd.f32 %v1025_v43, %v1024_v55 }
 0x14b   :  { %v977_v63 = vadd.f32 %v976_v62, %v975_v59  ;;  %v1028_v0 = vadd.f32 %v1027_v61, %v1026_v60 }
 0x14d   :  { %v978_v4 = vrot.slane %v977_v63, 4  ;;  %v1030_v3 = vadd.f32 %v1029_v2, %v1028_v0 }
 0x14f   :  { %v979_v5 = vadd.f32 %v978_v4, %v977_v63  ;;  %v1031_v30 = vrot.slane %v1030_v3, 4 }
 0x151   :  { %v980_v7 = vrot.slane %v979_v5, 2  ;;  %v1032_v51 = vadd.f32 %v1031_v30, %v1030_v3 }
 0x153   :  { %v981_v52 = vadd.f32 %v980_v7, %v979_v5  ;;  %v1033_v8 = vrot.slane %v1032_v51, 2 }
 0x155   :  { %v1034_v10 = vadd.f32 %v1033_v8, %v1032_v51  ;;  %v982_v11 = vrot.slane %v981_v52, 1 }
 0x157   :  { %v1035_v14 = vrot.slane %v1034_v10, 1  ;;  %v983_v56 = vadd.f32 %v982_v11, %v981_v52 }
 0x159   :  { %v1036_v15 = vadd.f32 %v1035_v14, %v1034_v10 }
 0x15b   :  { %v1041_v16 = vsel %vm1040_vm2, %v1036_v15, 0.0 }
 0x15c   :  { %v1042_v17 = vsel %vm1039_vm3, %v983_v56, %v1041_v16 }
 0x15d   :  { %1043 = vst.msk [vmem:[%s1911_s3] sm:$0xff] %vm550_vm0, %v1042_v17 }

// kernel: resnet_forward.35
= control target key start
LH: loop header
LB: loop body
LE: loop exit
PB: predicated region body
PF: predicated region fallthrough
CT: control target
= control target key end

     0   :  { %s285_s0 = inlined_call_operand.vmem [shape: bf16[64,128], index: 0, kind: input, shape index: {}]   ;;  %s286_s1 = inlined_call_operand.vmem [shape: f32[1,128], index: 1, kind: input, shape index: {}]   ;;  %s287_s2 = inlined_call_operand.vmem [shape: f32[1,128], index: 2, kind: input, shape index: {}]   ;;  %s288_s3 = inlined_call_operand.vmem [shape: bf16[64,128], index: 3, kind: input, shape index: {}]   ;;  %s289_s4 = inlined_call_operand.vmem [shape: bf16[64,128], index: 4, kind: output, shape index: {}]  }
   0x1   :  { %v158_v0 = vld [vmem:[%s285_s0] sm:$0xff]   ;;  %v209_v5 = vld [vmem:[%s285_s0 + $0x8] sm:$0xff]   ;;  %v210_v12 = vld [vmem:[%s285_s0 + $0x10] sm:$0xff]  }
   0x2   :  { %v139_v1 = vld [vmem:[%s286_s1] ss:$0 sm:$0xff]  ;;  %v159_v2 = vunpack.c.l.bf16 %v158_v0  ;;  %v160_v3 = vunpack.c.h.bf16 %v158_v0  ;;  %v212_v6 = vld [vmem:[%s288_s3 + $0x8] sm:$0xff]   ;;  %v163_v10 = vunpack.c.l.bf16 %v209_v5  ;;  %v164_v11 = vunpack.c.h.bf16 %v209_v5  ;;  %v213_v13 = vld [vmem:[%s288_s3 + $0x10] sm:$0xff]  }
   0x3   :  { %v174_v4 = vld [vmem:[%s288_s3] sm:$0xff]   ;;  %v179_v16 = vunpack.c.l.bf16 %v212_v6  ;;  %v180_v17 = vunpack.c.h.bf16 %v212_v6  ;;  %v167_v20 = vunpack.c.l.bf16 %v210_v12  ;;  %v168_v21 = vunpack.c.h.bf16 %v210_v12  ;;  %v211_v22 = vld [vmem:[%s285_s0 + $0x18] sm:$0xff]  }
   0x4   :  { %v140_v7 = vld [vmem:[%s287_s2] ss:$0 sm:$0xff]  ;;  %v175_v8 = vunpack.c.l.bf16 %v174_v4  ;;  %v176_v9 = vunpack.c.h.bf16 %v174_v4  ;;  %v40_v14 = vmul.f32 %v159_v2, %v139_v1  ;;  %v41_v15 = vmul.f32 %v160_v3, %v139_v1  ;;  %v214_v39 = vld [vmem:[%s288_s3 + $0x18] sm:$0xff]  }
   0x5   :  { %v42_v18 = vmul.f32 %v163_v10, %v139_v1  ;;  %v43_v19 = vmul.f32 %v164_v11, %v139_v1  ;;  %v183_v25 = vunpack.c.l.bf16 %v213_v13  ;;  %v184_v26 = vunpack.c.h.bf16 %v213_v13 }
   0x6   :  { %v55_v23 = vadd.f32 %v140_v7, %v40_v14  ;;  %v56_v24 = vadd.f32 %v140_v7, %v41_v15  ;;  %v44_v29 = vmul.f32 %v167_v20, %v139_v1  ;;  %v45_v30 = vmul.f32 %v168_v21, %v139_v1 }
   0x7   :  { %v57_v27 = vadd.f32 %v140_v7, %v42_v18  ;;  %v58_v28 = vadd.f32 %v140_v7, %v43_v19  ;;  %v171_v33 = vunpack.c.l.bf16 %v211_v22  ;;  %v172_v34 = vunpack.c.h.bf16 %v211_v22 }
   0x8   :  { %v79_v31 = vadd.f32 %v175_v8, %v55_v23  ;;  %v80_v32 = vadd.f32 %v176_v9, %v56_v24  ;;  %v59_v37 = vadd.f32 %v140_v7, %v44_v29  ;;  %v60_v38 = vadd.f32 %v140_v7, %v45_v30 }
   0x9   :  { %v81_v35 = vadd.f32 %v179_v16, %v57_v27  ;;  %v82_v36 = vadd.f32 %v180_v17, %v58_v28  ;;  %v46_v42 = vmul.f32 %v171_v33, %v139_v1  ;;  %v47_v43 = vmul.f32 %v172_v34, %v139_v1 }
   0xa   :  { %v87_v40 = vmax.f32 %v79_v31, 0.0  ;;  %v88_v41 = vmax.f32 %v80_v32, 0.0  ;;  %v83_v46 = vadd.f32 %v183_v25, %v59_v37  ;;  %v84_v47 = vadd.f32 %v184_v26, %v60_v38 }
   0xb   :  { %v89_v44 = vmax.f32 %v81_v35, 0.0  ;;  %v90_v45 = vmax.f32 %v82_v36, 0.0  ;;  %v61_v49 = vadd.f32 %v140_v7, %v46_v42  ;;  %v62_v50 = vadd.f32 %v140_v7, %v47_v43 }
   0xc   :  { %v192_v48 = vpack.c.bf16 %v88_v41, %v87_v40  ;;  %v187_v51 = vunpack.c.l.bf16 %v214_v39  ;;  %v91_v53 = vmax.f32 %v83_v46, 0.0  ;;  %v92_v54 = vmax.f32 %v84_v47, 0.0 }
   0xd   :  { %v197_v52 = vpack.c.bf16 %v90_v45, %v89_v44  ;;  %v188_v55 = vunpack.c.h.bf16 %v214_v39 }
   0xe   :  { %193 = vst [vmem:[%s289_s4] sm:$0xff] %v192_v48   ;;  %v85_v56 = vadd.f32 %v187_v51, %v61_v49  ;;  %v202_v57 = vpack.c.bf16 %v92_v54, %v91_v53 }
   0xf   :  { %215 = vst [vmem:[%s289_s4 + $0x8] sm:$0xff] %v197_v52   ;;  %v86_v58 = vadd.f32 %v188_v55, %v62_v50 }
  0x10   :  { %v93_v59 = vmax.f32 %v85_v56, 0.0  ;;  %216 = vst [vmem:[%s289_s4 + $0x10] sm:$0xff] %v202_v57  }
  0x11   :  { %v94_v60 = vmax.f32 %v86_v58, 0.0 }
  0x13   :  { %v207_v61 = vpack.c.bf16 %v94_v60, %v93_v59 }
  0x15   :  { %217 = vst [vmem:[%s289_s4 + $0x18] sm:$0xff] %v207_v61  }

// kernel: resnet_forward.41
= control target key start
LH: loop header
LB: loop body
LE: loop exit
PB: predicated region body
PF: predicated region fallthrough
CT: control target
= control target key end

     0   :  { %s140_s0 = inlined_call_operand.vmem [shape: bf16[32,128], index: 0, kind: input, shape index: {}]   ;;  %s141_s1 = inlined_call_operand.vmem [shape: f32[1,128], index: 1, kind: input, shape index: {}]   ;;  %s142_s2 = inlined_call_operand.vmem [shape: f32[1,128], index: 2, kind: input, shape index: {}]   ;;  %s143_s3 = inlined_call_operand.vmem [shape: bf16[32,128], index: 3, kind: output, shape index: {}]  }
   0x1   :  { %v83_v0 = vld [vmem:[%s140_s0] sm:$0xff]   ;;  %v100_v4 = vld [vmem:[%s140_s0 + $0x8] sm:$0xff]  }
   0x2   :  { %v72_v1 = vld [vmem:[%s141_s1] ss:$0 sm:$0xff]  ;;  %v84_v2 = vunpack.c.l.bf16 %v83_v0  ;;  %v85_v3 = vunpack.c.h.bf16 %v83_v0  ;;  %v88_v6 = vunpack.c.l.bf16 %v100_v4  ;;  %v89_v7 = vunpack.c.h.bf16 %v100_v4 }
   0x3   :  { %v73_v5 = vld [vmem:[%s142_s2] ss:$0 sm:$0xff] }
   0x4   :  { %v29_v8 = vmul.f32 %v84_v2, %v72_v1  ;;  %v30_v9 = vmul.f32 %v85_v3, %v72_v1  ;;  %v31_v10 = vmul.f32 %v88_v6, %v72_v1  ;;  %v32_v11 = vmul.f32 %v89_v7, %v72_v1 }
   0x6   :  { %v40_v12 = vadd.f32 %v73_v5, %v29_v8  ;;  %v41_v13 = vadd.f32 %v73_v5, %v30_v9  ;;  %v42_v14 = vadd.f32 %v73_v5, %v31_v10  ;;  %v43_v15 = vadd.f32 %v73_v5, %v32_v11 }
   0x8   :  { %v44_v16 = vmax.f32 %v40_v12, 0.0  ;;  %v45_v17 = vmax.f32 %v41_v13, 0.0  ;;  %v46_v18 = vmax.f32 %v42_v14, 0.0  ;;  %v47_v19 = vmax.f32 %v43_v15, 0.0 }
   0xa   :  { %v93_v20 = vpack.c.bf16 %v45_v17, %v44_v16  ;;  %v98_v21 = vpack.c.bf16 %v47_v19, %v46_v18 }
   0xc   :  { %94 = vst [vmem:[%s143_s3] sm:$0xff] %v93_v20   ;;  %101 = vst [vmem:[%s143_s3 + $0x8] sm:$0xff] %v98_v21  }

// kernel: resnet_forward.40
= control target key start
LH: loop header
LB: loop body
LE: loop exit
PB: predicated region body
PF: predicated region fallthrough
CT: control target
= control target key end

     0   :  { %vm364_vm0 = vcmask 523264   ;;  %s933_s1 = inlined_call_operand.vmem [shape: bf16[576,128], index: 1, kind: input, shape index: {}]   ;;  %s934_s0 = inlined_call_operand.vmem [shape: bf16[32,576], index: 0, kind: input, shape index: {}]   ;;  %s935_s2 = inlined_call_operand.vmem [shape: bf16[32,128], index: 2, kind: output, shape index: {0}]   ;;  %s936_s3 = inlined_call_operand.vmem [shape: f32[8,128], index: 3, kind: output, shape index: {1}]  }
   0x1   :  { %v716_v0 = vld [vmem:[%s933_s1 + $0x78] sm:$0xff]   ;;  %v720_v4 = vld [vmem:[%s933_s1 + $0x70] sm:$0xff]   ;;  %v724_v8 = vld [vmem:[%s933_s1 + $0x68] sm:$0xff]  }
   0x2   :  { %v717_v1 = vld [vmem:[%s933_s1 + $0xf8] sm:$0xff]   ;;  %642 = vmatprep.subr.bf16.mxu0 %v716_v0  ;;  %v721_v5 = vld [vmem:[%s933_s1 + $0xf0] sm:$0xff]   ;;  %v725_v9 = vld [vmem:[%s933_s1 + $0xe8] sm:$0xff]  }
   0x3   :  { %v718_v2 = vld [vmem:[%s933_s1 + $0x38] sm:$0xff]   ;;  %670 = vmatprep.subr.bf16.mxu1 %v717_v1  ;;  %v722_v6 = vld [vmem:[%s933_s1 + $0x30] sm:$0xff]   ;;  %v726_v10 = vld [vmem:[%s933_s1 + $0x28] sm:$0xff]  }
   0x4   :  { %v719_v3 = vld [vmem:[%s933_s1 + $0xb8] sm:$0xff]   ;;  %643 = vmatpush3.bf16.msra.mxu0 %v718_v2  ;;  %v723_v7 = vld [vmem:[%s933_s1 + $0xb0] sm:$0xff]   ;;  %v727_v11 = vld [vmem:[%s933_s1 + $0xa8] sm:$0xff]  }
   0x5   :  { %671 = vmatpush3.bf16.msra.mxu1 %v719_v3  ;;  %644 = vmatprep.subr.bf16.mxu0 %v720_v4  ;;  %v728_v12 = vld [vmem:[%s933_s1 + $0x60] sm:$0xff]   ;;  %v732_v16 = vld [vmem:[%s933_s1 + $0x58] sm:$0xff]   ;;  %v736_v20 = vld [vmem:[%s933_s1 + $0x50] sm:$0xff]  }
   0x6   :  { %672 = vmatprep.subr.bf16.mxu1 %v721_v5  ;;  %v729_v13 = vld [vmem:[%s933_s1 + $0xe0] sm:$0xff]   ;;  %v733_v17 = vld [vmem:[%s933_s1 + $0xd8] sm:$0xff]   ;;  %v737_v21 = vld [vmem:[%s933_s1 + $0xd0] sm:$0xff]  }
   0x7   :  { %v730_v14 = vld [vmem:[%s933_s1 + $0x20] sm:$0xff]   ;;  %v734_v18 = vld [vmem:[%s933_s1 + $0x18] sm:$0xff]   ;;  %v738_v22 = vld [vmem:[%s933_s1 + $0x10] sm:$0xff]  }
   0x8   :  { %645 = vmatpush3.bf16.msra.mxu0 %v722_v6  ;;  %v731_v15 = vld [vmem:[%s933_s1 + $0xa0] sm:$0xff]   ;;  %v735_v19 = vld [vmem:[%s933_s1 + $0x98] sm:$0xff]   ;;  %v739_v23 = vld [vmem:[%s933_s1 + $0x90] sm:$0xff]  }
   0x9   :  { %673 = vmatpush3.bf16.msra.mxu1 %v723_v7  ;;  %646 = vmatprep.subr.bf16.mxu0 %v724_v8  ;;  %v740_v24 = vld [vmem:[%s933_s1 + $0x48] sm:$0xff]   ;;  %v744_v28 = vld [vmem:[%s933_s1 + $0x40] sm:$0xff]   ;;  %v754_v36 = vld [vmem:[%s933_s1 + $0x118] sm:$0xff]  }
   0xa   :  { %674 = vmatprep.subr.bf16.mxu1 %v725_v9  ;;  %v741_v25 = vld [vmem:[%s933_s1 + $0xc8] sm:$0xff]   ;;  %v745_v29 = vld [vmem:[%s933_s1 + $0xc0] sm:$0xff]   ;;  %v755_v37 = vld [vmem:[%s933_s1 + $0x110] sm:$0xff]  }
   0xb   :  { %v742_v26 = vld [vmem:[%s933_s1 + $0x8] sm:$0xff]   ;;  %v746_v30 = vld [vmem:[%s933_s1] sm:$0xff]  }
   0xc   :  { %647 = vmatpush3.bf16.msra.mxu0 %v726_v10  ;;  %v743_v27 = vld [vmem:[%s933_s1 + $0x88] sm:$0xff]   ;;  %v747_v31 = vld [vmem:[%s933_s1 + $0x80] sm:$0xff]  }
   0xd   :  { %675 = vmatpush3.bf16.msra.mxu1 %v727_v11  ;;  %648 = vmatprep.subr.bf16.mxu0 %v728_v12  ;;  %v748_v32 = vld [vmem:[%s934_s0] ss:$20 sps:$4 sm:$0xff]   ;;  %v750_v33 = vld [vmem:[%s934_s0 + $0x4] ss:$20 sps:$4 sm:$0xff]   ;;  %v751_v34 = vld [vmem:[%s934_s0 + $0x8] ss:$20 sps:$4 sm:$0xff]  }
   0xe   :  { %676 = vmatprep.subr.bf16.mxu1 %v729_v13  ;;  %v753_v35 = vld [vmem:[%s934_s0 + $0xc] ss:$20 sps:$4 sm:$0xff]   ;;  %403 = vmatprep.mubr.bf16.mxu0 %v750_v33  ;;  %v758_v39 = vld [vmem:[%s934_s0 + $0x34] ss:$20 sps:$4 sm:$0xff]   ;;  %v761_v42 = vld [vmem:[%s934_s0 + $0x30] ss:$20 sps:$4 sm:$0xff]   ;;  %v560_v33 = vlaneseq }
   0xf   :  { %452 = vmatprep.mubr.bf16.mxu1 %v753_v35  ;;  %v756_v38 = vld [vmem:[%s934_s0 + $0x2c] ss:$20 sps:$4 sm:$0xff]   ;;  %v760_v40 = vld [vmem:[%s934_s0 + $0x28] ss:$20 sps:$4 sm:$0xff]   ;;  %v764_v43 = vld [vmem:[%s934_s0 + $0x10] ss:$20 sps:$4 sm:$0xff]  }
  0x10   :  { %649 = vmatpush3.bf16.msra.mxu0 %v730_v14  ;;  %v762_v41 = vld [vmem:[%s933_s1 + $0x108] sm:$0xff]   ;;  %v763_v44 = vld [vmem:[%s933_s1 + $0x100] sm:$0xff]  }
  0x11   :  { %677 = vmatpush3.bf16.msra.mxu1 %v731_v15  ;;  %650 = vmatprep.subr.bf16.mxu0 %v732_v16  ;;  %v765_v45 = vld [vmem:[%s934_s0 + $0x38] ss:$20 sps:$4 sm:$0xff]  }
  0x12   :  { %678 = vmatprep.subr.bf16.mxu1 %v733_v17 }
  0x14   :  { %651 = vmatpush3.bf16.msra.mxu0 %v734_v18 }
  0x15   :  { %679 = vmatpush3.bf16.msra.mxu1 %v735_v19  ;;  %652 = vmatprep.subr.bf16.mxu0 %v736_v20 }
  0x16   :  { %680 = vmatprep.subr.bf16.mxu1 %v737_v21 }
  0x18   :  { %653 = vmatpush3.bf16.msra.mxu0 %v738_v22 }
  0x19   :  { %681 = vmatpush3.bf16.msra.mxu1 %v739_v23  ;;  %654 = vmatprep.subr.bf16.mxu0 %v740_v24 }
  0x1a   :  { %682 = vmatprep.subr.bf16.mxu1 %v741_v25 }
  0x1c   :  { %655 = vmatpush3.bf16.msra.mxu0 %v742_v26 }
  0x1d   :  { %683 = vmatpush3.bf16.msra.mxu1 %v743_v27  ;;  %656 = vmatprep.subr.bf16.mxu0 %v744_v28 }
  0x1e   :  { %684 = vmatprep.subr.bf16.mxu1 %v745_v29 }
  0x20   :  { %657 = vmatpush3.bf16.msra.mxu0 %v746_v30 }
  0x21   :  { %685 = vmatpush3.bf16.msra.mxu1 %v747_v31  ;;  %704 = vmatprep.subr.bf16.mxu0 %v754_v36 }
  0x23   :  { %404 = vmatmul.mubr.bf16.vlgmr.msra.gmra.mxu0 %v748_v32 }
  0x24   :  { %453 = vmatmul.mubr.bf16.vlgmr.msra.gmra.mxu1 %v751_v34  ;;  %705 = vmatpush3.bf16.msra.mxu0 %v754_v36 }
  0x25   :  { %706 = vmatprep.subr.bf16.mxu0 %v755_v37  ;;  %411 = vmatprep.mubr.bf16.mxu0 %v756_v38  ;;  %v561_v38 = vshrl.u32 %v560_v33, 7 }
  0x26   :  { %460 = vmatprep.mubr.bf16.mxu1 %v758_v39 }
  0x27   :  { %vm563_vm1 = vcmp.eq.s32.totalorder %v561_v38, 1  ;;  %vm562_vm2 = vcmp.eq.s32.totalorder %v561_v38, 0 }
  0x28   :  { %707 = vmatpush3.bf16.msra.mxu0 %v755_v37 }
  0x29   :  { %708 = vmatprep.subr.bf16.mxu0 %v762_v41 }
  0x2b   :  { %412 = vmatmul.mubr.bf16.gmra.mxu0 %v760_v40 }
  0x2c   :  { %461 = vmatmul.mubr.bf16.gmra.mxu1 %v761_v42  ;;  %712 = vmatprep.mubr.msk.bf16.mxu0 %vm364_vm0, %v764_v43 }
  0x2d   :  { %709 = vmatpush3.bf16.msra.mxu0 %v762_v41 }
  0x2e   :  { %710 = vmatprep.subr.bf16.mxu0 %v763_v44 }
  0x31   :  { %711 = vmatpush3.bf16.msra.mxu0 %v763_v44 }
  0x34   :  { %713 = vmatmul.mubr.msk.bf16.vlgmr.msra.gmra.mxu0 %vm364_vm0, %v765_v45 }
  0xe3   :  { %v658_v46 = vpop.f32.mrf.mxu0 }
  0xe4   :  { %v686_v47 = vpop.f32.mrf.mxu1 }
  0xe5   :  { %v659_v48 = vpop.f32.mrf.mxu0 }
  0xe6   :  { %v687_v49 = vpop.f32.mrf.mxu1  ;;  %v660_v61 = vadd.f32 %v659_v48, %v658_v46 }
  0xe7   :  { %v661_v50 = vpop.f32.mrf.mxu0  ;;  %v688_v62 = vadd.f32 %v687_v49, %v686_v47 }
  0xe8   :  { %v689_v51 = vpop.f32.mrf.mxu1 }
  0xe9   :  { %v662_v52 = vpop.f32.mrf.mxu0  ;;  %v455_v9 = vadd.f32 %v688_v62, %v660_v61 }
  0xea   :  { %v690_v53 = vpop.f32.mrf.mxu1  ;;  %v663_v5 = vadd.f32 %v662_v52, %v661_v50 }
  0xeb   :  { %v664_v54 = vpop.f32.mrf.mxu0  ;;  %v691_v6 = vadd.f32 %v690_v53, %v689_v51 }
  0xec   :  { %v692_v55 = vpop.f32.mrf.mxu1 }
  0xed   :  { %v665_v56 = vpop.f32.mrf.mxu0  ;;  %v458_v15 = vadd.f32 %v691_v6, %v663_v5 }
  0xee   :  { %v693_v57 = vpop.f32.mrf.mxu1  ;;  %v666_v0 = vadd.f32 %v665_v56, %v664_v54 }
  0xef   :  { %v667_v58 = vpop.f32.mrf.mxu0  ;;  %v694_v1 = vadd.f32 %v693_v57, %v692_v55 }
  0xf0   :  { %v695_v59 = vpop.f32.mrf.mxu1 }
  0xf1   :  { %v668_v60 = vpop.f32.mrf.mxu0  ;;  %v463_v8 = vadd.f32 %v694_v1, %v666_v0 }
  0xf2   :  { %v696_v63 = vpop.f32.mrf.mxu1  ;;  %v669_v2 = vadd.f32 %v668_v60, %v667_v58 }
  0xf3   :  { %v697_v3 = vadd.f32 %v696_v63, %v695_v59 }
  0xf4   :  { %v714_v4 = vpop.f32.mrf.mxu0 }
  0xf5   :  { %v466_v10 = vadd.f32 %v697_v3, %v669_v2  ;;  %v512_v12 = vadd.f32 %v714_v4, %v463_v8 }
  0xf6   :  { %v503_v7 = vpop.f32.mrf.mxu0 }
  0xf7   :  { %v504_v13 = vadd.f32 %v503_v7, %v455_v9  ;;  %v549_v23 = vmul.f32 %v512_v12, %v512_v12 }
  0xf8   :  { %v715_v11 = vpop.f32.mrf.mxu0 }
  0xf9   :  { %v515_v14 = vadd.f32 %v715_v11, %v466_v10  ;;  %v547_v19 = vmul.f32 %v504_v13, %v504_v13 }
  0xfa   :  { %v506_v16 = vpop.f32.mrf.mxu0 }
  0xfb   :  { %v639_v17 = vpack.c.bf16 %v515_v14, %v512_v12  ;;  %v507_v18 = vadd.f32 %v506_v16, %v458_v15  ;;  %v550_v26 = vmul.f32 %v515_v14, %v515_v14 }
  0xfd   :  { %641 = vst [vmem:[%s935_s2 + $0x8] sm:$0xff] %v639_v17   ;;  %v634_v20 = vpack.c.bf16 %v507_v18, %v504_v13  ;;  %v538_v21 = vadd.f32 %v507_v18, %v504_v13  ;;  %v548_v22 = vmul.f32 %v507_v18, %v507_v18 }
  0xff   :  { %635 = vst [vmem:[%s935_s2] sm:$0xff] %v634_v20   ;;  %v539_v24 = vadd.f32 %v538_v21, %v512_v12  ;;  %v551_v25 = vadd.f32 %v548_v22, %v547_v19 }
 0x101   :  { %v540_v27 = vadd.f32 %v539_v24, %v515_v14  ;;  %v552_v28 = vadd.f32 %v551_v25, %v549_v23 }
 0x103   :  { %v541_v29 = vrot.slane %v540_v27, 4  ;;  %v553_v30 = vadd.f32 %v552_v28, %v550_v26 }
 0x105   :  { %v542_v31 = vadd.f32 %v541_v29, %v540_v27  ;;  %v554_v32 = vrot.slane %v553_v30, 4 }
 0x107   :  { %v543_v34 = vrot.slane %v542_v31, 2  ;;  %v555_v35 = vadd.f32 %v554_v32, %v553_v30 }
 0x109   :  { %v544_v36 = vadd.f32 %v543_v34, %v542_v31  ;;  %v556_v37 = vrot.slane %v555_v35, 2 }
 0x10b   :  { %v557_v39 = vadd.f32 %v556_v37, %v555_v35  ;;  %v545_v40 = vrot.slane %v544_v36, 1 }
 0x10d   :  { %v558_v41 = vrot.slane %v557_v39, 1  ;;  %v546_v43 = vadd.f32 %v545_v40, %v544_v36 }
 0x10f   :  { %v559_v42 = vadd.f32 %v558_v41, %v557_v39 }
 0x111   :  { %v564_v44 = vsel %vm563_vm1, %v559_v42, 0.0 }
 0x112   :  { %v565_v45 = vsel %vm562_vm2, %v546_v43, %v564_v44 }
 0x113   :  { %566 = vst [vmem:[%s936_s3] sm:$0xff] %v565_v45 }

// kernel: resnet_forward.43
= control target key start
LH: loop header
LB: loop body
LE: loop exit
PB: predicated region body
PF: predicated region fallthrough
CT: control target
= control target key end

     0   :  { %vm60_vm0 = vcmask 523264   ;;  %v158_v25 = vlaneseq  ;;  %s271_s1 = inlined_call_operand.vmem [shape: bf16[64,128], index: 1, kind: input, shape index: {}]   ;;  %s272_s0 = inlined_call_operand.vmem [shape: bf16[32,64], index: 0, kind: input, shape index: {}]   ;;  %s273_s2 = inlined_call_operand.vmem [shape: bf16[32,128], index: 2, kind: output, shape index: {0}]   ;;  %s274_s3 = inlined_call_operand.vmem [shape: f32[8,128], index: 3, kind: output, shape index: {1}]  }
   0x1   :  { %v218_v0 = vld [vmem:[%s271_s1 + $0x18] sm:$0xff]   ;;  %v219_v1 = vld [vmem:[%s271_s1 + $0x10] sm:$0xff]   ;;  %v220_v2 = vld [vmem:[%s271_s1 + $0x8] sm:$0xff]  }
   0x2   :  { %206 = vmatprep.subr.bf16.mxu0 %v218_v0  ;;  %v222_v3 = vld [vmem:[%s272_s0] sm:$0xff]   ;;  %v223_v5 = vld [vmem:[%s272_s0 + $0x8] sm:$0xff]   ;;  %v159_v30 = vshrl.u32 %v158_v25, 7 }
   0x3   :  { %207 = vmatpush3.bf16.msra.mxu0 %v218_v0  ;;  %214 = vmatprep.mubr.msk.bf16.mxu0 %vm60_vm0, %v222_v3  ;;  %v221_v4 = vld [vmem:[%s271_s1] sm:$0xff]  }
   0x4   :  { %208 = vmatprep.subr.bf16.mxu0 %v219_v1  ;;  %vm161_vm1 = vcmp.eq.s32.totalorder %v159_v30, 1  ;;  %vm160_vm2 = vcmp.eq.s32.totalorder %v159_v30, 0 }
   0x7   :  { %209 = vmatpush3.bf16.msra.mxu0 %v219_v1 }
   0x8   :  { %210 = vmatprep.subr.bf16.mxu0 %v220_v2 }
   0xb   :  { %211 = vmatpush3.bf16.msra.mxu0 %v220_v2 }
   0xc   :  { %212 = vmatprep.subr.bf16.mxu0 %v221_v4 }
   0xf   :  { %213 = vmatpush3.bf16.msra.mxu0 %v221_v4 }
  0x12   :  { %215 = vmatmul.mubr.msk.bf16.vlgmr.msra.gmra.mxu0 %vm60_vm0, %v223_v5 }
  0xd2   :  { %v216_v6 = vpop.f32.mrf.mxu0 }
  0xd3   :  { %v147_v15 = vmul.f32 %v216_v6, %v216_v6 }
  0xd4   :  { %v101_v7 = vpop.f32.mrf.mxu0 }
  0xd5   :  { %v145_v11 = vmul.f32 %v101_v7, %v101_v7 }
  0xd6   :  { %v217_v8 = vpop.f32.mrf.mxu0 }
  0xd7   :  { %v197_v9 = vpack.c.bf16 %v217_v8, %v216_v6  ;;  %v148_v18 = vmul.f32 %v217_v8, %v217_v8 }
  0xd8   :  { %v104_v10 = vpop.f32.mrf.mxu0 }
  0xd9   :  { %v192_v12 = vpack.c.bf16 %v104_v10, %v101_v7  ;;  %199 = vst [vmem:[%s273_s2 + $0x8] sm:$0xff] %v197_v9   ;;  %v136_v13 = vadd.f32 %v104_v10, %v101_v7  ;;  %v146_v14 = vmul.f32 %v104_v10, %v104_v10 }
  0xdb   :  { %193 = vst [vmem:[%s273_s2] sm:$0xff] %v192_v12   ;;  %v137_v16 = vadd.f32 %v216_v6, %v136_v13  ;;  %v149_v17 = vadd.f32 %v146_v14, %v145_v11 }
  0xdd   :  { %v138_v19 = vadd.f32 %v217_v8, %v137_v16  ;;  %v150_v20 = vadd.f32 %v149_v17, %v147_v15 }
  0xdf   :  { %v139_v21 = vrot.slane %v138_v19, 4  ;;  %v151_v22 = vadd.f32 %v150_v20, %v148_v18 }
  0xe1   :  { %v140_v23 = vadd.f32 %v139_v21, %v138_v19  ;;  %v152_v24 = vrot.slane %v151_v22, 4 }
  0xe3   :  { %v141_v26 = vrot.slane %v140_v23, 2  ;;  %v153_v27 = vadd.f32 %v152_v24, %v151_v22 }
  0xe5   :  { %v142_v28 = vadd.f32 %v141_v26, %v140_v23  ;;  %v154_v29 = vrot.slane %v153_v27, 2 }
  0xe7   :  { %v155_v31 = vadd.f32 %v154_v29, %v153_v27  ;;  %v143_v32 = vrot.slane %v142_v28, 1 }
  0xe9   :  { %v156_v33 = vrot.slane %v155_v31, 1  ;;  %v144_v35 = vadd.f32 %v143_v32, %v142_v28 }
  0xeb   :  { %v157_v34 = vadd.f32 %v156_v33, %v155_v31 }
  0xed   :  { %v162_v36 = vsel %vm161_vm1, %v157_v34, 0.0 }
  0xee   :  { %v163_v37 = vsel %vm160_vm2, %v144_v35, %v162_v36 }
  0xef   :  { %164 = vst [vmem:[%s274_s3] sm:$0xff] %v163_v37 }

// kernel: resnet_forward.44
= control target key start
LH: loop header
LB: loop body
LE: loop exit
PB: predicated region body
PF: predicated region fallthrough
CT: control target
= control target key end

     0   :  { %s221_s0 = inlined_call_operand.vmem [shape: bf16[32,128], index: 0, kind: input, shape index: {}]   ;;  %s222_s1 = inlined_call_operand.vmem [shape: f32[1,128], index: 1, kind: input, shape index: {}]   ;;  %s223_s2 = inlined_call_operand.vmem [shape: f32[1,128], index: 2, kind: input, shape index: {}]   ;;  %s224_s3 = inlined_call_operand.vmem [shape: bf16[32,128], index: 3, kind: input, shape index: {}]   ;;  %s225_s4 = inlined_call_operand.vmem [shape: f32[1,128], index: 4, kind: input, shape index: {}]   ;;  %s226_s5 = inlined_call_operand.vmem [shape: f32[1,128], index: 5, kind: input, shape index: {}]   ;;  %s227_s6 = inlined_call_operand.vmem [shape: bf16[32,128], index: 6, kind: output, shape index: {}]  }
   0x1   :  { %v128_v0 = vld [vmem:[%s221_s0] sm:$0xff]   ;;  %v153_v9 = vld [vmem:[%s221_s0 + $0x8] sm:$0xff]  }
   0x2   :  { %v115_v1 = vld [vmem:[%s222_s1] ss:$0 sm:$0xff]  ;;  %v129_v2 = vunpack.c.l.bf16 %v128_v0  ;;  %v130_v3 = vunpack.c.h.bf16 %v128_v0  ;;  %v154_v10 = vld [vmem:[%s224_s3 + $0x8] sm:$0xff]   ;;  %v133_v14 = vunpack.c.l.bf16 %v153_v9  ;;  %v134_v15 = vunpack.c.h.bf16 %v153_v9 }
   0x3   :  { %v136_v4 = vld [vmem:[%s224_s3] sm:$0xff]   ;;  %v141_v18 = vunpack.c.l.bf16 %v154_v10  ;;  %v142_v19 = vunpack.c.h.bf16 %v154_v10 }
   0x4   :  { %v117_v5 = vld [vmem:[%s225_s4] ss:$0 sm:$0xff]  ;;  %v137_v7 = vunpack.c.l.bf16 %v136_v4  ;;  %v138_v8 = vunpack.c.h.bf16 %v136_v4  ;;  %v38_v11 = vmul.f32 %v129_v2, %v115_v1  ;;  %v39_v12 = vmul.f32 %v130_v3, %v115_v1 }
   0x5   :  { %v116_v6 = vld [vmem:[%s223_s2] ss:$0 sm:$0xff]  ;;  %v40_v22 = vmul.f32 %v133_v14, %v115_v1  ;;  %v41_v23 = vmul.f32 %v134_v15, %v115_v1  ;;  %v70_v26 = vmul.f32 %v141_v18, %v117_v5  ;;  %v71_v27 = vmul.f32 %v142_v19, %v117_v5 }
   0x6   :  { %v118_v13 = vld [vmem:[%s226_s5] ss:$0 sm:$0xff]  ;;  %v68_v16 = vmul.f32 %v137_v7, %v117_v5  ;;  %v69_v17 = vmul.f32 %v138_v8, %v117_v5  ;;  %v49_v20 = vadd.f32 %v116_v6, %v38_v11  ;;  %v50_v21 = vadd.f32 %v116_v6, %v39_v12 }
   0x7   :  { %v51_v28 = vadd.f32 %v116_v6, %v40_v22  ;;  %v52_v29 = vadd.f32 %v116_v6, %v41_v23  ;;  %v81_v32 = vadd.f32 %v118_v13, %v70_v26  ;;  %v82_v33 = vadd.f32 %v118_v13, %v71_v27 }
   0x8   :  { %v79_v24 = vadd.f32 %v118_v13, %v68_v16  ;;  %v80_v25 = vadd.f32 %v118_v13, %v69_v17 }
   0x9   :  { %v85_v36 = vadd.f32 %v81_v32, %v51_v28  ;;  %v86_v37 = vadd.f32 %v82_v33, %v52_v29 }
   0xa   :  { %v83_v30 = vadd.f32 %v79_v24, %v49_v20  ;;  %v84_v31 = vadd.f32 %v80_v25, %v50_v21 }
   0xb   :  { %v89_v39 = vmax.f32 %v85_v36, 0.0  ;;  %v90_v40 = vmax.f32 %v86_v37, 0.0 }
   0xc   :  { %v87_v34 = vmax.f32 %v83_v30, 0.0  ;;  %v88_v35 = vmax.f32 %v84_v31, 0.0 }
   0xd   :  { %v151_v41 = vpack.c.bf16 %v90_v40, %v89_v39 }
   0xe   :  { %v146_v38 = vpack.c.bf16 %v88_v35, %v87_v34 }
   0xf   :  { %155 = vst [vmem:[%s227_s6 + $0x8] sm:$0xff] %v151_v41  }
  0x10   :  { %147 = vst [vmem:[%s227_s6] sm:$0xff] %v146_v38  }

// kernel: resnet_forward.42
= control target key start
LH: loop header
LB: loop body
LE: loop exit
PB: predicated region body
PF: predicated region fallthrough
CT: control target
= control target key end

     0   :  { %s1652_s1 = inlined_call_operand.vmem [shape: bf16[1152,128], index: 1, kind: input, shape index: {}]   ;;  %s1653_s0 = inlined_call_operand.vmem [shape: bf16[32,1152], index: 0, kind: input, shape index: {}]   ;;  %s1654_s2 = inlined_call_operand.vmem [shape: bf16[32,128], index: 2, kind: output, shape index: {0}]   ;;  %s1655_s3 = inlined_call_operand.vmem [shape: f32[8,128], index: 3, kind: output, shape index: {1}]  }
   0x1   :  { %v1255_v0 = vld [vmem:[%s1652_s1 + $0x78] sm:$0xff]   ;;  %v1259_v4 = vld [vmem:[%s1652_s1 + $0x70] sm:$0xff]   ;;  %v1263_v8 = vld [vmem:[%s1652_s1 + $0x68] sm:$0xff]  }
   0x2   :  { %v1256_v1 = vld [vmem:[%s1652_s1 + $0xf8] sm:$0xff]   ;;  %1113 = vmatprep.subr.bf16.mxu0 %v1255_v0  ;;  %v1260_v5 = vld [vmem:[%s1652_s1 + $0xf0] sm:$0xff]   ;;  %v1264_v9 = vld [vmem:[%s1652_s1 + $0xe8] sm:$0xff]  }
   0x3   :  { %v1257_v2 = vld [vmem:[%s1652_s1 + $0x38] sm:$0xff]   ;;  %1141 = vmatprep.subr.bf16.mxu1 %v1256_v1  ;;  %v1261_v6 = vld [vmem:[%s1652_s1 + $0x30] sm:$0xff]   ;;  %v1265_v10 = vld [vmem:[%s1652_s1 + $0x28] sm:$0xff]  }
   0x4   :  { %v1258_v3 = vld [vmem:[%s1652_s1 + $0xb8] sm:$0xff]   ;;  %1114 = vmatpush3.bf16.msra.mxu0 %v1257_v2  ;;  %v1262_v7 = vld [vmem:[%s1652_s1 + $0xb0] sm:$0xff]   ;;  %v1266_v11 = vld [vmem:[%s1652_s1 + $0xa8] sm:$0xff]  }
   0x5   :  { %1142 = vmatpush3.bf16.msra.mxu1 %v1258_v3  ;;  %1115 = vmatprep.subr.bf16.mxu0 %v1259_v4  ;;  %v1267_v12 = vld [vmem:[%s1652_s1 + $0x60] sm:$0xff]   ;;  %v1271_v16 = vld [vmem:[%s1652_s1 + $0x58] sm:$0xff]   ;;  %v1275_v20 = vld [vmem:[%s1652_s1 + $0x50] sm:$0xff]  }
   0x6   :  { %1143 = vmatprep.subr.bf16.mxu1 %v1260_v5  ;;  %v1268_v13 = vld [vmem:[%s1652_s1 + $0xe0] sm:$0xff]   ;;  %v1272_v17 = vld [vmem:[%s1652_s1 + $0xd8] sm:$0xff]   ;;  %v1276_v21 = vld [vmem:[%s1652_s1 + $0xd0] sm:$0xff]  }
   0x7   :  { %v1269_v14 = vld [vmem:[%s1652_s1 + $0x20] sm:$0xff]   ;;  %v1273_v18 = vld [vmem:[%s1652_s1 + $0x18] sm:$0xff]   ;;  %v1277_v22 = vld [vmem:[%s1652_s1 + $0x10] sm:$0xff]  }
   0x8   :  { %1116 = vmatpush3.bf16.msra.mxu0 %v1261_v6  ;;  %v1270_v15 = vld [vmem:[%s1652_s1 + $0xa0] sm:$0xff]   ;;  %v1274_v19 = vld [vmem:[%s1652_s1 + $0x98] sm:$0xff]   ;;  %v1278_v23 = vld [vmem:[%s1652_s1 + $0x90] sm:$0xff]  }
   0x9   :  { %1144 = vmatpush3.bf16.msra.mxu1 %v1262_v7  ;;  %1117 = vmatprep.subr.bf16.mxu0 %v1263_v8  ;;  %v1279_v24 = vld [vmem:[%s1652_s1 + $0x48] sm:$0xff]   ;;  %v1283_v28 = vld [vmem:[%s1652_s1 + $0x40] sm:$0xff]   ;;  %v1293_v36 = vld [vmem:[%s1652_s1 + $0x178] sm:$0xff]  }
   0xa   :  { %1145 = vmatprep.subr.bf16.mxu1 %v1264_v9  ;;  %v1280_v25 = vld [vmem:[%s1652_s1 + $0xc8] sm:$0xff]   ;;  %v1284_v29 = vld [vmem:[%s1652_s1 + $0xc0] sm:$0xff]   ;;  %v1294_v37 = vld [vmem:[%s1652_s1 + $0x138] sm:$0xff]  }
   0xb   :  { %v1281_v26 = vld [vmem:[%s1652_s1 + $0x8] sm:$0xff]   ;;  %v1285_v30 = vld [vmem:[%s1652_s1] sm:$0xff]   ;;  %v1295_v38 = vld [vmem:[%s1652_s1 + $0x1f8] sm:$0xff]  }
   0xc   :  { %1118 = vmatpush3.bf16.msra.mxu0 %v1265_v10  ;;  %v1282_v27 = vld [vmem:[%s1652_s1 + $0x88] sm:$0xff]   ;;  %v1286_v31 = vld [vmem:[%s1652_s1 + $0x80] sm:$0xff]   ;;  %v1296_v39 = vld [vmem:[%s1652_s1 + $0x1b8] sm:$0xff]  }
   0xd   :  { %1146 = vmatpush3.bf16.msra.mxu1 %v1266_v11  ;;  %1119 = vmatprep.subr.bf16.mxu0 %v1267_v12  ;;  %v1287_v32 = vld [vmem:[%s1653_s0] ss:$36 sps:$4 sm:$0xff]   ;;  %v1290_v34 = vld [vmem:[%s1653_s0 + $0x8] ss:$36 sps:$4 sm:$0xff]   ;;  %v1297_v40 = vld [vmem:[%s1652_s1 + $0x170] sm:$0xff]  }
   0xe   :  { %1147 = vmatprep.subr.bf16.mxu1 %v1268_v13  ;;  %v1289_v33 = vld [vmem:[%s1653_s0 + $0x4] ss:$36 sps:$4 sm:$0xff]   ;;  %v1292_v35 = vld [vmem:[%s1653_s0 + $0xc] ss:$36 sps:$4 sm:$0xff]   ;;  %v1309_v52 = vld [vmem:[%s1652_s1 + $0x158] sm:$0xff]  }
   0xf   :  { %734 = vmatprep.mubr.bf16.mxu0 %v1289_v33  ;;  %783 = vmatprep.mubr.bf16.mxu1 %v1292_v35  ;;  %v1298_v41 = vld [vmem:[%s1652_s1 + $0x130] sm:$0xff]   ;;  %v1301_v44 = vld [vmem:[%s1652_s1 + $0x168] sm:$0xff]   ;;  %v1305_v48 = vld [vmem:[%s1652_s1 + $0x160] sm:$0xff]  }
  0x10   :  { %1120 = vmatpush3.bf16.msra.mxu0 %v1269_v14  ;;  %v1299_v42 = vld [vmem:[%s1652_s1 + $0x1f0] sm:$0xff]   ;;  %v1302_v45 = vld [vmem:[%s1652_s1 + $0x128] sm:$0xff]   ;;  %v1306_v49 = vld [vmem:[%s1652_s1 + $0x120] sm:$0xff]  }
  0x11   :  { %1148 = vmatpush3.bf16.msra.mxu1 %v1270_v15  ;;  %1121 = vmatprep.subr.bf16.mxu0 %v1271_v16  ;;  %v1300_v43 = vld [vmem:[%s1652_s1 + $0x1b0] sm:$0xff]   ;;  %v1303_v46 = vld [vmem:[%s1652_s1 + $0x1e8] sm:$0xff]   ;;  %v1307_v50 = vld [vmem:[%s1652_s1 + $0x1e0] sm:$0xff]  }
  0x12   :  { %1149 = vmatprep.subr.bf16.mxu1 %v1272_v17  ;;  %v1304_v47 = vld [vmem:[%s1652_s1 + $0x1a8] sm:$0xff]   ;;  %v1308_v51 = vld [vmem:[%s1652_s1 + $0x1a0] sm:$0xff]   ;;  %v1310_v53 = vld [vmem:[%s1652_s1 + $0x118] sm:$0xff]  }
  0x13   :  { %v1311_v54 = vld [vmem:[%s1653_s0 + $0x4c] ss:$36 sps:$4 sm:$0xff]   ;;  %v1313_v55 = vld [vmem:[%s1653_s0 + $0x54] ss:$36 sps:$4 sm:$0xff]   ;;  %v1327_v4 = vld [vmem:[%s1652_s1 + $0x140] sm:$0xff]  }
  0x14   :  { %1122 = vmatpush3.bf16.msra.mxu0 %v1273_v18  ;;  %v1315_v56 = vld [vmem:[%s1652_s1 + $0x1d8] sm:$0xff]   ;;  %v1316_v57 = vld [vmem:[%s1653_s0 + $0x48] ss:$36 sps:$4 sm:$0xff]   ;;  %v1317_v58 = vld [vmem:[%s1653_s0 + $0x50] ss:$36 sps:$4 sm:$0xff]  }
  0x15   :  { %1150 = vmatpush3.bf16.msra.mxu1 %v1274_v19  ;;  %1123 = vmatprep.subr.bf16.mxu0 %v1275_v20  ;;  %v1318_v59 = vld [vmem:[%s1652_s1 + $0x198] sm:$0xff]   ;;  %v1319_v60 = vld [vmem:[%s1652_s1 + $0x150] sm:$0xff]   ;;  %v1323_v0 = vld [vmem:[%s1652_s1 + $0x148] sm:$0xff]  }
  0x16   :  { %1151 = vmatprep.subr.bf16.mxu1 %v1276_v21  ;;  %v1320_v61 = vld [vmem:[%s1652_s1 + $0x110] sm:$0xff]   ;;  %v1324_v1 = vld [vmem:[%s1652_s1 + $0x108] sm:$0xff]   ;;  %v1328_v5 = vld [vmem:[%s1652_s1 + $0x100] sm:$0xff]  }
  0x17   :  { %v1321_v62 = vld [vmem:[%s1652_s1 + $0x1d0] sm:$0xff]   ;;  %v1325_v2 = vld [vmem:[%s1652_s1 + $0x1c8] sm:$0xff]   ;;  %v1329_v6 = vld [vmem:[%s1652_s1 + $0x1c0] sm:$0xff]  }
  0x18   :  { %1124 = vmatpush3.bf16.msra.mxu0 %v1277_v22  ;;  %v1322_v63 = vld [vmem:[%s1652_s1 + $0x190] sm:$0xff]   ;;  %v1326_v3 = vld [vmem:[%s1652_s1 + $0x188] sm:$0xff]   ;;  %v1333_v9 = vld [vmem:[%s1652_s1 + $0x180] sm:$0xff]  }
  0x19   :  { %1152 = vmatpush3.bf16.msra.mxu1 %v1278_v23  ;;  %1125 = vmatprep.subr.bf16.mxu0 %v1279_v24  ;;  %v1330_v7 = vld [vmem:[%s1653_s0 + $0x10] ss:$36 sps:$4 sm:$0xff]   ;;  %v1334_v10 = vld [vmem:[%s1652_s1 + $0x238] sm:$0xff]   ;;  %v1342_v16 = vld [vmem:[%s1652_s1 + $0x228] sm:$0xff]  }
  0x1a   :  { %1153 = vmatprep.subr.bf16.mxu1 %v1280_v25  ;;  %v1332_v8 = vld [vmem:[%s1653_s0 + $0x14] ss:$36 sps:$4 sm:$0xff]   ;;  %v1337_v12 = vld [vmem:[%s1653_s0 + $0x1c] ss:$36 sps:$4 sm:$0xff]   ;;  %v1343_v17 = vld [vmem:[%s1653_s0 + $0x64] ss:$36 sps:$4 sm:$0xff]  }
  0x1b   :  { %v1335_v11 = vld [vmem:[%s1653_s0 + $0x18] ss:$36 sps:$4 sm:$0xff]   ;;  %v1338_v13 = vld [vmem:[%s1652_s1 + $0x230] sm:$0xff]   ;;  %v1345_v18 = vld [vmem:[%s1653_s0 + $0x60] ss:$36 sps:$4 sm:$0xff]  }
  0x1c   :  { %1126 = vmatpush3.bf16.msra.mxu0 %v1281_v26  ;;  %v1339_v14 = vld [vmem:[%s1653_s0 + $0x5c] ss:$36 sps:$4 sm:$0xff]   ;;  %v1348_v22 = vld [vmem:[%s1652_s1 + $0x210] sm:$0xff]   ;;  %v1349_v23 = vld [vmem:[%s1652_s1 + $0x208] sm:$0xff]  }
  0x1d   :  { %1154 = vmatpush3.bf16.msra.mxu1 %v1282_v27  ;;  %1127 = vmatprep.subr.bf16.mxu0 %v1283_v28  ;;  %v1341_v15 = vld [vmem:[%s1653_s0 + $0x58] ss:$36 sps:$4 sm:$0xff]   ;;  %v1346_v19 = vld [vmem:[%s1652_s1 + $0x220] sm:$0xff]   ;;  %v1352_v25 = vld [vmem:[%s1653_s0 + $0x68] ss:$36 sps:$4 sm:$0xff]  }
  0x1e   :  { %1155 = vmatprep.subr.bf16.mxu1 %v1284_v29  ;;  %v1347_v20 = vld [vmem:[%s1652_s1 + $0x218] sm:$0xff]   ;;  %v1351_v21 = vld [vmem:[%s1653_s0 + $0x20] ss:$36 sps:$4 sm:$0xff]  }
  0x1f   :  { %v1350_v24 = vld [vmem:[%s1652_s1 + $0x200] sm:$0xff]  }
  0x20   :  { %1128 = vmatpush3.bf16.msra.mxu0 %v1285_v30 }
  0x21   :  { %1156 = vmatpush3.bf16.msra.mxu1 %v1286_v31  ;;  %1169 = vmatprep.subr.bf16.mxu0 %v1293_v36 }
  0x22   :  { %1197 = vmatprep.subr.bf16.mxu1 %v1295_v38 }
  0x23   :  { %735 = vmatmul.mubr.bf16.vlgmr.msra.gmra.mxu0 %v1287_v32 }
  0x24   :  { %784 = vmatmul.mubr.bf16.vlgmr.msra.gmra.mxu1 %v1290_v34  ;;  %1170 = vmatpush3.bf16.msra.mxu0 %v1294_v37 }
  0x25   :  { %1198 = vmatpush3.bf16.msra.mxu1 %v1296_v39  ;;  %1171 = vmatprep.subr.bf16.mxu0 %v1297_v40 }
  0x26   :  { %1199 = vmatprep.subr.bf16.mxu1 %v1299_v42  ;;  %742 = vmatprep.mubr.bf16.mxu0 %v1311_v54 }
  0x27   :  { %791 = vmatprep.mubr.bf16.mxu1 %v1313_v55 }
  0x28   :  { %1172 = vmatpush3.bf16.msra.mxu0 %v1298_v41 }
  0x29   :  { %1200 = vmatpush3.bf16.msra.mxu1 %v1300_v43  ;;  %1173 = vmatprep.subr.bf16.mxu0 %v1301_v44 }
  0x2a   :  { %1201 = vmatprep.subr.bf16.mxu1 %v1303_v46 }
  0x2b   :  { %743 = vmatmul.mubr.bf16.gmra.mxu0 %v1316_v57 }
  0x2c   :  { %1174 = vmatpush3.bf16.msra.mxu0 %v1302_v45  ;;  %792 = vmatmul.mubr.bf16.gmra.mxu1 %v1317_v58 }
  0x2d   :  { %1202 = vmatpush3.bf16.msra.mxu1 %v1304_v47  ;;  %1175 = vmatprep.subr.bf16.mxu0 %v1305_v48 }
  0x2e   :  { %1203 = vmatprep.subr.bf16.mxu1 %v1307_v50  ;;  %832 = vmatprep.mubr.bf16.mxu0 %v1332_v8 }
  0x2f   :  { %881 = vmatprep.mubr.bf16.mxu1 %v1337_v12 }
  0x30   :  { %1176 = vmatpush3.bf16.msra.mxu0 %v1306_v49 }
  0x31   :  { %1204 = vmatpush3.bf16.msra.mxu1 %v1308_v51  ;;  %1177 = vmatprep.subr.bf16.mxu0 %v1309_v52 }
  0x32   :  { %1205 = vmatprep.subr.bf16.mxu1 %v1315_v56 }
  0x34   :  { %1178 = vmatpush3.bf16.msra.mxu0 %v1310_v53 }
  0x35   :  { %1206 = vmatpush3.bf16.msra.mxu1 %v1318_v59  ;;  %1179 = vmatprep.subr.bf16.mxu0 %v1319_v60 }
  0x36   :  { %1207 = vmatprep.subr.bf16.mxu1 %v1321_v62 }
  0x38   :  { %1180 = vmatpush3.bf16.msra.mxu0 %v1320_v61 }
  0x39   :  { %1208 = vmatpush3.bf16.msra.mxu1 %v1322_v63  ;;  %1181 = vmatprep.subr.bf16.mxu0 %v1323_v0 }
  0x3a   :  { %1209 = vmatprep.subr.bf16.mxu1 %v1325_v2 }
  0x3c   :  { %1182 = vmatpush3.bf16.msra.mxu0 %v1324_v1 }
  0x3d   :  { %1210 = vmatpush3.bf16.msra.mxu1 %v1326_v3  ;;  %1183 = vmatprep.subr.bf16.mxu0 %v1327_v4 }
  0x3e   :  { %1211 = vmatprep.subr.bf16.mxu1 %v1329_v6 }
  0x40   :  { %1184 = vmatpush3.bf16.msra.mxu0 %v1328_v5 }
  0x41   :  { %1212 = vmatpush3.bf16.msra.mxu1 %v1333_v9  ;;  %1235 = vmatprep.subr.bf16.mxu0 %v1334_v10 }
  0x43   :  { %833 = vmatmul.mubr.bf16.vlgmr.msra.gmra.mxu0 %v1330_v7 }
  0x44   :  { %1236 = vmatpush3.bf16.msra.mxu0 %v1334_v10  ;;  %882 = vmatmul.mubr.bf16.vlgmr.msra.gmra.mxu1 %v1335_v11 }
  0x45   :  { %1237 = vmatprep.subr.bf16.mxu0 %v1338_v13  ;;  %840 = vmatprep.mubr.bf16.mxu0 %v1339_v14 }
  0x46   :  { %889 = vmatprep.mubr.bf16.mxu1 %v1343_v17 }
  0x48   :  { %1238 = vmatpush3.bf16.msra.mxu0 %v1338_v13 }
  0x49   :  { %1239 = vmatprep.subr.bf16.mxu0 %v1342_v16 }
  0x4b   :  { %841 = vmatmul.mubr.bf16.gmra.mxu0 %v1341_v15 }
  0x4c   :  { %1240 = vmatpush3.bf16.msra.mxu0 %v1342_v16  ;;  %890 = vmatmul.mubr.bf16.gmra.mxu1 %v1345_v18 }
  0x4d   :  { %1241 = vmatprep.subr.bf16.mxu0 %v1346_v19  ;;  %1251 = vmatprep.mubr.bf16.mxu0 %v1351_v21 }
  0x50   :  { %1242 = vmatpush3.bf16.msra.mxu0 %v1346_v19 }
  0x51   :  { %1243 = vmatprep.subr.bf16.mxu0 %v1347_v20 }
  0x54   :  { %1244 = vmatpush3.bf16.msra.mxu0 %v1347_v20 }
  0x55   :  { %1245 = vmatprep.subr.bf16.mxu0 %v1348_v22 }
  0x58   :  { %1246 = vmatpush3.bf16.msra.mxu0 %v1348_v22 }
  0x59   :  { %1247 = vmatprep.subr.bf16.mxu0 %v1349_v23 }
  0x5c   :  { %1248 = vmatpush3.bf16.msra.mxu0 %v1349_v23 }
  0x5d   :  { %1249 = vmatprep.subr.bf16.mxu0 %v1350_v24 }
  0x60   :  { %1250 = vmatpush3.bf16.msra.mxu0 %v1350_v24 }
  0x63   :  { %1252 = vmatmul.mubr.bf16.vlgmr.msra.gmra.mxu0 %v1352_v25 }
  0xe3   :  { %v1129_v26 = vpop.f32.mrf.mxu0 }
  0xe4   :  { %v1157_v27 = vpop.f32.mrf.mxu1 }
  0xe5   :  { %v1130_v28 = vpop.f32.mrf.mxu0 }
  0xe6   :  { %v1158_v29 = vpop.f32.mrf.mxu1  ;;  %v1131_v55 = vadd.f32 %v1130_v28, %v1129_v26 }
  0xe7   :  { %v1132_v30 = vpop.f32.mrf.mxu0  ;;  %v1159_v56 = vadd.f32 %v1158_v29, %v1157_v27 }
  0xe8   :  { %v1160_v31 = vpop.f32.mrf.mxu1 }
  0xe9   :  { %v1133_v32 = vpop.f32.mrf.mxu0  ;;  %v786_v4 = vadd.f32 %v1159_v56, %v1131_v55 }
  0xea   :  { %v1161_v34 = vpop.f32.mrf.mxu1  ;;  %v1134_v63 = vadd.f32 %v1133_v32, %v1132_v30 }
  0xeb   :  { %v1135_v33 = vpop.f32.mrf.mxu0  ;;  %v1162_v0 = vadd.f32 %v1161_v34, %v1160_v31 }
  0xec   :  { %v1163_v35 = vpop.f32.mrf.mxu1 }
  0xed   :  { %v1136_v36 = vpop.f32.mrf.mxu0  ;;  %v789_v9 = vadd.f32 %v1162_v0, %v1134_v63 }
  0xee   :  { %v1164_v37 = vpop.f32.mrf.mxu1  ;;  %v1137_v59 = vadd.f32 %v1136_v36, %v1135_v33 }
  0xef   :  { %v1138_v38 = vpop.f32.mrf.mxu0  ;;  %v1165_v60 = vadd.f32 %v1164_v37, %v1163_v35 }
  0xf0   :  { %v1166_v39 = vpop.f32.mrf.mxu1 }
  0xf1   :  { %v1139_v40 = vpop.f32.mrf.mxu0  ;;  %v794_v6 = vadd.f32 %v1165_v60, %v1137_v59 }
  0xf2   :  { %v1167_v42 = vpop.f32.mrf.mxu1  ;;  %v1140_v61 = vadd.f32 %v1139_v40, %v1138_v38 }
  0xf3   :  { %v1168_v62 = vadd.f32 %v1167_v42, %v1166_v39 }
  0xf5   :  { %v797_v7 = vadd.f32 %v1168_v62, %v1140_v61 }
 0x103   :  { %v1185_v41 = vpop.f32.mrf.mxu0 }
 0x104   :  { %v1213_v44 = vpop.f32.mrf.mxu1 }
 0x105   :  { %v1186_v43 = vpop.f32.mrf.mxu0 }
 0x106   :  { %v1214_v46 = vpop.f32.mrf.mxu1  ;;  %v1187_v1 = vadd.f32 %v1186_v43, %v1185_v41 }
 0x107   :  { %v1188_v45 = vpop.f32.mrf.mxu0  ;;  %v1215_v11 = vadd.f32 %v1214_v46, %v1213_v44 }
 0x108   :  { %v1216_v48 = vpop.f32.mrf.mxu1  ;;  %v835_v10 = vadd.f32 %v1187_v1, %v786_v4 }
 0x109   :  { %v1189_v47 = vpop.f32.mrf.mxu0 }
 0x10a   :  { %v1217_v50 = vpop.f32.mrf.mxu1  ;;  %v1190_v8 = vadd.f32 %v1189_v47, %v1188_v45  ;;  %v884_v21 = vadd.f32 %v1215_v11, %v835_v10  ;;  %v989_v45 = vlaneseq }
 0x10b   :  { %v1191_v49 = vpop.f32.mrf.mxu0  ;;  %v1218_v18 = vadd.f32 %v1217_v50, %v1216_v48 }
 0x10c   :  { %v1219_v52 = vpop.f32.mrf.mxu1  ;;  %v838_v17 = vadd.f32 %v1190_v8, %v789_v9  ;;  %v990_v50 = vshrl.u32 %v989_v45, 7 }
 0x10d   :  { %v1192_v51 = vpop.f32.mrf.mxu0 }
 0x10e   :  { %v1220_v54 = vpop.f32.mrf.mxu1  ;;  %v1193_v2 = vadd.f32 %v1192_v51, %v1191_v49  ;;  %v887_v27 = vadd.f32 %v1218_v18, %v838_v17  ;;  %vm992_vm0 = vcmp.eq.s32.totalorder %v990_v50, 1  ;;  %vm991_vm1 = vcmp.eq.s32.totalorder %v990_v50, 0 }
 0x10f   :  { %v1194_v53 = vpop.f32.mrf.mxu0  ;;  %v1221_v13 = vadd.f32 %v1220_v54, %v1219_v52 }
 0x110   :  { %v1222_v58 = vpop.f32.mrf.mxu1  ;;  %v843_v12 = vadd.f32 %v1193_v2, %v794_v6 }
 0x111   :  { %v1195_v57 = vpop.f32.mrf.mxu0 }
 0x112   :  { %v1196_v3 = vadd.f32 %v1195_v57, %v1194_v53  ;;  %v1223_v5 = vpop.f32.mrf.mxu1  ;;  %v892_v20 = vadd.f32 %v1221_v13, %v843_v12 }
 0x113   :  { %v1224_v15 = vadd.f32 %v1223_v5, %v1222_v58 }
 0x114   :  { %v846_v14 = vadd.f32 %v1196_v3, %v797_v7 }
 0x116   :  { %v895_v22 = vadd.f32 %v1224_v15, %v846_v14 }
 0x123   :  { %v1253_v16 = vpop.f32.mrf.mxu0 }
 0x124   :  { %v941_v24 = vadd.f32 %v1253_v16, %v892_v20 }
 0x125   :  { %v932_v19 = vpop.f32.mrf.mxu0 }
 0x126   :  { %v933_v25 = vadd.f32 %v932_v19, %v884_v21  ;;  %v978_v35 = vmul.f32 %v941_v24, %v941_v24 }
 0x127   :  { %v1254_v23 = vpop.f32.mrf.mxu0 }
 0x128   :  { %v944_v26 = vadd.f32 %v1254_v23, %v895_v22  ;;  %v976_v31 = vmul.f32 %v933_v25, %v933_v25 }
 0x129   :  { %v935_v28 = vpop.f32.mrf.mxu0 }
 0x12a   :  { %v1110_v29 = vpack.c.bf16 %v944_v26, %v941_v24  ;;  %v936_v30 = vadd.f32 %v935_v28, %v887_v27  ;;  %v979_v38 = vmul.f32 %v944_v26, %v944_v26 }
 0x12c   :  { %1112 = vst [vmem:[%s1654_s2 + $0x8] sm:$0xff] %v1110_v29   ;;  %v1105_v32 = vpack.c.bf16 %v936_v30, %v933_v25  ;;  %v967_v33 = vadd.f32 %v936_v30, %v933_v25  ;;  %v977_v34 = vmul.f32 %v936_v30, %v936_v30 }
 0x12e   :  { %1106 = vst [vmem:[%s1654_s2] sm:$0xff] %v1105_v32   ;;  %v968_v36 = vadd.f32 %v967_v33, %v941_v24  ;;  %v980_v37 = vadd.f32 %v977_v34, %v976_v31 }
 0x130   :  { %v969_v39 = vadd.f32 %v968_v36, %v944_v26  ;;  %v981_v40 = vadd.f32 %v980_v37, %v978_v35 }
 0x132   :  { %v970_v41 = vrot.slane %v969_v39, 4  ;;  %v982_v42 = vadd.f32 %v981_v40, %v979_v38 }
 0x134   :  { %v971_v43 = vadd.f32 %v970_v41, %v969_v39  ;;  %v983_v44 = vrot.slane %v982_v42, 4 }
 0x136   :  { %v972_v46 = vrot.slane %v971_v43, 2  ;;  %v984_v47 = vadd.f32 %v983_v44, %v982_v42 }
 0x138   :  { %v973_v48 = vadd.f32 %v972_v46, %v971_v43  ;;  %v985_v49 = vrot.slane %v984_v47, 2 }
 0x13a   :  { %v986_v51 = vadd.f32 %v985_v49, %v984_v47  ;;  %v974_v52 = vrot.slane %v973_v48, 1 }
 0x13c   :  { %v987_v53 = vrot.slane %v986_v51, 1  ;;  %v975_v55 = vadd.f32 %v974_v52, %v973_v48 }
 0x13e   :  { %v988_v54 = vadd.f32 %v987_v53, %v986_v51 }
 0x140   :  { %v993_v56 = vsel %vm992_vm0, %v988_v54, 0.0 }
 0x141   :  { %v994_v57 = vsel %vm991_vm1, %v975_v55, %v993_v56 }
 0x142   :  { %995 = vst [vmem:[%s1655_s3] sm:$0xff] %v994_v57 }

// kernel: resnet_forward.48
= control target key start
LH: loop header
LB: loop body
LE: loop exit
PB: predicated region body
PF: predicated region fallthrough
CT: control target
= control target key end

     0   :  { %s175_s0 = inlined_call_operand.vmem [shape: bf16[32,128], index: 0, kind: input, shape index: {}]   ;;  %s176_s1 = inlined_call_operand.vmem [shape: f32[1,128], index: 1, kind: input, shape index: {}]   ;;  %s177_s2 = inlined_call_operand.vmem [shape: f32[1,128], index: 2, kind: input, shape index: {}]   ;;  %s178_s3 = inlined_call_operand.vmem [shape: bf16[32,128], index: 3, kind: input, shape index: {}]   ;;  %s179_s4 = inlined_call_operand.vmem [shape: bf16[32,128], index: 4, kind: output, shape index: {}]  }
   0x1   :  { %v98_v0 = vld [vmem:[%s175_s0] sm:$0xff]   ;;  %v123_v5 = vld [vmem:[%s175_s0 + $0x8] sm:$0xff]  }
   0x2   :  { %v87_v1 = vld [vmem:[%s176_s1] ss:$0 sm:$0xff]  ;;  %v99_v2 = vunpack.c.l.bf16 %v98_v0  ;;  %v100_v3 = vunpack.c.h.bf16 %v98_v0  ;;  %v124_v6 = vld [vmem:[%s178_s3 + $0x8] sm:$0xff]   ;;  %v103_v8 = vunpack.c.l.bf16 %v123_v5  ;;  %v104_v9 = vunpack.c.h.bf16 %v123_v5 }
   0x3   :  { %v106_v4 = vld [vmem:[%s178_s3] sm:$0xff]   ;;  %v111_v16 = vunpack.c.l.bf16 %v124_v6  ;;  %v112_v17 = vunpack.c.h.bf16 %v124_v6 }
   0x4   :  { %v88_v7 = vld [vmem:[%s177_s2] ss:$0 sm:$0xff]  ;;  %v32_v10 = vmul.f32 %v99_v2, %v87_v1  ;;  %v33_v11 = vmul.f32 %v100_v3, %v87_v1  ;;  %v107_v12 = vunpack.c.l.bf16 %v106_v4  ;;  %v108_v13 = vunpack.c.h.bf16 %v106_v4 }
   0x5   :  { %v34_v14 = vmul.f32 %v103_v8, %v87_v1  ;;  %v35_v15 = vmul.f32 %v104_v9, %v87_v1 }
   0x6   :  { %v43_v18 = vadd.f32 %v88_v7, %v32_v10  ;;  %v44_v19 = vadd.f32 %v88_v7, %v33_v11 }
   0x7   :  { %v45_v20 = vadd.f32 %v88_v7, %v34_v14  ;;  %v46_v21 = vadd.f32 %v88_v7, %v35_v15 }
   0x8   :  { %v55_v22 = vadd.f32 %v107_v12, %v43_v18  ;;  %v56_v23 = vadd.f32 %v108_v13, %v44_v19 }
   0x9   :  { %v57_v24 = vadd.f32 %v111_v16, %v45_v20  ;;  %v58_v25 = vadd.f32 %v112_v17, %v46_v21 }
   0xa   :  { %v59_v26 = vmax.f32 %v55_v22, 0.0  ;;  %v60_v27 = vmax.f32 %v56_v23, 0.0 }
   0xb   :  { %v61_v28 = vmax.f32 %v57_v24, 0.0  ;;  %v62_v29 = vmax.f32 %v58_v25, 0.0 }
   0xc   :  { %v116_v30 = vpack.c.bf16 %v60_v27, %v59_v26 }
   0xd   :  { %v121_v31 = vpack.c.bf16 %v62_v29, %v61_v28 }
   0xe   :  { %117 = vst [vmem:[%s179_s4] sm:$0xff] %v116_v30  }
   0xf   :  { %125 = vst [vmem:[%s179_s4 + $0x8] sm:$0xff] %v121_v31  }

// kernel: resnet_forward.52
= control target key start
LH: loop header
LB: loop body
LE: loop exit
PB: predicated region body
PF: predicated region fallthrough
CT: control target
= control target key end

     0   :  { %v248_v1 = vmov 0   ;;  %v187_v26 = vlaneseq  ;;  %s329_s1 = inlined_call_operand.vmem [shape: bf16[128,256], index: 1, kind: input, shape index: {}]   ;;  %s330_s0 = inlined_call_operand.vmem [shape: bf16[8,128], index: 0, kind: input, shape index: {}]   ;;  %s331_s2 = inlined_call_operand.vmem [shape: bf16[8,256], index: 2, kind: output, shape index: {0}]   ;;  %s332_s3 = inlined_call_operand.vmem [shape: f32[8,256], index: 3, kind: output, shape index: {1}]  }
   0x1   :  { %v224_v0 = vld [vmem:[%s329_s1 + $0x74] ss:$8 sps:$4 sm:$0xff]   ;;  %143 = vmatprep.mubr.bf16.mxu0 %v248_v1  ;;  %v226_v2 = vld [vmem:[%s329_s1 + $0x70] ss:$8 sps:$4 sm:$0xff]   ;;  %v227_v3 = vld [vmem:[%s329_s1 + $0x64] ss:$8 sps:$4 sm:$0xff]  }
   0x2   :  { %111 = vmatprep.subr.bf16.mxu0 %v224_v0  ;;  %v229_v4 = vld [vmem:[%s329_s1 + $0x60] ss:$8 sps:$4 sm:$0xff]   ;;  %v230_v5 = vld [vmem:[%s329_s1 + $0x54] ss:$8 sps:$4 sm:$0xff]   ;;  %v232_v6 = vld [vmem:[%s329_s1 + $0x50] ss:$8 sps:$4 sm:$0xff]  }
   0x3   :  { %112 = vmatpush1.bf16.msra.mxu0 %v226_v2  ;;  %v233_v7 = vld [vmem:[%s329_s1 + $0x44] ss:$8 sps:$4 sm:$0xff]   ;;  %v235_v8 = vld [vmem:[%s329_s1 + $0x40] ss:$8 sps:$4 sm:$0xff]   ;;  %v236_v9 = vld [vmem:[%s329_s1 + $0x34] ss:$8 sps:$4 sm:$0xff]  }
   0x4   :  { %113 = vmatprep.subr.bf16.mxu0 %v227_v3  ;;  %v238_v10 = vld [vmem:[%s329_s1 + $0x30] ss:$8 sps:$4 sm:$0xff]   ;;  %v239_v11 = vld [vmem:[%s329_s1 + $0x24] ss:$8 sps:$4 sm:$0xff]   ;;  %v241_v12 = vld [vmem:[%s329_s1 + $0x20] ss:$8 sps:$4 sm:$0xff]  }
   0x5   :  { %v242_v13 = vld [vmem:[%s329_s1 + $0x14] ss:$8 sps:$4 sm:$0xff]   ;;  %v244_v14 = vld [vmem:[%s329_s1 + $0x10] ss:$8 sps:$4 sm:$0xff]   ;;  %v245_v15 = vld [vmem:[%s329_s1 + $0x4] ss:$8 sps:$4 sm:$0xff]  }
   0x6   :  { %v247_v16 = vld [vmem:[%s329_s1] ss:$8 sps:$4 sm:$0xff]   ;;  %v188_v37 = vshrl.u32 %v187_v26, 7 }
   0x7   :  { %114 = vmatpush1.bf16.msra.mxu0 %v229_v4  ;;  %v14_v17 = vld [vmem:[%s330_s0] sm:$0xf] }
   0x8   :  { %115 = vmatprep.subr.bf16.mxu0 %v230_v5  ;;  %vm190_vm0 = vcmp.eq.s32.totalorder %v188_v37, 1  ;;  %vm189_vm1 = vcmp.eq.s32.totalorder %v188_v37, 0 }
   0xb   :  { %116 = vmatpush1.bf16.msra.mxu0 %v232_v6 }
   0xc   :  { %117 = vmatprep.subr.bf16.mxu0 %v233_v7 }
   0xf   :  { %118 = vmatpush1.bf16.msra.mxu0 %v235_v8 }
  0x10   :  { %119 = vmatprep.subr.bf16.mxu0 %v236_v9 }
  0x13   :  { %120 = vmatpush1.bf16.msra.mxu0 %v238_v10 }
  0x14   :  { %121 = vmatprep.subr.bf16.mxu0 %v239_v11 }
  0x17   :  { %122 = vmatpush1.bf16.msra.mxu0 %v241_v12 }
  0x18   :  { %123 = vmatprep.subr.bf16.mxu0 %v242_v13 }
  0x1b   :  { %124 = vmatpush1.bf16.msra.mxu0 %v244_v14 }
  0x1c   :  { %125 = vmatprep.subr.bf16.mxu0 %v245_v15 }
  0x1f   :  { %126 = vmatpush1.bf16.msra.mxu0 %v247_v16 }
  0x22   :  { %144 = vmatmul.mubr.bf16.vlgmr.msra.gmra.mxu0 %v14_v17 }
  0xe2   :  { %v145_v18 = vpop.f32.mrf.mxu0 }
  0xe3   :  { %v161_v19 = vrot.slane %v145_v18, 4  ;;  %v173_v20 = vmul.f32 %v145_v18, %v145_v18 }
  0xe4   :  { %v147_v21 = vpop.f32.mrf.mxu0 }
  0xe5   :  { %v162_v22 = vadd.f32 %v161_v19, %v145_v18  ;;  %v175_v23 = vrot.slane %v173_v20, 4  ;;  %v222_v24 = vpack.c.bf16 %v147_v21, %v145_v18  ;;  %v167_v25 = vrot.slane %v147_v21, 4 }
  0xe6   :  { %v174_v27 = vmul.f32 %v147_v21, %v147_v21  ;;  %v149_v28 = vpop.f32.mrf.mxu0 }
  0xe7   :  { %v163_v29 = vrot.slane %v162_v22, 2  ;;  %v176_v30 = vadd.f32 %v175_v23, %v173_v20  ;;  %160 = vst [vmem:[%s331_s2] sm:$0xff] %v222_v24  ;;  %v168_v31 = vadd.f32 %v167_v25, %v147_v21 }
  0xe8   :  { %v181_v32 = vrot.slane %v174_v27, 4  ;;  %v150_v33 = vpop.f32.mrf.mxu0 }
  0xe9   :  { %v164_v34 = vadd.f32 %v163_v29, %v162_v22  ;;  %v177_v35 = vrot.slane %v176_v30, 2  ;;  %v169_v36 = vrot.slane %v168_v31, 2 }
  0xea   :  { %v182_v38 = vadd.f32 %v181_v32, %v174_v27 }
  0xeb   :  { %v178_v39 = vadd.f32 %v177_v35, %v176_v30  ;;  %v170_v40 = vadd.f32 %v169_v36, %v168_v31  ;;  %v165_v41 = vrot.slane %v164_v34, 1 }
  0xec   :  { %v183_v42 = vrot.slane %v182_v38, 2 }
  0xed   :  { %v179_v43 = vrot.slane %v178_v39, 1  ;;  %v171_v46 = vrot.slane %v170_v40, 1  ;;  %v166_v47 = vadd.f32 %v165_v41, %v164_v34 }
  0xee   :  { %v184_v44 = vadd.f32 %v183_v42, %v182_v38 }
  0xef   :  { %v180_v45 = vadd.f32 %v179_v43, %v178_v39  ;;  %v172_v52 = vadd.f32 %v171_v46, %v170_v40 }
  0xf0   :  { %v185_v48 = vrot.slane %v184_v44, 1 }
  0xf1   :  { %v191_v49 = vsel %vm190_vm0, %v180_v45, 0.0 }
  0xf2   :  { %v193_v50 = vsel %vm189_vm1, %v166_v47, %v191_v49  ;;  %v186_v51 = vadd.f32 %v185_v48, %v184_v44 }
  0xf3   :  { %195 = vst [vmem:[%s332_s3] sm:$0xff] %v193_v50 }
  0xf4   :  { %v192_v53 = vsel %vm190_vm0, %v186_v51, 0.0 }
  0xf5   :  { %v194_v54 = vsel %vm189_vm1, %v172_v52, %v192_v53 }
  0xf6   :  { %196 = vst [vmem:[%s332_s3 + $0x8] sm:$0xff] %v194_v54 }

// kernel: resnet_forward.50
= control target key start
LH: loop header
LB: loop body
LE: loop exit
PB: predicated region body
PF: predicated region fallthrough
CT: control target
= control target key end

     0   :  { %v19_v0 = vlaneseq  ;;  %s94_s0 = inlined_call_operand.vmem [shape: bf16[8,256], index: 0, kind: input, shape index: {}]   ;;  %s95_s1 = inlined_call_operand.vmem [shape: f32[1,256], index: 1, kind: input, shape index: {}]   ;;  %s96_s2 = inlined_call_operand.vmem [shape: f32[1,256], index: 2, kind: input, shape index: {}]   ;;  %s97_s3 = inlined_call_operand.vmem [shape: bf16[8,256], index: 3, kind: output, shape index: {}]  }
   0x1   :  { %v14_v1 = vld [vmem:[%s94_s0] sm:$0xff] }
   0x2   :  { %v20_v2 = vshrl.u32 %v19_v0, 7  ;;  %v17_v3 = vld [vmem:[%s95_s1] sm:$0x3]  ;;  %v15_v5 = vunpack.c.l.bf16 %v14_v1  ;;  %v16_v6 = vunpack.c.h.bf16 %v14_v1 }
   0x3   :  { %v31_v4 = vld [vmem:[%s96_s2] sm:$0x3] }
   0x4   :  { %v21_v7 = vsub.s32 0, %v20_v2  ;;  %v25_v8 = vsub.s32 1, %v20_v2 }
   0x6   :  { %v22_v9 = vrot.slane %v17_v3, %v21_v7  ;;  %v26_v10 = vrot.slane %v17_v3, %v25_v8  ;;  %v36_v11 = vrot.slane %v31_v4, %v21_v7  ;;  %v40_v12 = vrot.slane %v31_v4, %v25_v8 }
   0x8   :  { %v29_v13 = vmul.f32 %v22_v9, %v15_v5  ;;  %v30_v14 = vmul.f32 %v26_v10, %v16_v6 }
   0xa   :  { %v43_v15 = vadd.f32 %v36_v11, %v29_v13  ;;  %v44_v16 = vadd.f32 %v40_v12, %v30_v14 }
   0xc   :  { %v45_v17 = vmax.f32 %v43_v15, 0.0  ;;  %v46_v18 = vmax.f32 %v44_v16, 0.0 }
   0xe   :  { %v61_v19 = vpack.c.bf16 %v46_v18, %v45_v17 }
  0x10   :  { %55 = vst [vmem:[%s97_s3] sm:$0xff] %v61_v19 }

// kernel: resnet_forward.49
= control target key start
LH: loop header
LB: loop body
LE: loop exit
PB: predicated region body
PF: predicated region fallthrough
CT: control target
= control target key end

     0   :  { %s2043_s1 = inlined_call_operand.vmem [shape: bf16[1152,256], index: 1, kind: input, shape index: {}]   ;;  %s2044_s0 = inlined_call_operand.vmem [shape: bf16[8,1152], index: 0, kind: input, shape index: {}]   ;;  %s2045_s2 = inlined_call_operand.vmem [shape: bf16[8,256], index: 2, kind: output, shape index: {0}]   ;;  %s2046_s3 = inlined_call_operand.vmem [shape: f32[8,256], index: 3, kind: output, shape index: {1}]  }
   0x1   :  { %v1329_v0 = vld [vmem:[%s2043_s1 + $0x74] ss:$8 sps:$4 sm:$0xff]   ;;  %v1333_v2 = vld [vmem:[%s2043_s1 + $0x70] ss:$8 sps:$4 sm:$0xff]   ;;  %v1335_v4 = vld [vmem:[%s2043_s1 + $0x64] ss:$8 sps:$4 sm:$0xff]  }
   0x2   :  { %v1331_v1 = vld [vmem:[%s2043_s1 + $0x174] ss:$8 sps:$4 sm:$0xff]   ;;  %915 = vmatprep.subr.bf16.mxu0 %v1329_v0  ;;  %v1334_v3 = vld [vmem:[%s2043_s1 + $0x170] ss:$8 sps:$4 sm:$0xff]   ;;  %v1337_v5 = vld [vmem:[%s2043_s1 + $0x164] ss:$8 sps:$4 sm:$0xff]  }
   0x3   :  { %956 = vmatprep.subr.bf16.mxu1 %v1331_v1  ;;  %916 = vmatpush1.bf16.msra.mxu0 %v1333_v2  ;;  %v1339_v6 = vld [vmem:[%s2043_s1 + $0x60] ss:$8 sps:$4 sm:$0xff]   ;;  %v1341_v8 = vld [vmem:[%s2043_s1 + $0x54] ss:$8 sps:$4 sm:$0xff]   ;;  %v1345_v10 = vld [vmem:[%s2043_s1 + $0x50] ss:$8 sps:$4 sm:$0xff]  }
   0x4   :  { %957 = vmatpush1.bf16.msra.mxu1 %v1334_v3  ;;  %917 = vmatprep.subr.bf16.mxu0 %v1335_v4  ;;  %v1340_v7 = vld [vmem:[%s2043_s1 + $0x160] ss:$8 sps:$4 sm:$0xff]   ;;  %v1343_v9 = vld [vmem:[%s2043_s1 + $0x154] ss:$8 sps:$4 sm:$0xff]   ;;  %v1346_v11 = vld [vmem:[%s2043_s1 + $0x150] ss:$8 sps:$4 sm:$0xff]  }
   0x5   :  { %958 = vmatprep.subr.bf16.mxu1 %v1337_v5  ;;  %v1347_v12 = vld [vmem:[%s2043_s1 + $0x44] ss:$8 sps:$4 sm:$0xff]   ;;  %v1351_v14 = vld [vmem:[%s2043_s1 + $0x40] ss:$8 sps:$4 sm:$0xff]   ;;  %v1353_v16 = vld [vmem:[%s2043_s1 + $0x34] ss:$8 sps:$4 sm:$0xff]  }
   0x6   :  { %v1349_v13 = vld [vmem:[%s2043_s1 + $0x144] ss:$8 sps:$4 sm:$0xff]   ;;  %v1352_v15 = vld [vmem:[%s2043_s1 + $0x140] ss:$8 sps:$4 sm:$0xff]   ;;  %v1355_v17 = vld [vmem:[%s2043_s1 + $0x134] ss:$8 sps:$4 sm:$0xff]  }
   0x7   :  { %918 = vmatpush1.bf16.msra.mxu0 %v1339_v6  ;;  %v1357_v18 = vld [vmem:[%s2043_s1 + $0x30] ss:$8 sps:$4 sm:$0xff]   ;;  %v1359_v20 = vld [vmem:[%s2043_s1 + $0x24] ss:$8 sps:$4 sm:$0xff]   ;;  %v1363_v22 = vld [vmem:[%s2043_s1 + $0x20] ss:$8 sps:$4 sm:$0xff]  }
   0x8   :  { %959 = vmatpush1.bf16.msra.mxu1 %v1340_v7  ;;  %919 = vmatprep.subr.bf16.mxu0 %v1341_v8  ;;  %v1358_v19 = vld [vmem:[%s2043_s1 + $0x130] ss:$8 sps:$4 sm:$0xff]   ;;  %v1361_v21 = vld [vmem:[%s2043_s1 + $0x124] ss:$8 sps:$4 sm:$0xff]   ;;  %v1364_v23 = vld [vmem:[%s2043_s1 + $0x120] ss:$8 sps:$4 sm:$0xff]  }
   0x9   :  { %960 = vmatprep.subr.bf16.mxu1 %v1343_v9  ;;  %v1365_v24 = vld [vmem:[%s2043_s1 + $0x14] ss:$8 sps:$4 sm:$0xff]   ;;  %v1369_v26 = vld [vmem:[%s2043_s1 + $0x10] ss:$8 sps:$4 sm:$0xff]   ;;  %v1371_v28 = vld [vmem:[%s2043_s1 + $0x4] ss:$8 sps:$4 sm:$0xff]  }
   0xa   :  { %v1367_v25 = vld [vmem:[%s2043_s1 + $0x114] ss:$8 sps:$4 sm:$0xff]   ;;  %v1370_v27 = vld [vmem:[%s2043_s1 + $0x110] ss:$8 sps:$4 sm:$0xff]   ;;  %v1373_v29 = vld [vmem:[%s2043_s1 + $0x104] ss:$8 sps:$4 sm:$0xff]  }
   0xb   :  { %920 = vmatpush1.bf16.msra.mxu0 %v1345_v10  ;;  %v1375_v30 = vld [vmem:[%s2043_s1] ss:$8 sps:$4 sm:$0xff]   ;;  %v1377_v32 = vld [vmem:[%s2043_s1 + $0xf4] ss:$8 sps:$4 sm:$0xff]   ;;  %v1381_v34 = vld [vmem:[%s2043_s1 + $0xf0] ss:$8 sps:$4 sm:$0xff]  }
   0xc   :  { %961 = vmatpush1.bf16.msra.mxu1 %v1346_v11  ;;  %921 = vmatprep.subr.bf16.mxu0 %v1347_v12  ;;  %v1376_v31 = vld [vmem:[%s2043_s1 + $0x100] ss:$8 sps:$4 sm:$0xff]   ;;  %v1379_v33 = vld [vmem:[%s2043_s1 + $0x1f4] ss:$8 sps:$4 sm:$0xff]   ;;  %v1382_v35 = vld [vmem:[%s2043_s1 + $0x1f0] ss:$8 sps:$4 sm:$0xff]  }
   0xd   :  { %962 = vmatprep.subr.bf16.mxu1 %v1349_v13  ;;  %v1383_v36 = vld [vmem:[%s2043_s1 + $0xe4] ss:$8 sps:$4 sm:$0xff]   ;;  %v1387_v38 = vld [vmem:[%s2043_s1 + $0xe0] ss:$8 sps:$4 sm:$0xff]   ;;  %v1389_v40 = vld [vmem:[%s2043_s1 + $0xd4] ss:$8 sps:$4 sm:$0xff]  }
   0xe   :  { %v1385_v37 = vld [vmem:[%s2043_s1 + $0x1e4] ss:$8 sps:$4 sm:$0xff]   ;;  %v1388_v39 = vld [vmem:[%s2043_s1 + $0x1e0] ss:$8 sps:$4 sm:$0xff]   ;;  %v1391_v41 = vld [vmem:[%s2043_s1 + $0x1d4] ss:$8 sps:$4 sm:$0xff]  }
   0xf   :  { %922 = vmatpush1.bf16.msra.mxu0 %v1351_v14  ;;  %v1393_v42 = vld [vmem:[%s2043_s1 + $0xd0] ss:$8 sps:$4 sm:$0xff]   ;;  %v1395_v44 = vld [vmem:[%s2043_s1 + $0xc4] ss:$8 sps:$4 sm:$0xff]   ;;  %v1399_v49 = vld [vmem:[%s2043_s1 + $0xc0] ss:$8 sps:$4 sm:$0xff]  }
  0x10   :  { %963 = vmatpush1.bf16.msra.mxu1 %v1352_v15  ;;  %923 = vmatprep.subr.bf16.mxu0 %v1353_v16  ;;  %v1394_v43 = vld [vmem:[%s2043_s1 + $0x1d0] ss:$8 sps:$4 sm:$0xff]   ;;  %v1397_v45 = vld [vmem:[%s2043_s1 + $0x1c4] ss:$8 sps:$4 sm:$0xff]   ;;  %v1400_v50 = vld [vmem:[%s2043_s1 + $0x1c0] ss:$8 sps:$4 sm:$0xff]  }
  0x11   :  { %964 = vmatprep.subr.bf16.mxu1 %v1355_v17  ;;  %v14_v46 = vld [vmem:[%s2044_s0] sm:$0xff]  ;;  %v15_v48 = vld [vmem:[%s2044_s0 + $0x8] sm:$0xff]  ;;  %v1401_v52 = vld [vmem:[%s2043_s1 + $0xb4] ss:$8 sps:$4 sm:$0xff]  }
  0x12   :  { %v1174_v47 = vcombine.high %v14_v46, %v14_v46  ;;  %v1176_v51 = vcombine.high %v15_v48, %v15_v48  ;;  %v1403_v53 = vld [vmem:[%s2043_s1 + $0x1b4] ss:$8 sps:$4 sm:$0xff]   ;;  %v1405_v54 = vld [vmem:[%s2043_s1 + $0xb0] ss:$8 sps:$4 sm:$0xff]   ;;  %v1407_v56 = vld [vmem:[%s2043_s1 + $0xa4] ss:$8 sps:$4 sm:$0xff]   ;;  %v1173_v6 = vcombine.low %v14_v46, %v14_v46  ;;  %v1175_v7 = vcombine.low %v15_v48, %v15_v48 }
  0x13   :  { %924 = vmatpush1.bf16.msra.mxu0 %v1357_v18  ;;  %v1406_v55 = vld [vmem:[%s2043_s1 + $0x1b0] ss:$8 sps:$4 sm:$0xff]   ;;  %v1409_v57 = vld [vmem:[%s2043_s1 + $0x1a4] ss:$8 sps:$4 sm:$0xff]   ;;  %v1411_v58 = vld [vmem:[%s2043_s1 + $0xa0] ss:$8 sps:$4 sm:$0xff]  }
  0x14   :  { %965 = vmatpush1.bf16.msra.mxu1 %v1358_v19  ;;  %925 = vmatprep.subr.bf16.mxu0 %v1359_v20  ;;  %v1412_v59 = vld [vmem:[%s2043_s1 + $0x1a0] ss:$8 sps:$4 sm:$0xff]   ;;  %v1413_v60 = vld [vmem:[%s2043_s1 + $0x94] ss:$8 sps:$4 sm:$0xff]   ;;  %v1417_v62 = vld [vmem:[%s2043_s1 + $0x90] ss:$8 sps:$4 sm:$0xff]  }
  0x15   :  { %966 = vmatprep.subr.bf16.mxu1 %v1361_v21  ;;  %947 = vmatprep.mubr.bf16.mxu0 %v1174_v47  ;;  %v1415_v61 = vld [vmem:[%s2043_s1 + $0x194] ss:$8 sps:$4 sm:$0xff]   ;;  %v1418_v63 = vld [vmem:[%s2043_s1 + $0x190] ss:$8 sps:$4 sm:$0xff]   ;;  %v1419_v0 = vld [vmem:[%s2043_s1 + $0x84] ss:$8 sps:$4 sm:$0xff]  }
  0x16   :  { %988 = vmatprep.mubr.bf16.mxu1 %v1176_v51  ;;  %v1421_v1 = vld [vmem:[%s2043_s1 + $0x184] ss:$8 sps:$4 sm:$0xff]   ;;  %v1423_v2 = vld [vmem:[%s2043_s1 + $0x80] ss:$8 sps:$4 sm:$0xff]   ;;  %v1431_v4 = vld [vmem:[%s2043_s1 + $0x274] ss:$8 sps:$4 sm:$0xff]  }
  0x17   :  { %926 = vmatpush1.bf16.msra.mxu0 %v1363_v22  ;;  %v1424_v3 = vld [vmem:[%s2043_s1 + $0x180] ss:$8 sps:$4 sm:$0xff]   ;;  %v1434_v5 = vld [vmem:[%s2043_s1 + $0x374] ss:$8 sps:$4 sm:$0xff]   ;;  %v1429_v8 = vld [vmem:[%s2043_s1 + $0x270] ss:$8 sps:$4 sm:$0xff]  }
  0x18   :  { %967 = vmatpush1.bf16.msra.mxu1 %v1364_v23  ;;  %927 = vmatprep.subr.bf16.mxu0 %v1365_v24  ;;  %v1432_v9 = vld [vmem:[%s2043_s1 + $0x370] ss:$8 sps:$4 sm:$0xff]   ;;  %v1437_v10 = vld [vmem:[%s2043_s1 + $0x264] ss:$8 sps:$4 sm:$0xff]   ;;  %v1435_v12 = vld [vmem:[%s2043_s1 + $0x260] ss:$8 sps:$4 sm:$0xff]  }
  0x19   :  { %968 = vmatprep.subr.bf16.mxu1 %v1367_v25  ;;  %v1440_v11 = vld [vmem:[%s2043_s1 + $0x364] ss:$8 sps:$4 sm:$0xff]   ;;  %v1438_v13 = vld [vmem:[%s2043_s1 + $0x360] ss:$8 sps:$4 sm:$0xff]   ;;  %v1443_v14 = vld [vmem:[%s2043_s1 + $0x254] ss:$8 sps:$4 sm:$0xff]  }
  0x1a   :  { %v1446_v15 = vld [vmem:[%s2043_s1 + $0x354] ss:$8 sps:$4 sm:$0xff]   ;;  %v1441_v16 = vld [vmem:[%s2043_s1 + $0x250] ss:$8 sps:$4 sm:$0xff]   ;;  %v1449_v18 = vld [vmem:[%s2043_s1 + $0x244] ss:$8 sps:$4 sm:$0xff]  }
  0x1b   :  { %928 = vmatpush1.bf16.msra.mxu0 %v1369_v26  ;;  %v1444_v17 = vld [vmem:[%s2043_s1 + $0x350] ss:$8 sps:$4 sm:$0xff]   ;;  %v1452_v19 = vld [vmem:[%s2043_s1 + $0x344] ss:$8 sps:$4 sm:$0xff]   ;;  %v1447_v20 = vld [vmem:[%s2043_s1 + $0x240] ss:$8 sps:$4 sm:$0xff]  }
  0x1c   :  { %969 = vmatpush1.bf16.msra.mxu1 %v1370_v27  ;;  %929 = vmatprep.subr.bf16.mxu0 %v1371_v28  ;;  %v1450_v21 = vld [vmem:[%s2043_s1 + $0x340] ss:$8 sps:$4 sm:$0xff]   ;;  %v1455_v22 = vld [vmem:[%s2043_s1 + $0x234] ss:$8 sps:$4 sm:$0xff]   ;;  %v1453_v24 = vld [vmem:[%s2043_s1 + $0x230] ss:$8 sps:$4 sm:$0xff]  }
  0x1d   :  { %970 = vmatprep.subr.bf16.mxu1 %v1373_v29  ;;  %v1458_v23 = vld [vmem:[%s2043_s1 + $0x334] ss:$8 sps:$4 sm:$0xff]   ;;  %v1456_v25 = vld [vmem:[%s2043_s1 + $0x330] ss:$8 sps:$4 sm:$0xff]   ;;  %v1461_v26 = vld [vmem:[%s2043_s1 + $0x224] ss:$8 sps:$4 sm:$0xff]  }
  0x1e   :  { %v1464_v27 = vld [vmem:[%s2043_s1 + $0x324] ss:$8 sps:$4 sm:$0xff]   ;;  %v1459_v28 = vld [vmem:[%s2043_s1 + $0x220] ss:$8 sps:$4 sm:$0xff]   ;;  %v1494_v51 = vld [vmem:[%s2043_s1 + $0x3d4] ss:$8 sps:$4 sm:$0xff]  }
  0x1f   :  { %930 = vmatpush1.bf16.msra.mxu0 %v1375_v30  ;;  %v1462_v29 = vld [vmem:[%s2043_s1 + $0x320] ss:$8 sps:$4 sm:$0xff]   ;;  %v1467_v30 = vld [vmem:[%s2043_s1 + $0x214] ss:$8 sps:$4 sm:$0xff]   ;;  %v1485_v46 = vld [vmem:[%s2043_s1 + $0x2e4] ss:$8 sps:$4 sm:$0xff]  }
  0x20   :  { %971 = vmatpush1.bf16.msra.mxu1 %v1376_v31  ;;  %931 = vmatprep.subr.bf16.mxu0 %v1377_v32  ;;  %v1470_v31 = vld [vmem:[%s2043_s1 + $0x314] ss:$8 sps:$4 sm:$0xff]   ;;  %v1488_v47 = vld [vmem:[%s2043_s1 + $0x3e4] ss:$8 sps:$4 sm:$0xff]   ;;  %v1483_v48 = vld [vmem:[%s2043_s1 + $0x2e0] ss:$8 sps:$4 sm:$0xff]  }
  0x21   :  { %972 = vmatprep.subr.bf16.mxu1 %v1379_v33  ;;  %v1854_v32 = vld [vmem:[%s2044_s0 + $0x10] sm:$0xff] }
  0x22   :  { %v1465_v33 = vld [vmem:[%s2043_s1 + $0x210] ss:$8 sps:$4 sm:$0xff]  }
  0x23   :  { %932 = vmatpush2.bf16.msra.mxu0 %v1381_v34  ;;  %v1468_v34 = vld [vmem:[%s2043_s1 + $0x310] ss:$8 sps:$4 sm:$0xff]  }
  0x24   :  { %973 = vmatpush2.bf16.msra.mxu1 %v1382_v35  ;;  %933 = vmatprep.subr.bf16.mxu0 %v1383_v36  ;;  %v1178_v35 = vcombine.high %v1854_v32, %v1854_v32  ;;  %v1867_v36 = vld [vmem:[%s2044_s0 + $0x18] sm:$0xff] }
  0x25   :  { %974 = vmatprep.subr.bf16.mxu1 %v1385_v37  ;;  %v1473_v37 = vld [vmem:[%s2043_s1 + $0x204] ss:$8 sps:$4 sm:$0xff]  }
  0x27   :  { %934 = vmatpush2.bf16.msra.mxu0 %v1387_v38  ;;  %v1180_v38 = vcombine.high %v1867_v36, %v1867_v36 }
  0x28   :  { %975 = vmatpush2.bf16.msra.mxu1 %v1388_v39  ;;  %935 = vmatprep.subr.bf16.mxu0 %v1389_v40  ;;  %v1476_v39 = vld [vmem:[%s2043_s1 + $0x304] ss:$8 sps:$4 sm:$0xff]   ;;  %v1471_v40 = vld [vmem:[%s2043_s1 + $0x200] ss:$8 sps:$4 sm:$0xff]  }
  0x29   :  { %976 = vmatprep.subr.bf16.mxu1 %v1391_v41  ;;  %v1474_v41 = vld [vmem:[%s2043_s1 + $0x300] ss:$8 sps:$4 sm:$0xff]  }
  0x2b   :  { %936 = vmatpush2.bf16.msra.mxu0 %v1393_v42  ;;  %v1479_v42 = vld [vmem:[%s2043_s1 + $0x2f4] ss:$8 sps:$4 sm:$0xff]  }
  0x2c   :  { %977 = vmatpush2.bf16.msra.mxu1 %v1394_v43  ;;  %937 = vmatprep.subr.bf16.mxu0 %v1395_v44  ;;  %v1482_v43 = vld [vmem:[%s2043_s1 + $0x3f4] ss:$8 sps:$4 sm:$0xff]   ;;  %v1477_v44 = vld [vmem:[%s2043_s1 + $0x2f0] ss:$8 sps:$4 sm:$0xff]  }
  0x2d   :  { %978 = vmatprep.subr.bf16.mxu1 %v1397_v45  ;;  %v1480_v45 = vld [vmem:[%s2043_s1 + $0x3f0] ss:$8 sps:$4 sm:$0xff]  }
  0x2f   :  { %938 = vmatpush2.bf16.msra.mxu0 %v1399_v49  ;;  %v1486_v49 = vld [vmem:[%s2043_s1 + $0x3e0] ss:$8 sps:$4 sm:$0xff]  }
  0x30   :  { %979 = vmatpush2.bf16.msra.mxu1 %v1400_v50  ;;  %939 = vmatprep.subr.bf16.mxu0 %v1401_v52  ;;  %v1491_v50 = vld [vmem:[%s2043_s1 + $0x2d4] ss:$8 sps:$4 sm:$0xff]   ;;  %v1489_v52 = vld [vmem:[%s2043_s1 + $0x2d0] ss:$8 sps:$4 sm:$0xff]  }
  0x31   :  { %980 = vmatprep.subr.bf16.mxu1 %v1403_v53  ;;  %v1492_v53 = vld [vmem:[%s2043_s1 + $0x3d0] ss:$8 sps:$4 sm:$0xff]  }
  0x33   :  { %940 = vmatpush2.bf16.msra.mxu0 %v1405_v54  ;;  %v1497_v54 = vld [vmem:[%s2043_s1 + $0x2c4] ss:$8 sps:$4 sm:$0xff]  }
  0x34   :  { %981 = vmatpush2.bf16.msra.mxu1 %v1406_v55  ;;  %941 = vmatprep.subr.bf16.mxu0 %v1407_v56  ;;  %v1500_v55 = vld [vmem:[%s2043_s1 + $0x3c4] ss:$8 sps:$4 sm:$0xff]   ;;  %v1495_v56 = vld [vmem:[%s2043_s1 + $0x2c0] ss:$8 sps:$4 sm:$0xff]  }
  0x35   :  { %982 = vmatprep.subr.bf16.mxu1 %v1409_v57  ;;  %v1498_v57 = vld [vmem:[%s2043_s1 + $0x3c0] ss:$8 sps:$4 sm:$0xff]  }
  0x37   :  { %942 = vmatpush2.bf16.msra.mxu0 %v1411_v58  ;;  %v1503_v58 = vld [vmem:[%s2043_s1 + $0x2b4] ss:$8 sps:$4 sm:$0xff]  }
  0x38   :  { %983 = vmatpush2.bf16.msra.mxu1 %v1412_v59  ;;  %943 = vmatprep.subr.bf16.mxu0 %v1413_v60  ;;  %v1506_v59 = vld [vmem:[%s2043_s1 + $0x3b4] ss:$8 sps:$4 sm:$0xff]   ;;  %v1501_v60 = vld [vmem:[%s2043_s1 + $0x2b0] ss:$8 sps:$4 sm:$0xff]  }
  0x39   :  { %984 = vmatprep.subr.bf16.mxu1 %v1415_v61  ;;  %v1504_v61 = vld [vmem:[%s2043_s1 + $0x3b0] ss:$8 sps:$4 sm:$0xff]  }
  0x3b   :  { %944 = vmatpush2.bf16.msra.mxu0 %v1417_v62  ;;  %v1509_v62 = vld [vmem:[%s2043_s1 + $0x2a4] ss:$8 sps:$4 sm:$0xff]  }
  0x3c   :  { %985 = vmatpush2.bf16.msra.mxu1 %v1418_v63  ;;  %945 = vmatprep.subr.bf16.mxu0 %v1419_v0  ;;  %v1512_v63 = vld [vmem:[%s2043_s1 + $0x3a4] ss:$8 sps:$4 sm:$0xff]   ;;  %v1507_v0 = vld [vmem:[%s2043_s1 + $0x2a0] ss:$8 sps:$4 sm:$0xff]  }
  0x3d   :  { %986 = vmatprep.subr.bf16.mxu1 %v1421_v1  ;;  %v1510_v1 = vld [vmem:[%s2043_s1 + $0x3a0] ss:$8 sps:$4 sm:$0xff]  }
  0x3f   :  { %946 = vmatpush2.bf16.msra.mxu0 %v1423_v2  ;;  %v1515_v2 = vld [vmem:[%s2043_s1 + $0x294] ss:$8 sps:$4 sm:$0xff]  }
  0x40   :  { %987 = vmatpush2.bf16.msra.mxu1 %v1424_v3  ;;  %997 = vmatprep.subr.bf16.mxu0 %v1431_v4  ;;  %v1518_v3 = vld [vmem:[%s2043_s1 + $0x394] ss:$8 sps:$4 sm:$0xff]   ;;  %v1513_v4 = vld [vmem:[%s2043_s1 + $0x290] ss:$8 sps:$4 sm:$0xff]  }
  0x41   :  { %1038 = vmatprep.subr.bf16.mxu1 %v1434_v5  ;;  %v1516_v5 = vld [vmem:[%s2043_s1 + $0x390] ss:$8 sps:$4 sm:$0xff]  }
  0x42   :  { %948 = vmatmul.mubr.bf16.vlgmr.msra.gmra.mxu0 %v1173_v6  ;;  %v1521_v6 = vld [vmem:[%s2043_s1 + $0x284] ss:$8 sps:$4 sm:$0xff]  }
  0x43   :  { %989 = vmatmul.mubr.bf16.vlgmr.msra.gmra.mxu1 %v1175_v7  ;;  %998 = vmatpush1.bf16.msra.mxu0 %v1429_v8  ;;  %v1524_v7 = vld [vmem:[%s2043_s1 + $0x384] ss:$8 sps:$4 sm:$0xff]   ;;  %v1519_v8 = vld [vmem:[%s2043_s1 + $0x280] ss:$8 sps:$4 sm:$0xff]  }
  0x44   :  { %1039 = vmatpush1.bf16.msra.mxu1 %v1432_v9  ;;  %999 = vmatprep.subr.bf16.mxu0 %v1437_v10  ;;  %v1522_v9 = vld [vmem:[%s2043_s1 + $0x380] ss:$8 sps:$4 sm:$0xff]   ;;  %v1529_v10 = vld [vmem:[%s2043_s1 + $0x474] ss:$8 sps:$4 sm:$0xff]  }
  0x45   :  { %1040 = vmatprep.subr.bf16.mxu1 %v1440_v11  ;;  %1029 = vmatprep.mubr.bf16.mxu0 %v1178_v35  ;;  %v1177_v11 = vcombine.low %v1854_v32, %v1854_v32 }
  0x46   :  { %1070 = vmatprep.mubr.bf16.mxu1 %v1180_v38 }
  0x47   :  { %1000 = vmatpush1.bf16.msra.mxu0 %v1435_v12  ;;  %v1179_v12 = vcombine.low %v1867_v36, %v1867_v36 }
  0x48   :  { %1041 = vmatpush1.bf16.msra.mxu1 %v1438_v13  ;;  %1001 = vmatprep.subr.bf16.mxu0 %v1443_v14  ;;  %v1527_v13 = vld [vmem:[%s2043_s1 + $0x470] ss:$8 sps:$4 sm:$0xff]   ;;  %v1534_v14 = vld [vmem:[%s2043_s1 + $0x464] ss:$8 sps:$4 sm:$0xff]  }
  0x49   :  { %1042 = vmatprep.subr.bf16.mxu1 %v1446_v15  ;;  %v1532_v15 = vld [vmem:[%s2043_s1 + $0x460] ss:$8 sps:$4 sm:$0xff]  }
  0x4b   :  { %1002 = vmatpush1.bf16.msra.mxu0 %v1441_v16  ;;  %v1554_v16 = vmov 0  }
  0x4c   :  { %1043 = vmatpush1.bf16.msra.mxu1 %v1444_v17  ;;  %1003 = vmatprep.subr.bf16.mxu0 %v1449_v18  ;;  %v1537_v17 = vld [vmem:[%s2043_s1 + $0x454] ss:$8 sps:$4 sm:$0xff]   ;;  %v1535_v18 = vld [vmem:[%s2043_s1 + $0x450] ss:$8 sps:$4 sm:$0xff]  }
  0x4d   :  { %1044 = vmatprep.subr.bf16.mxu1 %v1452_v19  ;;  %v1540_v19 = vld [vmem:[%s2043_s1 + $0x444] ss:$8 sps:$4 sm:$0xff]  }
  0x4f   :  { %1004 = vmatpush1.bf16.msra.mxu0 %v1447_v20  ;;  %v1538_v20 = vld [vmem:[%s2043_s1 + $0x440] ss:$8 sps:$4 sm:$0xff]  }
  0x50   :  { %1045 = vmatpush1.bf16.msra.mxu1 %v1450_v21  ;;  %1005 = vmatprep.subr.bf16.mxu0 %v1455_v22  ;;  %v1543_v21 = vld [vmem:[%s2043_s1 + $0x434] ss:$8 sps:$4 sm:$0xff]   ;;  %v1541_v22 = vld [vmem:[%s2043_s1 + $0x430] ss:$8 sps:$4 sm:$0xff]  }
  0x51   :  { %1046 = vmatprep.subr.bf16.mxu1 %v1458_v23  ;;  %v1546_v23 = vld [vmem:[%s2043_s1 + $0x424] ss:$8 sps:$4 sm:$0xff]  }
  0x53   :  { %1006 = vmatpush1.bf16.msra.mxu0 %v1453_v24  ;;  %v1544_v24 = vld [vmem:[%s2043_s1 + $0x420] ss:$8 sps:$4 sm:$0xff]  }
  0x54   :  { %1047 = vmatpush1.bf16.msra.mxu1 %v1456_v25  ;;  %1007 = vmatprep.subr.bf16.mxu0 %v1461_v26  ;;  %v1549_v25 = vld [vmem:[%s2043_s1 + $0x414] ss:$8 sps:$4 sm:$0xff]   ;;  %v1547_v26 = vld [vmem:[%s2043_s1 + $0x410] ss:$8 sps:$4 sm:$0xff]  }
  0x55   :  { %1048 = vmatprep.subr.bf16.mxu1 %v1464_v27  ;;  %v1552_v27 = vld [vmem:[%s2043_s1 + $0x404] ss:$8 sps:$4 sm:$0xff]  }
  0x57   :  { %1008 = vmatpush1.bf16.msra.mxu0 %v1459_v28  ;;  %v1550_v28 = vld [vmem:[%s2043_s1 + $0x400] ss:$8 sps:$4 sm:$0xff]  }
  0x58   :  { %1049 = vmatpush1.bf16.msra.mxu1 %v1462_v29  ;;  %1009 = vmatprep.subr.bf16.mxu0 %v1467_v30  ;;  %v1553_v29 = vld [vmem:[%s2044_s0 + $0x20] ss:$0 sps:$4 sm:$0xff]  }
  0x59   :  { %1050 = vmatprep.subr.bf16.mxu1 %v1470_v31 }
  0x5b   :  { %1010 = vmatpush1.bf16.msra.mxu0 %v1465_v33 }
  0x5c   :  { %1051 = vmatpush1.bf16.msra.mxu1 %v1468_v34  ;;  %1011 = vmatprep.subr.bf16.mxu0 %v1473_v37 }
  0x5d   :  { %1052 = vmatprep.subr.bf16.mxu1 %v1476_v39 }
  0x5f   :  { %1012 = vmatpush1.bf16.msra.mxu0 %v1471_v40 }
  0x60   :  { %1053 = vmatpush1.bf16.msra.mxu1 %v1474_v41  ;;  %1013 = vmatprep.subr.bf16.mxu0 %v1479_v42 }
  0x61   :  { %1054 = vmatprep.subr.bf16.mxu1 %v1482_v43 }
  0x63   :  { %1014 = vmatpush2.bf16.msra.mxu0 %v1477_v44 }
  0x64   :  { %1055 = vmatpush2.bf16.msra.mxu1 %v1480_v45  ;;  %1015 = vmatprep.subr.bf16.mxu0 %v1485_v46 }
  0x65   :  { %1056 = vmatprep.subr.bf16.mxu1 %v1488_v47 }
  0x67   :  { %1016 = vmatpush2.bf16.msra.mxu0 %v1483_v48 }
  0x68   :  { %1057 = vmatpush2.bf16.msra.mxu1 %v1486_v49  ;;  %1017 = vmatprep.subr.bf16.mxu0 %v1491_v50 }
  0x69   :  { %1058 = vmatprep.subr.bf16.mxu1 %v1494_v51 }
  0x6b   :  { %1018 = vmatpush2.bf16.msra.mxu0 %v1489_v52 }
  0x6c   :  { %1059 = vmatpush2.bf16.msra.mxu1 %v1492_v53  ;;  %1019 = vmatprep.subr.bf16.mxu0 %v1497_v54 }
  0x6d   :  { %1060 = vmatprep.subr.bf16.mxu1 %v1500_v55 }
  0x6f   :  { %1020 = vmatpush2.bf16.msra.mxu0 %v1495_v56 }
  0x70   :  { %1061 = vmatpush2.bf16.msra.mxu1 %v1498_v57  ;;  %1021 = vmatprep.subr.bf16.mxu0 %v1503_v58 }
  0x71   :  { %1062 = vmatprep.subr.bf16.mxu1 %v1506_v59 }
  0x73   :  { %1022 = vmatpush2.bf16.msra.mxu0 %v1501_v60 }
  0x74   :  { %1063 = vmatpush2.bf16.msra.mxu1 %v1504_v61  ;;  %1023 = vmatprep.subr.bf16.mxu0 %v1509_v62 }
  0x75   :  { %1064 = vmatprep.subr.bf16.mxu1 %v1512_v63  ;;  %v1155_v63 = vlaneseq }
  0x77   :  { %1024 = vmatpush2.bf16.msra.mxu0 %v1507_v0 }
  0x78   :  { %1065 = vmatpush2.bf16.msra.mxu1 %v1510_v1  ;;  %1025 = vmatprep.subr.bf16.mxu0 %v1515_v2 }
  0x79   :  { %1066 = vmatprep.subr.bf16.mxu1 %v1518_v3 }
  0x7b   :  { %1026 = vmatpush2.bf16.msra.mxu0 %v1513_v4 }
  0x7c   :  { %1067 = vmatpush2.bf16.msra.mxu1 %v1516_v5  ;;  %1027 = vmatprep.subr.bf16.mxu0 %v1521_v6 }
  0x7d   :  { %1068 = vmatprep.subr.bf16.mxu1 %v1524_v7 }
  0x7f   :  { %1028 = vmatpush2.bf16.msra.mxu0 %v1519_v8 }
  0x80   :  { %1069 = vmatpush2.bf16.msra.mxu1 %v1522_v9  ;;  %1079 = vmatprep.subr.bf16.mxu0 %v1529_v10  ;;  %v1156_v9 = vshrl.u32 %v1155_v63, 7 }
  0x82   :  { %1030 = vmatmul.mubr.bf16.vlgmr.msra.gmra.mxu0 %v1177_v11  ;;  %vm1158_vm0 = vcmp.eq.s32.totalorder %v1156_v9, 1  ;;  %vm1157_vm1 = vcmp.eq.s32.totalorder %v1156_v9, 0 }
  0x83   :  { %1071 = vmatmul.mubr.bf16.vlgmr.msra.gmra.mxu1 %v1179_v12  ;;  %1080 = vmatpush1.bf16.msra.mxu0 %v1527_v13 }
  0x84   :  { %1111 = vmatprep.mubr.bf16.mxu0 %v1554_v16  ;;  %1081 = vmatprep.subr.bf16.mxu0 %v1534_v14 }
  0x87   :  { %1082 = vmatpush1.bf16.msra.mxu0 %v1532_v15 }
  0x88   :  { %1083 = vmatprep.subr.bf16.mxu0 %v1537_v17 }
  0x8b   :  { %1084 = vmatpush1.bf16.msra.mxu0 %v1535_v18 }
  0x8c   :  { %1085 = vmatprep.subr.bf16.mxu0 %v1540_v19 }
  0x8f   :  { %1086 = vmatpush1.bf16.msra.mxu0 %v1538_v20 }
  0x90   :  { %1087 = vmatprep.subr.bf16.mxu0 %v1543_v21 }
  0x93   :  { %1088 = vmatpush1.bf16.msra.mxu0 %v1541_v22 }
  0x94   :  { %1089 = vmatprep.subr.bf16.mxu0 %v1546_v23 }
  0x97   :  { %1090 = vmatpush1.bf16.msra.mxu0 %v1544_v24 }
  0x98   :  { %1091 = vmatprep.subr.bf16.mxu0 %v1549_v25 }
  0x9b   :  { %1092 = vmatpush1.bf16.msra.mxu0 %v1547_v26 }
  0x9c   :  { %1093 = vmatprep.subr.bf16.mxu0 %v1552_v27 }
  0x9f   :  { %1094 = vmatpush1.bf16.msra.mxu0 %v1550_v28 }
  0xa2   :  { %1112 = vmatmul.mubr.bf16.vlgmr.msra.gmra.mxu0 %v1553_v29 }
 0x102   :  { %v949_v30 = vpop.f32.mrf.mxu0 }
 0x103   :  { %v990_v31 = vpop.f32.mrf.mxu1 }
 0x104   :  { %v991_v32 = vadd.f32 %v990_v31, %v949_v30  ;;  %v951_v33 = vpop.f32.mrf.mxu0 }
 0x105   :  { %v992_v34 = vpop.f32.mrf.mxu1 }
 0x106   :  { %v993_v35 = vadd.f32 %v992_v34, %v951_v33  ;;  %v953_v36 = vpop.f32.mrf.mxu0 }
 0x107   :  { %v994_v37 = vpop.f32.mrf.mxu1 }
 0x108   :  { %v954_v38 = vpop.f32.mrf.mxu0 }
 0x109   :  { %v995_v39 = vpop.f32.mrf.mxu1 }
 0x142   :  { %v1031_v40 = vpop.f32.mrf.mxu0 }
 0x143   :  { %v1072_v41 = vpop.f32.mrf.mxu1  ;;  %v1032_v48 = vadd.f32 %v1031_v40, %v991_v32 }
 0x144   :  { %v1033_v42 = vpop.f32.mrf.mxu0 }
 0x145   :  { %v1074_v43 = vpop.f32.mrf.mxu1  ;;  %v1034_v49 = vadd.f32 %v1033_v42, %v993_v35  ;;  %v1073_v50 = vadd.f32 %v1072_v41, %v1032_v48 }
 0x146   :  { %v1035_v44 = vpop.f32.mrf.mxu0 }
 0x147   :  { %v1076_v45 = vpop.f32.mrf.mxu1  ;;  %v1075_v52 = vadd.f32 %v1074_v43, %v1034_v49 }
 0x148   :  { %v1036_v46 = vpop.f32.mrf.mxu0 }
 0x149   :  { %v1077_v47 = vpop.f32.mrf.mxu1 }
 0x162   :  { %v1113_v51 = vpop.f32.mrf.mxu0 }
 0x163   :  { %v1114_v53 = vadd.f32 %v1113_v51, %v1073_v50 }
 0x164   :  { %v1115_v54 = vpop.f32.mrf.mxu0 }
 0x165   :  { %v1129_v55 = vrot.slane %v1114_v53, 4  ;;  %v1141_v56 = vmul.f32 %v1114_v53, %v1114_v53  ;;  %v1116_v57 = vadd.f32 %v1115_v54, %v1075_v52 }
 0x166   :  { %v1117_v58 = vpop.f32.mrf.mxu0 }
 0x167   :  { %v1130_v59 = vadd.f32 %v1129_v55, %v1114_v53  ;;  %v1143_v60 = vrot.slane %v1141_v56, 4  ;;  %v1327_v61 = vpack.c.bf16 %v1116_v57, %v1114_v53  ;;  %v1135_v62 = vrot.slane %v1116_v57, 4 }
 0x168   :  { %v1142_v0 = vmul.f32 %v1116_v57, %v1116_v57  ;;  %v1118_v1 = vpop.f32.mrf.mxu0 }
 0x169   :  { %v1131_v2 = vrot.slane %v1130_v59, 2  ;;  %v1144_v3 = vadd.f32 %v1143_v60, %v1141_v56  ;;  %1128 = vst [vmem:[%s2045_s2] sm:$0xff] %v1327_v61  ;;  %v1136_v4 = vadd.f32 %v1135_v62, %v1116_v57 }
 0x16a   :  { %v1149_v5 = vrot.slane %v1142_v0, 4 }
 0x16b   :  { %v1132_v6 = vadd.f32 %v1131_v2, %v1130_v59  ;;  %v1145_v7 = vrot.slane %v1144_v3, 2  ;;  %v1137_v8 = vrot.slane %v1136_v4, 2 }
 0x16c   :  { %v1150_v10 = vadd.f32 %v1149_v5, %v1142_v0 }
 0x16d   :  { %v1146_v11 = vadd.f32 %v1145_v7, %v1144_v3  ;;  %v1138_v12 = vadd.f32 %v1137_v8, %v1136_v4  ;;  %v1133_v13 = vrot.slane %v1132_v6, 1 }
 0x16e   :  { %v1151_v14 = vrot.slane %v1150_v10, 2 }
 0x16f   :  { %v1147_v15 = vrot.slane %v1146_v11, 1  ;;  %v1139_v18 = vrot.slane %v1138_v12, 1  ;;  %v1134_v19 = vadd.f32 %v1133_v13, %v1132_v6 }
 0x170   :  { %v1152_v16 = vadd.f32 %v1151_v14, %v1150_v10 }
 0x171   :  { %v1148_v17 = vadd.f32 %v1147_v15, %v1146_v11  ;;  %v1140_v24 = vadd.f32 %v1139_v18, %v1138_v12 }
 0x172   :  { %v1153_v20 = vrot.slane %v1152_v16, 1 }
 0x173   :  { %v1159_v21 = vsel %vm1158_vm0, %v1148_v17, 0.0 }
 0x174   :  { %v1161_v22 = vsel %vm1157_vm1, %v1134_v19, %v1159_v21  ;;  %v1154_v23 = vadd.f32 %v1153_v20, %v1152_v16 }
 0x175   :  { %1163 = vst [vmem:[%s2046_s3] sm:$0xff] %v1161_v22 }
 0x176   :  { %v1160_v25 = vsel %vm1158_vm0, %v1154_v23, 0.0 }
 0x177   :  { %v1162_v26 = vsel %vm1157_vm1, %v1140_v24, %v1160_v25 }
 0x178   :  { %1164 = vst [vmem:[%s2046_s3 + $0x8] sm:$0xff] %v1162_v26 }

// kernel: resnet_forward.53
= control target key start
LH: loop header
LB: loop body
LE: loop exit
PB: predicated region body
PF: predicated region fallthrough
CT: control target
= control target key end

     0   :  { %v28_v0 = vlaneseq  ;;  %s160_s0 = inlined_call_operand.vmem [shape: bf16[8,256], index: 0, kind: input, shape index: {}]   ;;  %s161_s1 = inlined_call_operand.vmem [shape: f32[1,256], index: 1, kind: input, shape index: {}]   ;;  %s162_s2 = inlined_call_operand.vmem [shape: f32[1,256], index: 2, kind: input, shape index: {}]   ;;  %s163_s3 = inlined_call_operand.vmem [shape: bf16[8,256], index: 3, kind: input, shape index: {}]   ;;  %s164_s4 = inlined_call_operand.vmem [shape: f32[1,256], index: 4, kind: input, shape index: {}]   ;;  %s165_s5 = inlined_call_operand.vmem [shape: f32[1,256], index: 5, kind: input, shape index: {}]   ;;  %s166_s6 = inlined_call_operand.vmem [shape: bf16[8,256], index: 6, kind: output, shape index: {}]  }
   0x1   :  { %v23_v1 = vld [vmem:[%s160_s0] sm:$0xff] }
   0x2   :  { %v29_v2 = vshrl.u32 %v28_v0, 7  ;;  %v54_v3 = vld [vmem:[%s163_s3] sm:$0xff]  ;;  %v24_v6 = vunpack.c.l.bf16 %v23_v1  ;;  %v25_v7 = vunpack.c.h.bf16 %v23_v1 }
   0x3   :  { %v26_v4 = vld [vmem:[%s161_s1] sm:$0x3]  ;;  %v55_v12 = vunpack.c.l.bf16 %v54_v3  ;;  %v56_v13 = vunpack.c.h.bf16 %v54_v3 }
   0x4   :  { %v40_v5 = vld [vmem:[%s162_s2] sm:$0x3]  ;;  %v30_v8 = vsub.s32 0, %v29_v2  ;;  %v34_v9 = vsub.s32 1, %v29_v2 }
   0x5   :  { %v57_v10 = vld [vmem:[%s164_s4] sm:$0x3] }
   0x6   :  { %v71_v11 = vld [vmem:[%s165_s5] sm:$0x3]  ;;  %v31_v14 = vrot.slane %v26_v4, %v30_v8  ;;  %v35_v15 = vrot.slane %v26_v4, %v34_v9  ;;  %v45_v16 = vrot.slane %v40_v5, %v30_v8  ;;  %v49_v17 = vrot.slane %v40_v5, %v34_v9 }
   0x7   :  { %v62_v18 = vrot.slane %v57_v10, %v30_v8  ;;  %v66_v19 = vrot.slane %v57_v10, %v34_v9  ;;  %v76_v20 = vrot.slane %v71_v11, %v30_v8  ;;  %v80_v21 = vrot.slane %v71_v11, %v34_v9 }
   0x8   :  { %v38_v22 = vmul.f32 %v31_v14, %v24_v6  ;;  %v39_v23 = vmul.f32 %v35_v15, %v25_v7 }
   0x9   :  { %v69_v24 = vmul.f32 %v62_v18, %v55_v12  ;;  %v70_v25 = vmul.f32 %v66_v19, %v56_v13 }
   0xa   :  { %v52_v26 = vadd.f32 %v45_v16, %v38_v22  ;;  %v53_v27 = vadd.f32 %v49_v17, %v39_v23 }
   0xb   :  { %v83_v28 = vadd.f32 %v76_v20, %v69_v24  ;;  %v84_v29 = vadd.f32 %v80_v21, %v70_v25 }
   0xd   :  { %v85_v30 = vadd.f32 %v83_v28, %v52_v26  ;;  %v86_v31 = vadd.f32 %v84_v29, %v53_v27 }
   0xf   :  { %v87_v32 = vmax.f32 %v85_v30, 0.0  ;;  %v88_v33 = vmax.f32 %v86_v31, 0.0 }
  0x11   :  { %v103_v34 = vpack.c.bf16 %v88_v33, %v87_v32 }
  0x13   :  { %97 = vst [vmem:[%s166_s6] sm:$0xff] %v103_v34 }

// kernel: resnet_forward.57
= control target key start
LH: loop header
LB: loop body
LE: loop exit
PB: predicated region body
PF: predicated region fallthrough
CT: control target
= control target key end

     0   :  { %v22_v0 = vlaneseq  ;;  %s110_s0 = inlined_call_operand.vmem [shape: bf16[8,256], index: 0, kind: input, shape index: {}]   ;;  %s111_s1 = inlined_call_operand.vmem [shape: f32[1,256], index: 1, kind: input, shape index: {}]   ;;  %s112_s2 = inlined_call_operand.vmem [shape: f32[1,256], index: 2, kind: input, shape index: {}]   ;;  %s113_s3 = inlined_call_operand.vmem [shape: bf16[8,256], index: 3, kind: input, shape index: {}]   ;;  %s114_s4 = inlined_call_operand.vmem [shape: bf16[8,256], index: 4, kind: output, shape index: {}]  }
   0x1   :  { %v17_v1 = vld [vmem:[%s110_s0] sm:$0xff] }
   0x2   :  { %v23_v2 = vshrl.u32 %v22_v0, 7  ;;  %v20_v3 = vld [vmem:[%s111_s1] sm:$0x3]  ;;  %v18_v5 = vunpack.c.l.bf16 %v17_v1  ;;  %v19_v6 = vunpack.c.h.bf16 %v17_v1 }
   0x3   :  { %v34_v4 = vld [vmem:[%s112_s2] sm:$0x3] }
   0x4   :  { %v24_v7 = vsub.s32 0, %v23_v2  ;;  %v28_v8 = vsub.s32 1, %v23_v2  ;;  %v48_v9 = vld [vmem:[%s113_s3] sm:$0xff] }
   0x5   :  { %v49_v16 = vunpack.c.l.bf16 %v48_v9  ;;  %v50_v17 = vunpack.c.h.bf16 %v48_v9 }
   0x6   :  { %v25_v10 = vrot.slane %v20_v3, %v24_v7  ;;  %v29_v11 = vrot.slane %v20_v3, %v28_v8  ;;  %v39_v12 = vrot.slane %v34_v4, %v24_v7  ;;  %v43_v13 = vrot.slane %v34_v4, %v28_v8 }
   0x8   :  { %v32_v14 = vmul.f32 %v25_v10, %v18_v5  ;;  %v33_v15 = vmul.f32 %v29_v11, %v19_v6 }
   0xa   :  { %v46_v18 = vadd.f32 %v39_v12, %v32_v14  ;;  %v47_v19 = vadd.f32 %v43_v13, %v33_v15 }
   0xc   :  { %v51_v20 = vadd.f32 %v49_v16, %v46_v18  ;;  %v52_v21 = vadd.f32 %v50_v17, %v47_v19 }
   0xe   :  { %v53_v22 = vmax.f32 %v51_v20, 0.0  ;;  %v54_v23 = vmax.f32 %v52_v21, 0.0 }
  0x10   :  { %v69_v24 = vpack.c.bf16 %v54_v23, %v53_v22 }
  0x12   :  { %63 = vst [vmem:[%s114_s4] sm:$0xff] %v69_v24 }

// kernel: resnet_forward.51
= control target key start
LH: loop header
LB: loop body
LE: loop exit
PB: predicated region body
PF: predicated region fallthrough
CT: control target
= control target key end

     0   :  { %s3961_s1 = inlined_call_operand.vmem [shape: bf16[2304,256], index: 1, kind: input, shape index: {}]   ;;  %s3962_s0 = inlined_call_operand.vmem [shape: bf16[8,2304], index: 0, kind: input, shape index: {}]   ;;  %s3963_s2 = inlined_call_operand.vmem [shape: bf16[8,256], index: 2, kind: output, shape index: {0}]   ;;  %s3964_s3 = inlined_call_operand.vmem [shape: f32[8,256], index: 3, kind: output, shape index: {1}]  }
   0x1   :  { %v2543_v0 = vld [vmem:[%s3961_s1 + $0x74] ss:$8 sps:$4 sm:$0xff]   ;;  %v2547_v2 = vld [vmem:[%s3961_s1 + $0x70] ss:$8 sps:$4 sm:$0xff]   ;;  %v2549_v4 = vld [vmem:[%s3961_s1 + $0x64] ss:$8 sps:$4 sm:$0xff]  }
   0x2   :  { %v2545_v1 = vld [vmem:[%s3961_s1 + $0x174] ss:$8 sps:$4 sm:$0xff]   ;;  %1813 = vmatprep.subr.bf16.mxu0 %v2543_v0  ;;  %v2548_v3 = vld [vmem:[%s3961_s1 + $0x170] ss:$8 sps:$4 sm:$0xff]   ;;  %v2551_v5 = vld [vmem:[%s3961_s1 + $0x164] ss:$8 sps:$4 sm:$0xff]  }
   0x3   :  { %1854 = vmatprep.subr.bf16.mxu1 %v2545_v1  ;;  %1814 = vmatpush1.bf16.msra.mxu0 %v2547_v2  ;;  %v2553_v6 = vld [vmem:[%s3961_s1 + $0x60] ss:$8 sps:$4 sm:$0xff]   ;;  %v2555_v8 = vld [vmem:[%s3961_s1 + $0x54] ss:$8 sps:$4 sm:$0xff]   ;;  %v2559_v10 = vld [vmem:[%s3961_s1 + $0x50] ss:$8 sps:$4 sm:$0xff]  }
   0x4   :  { %1855 = vmatpush1.bf16.msra.mxu1 %v2548_v3  ;;  %1815 = vmatprep.subr.bf16.mxu0 %v2549_v4  ;;  %v2554_v7 = vld [vmem:[%s3961_s1 + $0x160] ss:$8 sps:$4 sm:$0xff]   ;;  %v2557_v9 = vld [vmem:[%s3961_s1 + $0x154] ss:$8 sps:$4 sm:$0xff]   ;;  %v2560_v11 = vld [vmem:[%s3961_s1 + $0x150] ss:$8 sps:$4 sm:$0xff]  }
   0x5   :  { %1856 = vmatprep.subr.bf16.mxu1 %v2551_v5  ;;  %v2561_v12 = vld [vmem:[%s3961_s1 + $0x44] ss:$8 sps:$4 sm:$0xff]   ;;  %v2565_v14 = vld [vmem:[%s3961_s1 + $0x40] ss:$8 sps:$4 sm:$0xff]   ;;  %v2567_v16 = vld [vmem:[%s3961_s1 + $0x34] ss:$8 sps:$4 sm:$0xff]  }
   0x6   :  { %v2563_v13 = vld [vmem:[%s3961_s1 + $0x144] ss:$8 sps:$4 sm:$0xff]   ;;  %v2566_v15 = vld [vmem:[%s3961_s1 + $0x140] ss:$8 sps:$4 sm:$0xff]   ;;  %v2569_v17 = vld [vmem:[%s3961_s1 + $0x134] ss:$8 sps:$4 sm:$0xff]  }
   0x7   :  { %1816 = vmatpush1.bf16.msra.mxu0 %v2553_v6  ;;  %v2571_v18 = vld [vmem:[%s3961_s1 + $0x30] ss:$8 sps:$4 sm:$0xff]   ;;  %v2573_v20 = vld [vmem:[%s3961_s1 + $0x24] ss:$8 sps:$4 sm:$0xff]   ;;  %v2577_v22 = vld [vmem:[%s3961_s1 + $0x20] ss:$8 sps:$4 sm:$0xff]  }
   0x8   :  { %1857 = vmatpush1.bf16.msra.mxu1 %v2554_v7  ;;  %1817 = vmatprep.subr.bf16.mxu0 %v2555_v8  ;;  %v2572_v19 = vld [vmem:[%s3961_s1 + $0x130] ss:$8 sps:$4 sm:$0xff]   ;;  %v2575_v21 = vld [vmem:[%s3961_s1 + $0x124] ss:$8 sps:$4 sm:$0xff]   ;;  %v2578_v23 = vld [vmem:[%s3961_s1 + $0x120] ss:$8 sps:$4 sm:$0xff]  }
   0x9   :  { %1858 = vmatprep.subr.bf16.mxu1 %v2557_v9  ;;  %v2579_v24 = vld [vmem:[%s3961_s1 + $0x14] ss:$8 sps:$4 sm:$0xff]   ;;  %v2583_v26 = vld [vmem:[%s3961_s1 + $0x10] ss:$8 sps:$4 sm:$0xff]   ;;  %v2585_v28 = vld [vmem:[%s3961_s1 + $0x4] ss:$8 sps:$4 sm:$0xff]  }
   0xa   :  { %v2581_v25 = vld [vmem:[%s3961_s1 + $0x114] ss:$8 sps:$4 sm:$0xff]   ;;  %v2584_v27 = vld [vmem:[%s3961_s1 + $0x110] ss:$8 sps:$4 sm:$0xff]   ;;  %v2587_v29 = vld [vmem:[%s3961_s1 + $0x104] ss:$8 sps:$4 sm:$0xff]  }
   0xb   :  { %1818 = vmatpush1.bf16.msra.mxu0 %v2559_v10  ;;  %v2589_v30 = vld [vmem:[%s3961_s1] ss:$8 sps:$4 sm:$0xff]   ;;  %v2591_v32 = vld [vmem:[%s3961_s1 + $0xf4] ss:$8 sps:$4 sm:$0xff]   ;;  %v2595_v34 = vld [vmem:[%s3961_s1 + $0xf0] ss:$8 sps:$4 sm:$0xff]  }
   0xc   :  { %1859 = vmatpush1.bf16.msra.mxu1 %v2560_v11  ;;  %1819 = vmatprep.subr.bf16.mxu0 %v2561_v12  ;;  %v2590_v31 = vld [vmem:[%s3961_s1 + $0x100] ss:$8 sps:$4 sm:$0xff]   ;;  %v2593_v33 = vld [vmem:[%s3961_s1 + $0x1f4] ss:$8 sps:$4 sm:$0xff]   ;;  %v2596_v35 = vld [vmem:[%s3961_s1 + $0x1f0] ss:$8 sps:$4 sm:$0xff]  }
   0xd   :  { %1860 = vmatprep.subr.bf16.mxu1 %v2563_v13  ;;  %v2597_v36 = vld [vmem:[%s3961_s1 + $0xe4] ss:$8 sps:$4 sm:$0xff]   ;;  %v2601_v38 = vld [vmem:[%s3961_s1 + $0xe0] ss:$8 sps:$4 sm:$0xff]   ;;  %v2603_v40 = vld [vmem:[%s3961_s1 + $0xd4] ss:$8 sps:$4 sm:$0xff]  }
   0xe   :  { %v2599_v37 = vld [vmem:[%s3961_s1 + $0x1e4] ss:$8 sps:$4 sm:$0xff]   ;;  %v2602_v39 = vld [vmem:[%s3961_s1 + $0x1e0] ss:$8 sps:$4 sm:$0xff]   ;;  %v2605_v41 = vld [vmem:[%s3961_s1 + $0x1d4] ss:$8 sps:$4 sm:$0xff]  }
   0xf   :  { %1820 = vmatpush1.bf16.msra.mxu0 %v2565_v14  ;;  %v2607_v42 = vld [vmem:[%s3961_s1 + $0xd0] ss:$8 sps:$4 sm:$0xff]   ;;  %v2609_v44 = vld [vmem:[%s3961_s1 + $0xc4] ss:$8 sps:$4 sm:$0xff]   ;;  %v2613_v49 = vld [vmem:[%s3961_s1 + $0xc0] ss:$8 sps:$4 sm:$0xff]  }
  0x10   :  { %1861 = vmatpush1.bf16.msra.mxu1 %v2566_v15  ;;  %1821 = vmatprep.subr.bf16.mxu0 %v2567_v16  ;;  %v2608_v43 = vld [vmem:[%s3961_s1 + $0x1d0] ss:$8 sps:$4 sm:$0xff]   ;;  %v2611_v45 = vld [vmem:[%s3961_s1 + $0x1c4] ss:$8 sps:$4 sm:$0xff]   ;;  %v2614_v50 = vld [vmem:[%s3961_s1 + $0x1c0] ss:$8 sps:$4 sm:$0xff]  }
  0x11   :  { %1862 = vmatprep.subr.bf16.mxu1 %v2569_v17  ;;  %v13_v46 = vld [vmem:[%s3962_s0] sm:$0xff]  ;;  %v14_v48 = vld [vmem:[%s3962_s0 + $0x8] sm:$0xff]  ;;  %v2615_v52 = vld [vmem:[%s3961_s1 + $0xb4] ss:$8 sps:$4 sm:$0xff]  }
  0x12   :  { %v2236_v47 = vcombine.high %v13_v46, %v13_v46  ;;  %v2238_v51 = vcombine.high %v14_v48, %v14_v48  ;;  %v2617_v53 = vld [vmem:[%s3961_s1 + $0x1b4] ss:$8 sps:$4 sm:$0xff]   ;;  %v2619_v54 = vld [vmem:[%s3961_s1 + $0xb0] ss:$8 sps:$4 sm:$0xff]   ;;  %v2621_v56 = vld [vmem:[%s3961_s1 + $0xa4] ss:$8 sps:$4 sm:$0xff]   ;;  %v2235_v6 = vcombine.low %v13_v46, %v13_v46  ;;  %v2237_v7 = vcombine.low %v14_v48, %v14_v48 }
  0x13   :  { %1822 = vmatpush1.bf16.msra.mxu0 %v2571_v18  ;;  %v2620_v55 = vld [vmem:[%s3961_s1 + $0x1b0] ss:$8 sps:$4 sm:$0xff]   ;;  %v2623_v57 = vld [vmem:[%s3961_s1 + $0x1a4] ss:$8 sps:$4 sm:$0xff]   ;;  %v2625_v58 = vld [vmem:[%s3961_s1 + $0xa0] ss:$8 sps:$4 sm:$0xff]  }
  0x14   :  { %1863 = vmatpush1.bf16.msra.mxu1 %v2572_v19  ;;  %1823 = vmatprep.subr.bf16.mxu0 %v2573_v20  ;;  %v2626_v59 = vld [vmem:[%s3961_s1 + $0x1a0] ss:$8 sps:$4 sm:$0xff]   ;;  %v2627_v60 = vld [vmem:[%s3961_s1 + $0x94] ss:$8 sps:$4 sm:$0xff]   ;;  %v2631_v62 = vld [vmem:[%s3961_s1 + $0x90] ss:$8 sps:$4 sm:$0xff]  }
  0x15   :  { %1864 = vmatprep.subr.bf16.mxu1 %v2575_v21  ;;  %1845 = vmatprep.mubr.bf16.mxu0 %v2236_v47  ;;  %v2629_v61 = vld [vmem:[%s3961_s1 + $0x194] ss:$8 sps:$4 sm:$0xff]   ;;  %v2632_v63 = vld [vmem:[%s3961_s1 + $0x190] ss:$8 sps:$4 sm:$0xff]   ;;  %v2633_v0 = vld [vmem:[%s3961_s1 + $0x84] ss:$8 sps:$4 sm:$0xff]  }
  0x16   :  { %1886 = vmatprep.mubr.bf16.mxu1 %v2238_v51  ;;  %v2635_v1 = vld [vmem:[%s3961_s1 + $0x184] ss:$8 sps:$4 sm:$0xff]   ;;  %v2637_v2 = vld [vmem:[%s3961_s1 + $0x80] ss:$8 sps:$4 sm:$0xff]   ;;  %v2645_v4 = vld [vmem:[%s3961_s1 + $0x274] ss:$8 sps:$4 sm:$0xff]  }
  0x17   :  { %1824 = vmatpush1.bf16.msra.mxu0 %v2577_v22  ;;  %v2638_v3 = vld [vmem:[%s3961_s1 + $0x180] ss:$8 sps:$4 sm:$0xff]   ;;  %v2648_v5 = vld [vmem:[%s3961_s1 + $0x374] ss:$8 sps:$4 sm:$0xff]   ;;  %v2643_v8 = vld [vmem:[%s3961_s1 + $0x270] ss:$8 sps:$4 sm:$0xff]  }
  0x18   :  { %1865 = vmatpush1.bf16.msra.mxu1 %v2578_v23  ;;  %1825 = vmatprep.subr.bf16.mxu0 %v2579_v24  ;;  %v2646_v9 = vld [vmem:[%s3961_s1 + $0x370] ss:$8 sps:$4 sm:$0xff]   ;;  %v2651_v10 = vld [vmem:[%s3961_s1 + $0x264] ss:$8 sps:$4 sm:$0xff]   ;;  %v2649_v12 = vld [vmem:[%s3961_s1 + $0x260] ss:$8 sps:$4 sm:$0xff]  }
  0x19   :  { %1866 = vmatprep.subr.bf16.mxu1 %v2581_v25  ;;  %v2654_v11 = vld [vmem:[%s3961_s1 + $0x364] ss:$8 sps:$4 sm:$0xff]   ;;  %v2652_v13 = vld [vmem:[%s3961_s1 + $0x360] ss:$8 sps:$4 sm:$0xff]   ;;  %v2657_v14 = vld [vmem:[%s3961_s1 + $0x254] ss:$8 sps:$4 sm:$0xff]  }
  0x1a   :  { %v2660_v15 = vld [vmem:[%s3961_s1 + $0x354] ss:$8 sps:$4 sm:$0xff]   ;;  %v2655_v16 = vld [vmem:[%s3961_s1 + $0x250] ss:$8 sps:$4 sm:$0xff]   ;;  %v2663_v18 = vld [vmem:[%s3961_s1 + $0x244] ss:$8 sps:$4 sm:$0xff]  }
  0x1b   :  { %1826 = vmatpush1.bf16.msra.mxu0 %v2583_v26  ;;  %v2658_v17 = vld [vmem:[%s3961_s1 + $0x350] ss:$8 sps:$4 sm:$0xff]   ;;  %v2666_v19 = vld [vmem:[%s3961_s1 + $0x344] ss:$8 sps:$4 sm:$0xff]   ;;  %v2661_v20 = vld [vmem:[%s3961_s1 + $0x240] ss:$8 sps:$4 sm:$0xff]  }
  0x1c   :  { %1867 = vmatpush1.bf16.msra.mxu1 %v2584_v27  ;;  %1827 = vmatprep.subr.bf16.mxu0 %v2585_v28  ;;  %v2664_v21 = vld [vmem:[%s3961_s1 + $0x340] ss:$8 sps:$4 sm:$0xff]   ;;  %v2669_v22 = vld [vmem:[%s3961_s1 + $0x234] ss:$8 sps:$4 sm:$0xff]   ;;  %v2667_v24 = vld [vmem:[%s3961_s1 + $0x230] ss:$8 sps:$4 sm:$0xff]  }
  0x1d   :  { %1868 = vmatprep.subr.bf16.mxu1 %v2587_v29  ;;  %v2672_v23 = vld [vmem:[%s3961_s1 + $0x334] ss:$8 sps:$4 sm:$0xff]   ;;  %v2670_v25 = vld [vmem:[%s3961_s1 + $0x330] ss:$8 sps:$4 sm:$0xff]   ;;  %v2675_v26 = vld [vmem:[%s3961_s1 + $0x224] ss:$8 sps:$4 sm:$0xff]  }
  0x1e   :  { %v2678_v27 = vld [vmem:[%s3961_s1 + $0x324] ss:$8 sps:$4 sm:$0xff]   ;;  %v2673_v28 = vld [vmem:[%s3961_s1 + $0x220] ss:$8 sps:$4 sm:$0xff]   ;;  %v2708_v51 = vld [vmem:[%s3961_s1 + $0x3d4] ss:$8 sps:$4 sm:$0xff]  }
  0x1f   :  { %1828 = vmatpush1.bf16.msra.mxu0 %v2589_v30  ;;  %v2676_v29 = vld [vmem:[%s3961_s1 + $0x320] ss:$8 sps:$4 sm:$0xff]   ;;  %v2681_v30 = vld [vmem:[%s3961_s1 + $0x214] ss:$8 sps:$4 sm:$0xff]   ;;  %v2699_v46 = vld [vmem:[%s3961_s1 + $0x2e4] ss:$8 sps:$4 sm:$0xff]  }
  0x20   :  { %1869 = vmatpush1.bf16.msra.mxu1 %v2590_v31  ;;  %1829 = vmatprep.subr.bf16.mxu0 %v2591_v32  ;;  %v2684_v31 = vld [vmem:[%s3961_s1 + $0x314] ss:$8 sps:$4 sm:$0xff]   ;;  %v2702_v47 = vld [vmem:[%s3961_s1 + $0x3e4] ss:$8 sps:$4 sm:$0xff]   ;;  %v2697_v48 = vld [vmem:[%s3961_s1 + $0x2e0] ss:$8 sps:$4 sm:$0xff]  }
  0x21   :  { %1870 = vmatprep.subr.bf16.mxu1 %v2593_v33  ;;  %v3292_v32 = vld [vmem:[%s3962_s0 + $0x10] sm:$0xff] }
  0x22   :  { %v2679_v33 = vld [vmem:[%s3961_s1 + $0x210] ss:$8 sps:$4 sm:$0xff]  }
  0x23   :  { %1830 = vmatpush2.bf16.msra.mxu0 %v2595_v34  ;;  %v2682_v34 = vld [vmem:[%s3961_s1 + $0x310] ss:$8 sps:$4 sm:$0xff]  }
  0x24   :  { %1871 = vmatpush2.bf16.msra.mxu1 %v2596_v35  ;;  %1831 = vmatprep.subr.bf16.mxu0 %v2597_v36  ;;  %v2240_v35 = vcombine.high %v3292_v32, %v3292_v32  ;;  %v3305_v36 = vld [vmem:[%s3962_s0 + $0x18] sm:$0xff] }
  0x25   :  { %1872 = vmatprep.subr.bf16.mxu1 %v2599_v37  ;;  %v2687_v37 = vld [vmem:[%s3961_s1 + $0x204] ss:$8 sps:$4 sm:$0xff]  }
  0x27   :  { %1832 = vmatpush2.bf16.msra.mxu0 %v2601_v38  ;;  %v2242_v38 = vcombine.high %v3305_v36, %v3305_v36 }
  0x28   :  { %1873 = vmatpush2.bf16.msra.mxu1 %v2602_v39  ;;  %1833 = vmatprep.subr.bf16.mxu0 %v2603_v40  ;;  %v2690_v39 = vld [vmem:[%s3961_s1 + $0x304] ss:$8 sps:$4 sm:$0xff]   ;;  %v2685_v40 = vld [vmem:[%s3961_s1 + $0x200] ss:$8 sps:$4 sm:$0xff]  }
  0x29   :  { %1874 = vmatprep.subr.bf16.mxu1 %v2605_v41  ;;  %v2688_v41 = vld [vmem:[%s3961_s1 + $0x300] ss:$8 sps:$4 sm:$0xff]  }
  0x2b   :  { %1834 = vmatpush2.bf16.msra.mxu0 %v2607_v42  ;;  %v2693_v42 = vld [vmem:[%s3961_s1 + $0x2f4] ss:$8 sps:$4 sm:$0xff]  }
  0x2c   :  { %1875 = vmatpush2.bf16.msra.mxu1 %v2608_v43  ;;  %1835 = vmatprep.subr.bf16.mxu0 %v2609_v44  ;;  %v2696_v43 = vld [vmem:[%s3961_s1 + $0x3f4] ss:$8 sps:$4 sm:$0xff]   ;;  %v2691_v44 = vld [vmem:[%s3961_s1 + $0x2f0] ss:$8 sps:$4 sm:$0xff]  }
  0x2d   :  { %1876 = vmatprep.subr.bf16.mxu1 %v2611_v45  ;;  %v2694_v45 = vld [vmem:[%s3961_s1 + $0x3f0] ss:$8 sps:$4 sm:$0xff]  }
  0x2f   :  { %1836 = vmatpush2.bf16.msra.mxu0 %v2613_v49  ;;  %v2700_v49 = vld [vmem:[%s3961_s1 + $0x3e0] ss:$8 sps:$4 sm:$0xff]  }
  0x30   :  { %1877 = vmatpush2.bf16.msra.mxu1 %v2614_v50  ;;  %1837 = vmatprep.subr.bf16.mxu0 %v2615_v52  ;;  %v2705_v50 = vld [vmem:[%s3961_s1 + $0x2d4] ss:$8 sps:$4 sm:$0xff]   ;;  %v2703_v52 = vld [vmem:[%s3961_s1 + $0x2d0] ss:$8 sps:$4 sm:$0xff]  }
  0x31   :  { %1878 = vmatprep.subr.bf16.mxu1 %v2617_v53  ;;  %v2706_v53 = vld [vmem:[%s3961_s1 + $0x3d0] ss:$8 sps:$4 sm:$0xff]  }
  0x33   :  { %1838 = vmatpush2.bf16.msra.mxu0 %v2619_v54  ;;  %v2711_v54 = vld [vmem:[%s3961_s1 + $0x2c4] ss:$8 sps:$4 sm:$0xff]  }
  0x34   :  { %1879 = vmatpush2.bf16.msra.mxu1 %v2620_v55  ;;  %1839 = vmatprep.subr.bf16.mxu0 %v2621_v56  ;;  %v2714_v55 = vld [vmem:[%s3961_s1 + $0x3c4] ss:$8 sps:$4 sm:$0xff]   ;;  %v2709_v56 = vld [vmem:[%s3961_s1 + $0x2c0] ss:$8 sps:$4 sm:$0xff]  }
  0x35   :  { %1880 = vmatprep.subr.bf16.mxu1 %v2623_v57  ;;  %v2712_v57 = vld [vmem:[%s3961_s1 + $0x3c0] ss:$8 sps:$4 sm:$0xff]  }
  0x37   :  { %1840 = vmatpush2.bf16.msra.mxu0 %v2625_v58  ;;  %v2717_v58 = vld [vmem:[%s3961_s1 + $0x2b4] ss:$8 sps:$4 sm:$0xff]  }
  0x38   :  { %1881 = vmatpush2.bf16.msra.mxu1 %v2626_v59  ;;  %1841 = vmatprep.subr.bf16.mxu0 %v2627_v60  ;;  %v2720_v59 = vld [vmem:[%s3961_s1 + $0x3b4] ss:$8 sps:$4 sm:$0xff]   ;;  %v2715_v60 = vld [vmem:[%s3961_s1 + $0x2b0] ss:$8 sps:$4 sm:$0xff]  }
  0x39   :  { %1882 = vmatprep.subr.bf16.mxu1 %v2629_v61  ;;  %v2718_v61 = vld [vmem:[%s3961_s1 + $0x3b0] ss:$8 sps:$4 sm:$0xff]  }
  0x3b   :  { %1842 = vmatpush2.bf16.msra.mxu0 %v2631_v62  ;;  %v2723_v62 = vld [vmem:[%s3961_s1 + $0x2a4] ss:$8 sps:$4 sm:$0xff]  }
  0x3c   :  { %1883 = vmatpush2.bf16.msra.mxu1 %v2632_v63  ;;  %1843 = vmatprep.subr.bf16.mxu0 %v2633_v0  ;;  %v2726_v63 = vld [vmem:[%s3961_s1 + $0x3a4] ss:$8 sps:$4 sm:$0xff]   ;;  %v2721_v0 = vld [vmem:[%s3961_s1 + $0x2a0] ss:$8 sps:$4 sm:$0xff]  }
  0x3d   :  { %1884 = vmatprep.subr.bf16.mxu1 %v2635_v1  ;;  %v2724_v1 = vld [vmem:[%s3961_s1 + $0x3a0] ss:$8 sps:$4 sm:$0xff]  }
  0x3f   :  { %1844 = vmatpush2.bf16.msra.mxu0 %v2637_v2  ;;  %v2729_v2 = vld [vmem:[%s3961_s1 + $0x294] ss:$8 sps:$4 sm:$0xff]  }
  0x40   :  { %1885 = vmatpush2.bf16.msra.mxu1 %v2638_v3  ;;  %1895 = vmatprep.subr.bf16.mxu0 %v2645_v4  ;;  %v2732_v3 = vld [vmem:[%s3961_s1 + $0x394] ss:$8 sps:$4 sm:$0xff]   ;;  %v2727_v4 = vld [vmem:[%s3961_s1 + $0x290] ss:$8 sps:$4 sm:$0xff]  }
  0x41   :  { %1936 = vmatprep.subr.bf16.mxu1 %v2648_v5  ;;  %v2730_v5 = vld [vmem:[%s3961_s1 + $0x390] ss:$8 sps:$4 sm:$0xff]  }
  0x42   :  { %1846 = vmatmul.mubr.bf16.vlgmr.msra.gmra.mxu0 %v2235_v6  ;;  %v2735_v6 = vld [vmem:[%s3961_s1 + $0x284] ss:$8 sps:$4 sm:$0xff]  }
  0x43   :  { %1887 = vmatmul.mubr.bf16.vlgmr.msra.gmra.mxu1 %v2237_v7  ;;  %1896 = vmatpush1.bf16.msra.mxu0 %v2643_v8  ;;  %v2738_v7 = vld [vmem:[%s3961_s1 + $0x384] ss:$8 sps:$4 sm:$0xff]   ;;  %v2733_v8 = vld [vmem:[%s3961_s1 + $0x280] ss:$8 sps:$4 sm:$0xff]  }
  0x44   :  { %1937 = vmatpush1.bf16.msra.mxu1 %v2646_v9  ;;  %1897 = vmatprep.subr.bf16.mxu0 %v2651_v10  ;;  %v2736_v9 = vld [vmem:[%s3961_s1 + $0x380] ss:$8 sps:$4 sm:$0xff]   ;;  %v2743_v10 = vld [vmem:[%s3961_s1 + $0x474] ss:$8 sps:$4 sm:$0xff]  }
  0x45   :  { %1938 = vmatprep.subr.bf16.mxu1 %v2654_v11  ;;  %1927 = vmatprep.mubr.bf16.mxu0 %v2240_v35  ;;  %v2748_v11 = vld [vmem:[%s3961_s1 + $0x574] ss:$8 sps:$4 sm:$0xff]   ;;  %v2770_v35 = vld [vmem:[%s3961_s1 + $0x530] ss:$8 sps:$4 sm:$0xff]  }
  0x46   :  { %1968 = vmatprep.mubr.bf16.mxu1 %v2242_v38  ;;  %v2773_v38 = vld [vmem:[%s3961_s1 + $0x420] ss:$8 sps:$4 sm:$0xff]  }
  0x47   :  { %1898 = vmatpush1.bf16.msra.mxu0 %v2649_v12  ;;  %v2239_v12 = vcombine.low %v3292_v32, %v3292_v32  ;;  %v2769_v32 = vld [vmem:[%s3961_s1 + $0x434] ss:$8 sps:$4 sm:$0xff]  }
  0x48   :  { %1939 = vmatpush1.bf16.msra.mxu1 %v2652_v13  ;;  %1899 = vmatprep.subr.bf16.mxu0 %v2657_v14  ;;  %v2741_v13 = vld [vmem:[%s3961_s1 + $0x470] ss:$8 sps:$4 sm:$0xff]   ;;  %v2241_v14 = vcombine.low %v3305_v36, %v3305_v36  ;;  %v2775_v36 = vld [vmem:[%s3961_s1 + $0x424] ss:$8 sps:$4 sm:$0xff]  }
  0x49   :  { %1940 = vmatprep.subr.bf16.mxu1 %v2660_v15  ;;  %v2746_v15 = vld [vmem:[%s3961_s1 + $0x570] ss:$8 sps:$4 sm:$0xff]  }
  0x4b   :  { %1900 = vmatpush1.bf16.msra.mxu0 %v2655_v16  ;;  %v2751_v16 = vld [vmem:[%s3961_s1 + $0x464] ss:$8 sps:$4 sm:$0xff]  }
  0x4c   :  { %1941 = vmatpush1.bf16.msra.mxu1 %v2658_v17  ;;  %1901 = vmatprep.subr.bf16.mxu0 %v2663_v18  ;;  %v2754_v17 = vld [vmem:[%s3961_s1 + $0x564] ss:$8 sps:$4 sm:$0xff]  }
  0x4d   :  { %1942 = vmatprep.subr.bf16.mxu1 %v2666_v19  ;;  %v3442_v18 = vld [vmem:[%s3962_s0 + $0x20] sm:$0xff] }
  0x4e   :  { %v2244_v19 = vcombine.high %v3442_v18, %v3442_v18 }
  0x4f   :  { %1902 = vmatpush1.bf16.msra.mxu0 %v2661_v20  ;;  %v3449_v20 = vld [vmem:[%s3962_s0 + $0x28] sm:$0xff] }
  0x50   :  { %1943 = vmatpush1.bf16.msra.mxu1 %v2664_v21  ;;  %1903 = vmatprep.subr.bf16.mxu0 %v2669_v22  ;;  %v2749_v21 = vld [vmem:[%s3961_s1 + $0x460] ss:$8 sps:$4 sm:$0xff]  }
  0x51   :  { %1944 = vmatprep.subr.bf16.mxu1 %v2672_v23  ;;  %v2752_v22 = vld [vmem:[%s3961_s1 + $0x560] ss:$8 sps:$4 sm:$0xff]   ;;  %v2246_v23 = vcombine.high %v3449_v20, %v3449_v20 }
  0x53   :  { %1904 = vmatpush1.bf16.msra.mxu0 %v2667_v24  ;;  %v2757_v24 = vld [vmem:[%s3961_s1 + $0x454] ss:$8 sps:$4 sm:$0xff]  }
  0x54   :  { %1945 = vmatpush1.bf16.msra.mxu1 %v2670_v25  ;;  %1905 = vmatprep.subr.bf16.mxu0 %v2675_v26  ;;  %v2760_v25 = vld [vmem:[%s3961_s1 + $0x554] ss:$8 sps:$4 sm:$0xff]   ;;  %v2755_v26 = vld [vmem:[%s3961_s1 + $0x450] ss:$8 sps:$4 sm:$0xff]  }
  0x55   :  { %1946 = vmatprep.subr.bf16.mxu1 %v2678_v27  ;;  %v2758_v27 = vld [vmem:[%s3961_s1 + $0x550] ss:$8 sps:$4 sm:$0xff]  }
  0x57   :  { %1906 = vmatpush1.bf16.msra.mxu0 %v2673_v28  ;;  %v2763_v28 = vld [vmem:[%s3961_s1 + $0x444] ss:$8 sps:$4 sm:$0xff]  }
  0x58   :  { %1947 = vmatpush1.bf16.msra.mxu1 %v2676_v29  ;;  %1907 = vmatprep.subr.bf16.mxu0 %v2681_v30  ;;  %v2766_v29 = vld [vmem:[%s3961_s1 + $0x544] ss:$8 sps:$4 sm:$0xff]   ;;  %v2761_v30 = vld [vmem:[%s3961_s1 + $0x440] ss:$8 sps:$4 sm:$0xff]  }
  0x59   :  { %1948 = vmatprep.subr.bf16.mxu1 %v2684_v31  ;;  %v2764_v31 = vld [vmem:[%s3961_s1 + $0x540] ss:$8 sps:$4 sm:$0xff]  }
  0x5b   :  { %1908 = vmatpush1.bf16.msra.mxu0 %v2679_v33  ;;  %v2772_v33 = vld [vmem:[%s3961_s1 + $0x534] ss:$8 sps:$4 sm:$0xff]  }
  0x5c   :  { %1949 = vmatpush1.bf16.msra.mxu1 %v2682_v34  ;;  %1909 = vmatprep.subr.bf16.mxu0 %v2687_v37  ;;  %v2767_v34 = vld [vmem:[%s3961_s1 + $0x430] ss:$8 sps:$4 sm:$0xff]   ;;  %v2778_v37 = vld [vmem:[%s3961_s1 + $0x524] ss:$8 sps:$4 sm:$0xff]  }
  0x5d   :  { %1950 = vmatprep.subr.bf16.mxu1 %v2690_v39  ;;  %v2776_v39 = vld [vmem:[%s3961_s1 + $0x520] ss:$8 sps:$4 sm:$0xff]  }
  0x5f   :  { %1910 = vmatpush1.bf16.msra.mxu0 %v2685_v40  ;;  %v2781_v40 = vld [vmem:[%s3961_s1 + $0x414] ss:$8 sps:$4 sm:$0xff]  }
  0x60   :  { %1951 = vmatpush1.bf16.msra.mxu1 %v2688_v41  ;;  %1911 = vmatprep.subr.bf16.mxu0 %v2693_v42  ;;  %v2784_v41 = vld [vmem:[%s3961_s1 + $0x514] ss:$8 sps:$4 sm:$0xff]   ;;  %v2779_v42 = vld [vmem:[%s3961_s1 + $0x410] ss:$8 sps:$4 sm:$0xff]  }
  0x61   :  { %1952 = vmatprep.subr.bf16.mxu1 %v2696_v43  ;;  %v2782_v43 = vld [vmem:[%s3961_s1 + $0x510] ss:$8 sps:$4 sm:$0xff]  }
  0x63   :  { %1912 = vmatpush2.bf16.msra.mxu0 %v2691_v44  ;;  %v2787_v44 = vld [vmem:[%s3961_s1 + $0x404] ss:$8 sps:$4 sm:$0xff]  }
  0x64   :  { %1953 = vmatpush2.bf16.msra.mxu1 %v2694_v45  ;;  %1913 = vmatprep.subr.bf16.mxu0 %v2699_v46  ;;  %v2790_v45 = vld [vmem:[%s3961_s1 + $0x504] ss:$8 sps:$4 sm:$0xff]   ;;  %v2785_v46 = vld [vmem:[%s3961_s1 + $0x400] ss:$8 sps:$4 sm:$0xff]  }
  0x65   :  { %1954 = vmatprep.subr.bf16.mxu1 %v2702_v47  ;;  %v2788_v47 = vld [vmem:[%s3961_s1 + $0x500] ss:$8 sps:$4 sm:$0xff]  }
  0x67   :  { %1914 = vmatpush2.bf16.msra.mxu0 %v2697_v48  ;;  %v2793_v48 = vld [vmem:[%s3961_s1 + $0x4f4] ss:$8 sps:$4 sm:$0xff]  }
  0x68   :  { %1955 = vmatpush2.bf16.msra.mxu1 %v2700_v49  ;;  %1915 = vmatprep.subr.bf16.mxu0 %v2705_v50  ;;  %v2796_v49 = vld [vmem:[%s3961_s1 + $0x5f4] ss:$8 sps:$4 sm:$0xff]   ;;  %v2791_v50 = vld [vmem:[%s3961_s1 + $0x4f0] ss:$8 sps:$4 sm:$0xff]  }
  0x69   :  { %1956 = vmatprep.subr.bf16.mxu1 %v2708_v51  ;;  %v2794_v51 = vld [vmem:[%s3961_s1 + $0x5f0] ss:$8 sps:$4 sm:$0xff]  }
  0x6b   :  { %1916 = vmatpush2.bf16.msra.mxu0 %v2703_v52  ;;  %v2799_v52 = vld [vmem:[%s3961_s1 + $0x4e4] ss:$8 sps:$4 sm:$0xff]  }
  0x6c   :  { %1957 = vmatpush2.bf16.msra.mxu1 %v2706_v53  ;;  %1917 = vmatprep.subr.bf16.mxu0 %v2711_v54  ;;  %v2802_v53 = vld [vmem:[%s3961_s1 + $0x5e4] ss:$8 sps:$4 sm:$0xff]   ;;  %v2797_v54 = vld [vmem:[%s3961_s1 + $0x4e0] ss:$8 sps:$4 sm:$0xff]  }
  0x6d   :  { %1958 = vmatprep.subr.bf16.mxu1 %v2714_v55  ;;  %v2800_v55 = vld [vmem:[%s3961_s1 + $0x5e0] ss:$8 sps:$4 sm:$0xff]  }
  0x6f   :  { %1918 = vmatpush2.bf16.msra.mxu0 %v2709_v56  ;;  %v2805_v56 = vld [vmem:[%s3961_s1 + $0x4d4] ss:$8 sps:$4 sm:$0xff]  }
  0x70   :  { %1959 = vmatpush2.bf16.msra.mxu1 %v2712_v57  ;;  %1919 = vmatprep.subr.bf16.mxu0 %v2717_v58  ;;  %v2808_v57 = vld [vmem:[%s3961_s1 + $0x5d4] ss:$8 sps:$4 sm:$0xff]   ;;  %v2803_v58 = vld [vmem:[%s3961_s1 + $0x4d0] ss:$8 sps:$4 sm:$0xff]  }
  0x71   :  { %1960 = vmatprep.subr.bf16.mxu1 %v2720_v59  ;;  %v2806_v59 = vld [vmem:[%s3961_s1 + $0x5d0] ss:$8 sps:$4 sm:$0xff]  }
  0x73   :  { %1920 = vmatpush2.bf16.msra.mxu0 %v2715_v60  ;;  %v2811_v60 = vld [vmem:[%s3961_s1 + $0x4c4] ss:$8 sps:$4 sm:$0xff]  }
  0x74   :  { %1961 = vmatpush2.bf16.msra.mxu1 %v2718_v61  ;;  %1921 = vmatprep.subr.bf16.mxu0 %v2723_v62  ;;  %v2814_v61 = vld [vmem:[%s3961_s1 + $0x5c4] ss:$8 sps:$4 sm:$0xff]   ;;  %v2809_v62 = vld [vmem:[%s3961_s1 + $0x4c0] ss:$8 sps:$4 sm:$0xff]  }
  0x75   :  { %1962 = vmatprep.subr.bf16.mxu1 %v2726_v63  ;;  %v2812_v63 = vld [vmem:[%s3961_s1 + $0x5c0] ss:$8 sps:$4 sm:$0xff]  }
  0x77   :  { %1922 = vmatpush2.bf16.msra.mxu0 %v2721_v0  ;;  %v2817_v0 = vld [vmem:[%s3961_s1 + $0x4b4] ss:$8 sps:$4 sm:$0xff]  }
  0x78   :  { %1963 = vmatpush2.bf16.msra.mxu1 %v2724_v1  ;;  %1923 = vmatprep.subr.bf16.mxu0 %v2729_v2  ;;  %v2820_v1 = vld [vmem:[%s3961_s1 + $0x5b4] ss:$8 sps:$4 sm:$0xff]   ;;  %v2815_v2 = vld [vmem:[%s3961_s1 + $0x4b0] ss:$8 sps:$4 sm:$0xff]  }
  0x79   :  { %1964 = vmatprep.subr.bf16.mxu1 %v2732_v3  ;;  %v2818_v3 = vld [vmem:[%s3961_s1 + $0x5b0] ss:$8 sps:$4 sm:$0xff]  }
  0x7b   :  { %1924 = vmatpush2.bf16.msra.mxu0 %v2727_v4  ;;  %v2823_v4 = vld [vmem:[%s3961_s1 + $0x4a4] ss:$8 sps:$4 sm:$0xff]  }
  0x7c   :  { %1965 = vmatpush2.bf16.msra.mxu1 %v2730_v5  ;;  %1925 = vmatprep.subr.bf16.mxu0 %v2735_v6  ;;  %v2826_v5 = vld [vmem:[%s3961_s1 + $0x5a4] ss:$8 sps:$4 sm:$0xff]   ;;  %v2821_v6 = vld [vmem:[%s3961_s1 + $0x4a0] ss:$8 sps:$4 sm:$0xff]  }
  0x7d   :  { %1966 = vmatprep.subr.bf16.mxu1 %v2738_v7  ;;  %v2824_v7 = vld [vmem:[%s3961_s1 + $0x5a0] ss:$8 sps:$4 sm:$0xff]  }
  0x7f   :  { %1926 = vmatpush2.bf16.msra.mxu0 %v2733_v8  ;;  %v2829_v8 = vld [vmem:[%s3961_s1 + $0x494] ss:$8 sps:$4 sm:$0xff]  }
  0x80   :  { %1967 = vmatpush2.bf16.msra.mxu1 %v2736_v9  ;;  %1977 = vmatprep.subr.bf16.mxu0 %v2743_v10  ;;  %v2832_v9 = vld [vmem:[%s3961_s1 + $0x594] ss:$8 sps:$4 sm:$0xff]   ;;  %v2827_v10 = vld [vmem:[%s3961_s1 + $0x490] ss:$8 sps:$4 sm:$0xff]  }
  0x81   :  { %2018 = vmatprep.subr.bf16.mxu1 %v2748_v11  ;;  %v2830_v11 = vld [vmem:[%s3961_s1 + $0x590] ss:$8 sps:$4 sm:$0xff]  }
  0x82   :  { %1928 = vmatmul.mubr.bf16.vlgmr.msra.gmra.mxu0 %v2239_v12  ;;  %v2835_v12 = vld [vmem:[%s3961_s1 + $0x484] ss:$8 sps:$4 sm:$0xff]  }
  0x83   :  { %1969 = vmatmul.mubr.bf16.vlgmr.msra.gmra.mxu1 %v2241_v14  ;;  %1978 = vmatpush1.bf16.msra.mxu0 %v2741_v13  ;;  %v2838_v13 = vld [vmem:[%s3961_s1 + $0x584] ss:$8 sps:$4 sm:$0xff]   ;;  %v2833_v14 = vld [vmem:[%s3961_s1 + $0x480] ss:$8 sps:$4 sm:$0xff]  }
  0x84   :  { %2019 = vmatpush1.bf16.msra.mxu1 %v2746_v15  ;;  %1979 = vmatprep.subr.bf16.mxu0 %v2751_v16  ;;  %v2836_v15 = vld [vmem:[%s3961_s1 + $0x580] ss:$8 sps:$4 sm:$0xff]   ;;  %v2843_v16 = vld [vmem:[%s3961_s1 + $0x674] ss:$8 sps:$4 sm:$0xff]  }
  0x85   :  { %2020 = vmatprep.subr.bf16.mxu1 %v2754_v17  ;;  %2009 = vmatprep.mubr.bf16.mxu0 %v2244_v19  ;;  %v2848_v17 = vld [vmem:[%s3961_s1 + $0x774] ss:$8 sps:$4 sm:$0xff]   ;;  %v2841_v19 = vld [vmem:[%s3961_s1 + $0x670] ss:$8 sps:$4 sm:$0xff]  }
  0x86   :  { %2050 = vmatprep.mubr.bf16.mxu1 %v2246_v23  ;;  %v2245_v23 = vcombine.low %v3449_v20, %v3449_v20 }
  0x87   :  { %1980 = vmatpush1.bf16.msra.mxu0 %v2749_v21  ;;  %v2846_v21 = vld [vmem:[%s3961_s1 + $0x770] ss:$8 sps:$4 sm:$0xff]  }
  0x88   :  { %2021 = vmatpush1.bf16.msra.mxu1 %v2752_v22  ;;  %1981 = vmatprep.subr.bf16.mxu0 %v2757_v24  ;;  %v2243_v22 = vcombine.low %v3442_v18, %v3442_v18  ;;  %v3646_v24 = vld [vmem:[%s3962_s0 + $0x30] sm:$0xff]  ;;  %v2854_v18 = vld [vmem:[%s3961_s1 + $0x764] ss:$8 sps:$4 sm:$0xff]  }
  0x89   :  { %2022 = vmatprep.subr.bf16.mxu1 %v2760_v25  ;;  %v3651_v25 = vld [vmem:[%s3962_s0 + $0x38] sm:$0xff]  ;;  %v2248_v20 = vcombine.high %v3646_v24, %v3646_v24 }
  0x8b   :  { %1982 = vmatpush1.bf16.msra.mxu0 %v2755_v26  ;;  %v2851_v26 = vld [vmem:[%s3961_s1 + $0x664] ss:$8 sps:$4 sm:$0xff]  }
  0x8c   :  { %2023 = vmatpush1.bf16.msra.mxu1 %v2758_v27  ;;  %1983 = vmatprep.subr.bf16.mxu0 %v2763_v28  ;;  %v2250_v27 = vcombine.high %v3651_v25, %v3651_v25  ;;  %v2849_v28 = vld [vmem:[%s3961_s1 + $0x660] ss:$8 sps:$4 sm:$0xff]  }
  0x8d   :  { %2024 = vmatprep.subr.bf16.mxu1 %v2766_v29  ;;  %v2852_v29 = vld [vmem:[%s3961_s1 + $0x760] ss:$8 sps:$4 sm:$0xff]  }
  0x8f   :  { %1984 = vmatpush1.bf16.msra.mxu0 %v2761_v30  ;;  %v2857_v30 = vld [vmem:[%s3961_s1 + $0x654] ss:$8 sps:$4 sm:$0xff]  }
  0x90   :  { %2025 = vmatpush1.bf16.msra.mxu1 %v2764_v31  ;;  %1985 = vmatprep.subr.bf16.mxu0 %v2769_v32  ;;  %v2860_v31 = vld [vmem:[%s3961_s1 + $0x754] ss:$8 sps:$4 sm:$0xff]   ;;  %v2855_v32 = vld [vmem:[%s3961_s1 + $0x650] ss:$8 sps:$4 sm:$0xff]  }
  0x91   :  { %2026 = vmatprep.subr.bf16.mxu1 %v2772_v33  ;;  %v2858_v33 = vld [vmem:[%s3961_s1 + $0x750] ss:$8 sps:$4 sm:$0xff]  }
  0x93   :  { %1986 = vmatpush1.bf16.msra.mxu0 %v2767_v34  ;;  %v2863_v34 = vld [vmem:[%s3961_s1 + $0x644] ss:$8 sps:$4 sm:$0xff]  }
  0x94   :  { %2027 = vmatpush1.bf16.msra.mxu1 %v2770_v35  ;;  %1987 = vmatprep.subr.bf16.mxu0 %v2775_v36  ;;  %v2866_v35 = vld [vmem:[%s3961_s1 + $0x744] ss:$8 sps:$4 sm:$0xff]   ;;  %v2861_v36 = vld [vmem:[%s3961_s1 + $0x640] ss:$8 sps:$4 sm:$0xff]  }
  0x95   :  { %2028 = vmatprep.subr.bf16.mxu1 %v2778_v37  ;;  %v2864_v37 = vld [vmem:[%s3961_s1 + $0x740] ss:$8 sps:$4 sm:$0xff]  }
  0x97   :  { %1988 = vmatpush1.bf16.msra.mxu0 %v2773_v38  ;;  %v2869_v38 = vld [vmem:[%s3961_s1 + $0x634] ss:$8 sps:$4 sm:$0xff]  }
  0x98   :  { %2029 = vmatpush1.bf16.msra.mxu1 %v2776_v39  ;;  %1989 = vmatprep.subr.bf16.mxu0 %v2781_v40  ;;  %v2872_v39 = vld [vmem:[%s3961_s1 + $0x734] ss:$8 sps:$4 sm:$0xff]   ;;  %v2867_v40 = vld [vmem:[%s3961_s1 + $0x630] ss:$8 sps:$4 sm:$0xff]  }
  0x99   :  { %2030 = vmatprep.subr.bf16.mxu1 %v2784_v41  ;;  %v2870_v41 = vld [vmem:[%s3961_s1 + $0x730] ss:$8 sps:$4 sm:$0xff]  }
  0x9b   :  { %1990 = vmatpush1.bf16.msra.mxu0 %v2779_v42  ;;  %v2875_v42 = vld [vmem:[%s3961_s1 + $0x624] ss:$8 sps:$4 sm:$0xff]  }
  0x9c   :  { %2031 = vmatpush1.bf16.msra.mxu1 %v2782_v43  ;;  %1991 = vmatprep.subr.bf16.mxu0 %v2787_v44  ;;  %v2878_v43 = vld [vmem:[%s3961_s1 + $0x724] ss:$8 sps:$4 sm:$0xff]   ;;  %v2873_v44 = vld [vmem:[%s3961_s1 + $0x620] ss:$8 sps:$4 sm:$0xff]  }
  0x9d   :  { %2032 = vmatprep.subr.bf16.mxu1 %v2790_v45  ;;  %v2876_v45 = vld [vmem:[%s3961_s1 + $0x720] ss:$8 sps:$4 sm:$0xff]  }
  0x9f   :  { %1992 = vmatpush1.bf16.msra.mxu0 %v2785_v46  ;;  %v2881_v46 = vld [vmem:[%s3961_s1 + $0x614] ss:$8 sps:$4 sm:$0xff]  }
  0xa0   :  { %2033 = vmatpush1.bf16.msra.mxu1 %v2788_v47  ;;  %1993 = vmatprep.subr.bf16.mxu0 %v2793_v48  ;;  %v2884_v47 = vld [vmem:[%s3961_s1 + $0x714] ss:$8 sps:$4 sm:$0xff]   ;;  %v2879_v48 = vld [vmem:[%s3961_s1 + $0x610] ss:$8 sps:$4 sm:$0xff]  }
  0xa1   :  { %2034 = vmatprep.subr.bf16.mxu1 %v2796_v49  ;;  %v2882_v49 = vld [vmem:[%s3961_s1 + $0x710] ss:$8 sps:$4 sm:$0xff]  }
  0xa3   :  { %1994 = vmatpush2.bf16.msra.mxu0 %v2791_v50  ;;  %v2887_v50 = vld [vmem:[%s3961_s1 + $0x604] ss:$8 sps:$4 sm:$0xff]  }
  0xa4   :  { %2035 = vmatpush2.bf16.msra.mxu1 %v2794_v51  ;;  %1995 = vmatprep.subr.bf16.mxu0 %v2799_v52  ;;  %v2890_v51 = vld [vmem:[%s3961_s1 + $0x704] ss:$8 sps:$4 sm:$0xff]   ;;  %v2885_v52 = vld [vmem:[%s3961_s1 + $0x600] ss:$8 sps:$4 sm:$0xff]  }
  0xa5   :  { %2036 = vmatprep.subr.bf16.mxu1 %v2802_v53  ;;  %v2888_v53 = vld [vmem:[%s3961_s1 + $0x700] ss:$8 sps:$4 sm:$0xff]  }
  0xa7   :  { %1996 = vmatpush2.bf16.msra.mxu0 %v2797_v54  ;;  %v2893_v54 = vld [vmem:[%s3961_s1 + $0x6f4] ss:$8 sps:$4 sm:$0xff]  }
  0xa8   :  { %2037 = vmatpush2.bf16.msra.mxu1 %v2800_v55  ;;  %1997 = vmatprep.subr.bf16.mxu0 %v2805_v56  ;;  %v2896_v55 = vld [vmem:[%s3961_s1 + $0x7f4] ss:$8 sps:$4 sm:$0xff]   ;;  %v2891_v56 = vld [vmem:[%s3961_s1 + $0x6f0] ss:$8 sps:$4 sm:$0xff]  }
  0xa9   :  { %2038 = vmatprep.subr.bf16.mxu1 %v2808_v57  ;;  %v2894_v57 = vld [vmem:[%s3961_s1 + $0x7f0] ss:$8 sps:$4 sm:$0xff]  }
  0xab   :  { %1998 = vmatpush2.bf16.msra.mxu0 %v2803_v58  ;;  %v2899_v58 = vld [vmem:[%s3961_s1 + $0x6e4] ss:$8 sps:$4 sm:$0xff]  }
  0xac   :  { %2039 = vmatpush2.bf16.msra.mxu1 %v2806_v59  ;;  %1999 = vmatprep.subr.bf16.mxu0 %v2811_v60  ;;  %v2902_v59 = vld [vmem:[%s3961_s1 + $0x7e4] ss:$8 sps:$4 sm:$0xff]   ;;  %v2897_v60 = vld [vmem:[%s3961_s1 + $0x6e0] ss:$8 sps:$4 sm:$0xff]  }
  0xad   :  { %2040 = vmatprep.subr.bf16.mxu1 %v2814_v61  ;;  %v2900_v61 = vld [vmem:[%s3961_s1 + $0x7e0] ss:$8 sps:$4 sm:$0xff]  }
  0xaf   :  { %2000 = vmatpush2.bf16.msra.mxu0 %v2809_v62  ;;  %v2905_v62 = vld [vmem:[%s3961_s1 + $0x6d4] ss:$8 sps:$4 sm:$0xff]  }
  0xb0   :  { %2041 = vmatpush2.bf16.msra.mxu1 %v2812_v63  ;;  %2001 = vmatprep.subr.bf16.mxu0 %v2817_v0  ;;  %v2908_v63 = vld [vmem:[%s3961_s1 + $0x7d4] ss:$8 sps:$4 sm:$0xff]   ;;  %v2903_v0 = vld [vmem:[%s3961_s1 + $0x6d0] ss:$8 sps:$4 sm:$0xff]  }
  0xb1   :  { %2042 = vmatprep.subr.bf16.mxu1 %v2820_v1  ;;  %v2906_v1 = vld [vmem:[%s3961_s1 + $0x7d0] ss:$8 sps:$4 sm:$0xff]  }
  0xb3   :  { %2002 = vmatpush2.bf16.msra.mxu0 %v2815_v2  ;;  %v2911_v2 = vld [vmem:[%s3961_s1 + $0x6c4] ss:$8 sps:$4 sm:$0xff]  }
  0xb4   :  { %2043 = vmatpush2.bf16.msra.mxu1 %v2818_v3  ;;  %2003 = vmatprep.subr.bf16.mxu0 %v2823_v4  ;;  %v2914_v3 = vld [vmem:[%s3961_s1 + $0x7c4] ss:$8 sps:$4 sm:$0xff]   ;;  %v2909_v4 = vld [vmem:[%s3961_s1 + $0x6c0] ss:$8 sps:$4 sm:$0xff]  }
  0xb5   :  { %2044 = vmatprep.subr.bf16.mxu1 %v2826_v5  ;;  %v2912_v5 = vld [vmem:[%s3961_s1 + $0x7c0] ss:$8 sps:$4 sm:$0xff]  }
  0xb7   :  { %2004 = vmatpush2.bf16.msra.mxu0 %v2821_v6  ;;  %v2917_v6 = vld [vmem:[%s3961_s1 + $0x6b4] ss:$8 sps:$4 sm:$0xff]  }
  0xb8   :  { %2045 = vmatpush2.bf16.msra.mxu1 %v2824_v7  ;;  %2005 = vmatprep.subr.bf16.mxu0 %v2829_v8  ;;  %v2920_v7 = vld [vmem:[%s3961_s1 + $0x7b4] ss:$8 sps:$4 sm:$0xff]   ;;  %v2915_v8 = vld [vmem:[%s3961_s1 + $0x6b0] ss:$8 sps:$4 sm:$0xff]  }
  0xb9   :  { %2046 = vmatprep.subr.bf16.mxu1 %v2832_v9  ;;  %v2918_v9 = vld [vmem:[%s3961_s1 + $0x7b0] ss:$8 sps:$4 sm:$0xff]  }
  0xbb   :  { %2006 = vmatpush2.bf16.msra.mxu0 %v2827_v10  ;;  %v2923_v10 = vld [vmem:[%s3961_s1 + $0x6a4] ss:$8 sps:$4 sm:$0xff]  }
  0xbc   :  { %2047 = vmatpush2.bf16.msra.mxu1 %v2830_v11  ;;  %2007 = vmatprep.subr.bf16.mxu0 %v2835_v12  ;;  %v2926_v11 = vld [vmem:[%s3961_s1 + $0x7a4] ss:$8 sps:$4 sm:$0xff]   ;;  %v2921_v12 = vld [vmem:[%s3961_s1 + $0x6a0] ss:$8 sps:$4 sm:$0xff]  }
  0xbd   :  { %2048 = vmatprep.subr.bf16.mxu1 %v2838_v13  ;;  %v2924_v13 = vld [vmem:[%s3961_s1 + $0x7a0] ss:$8 sps:$4 sm:$0xff]  }
  0xbf   :  { %2008 = vmatpush2.bf16.msra.mxu0 %v2833_v14  ;;  %v2929_v14 = vld [vmem:[%s3961_s1 + $0x694] ss:$8 sps:$4 sm:$0xff]  }
  0xc0   :  { %2049 = vmatpush2.bf16.msra.mxu1 %v2836_v15  ;;  %2059 = vmatprep.subr.bf16.mxu0 %v2843_v16  ;;  %v2932_v15 = vld [vmem:[%s3961_s1 + $0x794] ss:$8 sps:$4 sm:$0xff]   ;;  %v2927_v16 = vld [vmem:[%s3961_s1 + $0x690] ss:$8 sps:$4 sm:$0xff]  }
  0xc1   :  { %2100 = vmatprep.subr.bf16.mxu1 %v2848_v17  ;;  %v2930_v17 = vld [vmem:[%s3961_s1 + $0x790] ss:$8 sps:$4 sm:$0xff]  }
  0xc2   :  { %2010 = vmatmul.mubr.bf16.vlgmr.msra.gmra.mxu0 %v2243_v22  ;;  %v2933_v22 = vld [vmem:[%s3961_s1 + $0x680] ss:$8 sps:$4 sm:$0xff]  }
  0xc3   :  { %2051 = vmatmul.mubr.bf16.vlgmr.msra.gmra.mxu1 %v2245_v23  ;;  %2060 = vmatpush1.bf16.msra.mxu0 %v2841_v19  ;;  %v2935_v19 = vld [vmem:[%s3961_s1 + $0x684] ss:$8 sps:$4 sm:$0xff]   ;;  %v2936_v23 = vld [vmem:[%s3961_s1 + $0x780] ss:$8 sps:$4 sm:$0xff]  }
  0xc4   :  { %2101 = vmatpush1.bf16.msra.mxu1 %v2846_v21  ;;  %2061 = vmatprep.subr.bf16.mxu0 %v2851_v26  ;;  %v2938_v21 = vld [vmem:[%s3961_s1 + $0x784] ss:$8 sps:$4 sm:$0xff]   ;;  %v2943_v26 = vld [vmem:[%s3961_s1 + $0x874] ss:$8 sps:$4 sm:$0xff]  }
  0xc5   :  { %2102 = vmatprep.subr.bf16.mxu1 %v2854_v18  ;;  %2091 = vmatprep.mubr.bf16.mxu0 %v2248_v20  ;;  %v3843_v18 = vld [vmem:[%s3962_s0 + $0x40] sm:$0xff]  ;;  %v2247_v20 = vcombine.low %v3646_v24, %v3646_v24 }
  0xc6   :  { %2132 = vmatprep.mubr.bf16.mxu1 %v2250_v27  ;;  %v2249_v27 = vcombine.low %v3651_v25, %v3651_v25  ;;  %v2946_v25 = vld [vmem:[%s3961_s1 + $0x860] ss:$8 sps:$4 sm:$0xff]  }
  0xc7   :  { %2062 = vmatpush1.bf16.msra.mxu0 %v2849_v28  ;;  %v2941_v28 = vld [vmem:[%s3961_s1 + $0x870] ss:$8 sps:$4 sm:$0xff]  }
  0xc8   :  { %2103 = vmatpush1.bf16.msra.mxu1 %v2852_v29  ;;  %2063 = vmatprep.subr.bf16.mxu0 %v2857_v30  ;;  %v2252_v29 = vcombine.high %v3843_v18, %v3843_v18  ;;  %v2948_v30 = vld [vmem:[%s3961_s1 + $0x864] ss:$8 sps:$4 sm:$0xff]  }
  0xc9   :  { %2104 = vmatprep.subr.bf16.mxu1 %v2860_v31 }
  0xcb   :  { %2064 = vmatpush1.bf16.msra.mxu0 %v2855_v32 }
  0xcc   :  { %2105 = vmatpush1.bf16.msra.mxu1 %v2858_v33  ;;  %2065 = vmatprep.subr.bf16.mxu0 %v2863_v34 }
  0xcd   :  { %2106 = vmatprep.subr.bf16.mxu1 %v2866_v35  ;;  %v2951_v35 = vld [vmem:[%s3961_s1 + $0x854] ss:$8 sps:$4 sm:$0xff]  }
  0xcf   :  { %2066 = vmatpush1.bf16.msra.mxu0 %v2861_v36 }
  0xd0   :  { %2107 = vmatpush1.bf16.msra.mxu1 %v2864_v37  ;;  %2067 = vmatprep.subr.bf16.mxu0 %v2869_v38 }
  0xd1   :  { %2108 = vmatprep.subr.bf16.mxu1 %v2872_v39  ;;  %v2949_v39 = vld [vmem:[%s3961_s1 + $0x850] ss:$8 sps:$4 sm:$0xff]  }
  0xd3   :  { %2068 = vmatpush1.bf16.msra.mxu0 %v2867_v40 }
  0xd4   :  { %2109 = vmatpush1.bf16.msra.mxu1 %v2870_v41  ;;  %2069 = vmatprep.subr.bf16.mxu0 %v2875_v42  ;;  %v2954_v41 = vld [vmem:[%s3961_s1 + $0x844] ss:$8 sps:$4 sm:$0xff]  }
  0xd5   :  { %2110 = vmatprep.subr.bf16.mxu1 %v2878_v43  ;;  %v2952_v43 = vld [vmem:[%s3961_s1 + $0x840] ss:$8 sps:$4 sm:$0xff]  }
  0xd7   :  { %2070 = vmatpush1.bf16.msra.mxu0 %v2873_v44  ;;  %v2957_v44 = vld [vmem:[%s3961_s1 + $0x834] ss:$8 sps:$4 sm:$0xff]  }
  0xd8   :  { %2111 = vmatpush1.bf16.msra.mxu1 %v2876_v45  ;;  %2071 = vmatprep.subr.bf16.mxu0 %v2881_v46  ;;  %v2955_v45 = vld [vmem:[%s3961_s1 + $0x830] ss:$8 sps:$4 sm:$0xff]   ;;  %v2960_v46 = vld [vmem:[%s3961_s1 + $0x824] ss:$8 sps:$4 sm:$0xff]  }
  0xd9   :  { %2112 = vmatprep.subr.bf16.mxu1 %v2884_v47  ;;  %v2958_v47 = vld [vmem:[%s3961_s1 + $0x820] ss:$8 sps:$4 sm:$0xff]  }
  0xdb   :  { %2072 = vmatpush1.bf16.msra.mxu0 %v2879_v48  ;;  %v2963_v48 = vld [vmem:[%s3961_s1 + $0x814] ss:$8 sps:$4 sm:$0xff]  }
  0xdc   :  { %2113 = vmatpush1.bf16.msra.mxu1 %v2882_v49  ;;  %2073 = vmatprep.subr.bf16.mxu0 %v2887_v50  ;;  %v2961_v49 = vld [vmem:[%s3961_s1 + $0x810] ss:$8 sps:$4 sm:$0xff]   ;;  %v2966_v50 = vld [vmem:[%s3961_s1 + $0x804] ss:$8 sps:$4 sm:$0xff]  }
  0xdd   :  { %2114 = vmatprep.subr.bf16.mxu1 %v2890_v51  ;;  %v2964_v51 = vld [vmem:[%s3961_s1 + $0x800] ss:$8 sps:$4 sm:$0xff]  }
  0xdf   :  { %2074 = vmatpush1.bf16.msra.mxu0 %v2885_v52  ;;  %v2969_v52 = vld [vmem:[%s3961_s1 + $0x8f4] ss:$8 sps:$4 sm:$0xff]  }
  0xe0   :  { %2115 = vmatpush1.bf16.msra.mxu1 %v2888_v53  ;;  %2075 = vmatprep.subr.bf16.mxu0 %v2893_v54  ;;  %v2967_v53 = vld [vmem:[%s3961_s1 + $0x8f0] ss:$8 sps:$4 sm:$0xff]   ;;  %v2972_v54 = vld [vmem:[%s3961_s1 + $0x8e4] ss:$8 sps:$4 sm:$0xff]  }
  0xe1   :  { %2116 = vmatprep.subr.bf16.mxu1 %v2896_v55  ;;  %v2970_v55 = vld [vmem:[%s3961_s1 + $0x8e0] ss:$8 sps:$4 sm:$0xff]  }
  0xe3   :  { %2076 = vmatpush2.bf16.msra.mxu0 %v2891_v56  ;;  %v2975_v56 = vld [vmem:[%s3961_s1 + $0x8d4] ss:$8 sps:$4 sm:$0xff]  }
  0xe4   :  { %2117 = vmatpush2.bf16.msra.mxu1 %v2894_v57  ;;  %2077 = vmatprep.subr.bf16.mxu0 %v2899_v58  ;;  %v2973_v57 = vld [vmem:[%s3961_s1 + $0x8d0] ss:$8 sps:$4 sm:$0xff]   ;;  %v2978_v58 = vld [vmem:[%s3961_s1 + $0x8c4] ss:$8 sps:$4 sm:$0xff]  }
  0xe5   :  { %2118 = vmatprep.subr.bf16.mxu1 %v2902_v59  ;;  %v2976_v59 = vld [vmem:[%s3961_s1 + $0x8c0] ss:$8 sps:$4 sm:$0xff]  }
  0xe7   :  { %2078 = vmatpush2.bf16.msra.mxu0 %v2897_v60  ;;  %v2981_v60 = vld [vmem:[%s3961_s1 + $0x8b4] ss:$8 sps:$4 sm:$0xff]  }
  0xe8   :  { %2119 = vmatpush2.bf16.msra.mxu1 %v2900_v61  ;;  %2079 = vmatprep.subr.bf16.mxu0 %v2905_v62  ;;  %v2979_v61 = vld [vmem:[%s3961_s1 + $0x8b0] ss:$8 sps:$4 sm:$0xff]   ;;  %v2984_v62 = vld [vmem:[%s3961_s1 + $0x8a4] ss:$8 sps:$4 sm:$0xff]  }
  0xe9   :  { %2120 = vmatprep.subr.bf16.mxu1 %v2908_v63  ;;  %v2982_v63 = vld [vmem:[%s3961_s1 + $0x8a0] ss:$8 sps:$4 sm:$0xff]  }
  0xeb   :  { %2080 = vmatpush2.bf16.msra.mxu0 %v2903_v0  ;;  %v2987_v0 = vld [vmem:[%s3961_s1 + $0x894] ss:$8 sps:$4 sm:$0xff]  }
  0xec   :  { %2121 = vmatpush2.bf16.msra.mxu1 %v2906_v1  ;;  %2081 = vmatprep.subr.bf16.mxu0 %v2911_v2  ;;  %v2985_v1 = vld [vmem:[%s3961_s1 + $0x890] ss:$8 sps:$4 sm:$0xff]   ;;  %v2990_v2 = vld [vmem:[%s3961_s1 + $0x884] ss:$8 sps:$4 sm:$0xff]  }
  0xed   :  { %2122 = vmatprep.subr.bf16.mxu1 %v2914_v3  ;;  %v2988_v3 = vld [vmem:[%s3961_s1 + $0x880] ss:$8 sps:$4 sm:$0xff]  }
  0xef   :  { %2082 = vmatpush2.bf16.msra.mxu0 %v2909_v4  ;;  %v2251_v4 = vcombine.low %v3843_v18, %v3843_v18 }
  0xf0   :  { %2123 = vmatpush2.bf16.msra.mxu1 %v2912_v5  ;;  %2083 = vmatprep.subr.bf16.mxu0 %v2917_v6 }
  0xf1   :  { %2124 = vmatprep.subr.bf16.mxu1 %v2920_v7 }
  0xf3   :  { %2084 = vmatpush2.bf16.msra.mxu0 %v2915_v8 }
  0xf4   :  { %2125 = vmatpush2.bf16.msra.mxu1 %v2918_v9  ;;  %2085 = vmatprep.subr.bf16.mxu0 %v2923_v10 }
  0xf5   :  { %2126 = vmatprep.subr.bf16.mxu1 %v2926_v11 }
  0xf7   :  { %2086 = vmatpush2.bf16.msra.mxu0 %v2921_v12 }
  0xf8   :  { %2127 = vmatpush2.bf16.msra.mxu1 %v2924_v13  ;;  %2087 = vmatprep.subr.bf16.mxu0 %v2929_v14 }
  0xf9   :  { %2128 = vmatprep.subr.bf16.mxu1 %v2932_v15 }
  0xfb   :  { %2088 = vmatpush2.bf16.msra.mxu0 %v2927_v16 }
  0xfc   :  { %2129 = vmatpush2.bf16.msra.mxu1 %v2930_v17  ;;  %2089 = vmatprep.subr.bf16.mxu0 %v2935_v19 }
  0xfd   :  { %2130 = vmatprep.subr.bf16.mxu1 %v2938_v21 }
  0xff   :  { %2090 = vmatpush2.bf16.msra.mxu0 %v2933_v22 }
 0x100   :  { %2131 = vmatpush2.bf16.msra.mxu1 %v2936_v23  ;;  %2141 = vmatprep.subr.bf16.mxu0 %v2943_v26 }
 0x102   :  { %v1847_v31 = vpop.f32.mrf.mxu0  ;;  %2092 = vmatmul.mubr.bf16.vlgmr.msra.gmra.mxu0 %v2247_v20 }
 0x103   :  { %v1888_v32 = vpop.f32.mrf.mxu1  ;;  %2133 = vmatmul.mubr.bf16.vlgmr.msra.gmra.mxu1 %v2249_v27  ;;  %2142 = vmatpush1.bf16.msra.mxu0 %v2941_v28 }
 0x104   :  { %v3857_v24 = vadd.f32 %v1888_v32, %v1847_v31  ;;  %2173 = vmatprep.mubr.bf16.mxu0 %v2252_v29  ;;  %v1849_v33 = vpop.f32.mrf.mxu0  ;;  %2143 = vmatprep.subr.bf16.mxu0 %v2948_v30 }
 0x105   :  { %v1890_v34 = vpop.f32.mrf.mxu1 }
 0x106   :  { %v3865_v36 = vadd.f32 %v1890_v34, %v1849_v33  ;;  %v1851_v37 = vpop.f32.mrf.mxu0 }
 0x107   :  { %v1892_v38 = vpop.f32.mrf.mxu1  ;;  %2144 = vmatpush1.bf16.msra.mxu0 %v2946_v25 }
 0x108   :  { %v1852_v40 = vpop.f32.mrf.mxu0  ;;  %2145 = vmatprep.subr.bf16.mxu0 %v2951_v35 }
 0x109   :  { %v1893_v42 = vpop.f32.mrf.mxu1 }
 0x10b   :  { %2146 = vmatpush1.bf16.msra.mxu0 %v2949_v39 }
 0x10c   :  { %2147 = vmatprep.subr.bf16.mxu0 %v2954_v41 }
 0x10f   :  { %2148 = vmatpush1.bf16.msra.mxu0 %v2952_v43 }
 0x110   :  { %2149 = vmatprep.subr.bf16.mxu0 %v2957_v44 }
 0x113   :  { %2150 = vmatpush1.bf16.msra.mxu0 %v2955_v45 }
 0x114   :  { %2151 = vmatprep.subr.bf16.mxu0 %v2960_v46 }
 0x117   :  { %2152 = vmatpush1.bf16.msra.mxu0 %v2958_v47 }
 0x118   :  { %2153 = vmatprep.subr.bf16.mxu0 %v2963_v48 }
 0x11b   :  { %2154 = vmatpush1.bf16.msra.mxu0 %v2961_v49 }
 0x11c   :  { %2155 = vmatprep.subr.bf16.mxu0 %v2966_v50 }
 0x11f   :  { %2156 = vmatpush1.bf16.msra.mxu0 %v2964_v51 }
 0x120   :  { %2157 = vmatprep.subr.bf16.mxu0 %v2969_v52  ;;  %v2217_v52 = vlaneseq }
 0x123   :  { %2158 = vmatpush2.bf16.msra.mxu0 %v2967_v53 }
 0x124   :  { %2159 = vmatprep.subr.bf16.mxu0 %v2972_v54 }
 0x127   :  { %2160 = vmatpush2.bf16.msra.mxu0 %v2970_v55 }
 0x128   :  { %2161 = vmatprep.subr.bf16.mxu0 %v2975_v56 }
 0x12b   :  { %2162 = vmatpush2.bf16.msra.mxu0 %v2973_v57 }
 0x12c   :  { %2163 = vmatprep.subr.bf16.mxu0 %v2978_v58 }
 0x12f   :  { %2164 = vmatpush2.bf16.msra.mxu0 %v2976_v59 }
 0x130   :  { %2165 = vmatprep.subr.bf16.mxu0 %v2981_v60 }
 0x133   :  { %2166 = vmatpush2.bf16.msra.mxu0 %v2979_v61 }
 0x134   :  { %2167 = vmatprep.subr.bf16.mxu0 %v2984_v62  ;;  %v2218_v62 = vshrl.u32 %v2217_v52, 7 }
 0x136   :  { %vm2220_vm0 = vcmp.eq.s32.totalorder %v2218_v62, 1  ;;  %vm2219_vm1 = vcmp.eq.s32.totalorder %v2218_v62, 0 }
 0x137   :  { %2168 = vmatpush2.bf16.msra.mxu0 %v2982_v63 }
 0x138   :  { %2169 = vmatprep.subr.bf16.mxu0 %v2987_v0 }
 0x13b   :  { %2170 = vmatpush2.bf16.msra.mxu0 %v2985_v1 }
 0x13c   :  { %2171 = vmatprep.subr.bf16.mxu0 %v2990_v2 }
 0x13f   :  { %2172 = vmatpush2.bf16.msra.mxu0 %v2988_v3 }
 0x142   :  { %v1929_v5 = vpop.f32.mrf.mxu0  ;;  %2174 = vmatmul.mubr.bf16.vlgmr.msra.gmra.mxu0 %v2251_v4 }
 0x143   :  { %v1970_v6 = vpop.f32.mrf.mxu1  ;;  %v1930_v7 = vadd.f32 %v1929_v5, %v3857_v24 }
 0x144   :  { %v1931_v8 = vpop.f32.mrf.mxu0 }
 0x145   :  { %v1972_v9 = vpop.f32.mrf.mxu1  ;;  %v1932_v10 = vadd.f32 %v1931_v8, %v3865_v36  ;;  %v1971_v11 = vadd.f32 %v1970_v6, %v1930_v7 }
 0x146   :  { %v1933_v12 = vpop.f32.mrf.mxu0 }
 0x147   :  { %v1974_v13 = vpop.f32.mrf.mxu1  ;;  %v1973_v14 = vadd.f32 %v1972_v9, %v1932_v10 }
 0x148   :  { %v1934_v15 = vpop.f32.mrf.mxu0 }
 0x149   :  { %v1975_v16 = vpop.f32.mrf.mxu1 }
 0x182   :  { %v2011_v17 = vpop.f32.mrf.mxu0 }
 0x183   :  { %v2052_v19 = vpop.f32.mrf.mxu1  ;;  %v2012_v21 = vadd.f32 %v2011_v17, %v1971_v11 }
 0x184   :  { %v2013_v22 = vpop.f32.mrf.mxu0 }
 0x185   :  { %v2054_v23 = vpop.f32.mrf.mxu1  ;;  %v2014_v26 = vadd.f32 %v2013_v22, %v1973_v14  ;;  %v2053_v18 = vadd.f32 %v2052_v19, %v2012_v21 }
 0x186   :  { %v2015_v20 = vpop.f32.mrf.mxu0 }
 0x187   :  { %v2056_v27 = vpop.f32.mrf.mxu1  ;;  %v2055_v28 = vadd.f32 %v2054_v23, %v2014_v26 }
 0x188   :  { %v2016_v29 = vpop.f32.mrf.mxu0 }
 0x189   :  { %v2057_v30 = vpop.f32.mrf.mxu1 }
 0x1c2   :  { %v2093_v31 = vpop.f32.mrf.mxu0 }
 0x1c3   :  { %v2134_v32 = vpop.f32.mrf.mxu1  ;;  %v2094_v37 = vadd.f32 %v2093_v31, %v2053_v18 }
 0x1c4   :  { %v2095_v24 = vpop.f32.mrf.mxu0 }
 0x1c5   :  { %v2136_v25 = vpop.f32.mrf.mxu1  ;;  %v2096_v38 = vadd.f32 %v2095_v24, %v2055_v28  ;;  %v2135_v39 = vadd.f32 %v2134_v32, %v2094_v37 }
 0x1c6   :  { %v2097_v33 = vpop.f32.mrf.mxu0 }
 0x1c7   :  { %v2138_v34 = vpop.f32.mrf.mxu1  ;;  %v2137_v41 = vadd.f32 %v2136_v25, %v2096_v38 }
 0x1c8   :  { %v2098_v35 = vpop.f32.mrf.mxu0 }
 0x1c9   :  { %v2139_v36 = vpop.f32.mrf.mxu1 }
 0x202   :  { %v2175_v40 = vpop.f32.mrf.mxu0 }
 0x203   :  { %v2176_v42 = vadd.f32 %v2175_v40, %v2135_v39 }
 0x204   :  { %v2177_v43 = vpop.f32.mrf.mxu0 }
 0x205   :  { %v2191_v44 = vrot.slane %v2176_v42, 4  ;;  %v2203_v45 = vmul.f32 %v2176_v42, %v2176_v42  ;;  %v2178_v46 = vadd.f32 %v2177_v43, %v2137_v41 }
 0x206   :  { %v2179_v47 = vpop.f32.mrf.mxu0 }
 0x207   :  { %v2192_v48 = vadd.f32 %v2191_v44, %v2176_v42  ;;  %v2205_v49 = vrot.slane %v2203_v45, 4  ;;  %v2542_v50 = vpack.c.bf16 %v2178_v46, %v2176_v42  ;;  %v2197_v51 = vrot.slane %v2178_v46, 4 }
 0x208   :  { %v2204_v53 = vmul.f32 %v2178_v46, %v2178_v46  ;;  %v2180_v54 = vpop.f32.mrf.mxu0 }
 0x209   :  { %v2193_v55 = vrot.slane %v2192_v48, 2  ;;  %v2206_v56 = vadd.f32 %v2205_v49, %v2203_v45  ;;  %2190 = vst [vmem:[%s3963_s2] sm:$0xff] %v2542_v50  ;;  %v2198_v57 = vadd.f32 %v2197_v51, %v2178_v46 }
 0x20a   :  { %v2211_v58 = vrot.slane %v2204_v53, 4 }
 0x20b   :  { %v2194_v59 = vadd.f32 %v2193_v55, %v2192_v48  ;;  %v2207_v60 = vrot.slane %v2206_v56, 2  ;;  %v2199_v61 = vrot.slane %v2198_v57, 2 }
 0x20c   :  { %v2212_v63 = vadd.f32 %v2211_v58, %v2204_v53 }
 0x20d   :  { %v2208_v0 = vadd.f32 %v2207_v60, %v2206_v56  ;;  %v2200_v1 = vadd.f32 %v2199_v61, %v2198_v57  ;;  %v2195_v2 = vrot.slane %v2194_v59, 1 }
 0x20e   :  { %v2213_v3 = vrot.slane %v2212_v63, 2 }
 0x20f   :  { %v2209_v4 = vrot.slane %v2208_v0, 1  ;;  %v2201_v7 = vrot.slane %v2200_v1, 1  ;;  %v2196_v8 = vadd.f32 %v2195_v2, %v2194_v59 }
 0x210   :  { %v2214_v5 = vadd.f32 %v2213_v3, %v2212_v63 }
 0x211   :  { %v2210_v6 = vadd.f32 %v2209_v4, %v2208_v0  ;;  %v2202_v13 = vadd.f32 %v2201_v7, %v2200_v1 }
 0x212   :  { %v2215_v9 = vrot.slane %v2214_v5, 1 }
 0x213   :  { %v2221_v10 = vsel %vm2220_vm0, %v2210_v6, 0.0 }
 0x214   :  { %v2223_v11 = vsel %vm2219_vm1, %v2196_v8, %v2221_v10  ;;  %v2216_v12 = vadd.f32 %v2215_v9, %v2214_v5 }
 0x215   :  { %2225 = vst [vmem:[%s3964_s3] sm:$0xff] %v2223_v11 }
 0x216   :  { %v2222_v14 = vsel %vm2220_vm0, %v2216_v12, 0.0 }
 0x217   :  { %v2224_v15 = vsel %vm2219_vm1, %v2202_v13, %v2222_v14 }
 0x218   :  { %2226 = vst [vmem:[%s3964_s3 + $0x8] sm:$0xff] %v2224_v15 }

</bundles_post_ra>
